<compile_context>
chip_gen: v6e
topology: v6e:2x2x1
jax: 0.10.0
libtpu: 0.0.40
codegen_flags: <defaults>
</compile_context>

<pallas_src>
import numpy as np
import jax
import jax.numpy as jnp
from jax import lax
from jax.experimental import pallas as pl
from jax.experimental.pallas import tpu as pltpu


KSIZE = 7
PAD = 3


def _frame_geometry(H, W):
    Hp, Wp = H + 2 * PAD, W + 2 * PAD
    F = ((Hp * Wp + 127) // 128) * 128          # lane-dense frame length
    return Hp, Wp, F


# ----------------------------------------------------------------------------
# Fused two-stage kernel
# ----------------------------------------------------------------------------
def _make_fused_kernel(N, Cin, Cout, H, W, E):
    Hp, Wp, F = _frame_geometry(H, W)
    halo_shift = PAD * Wp + PAD                 # valid block -> padded position

    def dw7x7(x, dw_ref):
        # x: (R, F) frame activations; dw_ref: (49, R, 1) per-row tap weights.
        acc = x * dw_ref[0]
        for kh in range(KSIZE):
            for kw in range(KSIZE):
                t = kh * KSIZE + kw
                if t == 0:
                    continue
                delta = kh * Wp + kw
                # roll by F - delta  ==  fetch from lane (i + delta); wrapped
                # lanes only land on invalid output positions.
                acc = acc + pltpu.roll(x, F - delta, axis=1) * dw_ref[t]
        return acc

    def stage(x, mask, dw_ref, dwb, P, gamma, beta, w_exp, b_exp, w_prj, b_prj):
        y = dw7x7(x, dw_ref) + dwb                                   # (R, F)
        # BatchNorm: biased batch statistics over the N*H*W valid positions.
        mu = jnp.sum(jnp.dot(P, y * mask, preferred_element_type=jnp.float32),
                     axis=-1, keepdims=True)                         # (R, 1)
        d = y - mu
        var = jnp.sum(jnp.dot(P, d * d * mask,
                              preferred_element_type=jnp.float32),
                      axis=-1, keepdims=True)                        # (R, 1)
        scale = gamma * lax.rsqrt(var + 1e-5)
        shift = beta - mu * scale
        y = y * scale + shift                                        # one FMA
        # 1x1 conv (expand) + ReLU, 1x1 conv (project): block-diag MXU matmuls.
        h = jnp.dot(w_exp, y, preferred_element_type=jnp.float32) + b_exp
        h = jnp.maximum(h, 0.0)
        return jnp.dot(w_prj, h, preferred_element_type=jnp.float32) + b_prj

    def kernel(x_ref, mask_ref,
               dw1_ref, dwb1_ref, p1_ref, g1_ref, be1_ref,
               w1_ref, b1_ref, w2_ref, b2_ref,
               dw2_ref, dwb2_ref, p2_ref, g2_ref, be2_ref,
               w3_ref, b3_ref, w4_ref, b4_ref,
               o_ref):
        mask = mask_ref[...]
        z1 = stage(x_ref[...], mask, dw1_ref, dwb1_ref[...], p1_ref[...],
                   g1_ref[...], be1_ref[...], w1_ref[...], b1_ref[...],
                   w2_ref[...], b2_ref[...])
        # In-kernel zero padding for stage 2: drop invalid lanes and shift the
        # valid block into the halo offset of the frame.
        x2 = pltpu.roll(z1 * mask, halo_shift, axis=1)
        z2 = stage(x2, mask, dw2_ref, dwb2_ref[...], p2_ref[...],
                   g2_ref[...], be2_ref[...], w3_ref[...], b3_ref[...],
                   w4_ref[...], b4_ref[...])
        o_ref[...] = z2                                              # (R2, F)

    return kernel


# ----------------------------------------------------------------------------
# Wrapper: layout plumbing + single pallas_call
# ----------------------------------------------------------------------------
@jax.jit
def encoder_block_forward(x_nchw, params):
    x_nchw = x_nchw.astype(jnp.float32)
    N, Cin, H, W = x_nchw.shape
    E = params["pw1_w"].shape[1]
    Cout = params["pw2_w"].shape[1]
    Hp, Wp, F = _frame_geometry(H, W)
    R1, R2 = N * Cin, N * Cout

    # NCHW -> zero-padded, flattened, lane-dense frame (R1, F)
    xpad = jnp.pad(x_nchw, ((0, 0), (0, 0), (PAD, PAD), (PAD, PAD)))
    x_frame = jnp.pad(xpad.reshape(R1, Hp * Wp), ((0, 0), (0, F - Hp * Wp)))

    # Constant valid-position mask over the frame (output (h, w) lives at
    # lane h*Wp + w).
    mask_np = np.zeros((1, F), np.float32)
    for h in range(H):
        mask_np[0, h * Wp:h * Wp + W] = 1.0
    mask = jnp.asarray(mask_np)

    inv_count = 1.0 / float(N * H * W)

    def rows(v, C):          # per-channel (1, C) -> per-(n, c)-row column
        return jnp.tile(v.reshape(1, C), (N, 1)).reshape(N * C, 1)

    def dw_rows(w49, C):     # (49, C) -> (49, N*C, 1)
        return jnp.tile(w49[:, None, :], (1, N, 1)).reshape(49, N * C, 1)

    def chan_avg(C):         # channel-averaging matrix over (n, c) rows
        return jnp.kron(jnp.ones((N, N), jnp.float32),
                        jnp.eye(C, dtype=jnp.float32)) * inv_count

    def block_diag(w):       # (C_in, C_out) -> block-diag (N*C_out, N*C_in)
        return jnp.kron(jnp.eye(N, dtype=jnp.float32), w.T)

    args = (
        x_frame, mask,
        # stage 1
        dw_rows(params["dw1_w"], Cin), rows(params["dw1_b"], Cin),
        chan_avg(Cin), rows(params["bn1_g"], Cin), rows(params["bn1_b"], Cin),
        block_diag(params["pw1_w"]), rows(params["pw1_b"], E),
        block_diag(params["pw2_w"]), rows(params["pw2_b"], Cout),
        # stage 2
        dw_rows(params["dw2_w"], Cout), rows(params["dw2_b"], Cout),
        chan_avg(Cout), rows(params["bn2_g"], Cout), rows(params["bn2_b"], Cout),
        block_diag(params["pw3_w"]), rows(params["pw3_b"], E),
        block_diag(params["pw4_w"]), rows(params["pw4_b"], Cout),
    )

    vspec = pl.BlockSpec(memory_space=pltpu.MemorySpace.VMEM)
    kernel = _make_fused_kernel(N, Cin, Cout, H, W, E)
    # NOTE: whole problem (<1 MiB) is VMEM-resident in a single invocation.
    # For larger shapes, tile the frame over a "parallel" grid axis so the
    # work shards across v7x's 2 TensorCores and stays under its 64 MiB VMEM.
    out_frame = pl.pallas_call(
        kernel,
        out_shape=jax.ShapeDtypeStruct((R2, F), jnp.float32),
        in_specs=[vspec] * len(args),
        out_specs=vspec,
    )(*args)

    # lane-dense frame -> NCHW
    out = out_frame[:, :Hp * Wp].reshape(N, Cout, Hp, Wp)[:, :, :H, :W]
    return out


# ----------------------------------------------------------------------------
# Deterministic parameter init (synthetic; shapes follow the nn.Module)
# ----------------------------------------------------------------------------
def init_params(key, in_channels, out_channels):
    E = 4 * out_channels
    ks = jax.random.split(key, 16)
    n = lambda k, shape, scale=0.1: scale * jax.random.normal(k, shape, jnp.float32)
    return {
        # stage 1
        "dw1_w": n(ks[0], (49, in_channels)),
        "dw1_b": n(ks[1], (1, in_channels)),
        "bn1_g": 1.0 + n(ks[2], (1, in_channels), 0.05),
        "bn1_b": n(ks[3], (1, in_channels), 0.05),
        "pw1_w": n(ks[4], (in_channels, E)),
        "pw1_b": n(ks[5], (1, E)),
        "pw2_w": n(ks[6], (E, out_channels)),
        "pw2_b": n(ks[7], (1, out_channels)),
        # stage 2
        "dw2_w": n(ks[8], (49, out_channels)),
        "dw2_b": n(ks[9], (1, out_channels)),
        "bn2_g": 1.0 + n(ks[10], (1, out_channels), 0.05),
        "bn2_b": n(ks[11], (1, out_channels), 0.05),
        "pw3_w": n(ks[12], (out_channels, E)),
        "pw3_b": n(ks[13], (1, E)),
        "pw4_w": n(ks[14], (E, out_channels)),
        "pw4_b": n(ks[15], (1, out_channels)),
    }


# ----------------------------------------------------------------------------
# Pure-JAX reference (for correctness check only)
# ----------------------------------------------------------------------------
def reference_forward(x_nchw, p):
    x = jnp.transpose(x_nchw, (0, 2, 3, 1)).astype(jnp.float32)

    def dwconv(x, w49, b):
        C = x.shape[-1]
        w = w49.reshape(7, 7, 1, C)
        y = jax.lax.conv_general_dilated(
            x, w, (1, 1), [(3, 3), (3, 3)],
            dimension_numbers=("NHWC", "HWIO", "NHWC"),
            feature_group_count=C)
        return y + b.reshape(1, 1, 1, C)

    def bn(x, g, beta):
        mu = jnp.mean(x, axis=(0, 1, 2), keepdims=True)
        var = jnp.mean((x - mu) ** 2, axis=(0, 1, 2), keepdims=True)
        return (x - mu) / jnp.sqrt(var + 1e-5) * g.reshape(1, 1, 1, -1) \
            + beta.reshape(1, 1, 1, -1)

    def pw(x, w, b):
        return jnp.einsum("nhwc,cd->nhwd", x, w) + b.reshape(1, 1, 1, -1)

    y = dwconv(x, p["dw1_w"], p["dw1_b"])
    y = bn(y, p["bn1_g"], p["bn1_b"])
    y = jnp.maximum(pw(y, p["pw1_w"], p["pw1_b"]), 0.0)
    y = pw(y, p["pw2_w"], p["pw2_b"])
    y = dwconv(y, p["dw2_w"], p["dw2_b"])
    y = bn(y, p["bn2_g"], p["bn2_b"])
    y = jnp.maximum(pw(y, p["pw3_w"], p["pw3_b"]), 0.0)
    y = pw(y, p["pw4_w"], p["pw4_b"])
    return jnp.transpose(y, (0, 3, 1, 2))


# ----------------------------------------------------------------------------
if __name__ == "__main__":
    N, Cin, Cout, H, W = 2, 4, 8, 16, 16

    key = jax.random.PRNGKey(0)
    k_x, k_p = jax.random.split(key)
    x = jax.random.normal(k_x, (N, Cin, H, W), jnp.float32)
    params = init_params(k_p, Cin, Cout)

    out = encoder_block_forward(x, params)
    out = jax.block_until_ready(out)
    assert out.shape == (N, Cout, H, W), out.shape

    ref = jax.block_until_ready(reference_forward(x, params))
    np.testing.assert_allclose(np.asarray(out), np.asarray(ref),
                               rtol=2e-3, atol=2e-3)

    print("KERNEL_OK")
</pallas_src>

<mosaic_0001>
module attributes {stable_mosaic.version = 11 : i64} {
  func.func @kernel(%arg0: memref<8x512xf32, #tpu.memory_space<vmem>>, %arg1: memref<1x512xf32, #tpu.memory_space<vmem>>, %arg2: memref<49x8x1xf32, #tpu.memory_space<vmem>>, %arg3: memref<8x1xf32, #tpu.memory_space<vmem>>, %arg4: memref<8x8xf32, #tpu.memory_space<vmem>>, %arg5: memref<8x1xf32, #tpu.memory_space<vmem>>, %arg6: memref<8x1xf32, #tpu.memory_space<vmem>>, %arg7: memref<64x8xf32, #tpu.memory_space<vmem>>, %arg8: memref<64x1xf32, #tpu.memory_space<vmem>>, %arg9: memref<16x64xf32, #tpu.memory_space<vmem>>, %arg10: memref<16x1xf32, #tpu.memory_space<vmem>>, %arg11: memref<49x16x1xf32, #tpu.memory_space<vmem>>, %arg12: memref<16x1xf32, #tpu.memory_space<vmem>>, %arg13: memref<16x16xf32, #tpu.memory_space<vmem>>, %arg14: memref<16x1xf32, #tpu.memory_space<vmem>>, %arg15: memref<16x1xf32, #tpu.memory_space<vmem>>, %arg16: memref<64x16xf32, #tpu.memory_space<vmem>>, %arg17: memref<64x1xf32, #tpu.memory_space<vmem>>, %arg18: memref<16x64xf32, #tpu.memory_space<vmem>>, %arg19: memref<16x1xf32, #tpu.memory_space<vmem>>, %arg20: memref<16x512xf32, #tpu.memory_space<vmem>>) attributes {dimension_semantics = [], scalar_prefetch = 0 : i64, scratch_operands = 0 : i64, tpu.core_type = #tpu.core_type<tc>} {
    %c0 = arith.constant 0 : index
    %c0_0 = arith.constant 0 : index
    %0 = vector.load %arg1[%c0, %c0_0] : memref<1x512xf32, #tpu.memory_space<vmem>>, vector<1x512xf32>
    %c0_1 = arith.constant 0 : index
    %c0_2 = arith.constant 0 : index
    %1 = vector.load %arg0[%c0_1, %c0_2] : memref<8x512xf32, #tpu.memory_space<vmem>>, vector<8x512xf32>
    %c0_3 = arith.constant 0 : index
    %c0_4 = arith.constant 0 : index
    %2 = vector.load %arg3[%c0_3, %c0_4] : memref<8x1xf32, #tpu.memory_space<vmem>>, vector<8x1xf32>
    %c0_5 = arith.constant 0 : index
    %c0_6 = arith.constant 0 : index
    %3 = vector.load %arg4[%c0_5, %c0_6] : memref<8x8xf32, #tpu.memory_space<vmem>>, vector<8x8xf32>
    %c0_7 = arith.constant 0 : index
    %c0_8 = arith.constant 0 : index
    %4 = vector.load %arg5[%c0_7, %c0_8] : memref<8x1xf32, #tpu.memory_space<vmem>>, vector<8x1xf32>
    %c0_9 = arith.constant 0 : index
    %c0_10 = arith.constant 0 : index
    %5 = vector.load %arg6[%c0_9, %c0_10] : memref<8x1xf32, #tpu.memory_space<vmem>>, vector<8x1xf32>
    %c0_11 = arith.constant 0 : index
    %c0_12 = arith.constant 0 : index
    %6 = vector.load %arg7[%c0_11, %c0_12] : memref<64x8xf32, #tpu.memory_space<vmem>>, vector<64x8xf32>
    %c0_13 = arith.constant 0 : index
    %c0_14 = arith.constant 0 : index
    %7 = vector.load %arg8[%c0_13, %c0_14] : memref<64x1xf32, #tpu.memory_space<vmem>>, vector<64x1xf32>
    %c0_15 = arith.constant 0 : index
    %c0_16 = arith.constant 0 : index
    %8 = vector.load %arg9[%c0_15, %c0_16] : memref<16x64xf32, #tpu.memory_space<vmem>>, vector<16x64xf32>
    %c0_17 = arith.constant 0 : index
    %c0_18 = arith.constant 0 : index
    %9 = vector.load %arg10[%c0_17, %c0_18] : memref<16x1xf32, #tpu.memory_space<vmem>>, vector<16x1xf32>
    %c0_19 = arith.constant 0 : index
    %c0_20 = arith.constant 0 : index
    %c0_21 = arith.constant 0 : index
    %10 = vector.load %arg2[%c0_19, %c0_20, %c0_21] : memref<49x8x1xf32, #tpu.memory_space<vmem>>, vector<1x8x1xf32>
    %11 = vector.shape_cast %10 : vector<1x8x1xf32> to vector<8x1xf32>
    %12 = vector.broadcast %11 : vector<8x1xf32> to vector<8x512xf32>
    %13 = arith.mulf %1, %12 : vector<8x512xf32>
    %c511_i32 = arith.constant 511 : i32
    %14 = tpu.dynamic_rotate %1 by %c511_i32 dim 1 : vector<8x512xf32>, i32 -> vector<8x512xf32>
    %c1 = arith.constant 1 : index
    %c0_22 = arith.constant 0 : index
    %c0_23 = arith.constant 0 : index
    %15 = vector.load %arg2[%c1, %c0_22, %c0_23] : memref<49x8x1xf32, #tpu.memory_space<vmem>>, vector<1x8x1xf32>
    %16 = vector.shape_cast %15 : vector<1x8x1xf32> to vector<8x1xf32>
    %17 = vector.broadcast %16 : vector<8x1xf32> to vector<8x512xf32>
    %18 = arith.mulf %14, %17 : vector<8x512xf32>
    %19 = arith.addf %13, %18 : vector<8x512xf32>
    %c510_i32 = arith.constant 510 : i32
    %20 = tpu.dynamic_rotate %1 by %c510_i32 dim 1 : vector<8x512xf32>, i32 -> vector<8x512xf32>
    %c2 = arith.constant 2 : index
    %c0_24 = arith.constant 0 : index
    %c0_25 = arith.constant 0 : index
    %21 = vector.load %arg2[%c2, %c0_24, %c0_25] : memref<49x8x1xf32, #tpu.memory_space<vmem>>, vector<1x8x1xf32>
    %22 = vector.shape_cast %21 : vector<1x8x1xf32> to vector<8x1xf32>
    %23 = vector.broadcast %22 : vector<8x1xf32> to vector<8x512xf32>
    %24 = arith.mulf %20, %23 : vector<8x512xf32>
    %25 = arith.addf %19, %24 : vector<8x512xf32>
    %c509_i32 = arith.constant 509 : i32
    %26 = tpu.dynamic_rotate %1 by %c509_i32 dim 1 : vector<8x512xf32>, i32 -> vector<8x512xf32>
    %c3 = arith.constant 3 : index
    %c0_26 = arith.constant 0 : index
    %c0_27 = arith.constant 0 : index
    %27 = vector.load %arg2[%c3, %c0_26, %c0_27] : memref<49x8x1xf32, #tpu.memory_space<vmem>>, vector<1x8x1xf32>
    %28 = vector.shape_cast %27 : vector<1x8x1xf32> to vector<8x1xf32>
    %29 = vector.broadcast %28 : vector<8x1xf32> to vector<8x512xf32>
    %30 = arith.mulf %26, %29 : vector<8x512xf32>
    %31 = arith.addf %25, %30 : vector<8x512xf32>
    %c508_i32 = arith.constant 508 : i32
    %32 = tpu.dynamic_rotate %1 by %c508_i32 dim 1 : vector<8x512xf32>, i32 -> vector<8x512xf32>
    %c4 = arith.constant 4 : index
    %c0_28 = arith.constant 0 : index
    %c0_29 = arith.constant 0 : index
    %33 = vector.load %arg2[%c4, %c0_28, %c0_29] : memref<49x8x1xf32, #tpu.memory_space<vmem>>, vector<1x8x1xf32>
    %34 = vector.shape_cast %33 : vector<1x8x1xf32> to vector<8x1xf32>
    %35 = vector.broadcast %34 : vector<8x1xf32> to vector<8x512xf32>
    %36 = arith.mulf %32, %35 : vector<8x512xf32>
    %37 = arith.addf %31, %36 : vector<8x512xf32>
    %c507_i32 = arith.constant 507 : i32
    %38 = tpu.dynamic_rotate %1 by %c507_i32 dim 1 : vector<8x512xf32>, i32 -> vector<8x512xf32>
    %c5 = arith.constant 5 : index
    %c0_30 = arith.constant 0 : index
    %c0_31 = arith.constant 0 : index
    %39 = vector.load %arg2[%c5, %c0_30, %c0_31] : memref<49x8x1xf32, #tpu.memory_space<vmem>>, vector<1x8x1xf32>
    %40 = vector.shape_cast %39 : vector<1x8x1xf32> to vector<8x1xf32>
    %41 = vector.broadcast %40 : vector<8x1xf32> to vector<8x512xf32>
    %42 = arith.mulf %38, %41 : vector<8x512xf32>
    %43 = arith.addf %37, %42 : vector<8x512xf32>
    %c506_i32 = arith.constant 506 : i32
    %44 = tpu.dynamic_rotate %1 by %c506_i32 dim 1 : vector<8x512xf32>, i32 -> vector<8x512xf32>
    %c6 = arith.constant 6 : index
    %c0_32 = arith.constant 0 : index
    %c0_33 = arith.constant 0 : index
    %45 = vector.load %arg2[%c6, %c0_32, %c0_33] : memref<49x8x1xf32, #tpu.memory_space<vmem>>, vector<1x8x1xf32>
    %46 = vector.shape_cast %45 : vector<1x8x1xf32> to vector<8x1xf32>
    %47 = vector.broadcast %46 : vector<8x1xf32> to vector<8x512xf32>
    %48 = arith.mulf %44, %47 : vector<8x512xf32>
    %49 = arith.addf %43, %48 : vector<8x512xf32>
    %c490_i32 = arith.constant 490 : i32
    %50 = tpu.dynamic_rotate %1 by %c490_i32 dim 1 : vector<8x512xf32>, i32 -> vector<8x512xf32>
    %c7 = arith.constant 7 : index
    %c0_34 = arith.constant 0 : index
    %c0_35 = arith.constant 0 : index
    %51 = vector.load %arg2[%c7, %c0_34, %c0_35] : memref<49x8x1xf32, #tpu.memory_space<vmem>>, vector<1x8x1xf32>
    %52 = vector.shape_cast %51 : vector<1x8x1xf32> to vector<8x1xf32>
    %53 = vector.broadcast %52 : vector<8x1xf32> to vector<8x512xf32>
    %54 = arith.mulf %50, %53 : vector<8x512xf32>
    %55 = arith.addf %49, %54 : vector<8x512xf32>
    %c489_i32 = arith.constant 489 : i32
    %56 = tpu.dynamic_rotate %1 by %c489_i32 dim 1 : vector<8x512xf32>, i32 -> vector<8x512xf32>
    %c8 = arith.constant 8 : index
    %c0_36 = arith.constant 0 : index
    %c0_37 = arith.constant 0 : index
    %57 = vector.load %arg2[%c8, %c0_36, %c0_37] : memref<49x8x1xf32, #tpu.memory_space<vmem>>, vector<1x8x1xf32>
    %58 = vector.shape_cast %57 : vector<1x8x1xf32> to vector<8x1xf32>
    %59 = vector.broadcast %58 : vector<8x1xf32> to vector<8x512xf32>
    %60 = arith.mulf %56, %59 : vector<8x512xf32>
    %61 = arith.addf %55, %60 : vector<8x512xf32>
    %c488_i32 = arith.constant 488 : i32
    %62 = tpu.dynamic_rotate %1 by %c488_i32 dim 1 : vector<8x512xf32>, i32 -> vector<8x512xf32>
    %c9 = arith.constant 9 : index
    %c0_38 = arith.constant 0 : index
    %c0_39 = arith.constant 0 : index
    %63 = vector.load %arg2[%c9, %c0_38, %c0_39] : memref<49x8x1xf32, #tpu.memory_space<vmem>>, vector<1x8x1xf32>
    %64 = vector.shape_cast %63 : vector<1x8x1xf32> to vector<8x1xf32>
    %65 = vector.broadcast %64 : vector<8x1xf32> to vector<8x512xf32>
    %66 = arith.mulf %62, %65 : vector<8x512xf32>
    %67 = arith.addf %61, %66 : vector<8x512xf32>
    %c487_i32 = arith.constant 487 : i32
    %68 = tpu.dynamic_rotate %1 by %c487_i32 dim 1 : vector<8x512xf32>, i32 -> vector<8x512xf32>
    %c10 = arith.constant 10 : index
    %c0_40 = arith.constant 0 : index
    %c0_41 = arith.constant 0 : index
    %69 = vector.load %arg2[%c10, %c0_40, %c0_41] : memref<49x8x1xf32, #tpu.memory_space<vmem>>, vector<1x8x1xf32>
    %70 = vector.shape_cast %69 : vector<1x8x1xf32> to vector<8x1xf32>
    %71 = vector.broadcast %70 : vector<8x1xf32> to vector<8x512xf32>
    %72 = arith.mulf %68, %71 : vector<8x512xf32>
    %73 = arith.addf %67, %72 : vector<8x512xf32>
    %c486_i32 = arith.constant 486 : i32
    %74 = tpu.dynamic_rotate %1 by %c486_i32 dim 1 : vector<8x512xf32>, i32 -> vector<8x512xf32>
    %c11 = arith.constant 11 : index
    %c0_42 = arith.constant 0 : index
    %c0_43 = arith.constant 0 : index
    %75 = vector.load %arg2[%c11, %c0_42, %c0_43] : memref<49x8x1xf32, #tpu.memory_space<vmem>>, vector<1x8x1xf32>
    %76 = vector.shape_cast %75 : vector<1x8x1xf32> to vector<8x1xf32>
    %77 = vector.broadcast %76 : vector<8x1xf32> to vector<8x512xf32>
    %78 = arith.mulf %74, %77 : vector<8x512xf32>
    %79 = arith.addf %73, %78 : vector<8x512xf32>
    %c485_i32 = arith.constant 485 : i32
    %80 = tpu.dynamic_rotate %1 by %c485_i32 dim 1 : vector<8x512xf32>, i32 -> vector<8x512xf32>
    %c12 = arith.constant 12 : index
    %c0_44 = arith.constant 0 : index
    %c0_45 = arith.constant 0 : index
    %81 = vector.load %arg2[%c12, %c0_44, %c0_45] : memref<49x8x1xf32, #tpu.memory_space<vmem>>, vector<1x8x1xf32>
    %82 = vector.shape_cast %81 : vector<1x8x1xf32> to vector<8x1xf32>
    %83 = vector.broadcast %82 : vector<8x1xf32> to vector<8x512xf32>
    %84 = arith.mulf %80, %83 : vector<8x512xf32>
    %85 = arith.addf %79, %84 : vector<8x512xf32>
    %c484_i32 = arith.constant 484 : i32
    %86 = tpu.dynamic_rotate %1 by %c484_i32 dim 1 : vector<8x512xf32>, i32 -> vector<8x512xf32>
    %c13 = arith.constant 13 : index
    %c0_46 = arith.constant 0 : index
    %c0_47 = arith.constant 0 : index
    %87 = vector.load %arg2[%c13, %c0_46, %c0_47] : memref<49x8x1xf32, #tpu.memory_space<vmem>>, vector<1x8x1xf32>
    %88 = vector.shape_cast %87 : vector<1x8x1xf32> to vector<8x1xf32>
    %89 = vector.broadcast %88 : vector<8x1xf32> to vector<8x512xf32>
    %90 = arith.mulf %86, %89 : vector<8x512xf32>
    %91 = arith.addf %85, %90 : vector<8x512xf32>
    %c468_i32 = arith.constant 468 : i32
    %92 = tpu.dynamic_rotate %1 by %c468_i32 dim 1 : vector<8x512xf32>, i32 -> vector<8x512xf32>
    %c14 = arith.constant 14 : index
    %c0_48 = arith.constant 0 : index
    %c0_49 = arith.constant 0 : index
    %93 = vector.load %arg2[%c14, %c0_48, %c0_49] : memref<49x8x1xf32, #tpu.memory_space<vmem>>, vector<1x8x1xf32>
    %94 = vector.shape_cast %93 : vector<1x8x1xf32> to vector<8x1xf32>
    %95 = vector.broadcast %94 : vector<8x1xf32> to vector<8x512xf32>
    %96 = arith.mulf %92, %95 : vector<8x512xf32>
    %97 = arith.addf %91, %96 : vector<8x512xf32>
    %c467_i32 = arith.constant 467 : i32
    %98 = tpu.dynamic_rotate %1 by %c467_i32 dim 1 : vector<8x512xf32>, i32 -> vector<8x512xf32>
    %c15 = arith.constant 15 : index
    %c0_50 = arith.constant 0 : index
    %c0_51 = arith.constant 0 : index
    %99 = vector.load %arg2[%c15, %c0_50, %c0_51] : memref<49x8x1xf32, #tpu.memory_space<vmem>>, vector<1x8x1xf32>
    %100 = vector.shape_cast %99 : vector<1x8x1xf32> to vector<8x1xf32>
    %101 = vector.broadcast %100 : vector<8x1xf32> to vector<8x512xf32>
    %102 = arith.mulf %98, %101 : vector<8x512xf32>
    %103 = arith.addf %97, %102 : vector<8x512xf32>
    %c466_i32 = arith.constant 466 : i32
    %104 = tpu.dynamic_rotate %1 by %c466_i32 dim 1 : vector<8x512xf32>, i32 -> vector<8x512xf32>
    %c16 = arith.constant 16 : index
    %c0_52 = arith.constant 0 : index
    %c0_53 = arith.constant 0 : index
    %105 = vector.load %arg2[%c16, %c0_52, %c0_53] : memref<49x8x1xf32, #tpu.memory_space<vmem>>, vector<1x8x1xf32>
    %106 = vector.shape_cast %105 : vector<1x8x1xf32> to vector<8x1xf32>
    %107 = vector.broadcast %106 : vector<8x1xf32> to vector<8x512xf32>
    %108 = arith.mulf %104, %107 : vector<8x512xf32>
    %109 = arith.addf %103, %108 : vector<8x512xf32>
    %c465_i32 = arith.constant 465 : i32
    %110 = tpu.dynamic_rotate %1 by %c465_i32 dim 1 : vector<8x512xf32>, i32 -> vector<8x512xf32>
    %c17 = arith.constant 17 : index
    %c0_54 = arith.constant 0 : index
    %c0_55 = arith.constant 0 : index
    %111 = vector.load %arg2[%c17, %c0_54, %c0_55] : memref<49x8x1xf32, #tpu.memory_space<vmem>>, vector<1x8x1xf32>
    %112 = vector.shape_cast %111 : vector<1x8x1xf32> to vector<8x1xf32>
    %113 = vector.broadcast %112 : vector<8x1xf32> to vector<8x512xf32>
    %114 = arith.mulf %110, %113 : vector<8x512xf32>
    %115 = arith.addf %109, %114 : vector<8x512xf32>
    %c464_i32 = arith.constant 464 : i32
    %116 = tpu.dynamic_rotate %1 by %c464_i32 dim 1 : vector<8x512xf32>, i32 -> vector<8x512xf32>
    %c18 = arith.constant 18 : index
    %c0_56 = arith.constant 0 : index
    %c0_57 = arith.constant 0 : index
    %117 = vector.load %arg2[%c18, %c0_56, %c0_57] : memref<49x8x1xf32, #tpu.memory_space<vmem>>, vector<1x8x1xf32>
    %118 = vector.shape_cast %117 : vector<1x8x1xf32> to vector<8x1xf32>
    %119 = vector.broadcast %118 : vector<8x1xf32> to vector<8x512xf32>
    %120 = arith.mulf %116, %119 : vector<8x512xf32>
    %121 = arith.addf %115, %120 : vector<8x512xf32>
    %c463_i32 = arith.constant 463 : i32
    %122 = tpu.dynamic_rotate %1 by %c463_i32 dim 1 : vector<8x512xf32>, i32 -> vector<8x512xf32>
    %c19 = arith.constant 19 : index
    %c0_58 = arith.constant 0 : index
    %c0_59 = arith.constant 0 : index
    %123 = vector.load %arg2[%c19, %c0_58, %c0_59] : memref<49x8x1xf32, #tpu.memory_space<vmem>>, vector<1x8x1xf32>
    %124 = vector.shape_cast %123 : vector<1x8x1xf32> to vector<8x1xf32>
    %125 = vector.broadcast %124 : vector<8x1xf32> to vector<8x512xf32>
    %126 = arith.mulf %122, %125 : vector<8x512xf32>
    %127 = arith.addf %121, %126 : vector<8x512xf32>
    %c462_i32 = arith.constant 462 : i32
    %128 = tpu.dynamic_rotate %1 by %c462_i32 dim 1 : vector<8x512xf32>, i32 -> vector<8x512xf32>
    %c20 = arith.constant 20 : index
    %c0_60 = arith.constant 0 : index
    %c0_61 = arith.constant 0 : index
    %129 = vector.load %arg2[%c20, %c0_60, %c0_61] : memref<49x8x1xf32, #tpu.memory_space<vmem>>, vector<1x8x1xf32>
    %130 = vector.shape_cast %129 : vector<1x8x1xf32> to vector<8x1xf32>
    %131 = vector.broadcast %130 : vector<8x1xf32> to vector<8x512xf32>
    %132 = arith.mulf %128, %131 : vector<8x512xf32>
    %133 = arith.addf %127, %132 : vector<8x512xf32>
    %c446_i32 = arith.constant 446 : i32
    %134 = tpu.dynamic_rotate %1 by %c446_i32 dim 1 : vector<8x512xf32>, i32 -> vector<8x512xf32>
    %c21 = arith.constant 21 : index
    %c0_62 = arith.constant 0 : index
    %c0_63 = arith.constant 0 : index
    %135 = vector.load %arg2[%c21, %c0_62, %c0_63] : memref<49x8x1xf32, #tpu.memory_space<vmem>>, vector<1x8x1xf32>
    %136 = vector.shape_cast %135 : vector<1x8x1xf32> to vector<8x1xf32>
    %137 = vector.broadcast %136 : vector<8x1xf32> to vector<8x512xf32>
    %138 = arith.mulf %134, %137 : vector<8x512xf32>
    %139 = arith.addf %133, %138 : vector<8x512xf32>
    %c445_i32 = arith.constant 445 : i32
    %140 = tpu.dynamic_rotate %1 by %c445_i32 dim 1 : vector<8x512xf32>, i32 -> vector<8x512xf32>
    %c22 = arith.constant 22 : index
    %c0_64 = arith.constant 0 : index
    %c0_65 = arith.constant 0 : index
    %141 = vector.load %arg2[%c22, %c0_64, %c0_65] : memref<49x8x1xf32, #tpu.memory_space<vmem>>, vector<1x8x1xf32>
    %142 = vector.shape_cast %141 : vector<1x8x1xf32> to vector<8x1xf32>
    %143 = vector.broadcast %142 : vector<8x1xf32> to vector<8x512xf32>
    %144 = arith.mulf %140, %143 : vector<8x512xf32>
    %145 = arith.addf %139, %144 : vector<8x512xf32>
    %c444_i32 = arith.constant 444 : i32
    %146 = tpu.dynamic_rotate %1 by %c444_i32 dim 1 : vector<8x512xf32>, i32 -> vector<8x512xf32>
    %c23 = arith.constant 23 : index
    %c0_66 = arith.constant 0 : index
    %c0_67 = arith.constant 0 : index
    %147 = vector.load %arg2[%c23, %c0_66, %c0_67] : memref<49x8x1xf32, #tpu.memory_space<vmem>>, vector<1x8x1xf32>
    %148 = vector.shape_cast %147 : vector<1x8x1xf32> to vector<8x1xf32>
    %149 = vector.broadcast %148 : vector<8x1xf32> to vector<8x512xf32>
    %150 = arith.mulf %146, %149 : vector<8x512xf32>
    %151 = arith.addf %145, %150 : vector<8x512xf32>
    %c443_i32 = arith.constant 443 : i32
    %152 = tpu.dynamic_rotate %1 by %c443_i32 dim 1 : vector<8x512xf32>, i32 -> vector<8x512xf32>
    %c24 = arith.constant 24 : index
    %c0_68 = arith.constant 0 : index
    %c0_69 = arith.constant 0 : index
    %153 = vector.load %arg2[%c24, %c0_68, %c0_69] : memref<49x8x1xf32, #tpu.memory_space<vmem>>, vector<1x8x1xf32>
    %154 = vector.shape_cast %153 : vector<1x8x1xf32> to vector<8x1xf32>
    %155 = vector.broadcast %154 : vector<8x1xf32> to vector<8x512xf32>
    %156 = arith.mulf %152, %155 : vector<8x512xf32>
    %157 = arith.addf %151, %156 : vector<8x512xf32>
    %c442_i32 = arith.constant 442 : i32
    %158 = tpu.dynamic_rotate %1 by %c442_i32 dim 1 : vector<8x512xf32>, i32 -> vector<8x512xf32>
    %c25 = arith.constant 25 : index
    %c0_70 = arith.constant 0 : index
    %c0_71 = arith.constant 0 : index
    %159 = vector.load %arg2[%c25, %c0_70, %c0_71] : memref<49x8x1xf32, #tpu.memory_space<vmem>>, vector<1x8x1xf32>
    %160 = vector.shape_cast %159 : vector<1x8x1xf32> to vector<8x1xf32>
    %161 = vector.broadcast %160 : vector<8x1xf32> to vector<8x512xf32>
    %162 = arith.mulf %158, %161 : vector<8x512xf32>
    %163 = arith.addf %157, %162 : vector<8x512xf32>
    %c441_i32 = arith.constant 441 : i32
    %164 = tpu.dynamic_rotate %1 by %c441_i32 dim 1 : vector<8x512xf32>, i32 -> vector<8x512xf32>
    %c26 = arith.constant 26 : index
    %c0_72 = arith.constant 0 : index
    %c0_73 = arith.constant 0 : index
    %165 = vector.load %arg2[%c26, %c0_72, %c0_73] : memref<49x8x1xf32, #tpu.memory_space<vmem>>, vector<1x8x1xf32>
    %166 = vector.shape_cast %165 : vector<1x8x1xf32> to vector<8x1xf32>
    %167 = vector.broadcast %166 : vector<8x1xf32> to vector<8x512xf32>
    %168 = arith.mulf %164, %167 : vector<8x512xf32>
    %169 = arith.addf %163, %168 : vector<8x512xf32>
    %c440_i32 = arith.constant 440 : i32
    %170 = tpu.dynamic_rotate %1 by %c440_i32 dim 1 : vector<8x512xf32>, i32 -> vector<8x512xf32>
    %c27 = arith.constant 27 : index
    %c0_74 = arith.constant 0 : index
    %c0_75 = arith.constant 0 : index
    %171 = vector.load %arg2[%c27, %c0_74, %c0_75] : memref<49x8x1xf32, #tpu.memory_space<vmem>>, vector<1x8x1xf32>
    %172 = vector.shape_cast %171 : vector<1x8x1xf32> to vector<8x1xf32>
    %173 = vector.broadcast %172 : vector<8x1xf32> to vector<8x512xf32>
    %174 = arith.mulf %170, %173 : vector<8x512xf32>
    %175 = arith.addf %169, %174 : vector<8x512xf32>
    %c424_i32 = arith.constant 424 : i32
    %176 = tpu.dynamic_rotate %1 by %c424_i32 dim 1 : vector<8x512xf32>, i32 -> vector<8x512xf32>
    %c28 = arith.constant 28 : index
    %c0_76 = arith.constant 0 : index
    %c0_77 = arith.constant 0 : index
    %177 = vector.load %arg2[%c28, %c0_76, %c0_77] : memref<49x8x1xf32, #tpu.memory_space<vmem>>, vector<1x8x1xf32>
    %178 = vector.shape_cast %177 : vector<1x8x1xf32> to vector<8x1xf32>
    %179 = vector.broadcast %178 : vector<8x1xf32> to vector<8x512xf32>
    %180 = arith.mulf %176, %179 : vector<8x512xf32>
    %181 = arith.addf %175, %180 : vector<8x512xf32>
    %c423_i32 = arith.constant 423 : i32
    %182 = tpu.dynamic_rotate %1 by %c423_i32 dim 1 : vector<8x512xf32>, i32 -> vector<8x512xf32>
    %c29 = arith.constant 29 : index
    %c0_78 = arith.constant 0 : index
    %c0_79 = arith.constant 0 : index
    %183 = vector.load %arg2[%c29, %c0_78, %c0_79] : memref<49x8x1xf32, #tpu.memory_space<vmem>>, vector<1x8x1xf32>
    %184 = vector.shape_cast %183 : vector<1x8x1xf32> to vector<8x1xf32>
    %185 = vector.broadcast %184 : vector<8x1xf32> to vector<8x512xf32>
    %186 = arith.mulf %182, %185 : vector<8x512xf32>
    %187 = arith.addf %181, %186 : vector<8x512xf32>
    %c422_i32 = arith.constant 422 : i32
    %188 = tpu.dynamic_rotate %1 by %c422_i32 dim 1 : vector<8x512xf32>, i32 -> vector<8x512xf32>
    %c30 = arith.constant 30 : index
    %c0_80 = arith.constant 0 : index
    %c0_81 = arith.constant 0 : index
    %189 = vector.load %arg2[%c30, %c0_80, %c0_81] : memref<49x8x1xf32, #tpu.memory_space<vmem>>, vector<1x8x1xf32>
    %190 = vector.shape_cast %189 : vector<1x8x1xf32> to vector<8x1xf32>
    %191 = vector.broadcast %190 : vector<8x1xf32> to vector<8x512xf32>
    %192 = arith.mulf %188, %191 : vector<8x512xf32>
    %193 = arith.addf %187, %192 : vector<8x512xf32>
    %c421_i32 = arith.constant 421 : i32
    %194 = tpu.dynamic_rotate %1 by %c421_i32 dim 1 : vector<8x512xf32>, i32 -> vector<8x512xf32>
    %c31 = arith.constant 31 : index
    %c0_82 = arith.constant 0 : index
    %c0_83 = arith.constant 0 : index
    %195 = vector.load %arg2[%c31, %c0_82, %c0_83] : memref<49x8x1xf32, #tpu.memory_space<vmem>>, vector<1x8x1xf32>
    %196 = vector.shape_cast %195 : vector<1x8x1xf32> to vector<8x1xf32>
    %197 = vector.broadcast %196 : vector<8x1xf32> to vector<8x512xf32>
    %198 = arith.mulf %194, %197 : vector<8x512xf32>
    %199 = arith.addf %193, %198 : vector<8x512xf32>
    %c420_i32 = arith.constant 420 : i32
    %200 = tpu.dynamic_rotate %1 by %c420_i32 dim 1 : vector<8x512xf32>, i32 -> vector<8x512xf32>
    %c32 = arith.constant 32 : index
    %c0_84 = arith.constant 0 : index
    %c0_85 = arith.constant 0 : index
    %201 = vector.load %arg2[%c32, %c0_84, %c0_85] : memref<49x8x1xf32, #tpu.memory_space<vmem>>, vector<1x8x1xf32>
    %202 = vector.shape_cast %201 : vector<1x8x1xf32> to vector<8x1xf32>
    %203 = vector.broadcast %202 : vector<8x1xf32> to vector<8x512xf32>
    %204 = arith.mulf %200, %203 : vector<8x512xf32>
    %205 = arith.addf %199, %204 : vector<8x512xf32>
    %c419_i32 = arith.constant 419 : i32
    %206 = tpu.dynamic_rotate %1 by %c419_i32 dim 1 : vector<8x512xf32>, i32 -> vector<8x512xf32>
    %c33 = arith.constant 33 : index
    %c0_86 = arith.constant 0 : index
    %c0_87 = arith.constant 0 : index
    %207 = vector.load %arg2[%c33, %c0_86, %c0_87] : memref<49x8x1xf32, #tpu.memory_space<vmem>>, vector<1x8x1xf32>
    %208 = vector.shape_cast %207 : vector<1x8x1xf32> to vector<8x1xf32>
    %209 = vector.broadcast %208 : vector<8x1xf32> to vector<8x512xf32>
    %210 = arith.mulf %206, %209 : vector<8x512xf32>
    %211 = arith.addf %205, %210 : vector<8x512xf32>
    %c418_i32 = arith.constant 418 : i32
    %212 = tpu.dynamic_rotate %1 by %c418_i32 dim 1 : vector<8x512xf32>, i32 -> vector<8x512xf32>
    %c34 = arith.constant 34 : index
    %c0_88 = arith.constant 0 : index
    %c0_89 = arith.constant 0 : index
    %213 = vector.load %arg2[%c34, %c0_88, %c0_89] : memref<49x8x1xf32, #tpu.memory_space<vmem>>, vector<1x8x1xf32>
    %214 = vector.shape_cast %213 : vector<1x8x1xf32> to vector<8x1xf32>
    %215 = vector.broadcast %214 : vector<8x1xf32> to vector<8x512xf32>
    %216 = arith.mulf %212, %215 : vector<8x512xf32>
    %217 = arith.addf %211, %216 : vector<8x512xf32>
    %c402_i32 = arith.constant 402 : i32
    %218 = tpu.dynamic_rotate %1 by %c402_i32 dim 1 : vector<8x512xf32>, i32 -> vector<8x512xf32>
    %c35 = arith.constant 35 : index
    %c0_90 = arith.constant 0 : index
    %c0_91 = arith.constant 0 : index
    %219 = vector.load %arg2[%c35, %c0_90, %c0_91] : memref<49x8x1xf32, #tpu.memory_space<vmem>>, vector<1x8x1xf32>
    %220 = vector.shape_cast %219 : vector<1x8x1xf32> to vector<8x1xf32>
    %221 = vector.broadcast %220 : vector<8x1xf32> to vector<8x512xf32>
    %222 = arith.mulf %218, %221 : vector<8x512xf32>
    %223 = arith.addf %217, %222 : vector<8x512xf32>
    %c401_i32 = arith.constant 401 : i32
    %224 = tpu.dynamic_rotate %1 by %c401_i32 dim 1 : vector<8x512xf32>, i32 -> vector<8x512xf32>
    %c36 = arith.constant 36 : index
    %c0_92 = arith.constant 0 : index
    %c0_93 = arith.constant 0 : index
    %225 = vector.load %arg2[%c36, %c0_92, %c0_93] : memref<49x8x1xf32, #tpu.memory_space<vmem>>, vector<1x8x1xf32>
    %226 = vector.shape_cast %225 : vector<1x8x1xf32> to vector<8x1xf32>
    %227 = vector.broadcast %226 : vector<8x1xf32> to vector<8x512xf32>
    %228 = arith.mulf %224, %227 : vector<8x512xf32>
    %229 = arith.addf %223, %228 : vector<8x512xf32>
    %c400_i32 = arith.constant 400 : i32
    %230 = tpu.dynamic_rotate %1 by %c400_i32 dim 1 : vector<8x512xf32>, i32 -> vector<8x512xf32>
    %c37 = arith.constant 37 : index
    %c0_94 = arith.constant 0 : index
    %c0_95 = arith.constant 0 : index
    %231 = vector.load %arg2[%c37, %c0_94, %c0_95] : memref<49x8x1xf32, #tpu.memory_space<vmem>>, vector<1x8x1xf32>
    %232 = vector.shape_cast %231 : vector<1x8x1xf32> to vector<8x1xf32>
    %233 = vector.broadcast %232 : vector<8x1xf32> to vector<8x512xf32>
    %234 = arith.mulf %230, %233 : vector<8x512xf32>
    %235 = arith.addf %229, %234 : vector<8x512xf32>
    %c399_i32 = arith.constant 399 : i32
    %236 = tpu.dynamic_rotate %1 by %c399_i32 dim 1 : vector<8x512xf32>, i32 -> vector<8x512xf32>
    %c38 = arith.constant 38 : index
    %c0_96 = arith.constant 0 : index
    %c0_97 = arith.constant 0 : index
    %237 = vector.load %arg2[%c38, %c0_96, %c0_97] : memref<49x8x1xf32, #tpu.memory_space<vmem>>, vector<1x8x1xf32>
    %238 = vector.shape_cast %237 : vector<1x8x1xf32> to vector<8x1xf32>
    %239 = vector.broadcast %238 : vector<8x1xf32> to vector<8x512xf32>
    %240 = arith.mulf %236, %239 : vector<8x512xf32>
    %241 = arith.addf %235, %240 : vector<8x512xf32>
    %c398_i32 = arith.constant 398 : i32
    %242 = tpu.dynamic_rotate %1 by %c398_i32 dim 1 : vector<8x512xf32>, i32 -> vector<8x512xf32>
    %c39 = arith.constant 39 : index
    %c0_98 = arith.constant 0 : index
    %c0_99 = arith.constant 0 : index
    %243 = vector.load %arg2[%c39, %c0_98, %c0_99] : memref<49x8x1xf32, #tpu.memory_space<vmem>>, vector<1x8x1xf32>
    %244 = vector.shape_cast %243 : vector<1x8x1xf32> to vector<8x1xf32>
    %245 = vector.broadcast %244 : vector<8x1xf32> to vector<8x512xf32>
    %246 = arith.mulf %242, %245 : vector<8x512xf32>
    %247 = arith.addf %241, %246 : vector<8x512xf32>
    %c397_i32 = arith.constant 397 : i32
    %248 = tpu.dynamic_rotate %1 by %c397_i32 dim 1 : vector<8x512xf32>, i32 -> vector<8x512xf32>
    %c40 = arith.constant 40 : index
    %c0_100 = arith.constant 0 : index
    %c0_101 = arith.constant 0 : index
    %249 = vector.load %arg2[%c40, %c0_100, %c0_101] : memref<49x8x1xf32, #tpu.memory_space<vmem>>, vector<1x8x1xf32>
    %250 = vector.shape_cast %249 : vector<1x8x1xf32> to vector<8x1xf32>
    %251 = vector.broadcast %250 : vector<8x1xf32> to vector<8x512xf32>
    %252 = arith.mulf %248, %251 : vector<8x512xf32>
    %253 = arith.addf %247, %252 : vector<8x512xf32>
    %c396_i32 = arith.constant 396 : i32
    %254 = tpu.dynamic_rotate %1 by %c396_i32 dim 1 : vector<8x512xf32>, i32 -> vector<8x512xf32>
    %c41 = arith.constant 41 : index
    %c0_102 = arith.constant 0 : index
    %c0_103 = arith.constant 0 : index
    %255 = vector.load %arg2[%c41, %c0_102, %c0_103] : memref<49x8x1xf32, #tpu.memory_space<vmem>>, vector<1x8x1xf32>
    %256 = vector.shape_cast %255 : vector<1x8x1xf32> to vector<8x1xf32>
    %257 = vector.broadcast %256 : vector<8x1xf32> to vector<8x512xf32>
    %258 = arith.mulf %254, %257 : vector<8x512xf32>
    %259 = arith.addf %253, %258 : vector<8x512xf32>
    %c380_i32 = arith.constant 380 : i32
    %260 = tpu.dynamic_rotate %1 by %c380_i32 dim 1 : vector<8x512xf32>, i32 -> vector<8x512xf32>
    %c42 = arith.constant 42 : index
    %c0_104 = arith.constant 0 : index
    %c0_105 = arith.constant 0 : index
    %261 = vector.load %arg2[%c42, %c0_104, %c0_105] : memref<49x8x1xf32, #tpu.memory_space<vmem>>, vector<1x8x1xf32>
    %262 = vector.shape_cast %261 : vector<1x8x1xf32> to vector<8x1xf32>
    %263 = vector.broadcast %262 : vector<8x1xf32> to vector<8x512xf32>
    %264 = arith.mulf %260, %263 : vector<8x512xf32>
    %265 = arith.addf %259, %264 : vector<8x512xf32>
    %c379_i32 = arith.constant 379 : i32
    %266 = tpu.dynamic_rotate %1 by %c379_i32 dim 1 : vector<8x512xf32>, i32 -> vector<8x512xf32>
    %c43 = arith.constant 43 : index
    %c0_106 = arith.constant 0 : index
    %c0_107 = arith.constant 0 : index
    %267 = vector.load %arg2[%c43, %c0_106, %c0_107] : memref<49x8x1xf32, #tpu.memory_space<vmem>>, vector<1x8x1xf32>
    %268 = vector.shape_cast %267 : vector<1x8x1xf32> to vector<8x1xf32>
    %269 = vector.broadcast %268 : vector<8x1xf32> to vector<8x512xf32>
    %270 = arith.mulf %266, %269 : vector<8x512xf32>
    %271 = arith.addf %265, %270 : vector<8x512xf32>
    %c378_i32 = arith.constant 378 : i32
    %272 = tpu.dynamic_rotate %1 by %c378_i32 dim 1 : vector<8x512xf32>, i32 -> vector<8x512xf32>
    %c44 = arith.constant 44 : index
    %c0_108 = arith.constant 0 : index
    %c0_109 = arith.constant 0 : index
    %273 = vector.load %arg2[%c44, %c0_108, %c0_109] : memref<49x8x1xf32, #tpu.memory_space<vmem>>, vector<1x8x1xf32>
    %274 = vector.shape_cast %273 : vector<1x8x1xf32> to vector<8x1xf32>
    %275 = vector.broadcast %274 : vector<8x1xf32> to vector<8x512xf32>
    %276 = arith.mulf %272, %275 : vector<8x512xf32>
    %277 = arith.addf %271, %276 : vector<8x512xf32>
    %c377_i32 = arith.constant 377 : i32
    %278 = tpu.dynamic_rotate %1 by %c377_i32 dim 1 : vector<8x512xf32>, i32 -> vector<8x512xf32>
    %c45 = arith.constant 45 : index
    %c0_110 = arith.constant 0 : index
    %c0_111 = arith.constant 0 : index
    %279 = vector.load %arg2[%c45, %c0_110, %c0_111] : memref<49x8x1xf32, #tpu.memory_space<vmem>>, vector<1x8x1xf32>
    %280 = vector.shape_cast %279 : vector<1x8x1xf32> to vector<8x1xf32>
    %281 = vector.broadcast %280 : vector<8x1xf32> to vector<8x512xf32>
    %282 = arith.mulf %278, %281 : vector<8x512xf32>
    %283 = arith.addf %277, %282 : vector<8x512xf32>
    %c376_i32 = arith.constant 376 : i32
    %284 = tpu.dynamic_rotate %1 by %c376_i32 dim 1 : vector<8x512xf32>, i32 -> vector<8x512xf32>
    %c46 = arith.constant 46 : index
    %c0_112 = arith.constant 0 : index
    %c0_113 = arith.constant 0 : index
    %285 = vector.load %arg2[%c46, %c0_112, %c0_113] : memref<49x8x1xf32, #tpu.memory_space<vmem>>, vector<1x8x1xf32>
    %286 = vector.shape_cast %285 : vector<1x8x1xf32> to vector<8x1xf32>
    %287 = vector.broadcast %286 : vector<8x1xf32> to vector<8x512xf32>
    %288 = arith.mulf %284, %287 : vector<8x512xf32>
    %289 = arith.addf %283, %288 : vector<8x512xf32>
    %c375_i32 = arith.constant 375 : i32
    %290 = tpu.dynamic_rotate %1 by %c375_i32 dim 1 : vector<8x512xf32>, i32 -> vector<8x512xf32>
    %c47 = arith.constant 47 : index
    %c0_114 = arith.constant 0 : index
    %c0_115 = arith.constant 0 : index
    %291 = vector.load %arg2[%c47, %c0_114, %c0_115] : memref<49x8x1xf32, #tpu.memory_space<vmem>>, vector<1x8x1xf32>
    %292 = vector.shape_cast %291 : vector<1x8x1xf32> to vector<8x1xf32>
    %293 = vector.broadcast %292 : vector<8x1xf32> to vector<8x512xf32>
    %294 = arith.mulf %290, %293 : vector<8x512xf32>
    %295 = arith.addf %289, %294 : vector<8x512xf32>
    %c374_i32 = arith.constant 374 : i32
    %296 = tpu.dynamic_rotate %1 by %c374_i32 dim 1 : vector<8x512xf32>, i32 -> vector<8x512xf32>
    %c48 = arith.constant 48 : index
    %c0_116 = arith.constant 0 : index
    %c0_117 = arith.constant 0 : index
    %297 = vector.load %arg2[%c48, %c0_116, %c0_117] : memref<49x8x1xf32, #tpu.memory_space<vmem>>, vector<1x8x1xf32>
    %298 = vector.shape_cast %297 : vector<1x8x1xf32> to vector<8x1xf32>
    %299 = vector.broadcast %298 : vector<8x1xf32> to vector<8x512xf32>
    %300 = arith.mulf %296, %299 : vector<8x512xf32>
    %301 = arith.addf %295, %300 : vector<8x512xf32>
    %302 = vector.broadcast %2 : vector<8x1xf32> to vector<8x512xf32>
    %303 = arith.addf %301, %302 : vector<8x512xf32>
    %304 = vector.broadcast %0 : vector<1x512xf32> to vector<8x512xf32>
    %305 = arith.mulf %303, %304 : vector<8x512xf32>
    %cst = arith.constant dense<0.000000e+00> : vector<8x512xf32>
    %306 = tpu.matmul %3, %305, %cst {dimension_numbers = #tpu.dot_dimension_numbers<[1], [0], [0], [1], [0, 0, 1, 1], [], []>} : vector<8x8xf32>, vector<8x512xf32>, vector<8x512xf32> -> vector<8x512xf32>
    %cst_118 = arith.constant dense<0.000000e+00> : vector<8xf32>
    %307 = vector.multi_reduction <add>, %306, %cst_118 [1] : vector<8x512xf32> to vector<8xf32>
    %308 = vector.shape_cast %307 : vector<8xf32> to vector<8x1xf32>
    %309 = vector.broadcast %308 : vector<8x1xf32> to vector<8x512xf32>
    %310 = arith.subf %303, %309 : vector<8x512xf32>
    %311 = arith.mulf %310, %310 : vector<8x512xf32>
    %312 = vector.broadcast %0 : vector<1x512xf32> to vector<8x512xf32>
    %313 = arith.mulf %311, %312 : vector<8x512xf32>
    %cst_119 = arith.constant dense<0.000000e+00> : vector<8x512xf32>
    %314 = tpu.matmul %3, %313, %cst_119 {dimension_numbers = #tpu.dot_dimension_numbers<[1], [0], [0], [1], [0, 0, 1, 1], [], []>} : vector<8x8xf32>, vector<8x512xf32>, vector<8x512xf32> -> vector<8x512xf32>
    %cst_120 = arith.constant dense<0.000000e+00> : vector<8xf32>
    %315 = vector.multi_reduction <add>, %314, %cst_120 [1] : vector<8x512xf32> to vector<8xf32>
    %316 = vector.shape_cast %315 : vector<8xf32> to vector<8x1xf32>
    %cst_121 = arith.constant 9.99999974E-6 : f32
    %317 = vector.broadcast %cst_121 : f32 to vector<8x1xf32>
    %318 = arith.addf %316, %317 : vector<8x1xf32>
    %319 = math.rsqrt %318 : vector<8x1xf32>
    %320 = arith.mulf %4, %319 : vector<8x1xf32>
    %321 = arith.mulf %308, %320 : vector<8x1xf32>
    %322 = arith.subf %5, %321 : vector<8x1xf32>
    %323 = vector.broadcast %320 : vector<8x1xf32> to vector<8x512xf32>
    %324 = arith.mulf %303, %323 : vector<8x512xf32>
    %325 = vector.broadcast %322 : vector<8x1xf32> to vector<8x512xf32>
    %326 = arith.addf %324, %325 : vector<8x512xf32>
    %cst_122 = arith.constant dense<0.000000e+00> : vector<64x512xf32>
    %327 = tpu.matmul %6, %326, %cst_122 {dimension_numbers = #tpu.dot_dimension_numbers<[1], [0], [0], [1], [0, 0, 1, 1], [], []>} : vector<64x8xf32>, vector<8x512xf32>, vector<64x512xf32> -> vector<64x512xf32>
    %328 = vector.broadcast %7 : vector<64x1xf32> to vector<64x512xf32>
    %329 = arith.addf %327, %328 : vector<64x512xf32>
    %cst_123 = arith.constant 0.000000e+00 : f32
    %330 = vector.broadcast %cst_123 : f32 to vector<64x512xf32>
    %331 = arith.maximumf %329, %330 : vector<64x512xf32>
    %cst_124 = arith.constant dense<0.000000e+00> : vector<16x512xf32>
    %332 = tpu.matmul %8, %331, %cst_124 {dimension_numbers = #tpu.dot_dimension_numbers<[1], [0], [0], [1], [0, 0, 1, 1], [], []>} : vector<16x64xf32>, vector<64x512xf32>, vector<16x512xf32> -> vector<16x512xf32>
    %333 = vector.broadcast %9 : vector<16x1xf32> to vector<16x512xf32>
    %334 = arith.addf %332, %333 : vector<16x512xf32>
    %335 = vector.broadcast %0 : vector<1x512xf32> to vector<16x512xf32>
    %336 = arith.mulf %334, %335 : vector<16x512xf32>
    %c69_i32 = arith.constant 69 : i32
    %337 = tpu.dynamic_rotate %336 by %c69_i32 dim 1 : vector<16x512xf32>, i32 -> vector<16x512xf32>
    %c0_125 = arith.constant 0 : index
    %c0_126 = arith.constant 0 : index
    %338 = vector.load %arg12[%c0_125, %c0_126] : memref<16x1xf32, #tpu.memory_space<vmem>>, vector<16x1xf32>
    %c0_127 = arith.constant 0 : index
    %c0_128 = arith.constant 0 : index
    %339 = vector.load %arg13[%c0_127, %c0_128] : memref<16x16xf32, #tpu.memory_space<vmem>>, vector<16x16xf32>
    %c0_129 = arith.constant 0 : index
    %c0_130 = arith.constant 0 : index
    %340 = vector.load %arg14[%c0_129, %c0_130] : memref<16x1xf32, #tpu.memory_space<vmem>>, vector<16x1xf32>
    %c0_131 = arith.constant 0 : index
    %c0_132 = arith.constant 0 : index
    %341 = vector.load %arg15[%c0_131, %c0_132] : memref<16x1xf32, #tpu.memory_space<vmem>>, vector<16x1xf32>
    %c0_133 = arith.constant 0 : index
    %c0_134 = arith.constant 0 : index
    %342 = vector.load %arg16[%c0_133, %c0_134] : memref<64x16xf32, #tpu.memory_space<vmem>>, vector<64x16xf32>
    %c0_135 = arith.constant 0 : index
    %c0_136 = arith.constant 0 : index
    %343 = vector.load %arg17[%c0_135, %c0_136] : memref<64x1xf32, #tpu.memory_space<vmem>>, vector<64x1xf32>
    %c0_137 = arith.constant 0 : index
    %c0_138 = arith.constant 0 : index
    %344 = vector.load %arg18[%c0_137, %c0_138] : memref<16x64xf32, #tpu.memory_space<vmem>>, vector<16x64xf32>
    %c0_139 = arith.constant 0 : index
    %c0_140 = arith.constant 0 : index
    %345 = vector.load %arg19[%c0_139, %c0_140] : memref<16x1xf32, #tpu.memory_space<vmem>>, vector<16x1xf32>
    %c0_141 = arith.constant 0 : index
    %c0_142 = arith.constant 0 : index
    %c0_143 = arith.constant 0 : index
    %346 = vector.load %arg11[%c0_141, %c0_142, %c0_143] : memref<49x16x1xf32, #tpu.memory_space<vmem>>, vector<1x16x1xf32>
    %347 = vector.shape_cast %346 : vector<1x16x1xf32> to vector<16x1xf32>
    %348 = vector.broadcast %347 : vector<16x1xf32> to vector<16x512xf32>
    %349 = arith.mulf %337, %348 : vector<16x512xf32>
    %c511_i32_144 = arith.constant 511 : i32
    %350 = tpu.dynamic_rotate %337 by %c511_i32_144 dim 1 : vector<16x512xf32>, i32 -> vector<16x512xf32>
    %c1_145 = arith.constant 1 : index
    %c0_146 = arith.constant 0 : index
    %c0_147 = arith.constant 0 : index
    %351 = vector.load %arg11[%c1_145, %c0_146, %c0_147] : memref<49x16x1xf32, #tpu.memory_space<vmem>>, vector<1x16x1xf32>
    %352 = vector.shape_cast %351 : vector<1x16x1xf32> to vector<16x1xf32>
    %353 = vector.broadcast %352 : vector<16x1xf32> to vector<16x512xf32>
    %354 = arith.mulf %350, %353 : vector<16x512xf32>
    %355 = arith.addf %349, %354 : vector<16x512xf32>
    %c510_i32_148 = arith.constant 510 : i32
    %356 = tpu.dynamic_rotate %337 by %c510_i32_148 dim 1 : vector<16x512xf32>, i32 -> vector<16x512xf32>
    %c2_149 = arith.constant 2 : index
    %c0_150 = arith.constant 0 : index
    %c0_151 = arith.constant 0 : index
    %357 = vector.load %arg11[%c2_149, %c0_150, %c0_151] : memref<49x16x1xf32, #tpu.memory_space<vmem>>, vector<1x16x1xf32>
    %358 = vector.shape_cast %357 : vector<1x16x1xf32> to vector<16x1xf32>
    %359 = vector.broadcast %358 : vector<16x1xf32> to vector<16x512xf32>
    %360 = arith.mulf %356, %359 : vector<16x512xf32>
    %361 = arith.addf %355, %360 : vector<16x512xf32>
    %c509_i32_152 = arith.constant 509 : i32
    %362 = tpu.dynamic_rotate %337 by %c509_i32_152 dim 1 : vector<16x512xf32>, i32 -> vector<16x512xf32>
    %c3_153 = arith.constant 3 : index
    %c0_154 = arith.constant 0 : index
    %c0_155 = arith.constant 0 : index
    %363 = vector.load %arg11[%c3_153, %c0_154, %c0_155] : memref<49x16x1xf32, #tpu.memory_space<vmem>>, vector<1x16x1xf32>
    %364 = vector.shape_cast %363 : vector<1x16x1xf32> to vector<16x1xf32>
    %365 = vector.broadcast %364 : vector<16x1xf32> to vector<16x512xf32>
    %366 = arith.mulf %362, %365 : vector<16x512xf32>
    %367 = arith.addf %361, %366 : vector<16x512xf32>
    %c508_i32_156 = arith.constant 508 : i32
    %368 = tpu.dynamic_rotate %337 by %c508_i32_156 dim 1 : vector<16x512xf32>, i32 -> vector<16x512xf32>
    %c4_157 = arith.constant 4 : index
    %c0_158 = arith.constant 0 : index
    %c0_159 = arith.constant 0 : index
    %369 = vector.load %arg11[%c4_157, %c0_158, %c0_159] : memref<49x16x1xf32, #tpu.memory_space<vmem>>, vector<1x16x1xf32>
    %370 = vector.shape_cast %369 : vector<1x16x1xf32> to vector<16x1xf32>
    %371 = vector.broadcast %370 : vector<16x1xf32> to vector<16x512xf32>
    %372 = arith.mulf %368, %371 : vector<16x512xf32>
    %373 = arith.addf %367, %372 : vector<16x512xf32>
    %c507_i32_160 = arith.constant 507 : i32
    %374 = tpu.dynamic_rotate %337 by %c507_i32_160 dim 1 : vector<16x512xf32>, i32 -> vector<16x512xf32>
    %c5_161 = arith.constant 5 : index
    %c0_162 = arith.constant 0 : index
    %c0_163 = arith.constant 0 : index
    %375 = vector.load %arg11[%c5_161, %c0_162, %c0_163] : memref<49x16x1xf32, #tpu.memory_space<vmem>>, vector<1x16x1xf32>
    %376 = vector.shape_cast %375 : vector<1x16x1xf32> to vector<16x1xf32>
    %377 = vector.broadcast %376 : vector<16x1xf32> to vector<16x512xf32>
    %378 = arith.mulf %374, %377 : vector<16x512xf32>
    %379 = arith.addf %373, %378 : vector<16x512xf32>
    %c506_i32_164 = arith.constant 506 : i32
    %380 = tpu.dynamic_rotate %337 by %c506_i32_164 dim 1 : vector<16x512xf32>, i32 -> vector<16x512xf32>
    %c6_165 = arith.constant 6 : index
    %c0_166 = arith.constant 0 : index
    %c0_167 = arith.constant 0 : index
    %381 = vector.load %arg11[%c6_165, %c0_166, %c0_167] : memref<49x16x1xf32, #tpu.memory_space<vmem>>, vector<1x16x1xf32>
    %382 = vector.shape_cast %381 : vector<1x16x1xf32> to vector<16x1xf32>
    %383 = vector.broadcast %382 : vector<16x1xf32> to vector<16x512xf32>
    %384 = arith.mulf %380, %383 : vector<16x512xf32>
    %385 = arith.addf %379, %384 : vector<16x512xf32>
    %c490_i32_168 = arith.constant 490 : i32
    %386 = tpu.dynamic_rotate %337 by %c490_i32_168 dim 1 : vector<16x512xf32>, i32 -> vector<16x512xf32>
    %c7_169 = arith.constant 7 : index
    %c0_170 = arith.constant 0 : index
    %c0_171 = arith.constant 0 : index
    %387 = vector.load %arg11[%c7_169, %c0_170, %c0_171] : memref<49x16x1xf32, #tpu.memory_space<vmem>>, vector<1x16x1xf32>
    %388 = vector.shape_cast %387 : vector<1x16x1xf32> to vector<16x1xf32>
    %389 = vector.broadcast %388 : vector<16x1xf32> to vector<16x512xf32>
    %390 = arith.mulf %386, %389 : vector<16x512xf32>
    %391 = arith.addf %385, %390 : vector<16x512xf32>
    %c489_i32_172 = arith.constant 489 : i32
    %392 = tpu.dynamic_rotate %337 by %c489_i32_172 dim 1 : vector<16x512xf32>, i32 -> vector<16x512xf32>
    %c8_173 = arith.constant 8 : index
    %c0_174 = arith.constant 0 : index
    %c0_175 = arith.constant 0 : index
    %393 = vector.load %arg11[%c8_173, %c0_174, %c0_175] : memref<49x16x1xf32, #tpu.memory_space<vmem>>, vector<1x16x1xf32>
    %394 = vector.shape_cast %393 : vector<1x16x1xf32> to vector<16x1xf32>
    %395 = vector.broadcast %394 : vector<16x1xf32> to vector<16x512xf32>
    %396 = arith.mulf %392, %395 : vector<16x512xf32>
    %397 = arith.addf %391, %396 : vector<16x512xf32>
    %c488_i32_176 = arith.constant 488 : i32
    %398 = tpu.dynamic_rotate %337 by %c488_i32_176 dim 1 : vector<16x512xf32>, i32 -> vector<16x512xf32>
    %c9_177 = arith.constant 9 : index
    %c0_178 = arith.constant 0 : index
    %c0_179 = arith.constant 0 : index
    %399 = vector.load %arg11[%c9_177, %c0_178, %c0_179] : memref<49x16x1xf32, #tpu.memory_space<vmem>>, vector<1x16x1xf32>
    %400 = vector.shape_cast %399 : vector<1x16x1xf32> to vector<16x1xf32>
    %401 = vector.broadcast %400 : vector<16x1xf32> to vector<16x512xf32>
    %402 = arith.mulf %398, %401 : vector<16x512xf32>
    %403 = arith.addf %397, %402 : vector<16x512xf32>
    %c487_i32_180 = arith.constant 487 : i32
    %404 = tpu.dynamic_rotate %337 by %c487_i32_180 dim 1 : vector<16x512xf32>, i32 -> vector<16x512xf32>
    %c10_181 = arith.constant 10 : index
    %c0_182 = arith.constant 0 : index
    %c0_183 = arith.constant 0 : index
    %405 = vector.load %arg11[%c10_181, %c0_182, %c0_183] : memref<49x16x1xf32, #tpu.memory_space<vmem>>, vector<1x16x1xf32>
    %406 = vector.shape_cast %405 : vector<1x16x1xf32> to vector<16x1xf32>
    %407 = vector.broadcast %406 : vector<16x1xf32> to vector<16x512xf32>
    %408 = arith.mulf %404, %407 : vector<16x512xf32>
    %409 = arith.addf %403, %408 : vector<16x512xf32>
    %c486_i32_184 = arith.constant 486 : i32
    %410 = tpu.dynamic_rotate %337 by %c486_i32_184 dim 1 : vector<16x512xf32>, i32 -> vector<16x512xf32>
    %c11_185 = arith.constant 11 : index
    %c0_186 = arith.constant 0 : index
    %c0_187 = arith.constant 0 : index
    %411 = vector.load %arg11[%c11_185, %c0_186, %c0_187] : memref<49x16x1xf32, #tpu.memory_space<vmem>>, vector<1x16x1xf32>
    %412 = vector.shape_cast %411 : vector<1x16x1xf32> to vector<16x1xf32>
    %413 = vector.broadcast %412 : vector<16x1xf32> to vector<16x512xf32>
    %414 = arith.mulf %410, %413 : vector<16x512xf32>
    %415 = arith.addf %409, %414 : vector<16x512xf32>
    %c485_i32_188 = arith.constant 485 : i32
    %416 = tpu.dynamic_rotate %337 by %c485_i32_188 dim 1 : vector<16x512xf32>, i32 -> vector<16x512xf32>
    %c12_189 = arith.constant 12 : index
    %c0_190 = arith.constant 0 : index
    %c0_191 = arith.constant 0 : index
    %417 = vector.load %arg11[%c12_189, %c0_190, %c0_191] : memref<49x16x1xf32, #tpu.memory_space<vmem>>, vector<1x16x1xf32>
    %418 = vector.shape_cast %417 : vector<1x16x1xf32> to vector<16x1xf32>
    %419 = vector.broadcast %418 : vector<16x1xf32> to vector<16x512xf32>
    %420 = arith.mulf %416, %419 : vector<16x512xf32>
    %421 = arith.addf %415, %420 : vector<16x512xf32>
    %c484_i32_192 = arith.constant 484 : i32
    %422 = tpu.dynamic_rotate %337 by %c484_i32_192 dim 1 : vector<16x512xf32>, i32 -> vector<16x512xf32>
    %c13_193 = arith.constant 13 : index
    %c0_194 = arith.constant 0 : index
    %c0_195 = arith.constant 0 : index
    %423 = vector.load %arg11[%c13_193, %c0_194, %c0_195] : memref<49x16x1xf32, #tpu.memory_space<vmem>>, vector<1x16x1xf32>
    %424 = vector.shape_cast %423 : vector<1x16x1xf32> to vector<16x1xf32>
    %425 = vector.broadcast %424 : vector<16x1xf32> to vector<16x512xf32>
    %426 = arith.mulf %422, %425 : vector<16x512xf32>
    %427 = arith.addf %421, %426 : vector<16x512xf32>
    %c468_i32_196 = arith.constant 468 : i32
    %428 = tpu.dynamic_rotate %337 by %c468_i32_196 dim 1 : vector<16x512xf32>, i32 -> vector<16x512xf32>
    %c14_197 = arith.constant 14 : index
    %c0_198 = arith.constant 0 : index
    %c0_199 = arith.constant 0 : index
    %429 = vector.load %arg11[%c14_197, %c0_198, %c0_199] : memref<49x16x1xf32, #tpu.memory_space<vmem>>, vector<1x16x1xf32>
    %430 = vector.shape_cast %429 : vector<1x16x1xf32> to vector<16x1xf32>
    %431 = vector.broadcast %430 : vector<16x1xf32> to vector<16x512xf32>
    %432 = arith.mulf %428, %431 : vector<16x512xf32>
    %433 = arith.addf %427, %432 : vector<16x512xf32>
    %c467_i32_200 = arith.constant 467 : i32
    %434 = tpu.dynamic_rotate %337 by %c467_i32_200 dim 1 : vector<16x512xf32>, i32 -> vector<16x512xf32>
    %c15_201 = arith.constant 15 : index
    %c0_202 = arith.constant 0 : index
    %c0_203 = arith.constant 0 : index
    %435 = vector.load %arg11[%c15_201, %c0_202, %c0_203] : memref<49x16x1xf32, #tpu.memory_space<vmem>>, vector<1x16x1xf32>
    %436 = vector.shape_cast %435 : vector<1x16x1xf32> to vector<16x1xf32>
    %437 = vector.broadcast %436 : vector<16x1xf32> to vector<16x512xf32>
    %438 = arith.mulf %434, %437 : vector<16x512xf32>
    %439 = arith.addf %433, %438 : vector<16x512xf32>
    %c466_i32_204 = arith.constant 466 : i32
    %440 = tpu.dynamic_rotate %337 by %c466_i32_204 dim 1 : vector<16x512xf32>, i32 -> vector<16x512xf32>
    %c16_205 = arith.constant 16 : index
    %c0_206 = arith.constant 0 : index
    %c0_207 = arith.constant 0 : index
    %441 = vector.load %arg11[%c16_205, %c0_206, %c0_207] : memref<49x16x1xf32, #tpu.memory_space<vmem>>, vector<1x16x1xf32>
    %442 = vector.shape_cast %441 : vector<1x16x1xf32> to vector<16x1xf32>
    %443 = vector.broadcast %442 : vector<16x1xf32> to vector<16x512xf32>
    %444 = arith.mulf %440, %443 : vector<16x512xf32>
    %445 = arith.addf %439, %444 : vector<16x512xf32>
    %c465_i32_208 = arith.constant 465 : i32
    %446 = tpu.dynamic_rotate %337 by %c465_i32_208 dim 1 : vector<16x512xf32>, i32 -> vector<16x512xf32>
    %c17_209 = arith.constant 17 : index
    %c0_210 = arith.constant 0 : index
    %c0_211 = arith.constant 0 : index
    %447 = vector.load %arg11[%c17_209, %c0_210, %c0_211] : memref<49x16x1xf32, #tpu.memory_space<vmem>>, vector<1x16x1xf32>
    %448 = vector.shape_cast %447 : vector<1x16x1xf32> to vector<16x1xf32>
    %449 = vector.broadcast %448 : vector<16x1xf32> to vector<16x512xf32>
    %450 = arith.mulf %446, %449 : vector<16x512xf32>
    %451 = arith.addf %445, %450 : vector<16x512xf32>
    %c464_i32_212 = arith.constant 464 : i32
    %452 = tpu.dynamic_rotate %337 by %c464_i32_212 dim 1 : vector<16x512xf32>, i32 -> vector<16x512xf32>
    %c18_213 = arith.constant 18 : index
    %c0_214 = arith.constant 0 : index
    %c0_215 = arith.constant 0 : index
    %453 = vector.load %arg11[%c18_213, %c0_214, %c0_215] : memref<49x16x1xf32, #tpu.memory_space<vmem>>, vector<1x16x1xf32>
    %454 = vector.shape_cast %453 : vector<1x16x1xf32> to vector<16x1xf32>
    %455 = vector.broadcast %454 : vector<16x1xf32> to vector<16x512xf32>
    %456 = arith.mulf %452, %455 : vector<16x512xf32>
    %457 = arith.addf %451, %456 : vector<16x512xf32>
    %c463_i32_216 = arith.constant 463 : i32
    %458 = tpu.dynamic_rotate %337 by %c463_i32_216 dim 1 : vector<16x512xf32>, i32 -> vector<16x512xf32>
    %c19_217 = arith.constant 19 : index
    %c0_218 = arith.constant 0 : index
    %c0_219 = arith.constant 0 : index
    %459 = vector.load %arg11[%c19_217, %c0_218, %c0_219] : memref<49x16x1xf32, #tpu.memory_space<vmem>>, vector<1x16x1xf32>
    %460 = vector.shape_cast %459 : vector<1x16x1xf32> to vector<16x1xf32>
    %461 = vector.broadcast %460 : vector<16x1xf32> to vector<16x512xf32>
    %462 = arith.mulf %458, %461 : vector<16x512xf32>
    %463 = arith.addf %457, %462 : vector<16x512xf32>
    %c462_i32_220 = arith.constant 462 : i32
    %464 = tpu.dynamic_rotate %337 by %c462_i32_220 dim 1 : vector<16x512xf32>, i32 -> vector<16x512xf32>
    %c20_221 = arith.constant 20 : index
    %c0_222 = arith.constant 0 : index
    %c0_223 = arith.constant 0 : index
    %465 = vector.load %arg11[%c20_221, %c0_222, %c0_223] : memref<49x16x1xf32, #tpu.memory_space<vmem>>, vector<1x16x1xf32>
    %466 = vector.shape_cast %465 : vector<1x16x1xf32> to vector<16x1xf32>
    %467 = vector.broadcast %466 : vector<16x1xf32> to vector<16x512xf32>
    %468 = arith.mulf %464, %467 : vector<16x512xf32>
    %469 = arith.addf %463, %468 : vector<16x512xf32>
    %c446_i32_224 = arith.constant 446 : i32
    %470 = tpu.dynamic_rotate %337 by %c446_i32_224 dim 1 : vector<16x512xf32>, i32 -> vector<16x512xf32>
    %c21_225 = arith.constant 21 : index
    %c0_226 = arith.constant 0 : index
    %c0_227 = arith.constant 0 : index
    %471 = vector.load %arg11[%c21_225, %c0_226, %c0_227] : memref<49x16x1xf32, #tpu.memory_space<vmem>>, vector<1x16x1xf32>
    %472 = vector.shape_cast %471 : vector<1x16x1xf32> to vector<16x1xf32>
    %473 = vector.broadcast %472 : vector<16x1xf32> to vector<16x512xf32>
    %474 = arith.mulf %470, %473 : vector<16x512xf32>
    %475 = arith.addf %469, %474 : vector<16x512xf32>
    %c445_i32_228 = arith.constant 445 : i32
    %476 = tpu.dynamic_rotate %337 by %c445_i32_228 dim 1 : vector<16x512xf32>, i32 -> vector<16x512xf32>
    %c22_229 = arith.constant 22 : index
    %c0_230 = arith.constant 0 : index
    %c0_231 = arith.constant 0 : index
    %477 = vector.load %arg11[%c22_229, %c0_230, %c0_231] : memref<49x16x1xf32, #tpu.memory_space<vmem>>, vector<1x16x1xf32>
    %478 = vector.shape_cast %477 : vector<1x16x1xf32> to vector<16x1xf32>
    %479 = vector.broadcast %478 : vector<16x1xf32> to vector<16x512xf32>
    %480 = arith.mulf %476, %479 : vector<16x512xf32>
    %481 = arith.addf %475, %480 : vector<16x512xf32>
    %c444_i32_232 = arith.constant 444 : i32
    %482 = tpu.dynamic_rotate %337 by %c444_i32_232 dim 1 : vector<16x512xf32>, i32 -> vector<16x512xf32>
    %c23_233 = arith.constant 23 : index
    %c0_234 = arith.constant 0 : index
    %c0_235 = arith.constant 0 : index
    %483 = vector.load %arg11[%c23_233, %c0_234, %c0_235] : memref<49x16x1xf32, #tpu.memory_space<vmem>>, vector<1x16x1xf32>
    %484 = vector.shape_cast %483 : vector<1x16x1xf32> to vector<16x1xf32>
    %485 = vector.broadcast %484 : vector<16x1xf32> to vector<16x512xf32>
    %486 = arith.mulf %482, %485 : vector<16x512xf32>
    %487 = arith.addf %481, %486 : vector<16x512xf32>
    %c443_i32_236 = arith.constant 443 : i32
    %488 = tpu.dynamic_rotate %337 by %c443_i32_236 dim 1 : vector<16x512xf32>, i32 -> vector<16x512xf32>
    %c24_237 = arith.constant 24 : index
    %c0_238 = arith.constant 0 : index
    %c0_239 = arith.constant 0 : index
    %489 = vector.load %arg11[%c24_237, %c0_238, %c0_239] : memref<49x16x1xf32, #tpu.memory_space<vmem>>, vector<1x16x1xf32>
    %490 = vector.shape_cast %489 : vector<1x16x1xf32> to vector<16x1xf32>
    %491 = vector.broadcast %490 : vector<16x1xf32> to vector<16x512xf32>
    %492 = arith.mulf %488, %491 : vector<16x512xf32>
    %493 = arith.addf %487, %492 : vector<16x512xf32>
    %c442_i32_240 = arith.constant 442 : i32
    %494 = tpu.dynamic_rotate %337 by %c442_i32_240 dim 1 : vector<16x512xf32>, i32 -> vector<16x512xf32>
    %c25_241 = arith.constant 25 : index
    %c0_242 = arith.constant 0 : index
    %c0_243 = arith.constant 0 : index
    %495 = vector.load %arg11[%c25_241, %c0_242, %c0_243] : memref<49x16x1xf32, #tpu.memory_space<vmem>>, vector<1x16x1xf32>
    %496 = vector.shape_cast %495 : vector<1x16x1xf32> to vector<16x1xf32>
    %497 = vector.broadcast %496 : vector<16x1xf32> to vector<16x512xf32>
    %498 = arith.mulf %494, %497 : vector<16x512xf32>
    %499 = arith.addf %493, %498 : vector<16x512xf32>
    %c441_i32_244 = arith.constant 441 : i32
    %500 = tpu.dynamic_rotate %337 by %c441_i32_244 dim 1 : vector<16x512xf32>, i32 -> vector<16x512xf32>
    %c26_245 = arith.constant 26 : index
    %c0_246 = arith.constant 0 : index
    %c0_247 = arith.constant 0 : index
    %501 = vector.load %arg11[%c26_245, %c0_246, %c0_247] : memref<49x16x1xf32, #tpu.memory_space<vmem>>, vector<1x16x1xf32>
    %502 = vector.shape_cast %501 : vector<1x16x1xf32> to vector<16x1xf32>
    %503 = vector.broadcast %502 : vector<16x1xf32> to vector<16x512xf32>
    %504 = arith.mulf %500, %503 : vector<16x512xf32>
    %505 = arith.addf %499, %504 : vector<16x512xf32>
    %c440_i32_248 = arith.constant 440 : i32
    %506 = tpu.dynamic_rotate %337 by %c440_i32_248 dim 1 : vector<16x512xf32>, i32 -> vector<16x512xf32>
    %c27_249 = arith.constant 27 : index
    %c0_250 = arith.constant 0 : index
    %c0_251 = arith.constant 0 : index
    %507 = vector.load %arg11[%c27_249, %c0_250, %c0_251] : memref<49x16x1xf32, #tpu.memory_space<vmem>>, vector<1x16x1xf32>
    %508 = vector.shape_cast %507 : vector<1x16x1xf32> to vector<16x1xf32>
    %509 = vector.broadcast %508 : vector<16x1xf32> to vector<16x512xf32>
    %510 = arith.mulf %506, %509 : vector<16x512xf32>
    %511 = arith.addf %505, %510 : vector<16x512xf32>
    %c424_i32_252 = arith.constant 424 : i32
    %512 = tpu.dynamic_rotate %337 by %c424_i32_252 dim 1 : vector<16x512xf32>, i32 -> vector<16x512xf32>
    %c28_253 = arith.constant 28 : index
    %c0_254 = arith.constant 0 : index
    %c0_255 = arith.constant 0 : index
    %513 = vector.load %arg11[%c28_253, %c0_254, %c0_255] : memref<49x16x1xf32, #tpu.memory_space<vmem>>, vector<1x16x1xf32>
    %514 = vector.shape_cast %513 : vector<1x16x1xf32> to vector<16x1xf32>
    %515 = vector.broadcast %514 : vector<16x1xf32> to vector<16x512xf32>
    %516 = arith.mulf %512, %515 : vector<16x512xf32>
    %517 = arith.addf %511, %516 : vector<16x512xf32>
    %c423_i32_256 = arith.constant 423 : i32
    %518 = tpu.dynamic_rotate %337 by %c423_i32_256 dim 1 : vector<16x512xf32>, i32 -> vector<16x512xf32>
    %c29_257 = arith.constant 29 : index
    %c0_258 = arith.constant 0 : index
    %c0_259 = arith.constant 0 : index
    %519 = vector.load %arg11[%c29_257, %c0_258, %c0_259] : memref<49x16x1xf32, #tpu.memory_space<vmem>>, vector<1x16x1xf32>
    %520 = vector.shape_cast %519 : vector<1x16x1xf32> to vector<16x1xf32>
    %521 = vector.broadcast %520 : vector<16x1xf32> to vector<16x512xf32>
    %522 = arith.mulf %518, %521 : vector<16x512xf32>
    %523 = arith.addf %517, %522 : vector<16x512xf32>
    %c422_i32_260 = arith.constant 422 : i32
    %524 = tpu.dynamic_rotate %337 by %c422_i32_260 dim 1 : vector<16x512xf32>, i32 -> vector<16x512xf32>
    %c30_261 = arith.constant 30 : index
    %c0_262 = arith.constant 0 : index
    %c0_263 = arith.constant 0 : index
    %525 = vector.load %arg11[%c30_261, %c0_262, %c0_263] : memref<49x16x1xf32, #tpu.memory_space<vmem>>, vector<1x16x1xf32>
    %526 = vector.shape_cast %525 : vector<1x16x1xf32> to vector<16x1xf32>
    %527 = vector.broadcast %526 : vector<16x1xf32> to vector<16x512xf32>
    %528 = arith.mulf %524, %527 : vector<16x512xf32>
    %529 = arith.addf %523, %528 : vector<16x512xf32>
    %c421_i32_264 = arith.constant 421 : i32
    %530 = tpu.dynamic_rotate %337 by %c421_i32_264 dim 1 : vector<16x512xf32>, i32 -> vector<16x512xf32>
    %c31_265 = arith.constant 31 : index
    %c0_266 = arith.constant 0 : index
    %c0_267 = arith.constant 0 : index
    %531 = vector.load %arg11[%c31_265, %c0_266, %c0_267] : memref<49x16x1xf32, #tpu.memory_space<vmem>>, vector<1x16x1xf32>
    %532 = vector.shape_cast %531 : vector<1x16x1xf32> to vector<16x1xf32>
    %533 = vector.broadcast %532 : vector<16x1xf32> to vector<16x512xf32>
    %534 = arith.mulf %530, %533 : vector<16x512xf32>
    %535 = arith.addf %529, %534 : vector<16x512xf32>
    %c420_i32_268 = arith.constant 420 : i32
    %536 = tpu.dynamic_rotate %337 by %c420_i32_268 dim 1 : vector<16x512xf32>, i32 -> vector<16x512xf32>
    %c32_269 = arith.constant 32 : index
    %c0_270 = arith.constant 0 : index
    %c0_271 = arith.constant 0 : index
    %537 = vector.load %arg11[%c32_269, %c0_270, %c0_271] : memref<49x16x1xf32, #tpu.memory_space<vmem>>, vector<1x16x1xf32>
    %538 = vector.shape_cast %537 : vector<1x16x1xf32> to vector<16x1xf32>
    %539 = vector.broadcast %538 : vector<16x1xf32> to vector<16x512xf32>
    %540 = arith.mulf %536, %539 : vector<16x512xf32>
    %541 = arith.addf %535, %540 : vector<16x512xf32>
    %c419_i32_272 = arith.constant 419 : i32
    %542 = tpu.dynamic_rotate %337 by %c419_i32_272 dim 1 : vector<16x512xf32>, i32 -> vector<16x512xf32>
    %c33_273 = arith.constant 33 : index
    %c0_274 = arith.constant 0 : index
    %c0_275 = arith.constant 0 : index
    %543 = vector.load %arg11[%c33_273, %c0_274, %c0_275] : memref<49x16x1xf32, #tpu.memory_space<vmem>>, vector<1x16x1xf32>
    %544 = vector.shape_cast %543 : vector<1x16x1xf32> to vector<16x1xf32>
    %545 = vector.broadcast %544 : vector<16x1xf32> to vector<16x512xf32>
    %546 = arith.mulf %542, %545 : vector<16x512xf32>
    %547 = arith.addf %541, %546 : vector<16x512xf32>
    %c418_i32_276 = arith.constant 418 : i32
    %548 = tpu.dynamic_rotate %337 by %c418_i32_276 dim 1 : vector<16x512xf32>, i32 -> vector<16x512xf32>
    %c34_277 = arith.constant 34 : index
    %c0_278 = arith.constant 0 : index
    %c0_279 = arith.constant 0 : index
    %549 = vector.load %arg11[%c34_277, %c0_278, %c0_279] : memref<49x16x1xf32, #tpu.memory_space<vmem>>, vector<1x16x1xf32>
    %550 = vector.shape_cast %549 : vector<1x16x1xf32> to vector<16x1xf32>
    %551 = vector.broadcast %550 : vector<16x1xf32> to vector<16x512xf32>
    %552 = arith.mulf %548, %551 : vector<16x512xf32>
    %553 = arith.addf %547, %552 : vector<16x512xf32>
    %c402_i32_280 = arith.constant 402 : i32
    %554 = tpu.dynamic_rotate %337 by %c402_i32_280 dim 1 : vector<16x512xf32>, i32 -> vector<16x512xf32>
    %c35_281 = arith.constant 35 : index
    %c0_282 = arith.constant 0 : index
    %c0_283 = arith.constant 0 : index
    %555 = vector.load %arg11[%c35_281, %c0_282, %c0_283] : memref<49x16x1xf32, #tpu.memory_space<vmem>>, vector<1x16x1xf32>
    %556 = vector.shape_cast %555 : vector<1x16x1xf32> to vector<16x1xf32>
    %557 = vector.broadcast %556 : vector<16x1xf32> to vector<16x512xf32>
    %558 = arith.mulf %554, %557 : vector<16x512xf32>
    %559 = arith.addf %553, %558 : vector<16x512xf32>
    %c401_i32_284 = arith.constant 401 : i32
    %560 = tpu.dynamic_rotate %337 by %c401_i32_284 dim 1 : vector<16x512xf32>, i32 -> vector<16x512xf32>
    %c36_285 = arith.constant 36 : index
    %c0_286 = arith.constant 0 : index
    %c0_287 = arith.constant 0 : index
    %561 = vector.load %arg11[%c36_285, %c0_286, %c0_287] : memref<49x16x1xf32, #tpu.memory_space<vmem>>, vector<1x16x1xf32>
    %562 = vector.shape_cast %561 : vector<1x16x1xf32> to vector<16x1xf32>
    %563 = vector.broadcast %562 : vector<16x1xf32> to vector<16x512xf32>
    %564 = arith.mulf %560, %563 : vector<16x512xf32>
    %565 = arith.addf %559, %564 : vector<16x512xf32>
    %c400_i32_288 = arith.constant 400 : i32
    %566 = tpu.dynamic_rotate %337 by %c400_i32_288 dim 1 : vector<16x512xf32>, i32 -> vector<16x512xf32>
    %c37_289 = arith.constant 37 : index
    %c0_290 = arith.constant 0 : index
    %c0_291 = arith.constant 0 : index
    %567 = vector.load %arg11[%c37_289, %c0_290, %c0_291] : memref<49x16x1xf32, #tpu.memory_space<vmem>>, vector<1x16x1xf32>
    %568 = vector.shape_cast %567 : vector<1x16x1xf32> to vector<16x1xf32>
    %569 = vector.broadcast %568 : vector<16x1xf32> to vector<16x512xf32>
    %570 = arith.mulf %566, %569 : vector<16x512xf32>
    %571 = arith.addf %565, %570 : vector<16x512xf32>
    %c399_i32_292 = arith.constant 399 : i32
    %572 = tpu.dynamic_rotate %337 by %c399_i32_292 dim 1 : vector<16x512xf32>, i32 -> vector<16x512xf32>
    %c38_293 = arith.constant 38 : index
    %c0_294 = arith.constant 0 : index
    %c0_295 = arith.constant 0 : index
    %573 = vector.load %arg11[%c38_293, %c0_294, %c0_295] : memref<49x16x1xf32, #tpu.memory_space<vmem>>, vector<1x16x1xf32>
    %574 = vector.shape_cast %573 : vector<1x16x1xf32> to vector<16x1xf32>
    %575 = vector.broadcast %574 : vector<16x1xf32> to vector<16x512xf32>
    %576 = arith.mulf %572, %575 : vector<16x512xf32>
    %577 = arith.addf %571, %576 : vector<16x512xf32>
    %c398_i32_296 = arith.constant 398 : i32
    %578 = tpu.dynamic_rotate %337 by %c398_i32_296 dim 1 : vector<16x512xf32>, i32 -> vector<16x512xf32>
    %c39_297 = arith.constant 39 : index
    %c0_298 = arith.constant 0 : index
    %c0_299 = arith.constant 0 : index
    %579 = vector.load %arg11[%c39_297, %c0_298, %c0_299] : memref<49x16x1xf32, #tpu.memory_space<vmem>>, vector<1x16x1xf32>
    %580 = vector.shape_cast %579 : vector<1x16x1xf32> to vector<16x1xf32>
    %581 = vector.broadcast %580 : vector<16x1xf32> to vector<16x512xf32>
    %582 = arith.mulf %578, %581 : vector<16x512xf32>
    %583 = arith.addf %577, %582 : vector<16x512xf32>
    %c397_i32_300 = arith.constant 397 : i32
    %584 = tpu.dynamic_rotate %337 by %c397_i32_300 dim 1 : vector<16x512xf32>, i32 -> vector<16x512xf32>
    %c40_301 = arith.constant 40 : index
    %c0_302 = arith.constant 0 : index
    %c0_303 = arith.constant 0 : index
    %585 = vector.load %arg11[%c40_301, %c0_302, %c0_303] : memref<49x16x1xf32, #tpu.memory_space<vmem>>, vector<1x16x1xf32>
    %586 = vector.shape_cast %585 : vector<1x16x1xf32> to vector<16x1xf32>
    %587 = vector.broadcast %586 : vector<16x1xf32> to vector<16x512xf32>
    %588 = arith.mulf %584, %587 : vector<16x512xf32>
    %589 = arith.addf %583, %588 : vector<16x512xf32>
    %c396_i32_304 = arith.constant 396 : i32
    %590 = tpu.dynamic_rotate %337 by %c396_i32_304 dim 1 : vector<16x512xf32>, i32 -> vector<16x512xf32>
    %c41_305 = arith.constant 41 : index
    %c0_306 = arith.constant 0 : index
    %c0_307 = arith.constant 0 : index
    %591 = vector.load %arg11[%c41_305, %c0_306, %c0_307] : memref<49x16x1xf32, #tpu.memory_space<vmem>>, vector<1x16x1xf32>
    %592 = vector.shape_cast %591 : vector<1x16x1xf32> to vector<16x1xf32>
    %593 = vector.broadcast %592 : vector<16x1xf32> to vector<16x512xf32>
    %594 = arith.mulf %590, %593 : vector<16x512xf32>
    %595 = arith.addf %589, %594 : vector<16x512xf32>
    %c380_i32_308 = arith.constant 380 : i32
    %596 = tpu.dynamic_rotate %337 by %c380_i32_308 dim 1 : vector<16x512xf32>, i32 -> vector<16x512xf32>
    %c42_309 = arith.constant 42 : index
    %c0_310 = arith.constant 0 : index
    %c0_311 = arith.constant 0 : index
    %597 = vector.load %arg11[%c42_309, %c0_310, %c0_311] : memref<49x16x1xf32, #tpu.memory_space<vmem>>, vector<1x16x1xf32>
    %598 = vector.shape_cast %597 : vector<1x16x1xf32> to vector<16x1xf32>
    %599 = vector.broadcast %598 : vector<16x1xf32> to vector<16x512xf32>
    %600 = arith.mulf %596, %599 : vector<16x512xf32>
    %601 = arith.addf %595, %600 : vector<16x512xf32>
    %c379_i32_312 = arith.constant 379 : i32
    %602 = tpu.dynamic_rotate %337 by %c379_i32_312 dim 1 : vector<16x512xf32>, i32 -> vector<16x512xf32>
    %c43_313 = arith.constant 43 : index
    %c0_314 = arith.constant 0 : index
    %c0_315 = arith.constant 0 : index
    %603 = vector.load %arg11[%c43_313, %c0_314, %c0_315] : memref<49x16x1xf32, #tpu.memory_space<vmem>>, vector<1x16x1xf32>
    %604 = vector.shape_cast %603 : vector<1x16x1xf32> to vector<16x1xf32>
    %605 = vector.broadcast %604 : vector<16x1xf32> to vector<16x512xf32>
    %606 = arith.mulf %602, %605 : vector<16x512xf32>
    %607 = arith.addf %601, %606 : vector<16x512xf32>
    %c378_i32_316 = arith.constant 378 : i32
    %608 = tpu.dynamic_rotate %337 by %c378_i32_316 dim 1 : vector<16x512xf32>, i32 -> vector<16x512xf32>
    %c44_317 = arith.constant 44 : index
    %c0_318 = arith.constant 0 : index
    %c0_319 = arith.constant 0 : index
    %609 = vector.load %arg11[%c44_317, %c0_318, %c0_319] : memref<49x16x1xf32, #tpu.memory_space<vmem>>, vector<1x16x1xf32>
    %610 = vector.shape_cast %609 : vector<1x16x1xf32> to vector<16x1xf32>
    %611 = vector.broadcast %610 : vector<16x1xf32> to vector<16x512xf32>
    %612 = arith.mulf %608, %611 : vector<16x512xf32>
    %613 = arith.addf %607, %612 : vector<16x512xf32>
    %c377_i32_320 = arith.constant 377 : i32
    %614 = tpu.dynamic_rotate %337 by %c377_i32_320 dim 1 : vector<16x512xf32>, i32 -> vector<16x512xf32>
    %c45_321 = arith.constant 45 : index
    %c0_322 = arith.constant 0 : index
    %c0_323 = arith.constant 0 : index
    %615 = vector.load %arg11[%c45_321, %c0_322, %c0_323] : memref<49x16x1xf32, #tpu.memory_space<vmem>>, vector<1x16x1xf32>
    %616 = vector.shape_cast %615 : vector<1x16x1xf32> to vector<16x1xf32>
    %617 = vector.broadcast %616 : vector<16x1xf32> to vector<16x512xf32>
    %618 = arith.mulf %614, %617 : vector<16x512xf32>
    %619 = arith.addf %613, %618 : vector<16x512xf32>
    %c376_i32_324 = arith.constant 376 : i32
    %620 = tpu.dynamic_rotate %337 by %c376_i32_324 dim 1 : vector<16x512xf32>, i32 -> vector<16x512xf32>
    %c46_325 = arith.constant 46 : index
    %c0_326 = arith.constant 0 : index
    %c0_327 = arith.constant 0 : index
    %621 = vector.load %arg11[%c46_325, %c0_326, %c0_327] : memref<49x16x1xf32, #tpu.memory_space<vmem>>, vector<1x16x1xf32>
    %622 = vector.shape_cast %621 : vector<1x16x1xf32> to vector<16x1xf32>
    %623 = vector.broadcast %622 : vector<16x1xf32> to vector<16x512xf32>
    %624 = arith.mulf %620, %623 : vector<16x512xf32>
    %625 = arith.addf %619, %624 : vector<16x512xf32>
    %c375_i32_328 = arith.constant 375 : i32
    %626 = tpu.dynamic_rotate %337 by %c375_i32_328 dim 1 : vector<16x512xf32>, i32 -> vector<16x512xf32>
    %c47_329 = arith.constant 47 : index
    %c0_330 = arith.constant 0 : index
    %c0_331 = arith.constant 0 : index
    %627 = vector.load %arg11[%c47_329, %c0_330, %c0_331] : memref<49x16x1xf32, #tpu.memory_space<vmem>>, vector<1x16x1xf32>
    %628 = vector.shape_cast %627 : vector<1x16x1xf32> to vector<16x1xf32>
    %629 = vector.broadcast %628 : vector<16x1xf32> to vector<16x512xf32>
    %630 = arith.mulf %626, %629 : vector<16x512xf32>
    %631 = arith.addf %625, %630 : vector<16x512xf32>
    %c374_i32_332 = arith.constant 374 : i32
    %632 = tpu.dynamic_rotate %337 by %c374_i32_332 dim 1 : vector<16x512xf32>, i32 -> vector<16x512xf32>
    %c48_333 = arith.constant 48 : index
    %c0_334 = arith.constant 0 : index
    %c0_335 = arith.constant 0 : index
    %633 = vector.load %arg11[%c48_333, %c0_334, %c0_335] : memref<49x16x1xf32, #tpu.memory_space<vmem>>, vector<1x16x1xf32>
    %634 = vector.shape_cast %633 : vector<1x16x1xf32> to vector<16x1xf32>
    %635 = vector.broadcast %634 : vector<16x1xf32> to vector<16x512xf32>
    %636 = arith.mulf %632, %635 : vector<16x512xf32>
    %637 = arith.addf %631, %636 : vector<16x512xf32>
    %638 = vector.broadcast %338 : vector<16x1xf32> to vector<16x512xf32>
    %639 = arith.addf %637, %638 : vector<16x512xf32>
    %640 = vector.broadcast %0 : vector<1x512xf32> to vector<16x512xf32>
    %641 = arith.mulf %639, %640 : vector<16x512xf32>
    %cst_336 = arith.constant dense<0.000000e+00> : vector<16x512xf32>
    %642 = tpu.matmul %339, %641, %cst_336 {dimension_numbers = #tpu.dot_dimension_numbers<[1], [0], [0], [1], [0, 0, 1, 1], [], []>} : vector<16x16xf32>, vector<16x512xf32>, vector<16x512xf32> -> vector<16x512xf32>
    %cst_337 = arith.constant dense<0.000000e+00> : vector<16xf32>
    %643 = vector.multi_reduction <add>, %642, %cst_337 [1] : vector<16x512xf32> to vector<16xf32>
    %644 = vector.shape_cast %643 : vector<16xf32> to vector<16x1xf32>
    %645 = vector.broadcast %644 : vector<16x1xf32> to vector<16x512xf32>
    %646 = arith.subf %639, %645 : vector<16x512xf32>
    %647 = arith.mulf %646, %646 : vector<16x512xf32>
    %648 = vector.broadcast %0 : vector<1x512xf32> to vector<16x512xf32>
    %649 = arith.mulf %647, %648 : vector<16x512xf32>
    %cst_338 = arith.constant dense<0.000000e+00> : vector<16x512xf32>
    %650 = tpu.matmul %339, %649, %cst_338 {dimension_numbers = #tpu.dot_dimension_numbers<[1], [0], [0], [1], [0, 0, 1, 1], [], []>} : vector<16x16xf32>, vector<16x512xf32>, vector<16x512xf32> -> vector<16x512xf32>
    %cst_339 = arith.constant dense<0.000000e+00> : vector<16xf32>
    %651 = vector.multi_reduction <add>, %650, %cst_339 [1] : vector<16x512xf32> to vector<16xf32>
    %652 = vector.shape_cast %651 : vector<16xf32> to vector<16x1xf32>
    %cst_340 = arith.constant 9.99999974E-6 : f32
    %653 = vector.broadcast %cst_340 : f32 to vector<16x1xf32>
    %654 = arith.addf %652, %653 : vector<16x1xf32>
    %655 = math.rsqrt %654 : vector<16x1xf32>
    %656 = arith.mulf %340, %655 : vector<16x1xf32>
    %657 = arith.mulf %644, %656 : vector<16x1xf32>
    %658 = arith.subf %341, %657 : vector<16x1xf32>
    %659 = vector.broadcast %656 : vector<16x1xf32> to vector<16x512xf32>
    %660 = arith.mulf %639, %659 : vector<16x512xf32>
    %661 = vector.broadcast %658 : vector<16x1xf32> to vector<16x512xf32>
    %662 = arith.addf %660, %661 : vector<16x512xf32>
    %cst_341 = arith.constant dense<0.000000e+00> : vector<64x512xf32>
    %663 = tpu.matmul %342, %662, %cst_341 {dimension_numbers = #tpu.dot_dimension_numbers<[1], [0], [0], [1], [0, 0, 1, 1], [], []>} : vector<64x16xf32>, vector<16x512xf32>, vector<64x512xf32> -> vector<64x512xf32>
    %664 = vector.broadcast %343 : vector<64x1xf32> to vector<64x512xf32>
    %665 = arith.addf %663, %664 : vector<64x512xf32>
    %cst_342 = arith.constant 0.000000e+00 : f32
    %666 = vector.broadcast %cst_342 : f32 to vector<64x512xf32>
    %667 = arith.maximumf %665, %666 : vector<64x512xf32>
    %cst_343 = arith.constant dense<0.000000e+00> : vector<16x512xf32>
    %668 = tpu.matmul %344, %667, %cst_343 {dimension_numbers = #tpu.dot_dimension_numbers<[1], [0], [0], [1], [0, 0, 1, 1], [], []>} : vector<16x64xf32>, vector<64x512xf32>, vector<16x512xf32> -> vector<16x512xf32>
    %669 = vector.broadcast %345 : vector<16x1xf32> to vector<16x512xf32>
    %670 = arith.addf %668, %669 : vector<16x512xf32>
    %c0_344 = arith.constant 0 : index
    %c0_345 = arith.constant 0 : index
    %671 = vector.load %arg20[%c0_344, %c0_345] : memref<16x512xf32, #tpu.memory_space<vmem>>, vector<16x512xf32>
    tpu.vector_store %arg20[%c0_344, %c0_345], %670 {strides = array<i32>} : memref<16x512xf32, #tpu.memory_space<vmem>>, vector<16x512xf32>,
    return
  }
}

</mosaic_0001>

<bundles_post_ra>
// kernel: tile.75
= control target key start
LH: loop header
LB: loop body
LE: loop exit
PB: predicated region body
PF: predicated region fallthrough
CT: control target
= control target key end

     0   :  { %s22_s0 = inlined_call_operand.vmem [shape: f32[4], index: 0, kind: input, shape index: {}]   ;;  %s23_s1 = inlined_call_operand.vmem [shape: f32[2,1,1,4], index: 1, kind: output, shape index: {}]  }
   0x1   :  { %v4_v0 = vld [vmem:[%s22_s0] ss:$0 sm:$0xff] }
   0x2   :  { %5 = vst [vmem:[%s23_s1] sm:$0x3] %v4_v0 }

// kernel: tile.104
= control target key start
LH: loop header
LB: loop body
LE: loop exit
PB: predicated region body
PF: predicated region fallthrough
CT: control target
= control target key end

     0   :  { %s22_s0 = inlined_call_operand.vmem [shape: f32[8], index: 0, kind: input, shape index: {}]   ;;  %s23_s1 = inlined_call_operand.vmem [shape: f32[2,1,1,8], index: 1, kind: output, shape index: {}]  }
   0x1   :  { %v4_v0 = vld [vmem:[%s22_s0] ss:$0 sm:$0xff] }
   0x2   :  { %5 = vst [vmem:[%s23_s1] sm:$0x3] %v4_v0 }

// kernel: tile.80
= control target key start
LH: loop header
LB: loop body
LE: loop exit
PB: predicated region body
PF: predicated region fallthrough
CT: control target
= control target key end

     0   :  { %s22_s0 = inlined_call_operand.vmem [shape: f32[32], index: 0, kind: input, shape index: {}]   ;;  %s23_s1 = inlined_call_operand.vmem [shape: f32[2,1,1,32], index: 1, kind: output, shape index: {}]  }
   0x1   :  { %v4_v0 = vld [vmem:[%s22_s0] ss:$0 sm:$0xff] }
   0x2   :  { %5 = vst [vmem:[%s23_s1] sm:$0x3] %v4_v0 }

// kernel: tile.0
= control target key start
LH: loop header
LB: loop body
LE: loop exit
PB: predicated region body
PF: predicated region fallthrough
CT: control target
= control target key end

     0   :  { %s35_s8 = smov 125   ;;  %vm8_vm0 = vcmask 7168   ;;  %s36_s11 = smov 126   ;;  %s62_s0 = inlined_call_operand.vmem [shape: f32[2,1,1,4], index: 0, kind: input, shape index: {}]   ;;  %s63_s1 = inlined_call_operand.vmem [shape: f32[8,1], index: 1, kind: output, shape index: {}]  }
   0x1   :  { %v5_v0 = vld [vmem:[%s62_s0] sm:$0x3]  ;;  %s34_s0 = smov 127  }
   0x2   :  { %6 = vst [vmem:[#allocation0] sm:$0x3] %v5_v0 }
   0x9   :  { %v10_v1 = vld [vmem:[#allocation0] sm:$0x3]  }
   0xa   :  { %v22_v2 = vld [vmem:[#allocation0] sm:$0x3]   ;;  %11 = vrot.lane.b32.xlu0 %v10_v1, %s34_s0 }
   0xb   :  { %23 = vrot.lane.b32.xlu1 %v22_v2, %s35_s8  ;;  %v7_v3 = vld [vmem:[#allocation0] sm:$0x3]  }
   0xc   :  { %v16_v4 = vld [vmem:[#allocation0] sm:$0x3]   ;;  %9 = vst.msk [vmem:[%s63_s1] ss:$4 sm:$0x3] %vm8_vm0, %v7_v3  }
   0xe   :  { %17 = vrot.lane.b32.xlu0 %v16_v4, %s36_s11 }
  0x7c   :  { %v12_v5 = vpop.permute.xlu0 %11  }
  0x7d   :  { %v24_v6 = vpop.permute.xlu1 %23   ;;  %28 = vst.msk [vmem:[%s63_s1 + $0x1] ss:$4 sm:$0x3] %vm8_vm0, %v12_v5  }
  0x7e   :  { %30 = vst.msk [vmem:[%s63_s1 + $0x3] ss:$4 sm:$0x3] %vm8_vm0, %v24_v6  }
  0x80   :  { %v18_v7 = vpop.permute.xlu0 %17  }
  0x81   :  { %29 = vst.msk [vmem:[%s63_s1 + $0x2] ss:$4 sm:$0x3] %vm8_vm0, %v18_v7  }

// kernel: tile.9
= control target key start
LH: loop header
LB: loop body
LE: loop exit
PB: predicated region body
PF: predicated region fallthrough
CT: control target
= control target key end

     0   :  { %s67_s8 = smov 125   ;;  %vm8_vm0 = vcmask 7168   ;;  %s68_s11 = smov 126   ;;  %s118_s0 = inlined_call_operand.vmem [shape: f32[2,1,1,8], index: 0, kind: input, shape index: {}]   ;;  %s119_s1 = inlined_call_operand.vmem [shape: f32[16,1], index: 1, kind: output, shape index: {}]  }
   0x1   :  { %v5_v0 = vld [vmem:[%s118_s0] sm:$0x3]  ;;  %s66_s0 = smov 127   ;;  %s69_s12 = smov 124  }
   0x2   :  { %6 = vst [vmem:[#allocation0] sm:$0x3] %v5_v0  ;;  %s70_s13 = smov 123   ;;  %s71_s14 = smov 122  }
   0x3   :  { %s72_s15 = smov 121  }
   0x9   :  { %v10_v1 = vld [vmem:[#allocation0] sm:$0x3]  }
   0xa   :  { %v22_v2 = vld [vmem:[#allocation0] sm:$0x3]   ;;  %11 = vrot.lane.b32.xlu0 %v10_v1, %s66_s0 }
   0xb   :  { %23 = vrot.lane.b32.xlu1 %v22_v2, %s67_s8  ;;  %v16_v3 = vld [vmem:[#allocation0] sm:$0x3]  }
   0xc   :  { %v28_v4 = vld [vmem:[#allocation0] sm:$0x3]  }
   0xd   :  { %v7_v5 = vld [vmem:[#allocation0] sm:$0x3]  }
   0xe   :  { %9 = vst.msk [vmem:[%s119_s1] ss:$8 sm:$0x3] %vm8_vm0, %v7_v5   ;;  %17 = vrot.lane.b32.xlu0 %v16_v3, %s68_s11  ;;  %v34_v6 = vld [vmem:[#allocation0] sm:$0x3]  }
   0xf   :  { %29 = vrot.lane.b32.xlu1 %v28_v4, %s69_s12  ;;  %v40_v7 = vld [vmem:[#allocation0] sm:$0x3]  }
  0x10   :  { %v46_v8 = vld [vmem:[#allocation0] sm:$0x3]  }
  0x12   :  { %35 = vrot.lane.b32.xlu0 %v34_v6, %s70_s13 }
  0x13   :  { %41 = vrot.lane.b32.xlu1 %v40_v7, %s71_s14 }
  0x16   :  { %47 = vrot.lane.b32.xlu0 %v46_v8, %s72_s15 }
  0x7c   :  { %v12_v9 = vpop.permute.xlu0 %11  }
  0x7d   :  { %v24_v10 = vpop.permute.xlu1 %23   ;;  %52 = vst.msk [vmem:[%s119_s1 + $0x1] ss:$8 sm:$0x3] %vm8_vm0, %v12_v9  }
  0x7e   :  { %54 = vst.msk [vmem:[%s119_s1 + $0x3] ss:$8 sm:$0x3] %vm8_vm0, %v24_v10  }
  0x80   :  { %v18_v11 = vpop.permute.xlu0 %17  }
  0x81   :  { %v30_v12 = vpop.permute.xlu1 %29   ;;  %53 = vst.msk [vmem:[%s119_s1 + $0x2] ss:$8 sm:$0x3] %vm8_vm0, %v18_v11  }
  0x82   :  { %55 = vst.msk [vmem:[%s119_s1 + $0x4] ss:$8 sm:$0x3] %vm8_vm0, %v30_v12  }
  0x84   :  { %v36_v13 = vpop.permute.xlu0 %35  }
  0x85   :  { %v42_v14 = vpop.permute.xlu1 %41   ;;  %56 = vst.msk [vmem:[%s119_s1 + $0x5] ss:$8 sm:$0x3] %vm8_vm0, %v36_v13  }
  0x86   :  { %57 = vst.msk [vmem:[%s119_s1 + $0x6] ss:$8 sm:$0x3] %vm8_vm0, %v42_v14  }
  0x88   :  { %v48_v15 = vpop.permute.xlu0 %47  }
  0x89   :  { %58 = vst.msk [vmem:[%s119_s1 + $0x7] ss:$8 sm:$0x3] %vm8_vm0, %v48_v15  }

// kernel: tile.8
= control target key start
LH: loop header
LB: loop body
LE: loop exit
PB: predicated region body
PF: predicated region fallthrough
CT: control target
= control target key end

     0   :  { %s355_s8 = smov 125   ;;  %s356_s9 = smov 126   ;;  %vm8_vm0 = vcmask 7168   ;;  %s654_s0 = inlined_call_operand.vmem [shape: f32[2,1,1,32], index: 0, kind: input, shape index: {}]   ;;  %s655_s1 = inlined_call_operand.vmem [shape: f32[64,1], index: 1, kind: output, shape index: {}]  }
   0x1   :  { %v5_v0 = vld [vmem:[%s654_s0] sm:$0x3]  ;;  %s354_s0 = smov 127   ;;  %s357_s10 = smov 124  }
   0x2   :  { %6 = vst [vmem:[#allocation0] sm:$0x3] %v5_v0  ;;  %s358_s11 = smov 123   ;;  %s359_s12 = smov 122  }
   0x3   :  { %s360_s13 = smov 121   ;;  %s361_s14 = smov 120  }
   0x4   :  { %s362_s15 = smov 119   ;;  %s363_s16 = smov 118  }
   0x5   :  { %s364_s17 = smov 117   ;;  %s365_s18 = smov 116  }
   0x6   :  { %s366_s19 = smov 115   ;;  %s367_s20 = smov 114  }
   0x7   :  { %s368_s21 = smov 113   ;;  %s369_s22 = smov 112  }
   0x8   :  { %s370_s23 = smov 111   ;;  %s371_s24 = smov 110  }
   0x9   :  { %v12_v1 = vld [vmem:[#allocation0] sm:$0x3]   ;;  %s372_s25 = smov 109   ;;  %s373_s26 = smov 108  }
   0xa   :  { %v28_v2 = vld [vmem:[#allocation0] sm:$0x3]   ;;  %13 = vrot.lane.b32.xlu0 %v12_v1, %s354_s0  ;;  %s374_s27 = smov 107   ;;  %s375_s28 = smov 106  }
   0xb   :  { %29 = vrot.lane.b32.xlu1 %v28_v2, %s355_s8  ;;  %v20_v3 = vld [vmem:[#allocation0] sm:$0x3]   ;;  %s376_s29 = smov 105   ;;  %s377_s30 = smov 104  }
   0xc   :  { %v36_v4 = vld [vmem:[#allocation0] sm:$0x3]   ;;  %s378_s6 = smov 103   ;;  %s379_s7 = smov 102  }
   0xd   :  { %v44_v5 = vld [vmem:[#allocation0] sm:$0x3]   ;;  %s380_s0 = smov 101   ;;  %s381_s8 = smov 100  }
   0xe   :  { %21 = vrot.lane.b32.xlu0 %v20_v3, %s356_s9  ;;  %v52_v6 = vld [vmem:[#allocation0] sm:$0x3]   ;;  %s382_s9 = smov 99  }
   0xf   :  { %37 = vrot.lane.b32.xlu1 %v36_v4, %s357_s10  ;;  %v60_v7 = vld [vmem:[#allocation0] sm:$0x3]   ;;  %s383_s10 = smov 98  }
  0x10   :  { %v68_v8 = vld [vmem:[#allocation0] sm:$0x3]  }
  0x11   :  { %v76_v9 = vld [vmem:[#allocation0] sm:$0x3]  }
  0x12   :  { %45 = vrot.lane.b32.xlu0 %v44_v5, %s358_s11  ;;  %v84_v10 = vld [vmem:[#allocation0] sm:$0x3]   ;;  %s384_s11 = smov 97  }
  0x13   :  { %53 = vrot.lane.b32.xlu1 %v52_v6, %s359_s12  ;;  %v92_v11 = vld [vmem:[#allocation0] sm:$0x3]  }
  0x14   :  { %v100_v12 = vld [vmem:[#allocation0] sm:$0x3]  }
  0x15   :  { %v108_v13 = vld [vmem:[#allocation0] sm:$0x3]  }
  0x16   :  { %61 = vrot.lane.b32.xlu0 %v60_v7, %s360_s13  ;;  %v116_v14 = vld [vmem:[#allocation0] sm:$0x3]  }
  0x17   :  { %69 = vrot.lane.b32.xlu1 %v68_v8, %s361_s14  ;;  %v124_v15 = vld [vmem:[#allocation0] sm:$0x3]  }
  0x18   :  { %v132_v16 = vld [vmem:[#allocation0] sm:$0x3]  }
  0x19   :  { %v140_v17 = vld [vmem:[#allocation0] sm:$0x3]  }
  0x1a   :  { %77 = vrot.lane.b32.xlu0 %v76_v9, %s362_s15  ;;  %v148_v18 = vld [vmem:[#allocation0] sm:$0x3]  }
  0x1b   :  { %85 = vrot.lane.b32.xlu1 %v84_v10, %s363_s16  ;;  %v156_v19 = vld [vmem:[#allocation0] sm:$0x3]  }
  0x1c   :  { %v164_v20 = vld [vmem:[#allocation0] sm:$0x3]  }
  0x1d   :  { %v172_v21 = vld [vmem:[#allocation0] sm:$0x3]  }
  0x1e   :  { %93 = vrot.lane.b32.xlu0 %v92_v11, %s364_s17  ;;  %v180_v22 = vld [vmem:[#allocation0] sm:$0x3]  }
  0x1f   :  { %101 = vrot.lane.b32.xlu1 %v100_v12, %s365_s18  ;;  %v188_v23 = vld [vmem:[#allocation0] sm:$0x3]  }
  0x20   :  { %v196_v24 = vld [vmem:[#allocation0] sm:$0x3]  }
  0x21   :  { %v204_v25 = vld [vmem:[#allocation0] sm:$0x3]  }
  0x22   :  { %109 = vrot.lane.b32.xlu0 %v108_v13, %s366_s19  ;;  %v212_v26 = vld [vmem:[#allocation0] sm:$0x3]  }
  0x23   :  { %117 = vrot.lane.b32.xlu1 %v116_v14, %s367_s20  ;;  %v7_v27 = vld [vmem:[#allocation0] sm:$0x3]  }
  0x24   :  { %9 = vst.msk [vmem:[%s655_s1] sm:$0x1] %vm8_vm0, %v7_v27   ;;  %260 = vst.msk [vmem:[%s655_s1 + $0x1f] sm:$0x2] %vm8_vm0, %v7_v27   ;;  %v220_v28 = vld [vmem:[#allocation0] sm:$0x3]  }
  0x25   :  { %v228_v29 = vld [vmem:[#allocation0] sm:$0x3]  }
  0x26   :  { %125 = vrot.lane.b32.xlu0 %v124_v15, %s368_s21  ;;  %v236_v30 = vld [vmem:[#allocation0] sm:$0x3]  }
  0x27   :  { %133 = vrot.lane.b32.xlu1 %v132_v16, %s369_s22  ;;  %v244_v31 = vld [vmem:[#allocation0] sm:$0x3]  }
  0x28   :  { %v252_v32 = vld [vmem:[#allocation0] sm:$0x3]  }
  0x2a   :  { %141 = vrot.lane.b32.xlu0 %v140_v17, %s370_s23 }
  0x2b   :  { %149 = vrot.lane.b32.xlu1 %v148_v18, %s371_s24 }
  0x2e   :  { %157 = vrot.lane.b32.xlu0 %v156_v19, %s372_s25 }
  0x2f   :  { %165 = vrot.lane.b32.xlu1 %v164_v20, %s373_s26 }
  0x32   :  { %173 = vrot.lane.b32.xlu0 %v172_v21, %s374_s27 }
  0x33   :  { %181 = vrot.lane.b32.xlu1 %v180_v22, %s375_s28 }
  0x36   :  { %189 = vrot.lane.b32.xlu0 %v188_v23, %s376_s29 }
  0x37   :  { %197 = vrot.lane.b32.xlu1 %v196_v24, %s377_s30 }
  0x3a   :  { %205 = vrot.lane.b32.xlu0 %v204_v25, %s378_s6 }
  0x3b   :  { %213 = vrot.lane.b32.xlu1 %v212_v26, %s379_s7 }
  0x3e   :  { %221 = vrot.lane.b32.xlu0 %v220_v28, %s380_s0 }
  0x3f   :  { %229 = vrot.lane.b32.xlu1 %v228_v29, %s381_s8 }
  0x42   :  { %237 = vrot.lane.b32.xlu0 %v236_v30, %s382_s9 }
  0x43   :  { %245 = vrot.lane.b32.xlu1 %v244_v31, %s383_s10 }
  0x46   :  { %253 = vrot.lane.b32.xlu0 %v252_v32, %s384_s11 }
  0x7c   :  { %v14_v33 = vpop.permute.xlu0 %13  }
  0x7d   :  { %v30_v34 = vpop.permute.xlu1 %29   ;;  %261 = vst.msk [vmem:[%s655_s1 + $0x1] sm:$0x1] %vm8_vm0, %v14_v33   ;;  %262 = vst.msk [vmem:[%s655_s1 + $0x20] sm:$0x2] %vm8_vm0, %v14_v33  }
  0x7e   :  { %265 = vst.msk [vmem:[%s655_s1 + $0x3] sm:$0x1] %vm8_vm0, %v30_v34   ;;  %266 = vst.msk [vmem:[%s655_s1 + $0x22] sm:$0x2] %vm8_vm0, %v30_v34  }
  0x80   :  { %v22_v35 = vpop.permute.xlu0 %21  }
  0x81   :  { %v38_v36 = vpop.permute.xlu1 %37   ;;  %263 = vst.msk [vmem:[%s655_s1 + $0x2] sm:$0x1] %vm8_vm0, %v22_v35   ;;  %264 = vst.msk [vmem:[%s655_s1 + $0x21] sm:$0x2] %vm8_vm0, %v22_v35  }
  0x82   :  { %267 = vst.msk [vmem:[%s655_s1 + $0x4] sm:$0x1] %vm8_vm0, %v38_v36   ;;  %268 = vst.msk [vmem:[%s655_s1 + $0x23] sm:$0x2] %vm8_vm0, %v38_v36  }
  0x84   :  { %v46_v37 = vpop.permute.xlu0 %45  }
  0x85   :  { %v54_v38 = vpop.permute.xlu1 %53   ;;  %269 = vst.msk [vmem:[%s655_s1 + $0x5] sm:$0x1] %vm8_vm0, %v46_v37   ;;  %270 = vst.msk [vmem:[%s655_s1 + $0x24] sm:$0x2] %vm8_vm0, %v46_v37  }
  0x86   :  { %271 = vst.msk [vmem:[%s655_s1 + $0x6] sm:$0x1] %vm8_vm0, %v54_v38   ;;  %272 = vst.msk [vmem:[%s655_s1 + $0x25] sm:$0x2] %vm8_vm0, %v54_v38  }
  0x88   :  { %v62_v39 = vpop.permute.xlu0 %61  }
  0x89   :  { %v70_v40 = vpop.permute.xlu1 %69   ;;  %273 = vst.msk [vmem:[%s655_s1 + $0x7] sm:$0x1] %vm8_vm0, %v62_v39   ;;  %274 = vst.msk [vmem:[%s655_s1 + $0x26] sm:$0x2] %vm8_vm0, %v62_v39  }
  0x8a   :  { %275 = vst.msk [vmem:[%s655_s1 + $0x8] sm:$0x1] %vm8_vm0, %v70_v40   ;;  %276 = vst.msk [vmem:[%s655_s1 + $0x27] sm:$0x2] %vm8_vm0, %v70_v40  }
  0x8c   :  { %v78_v41 = vpop.permute.xlu0 %77  }
  0x8d   :  { %v86_v42 = vpop.permute.xlu1 %85   ;;  %277 = vst.msk [vmem:[%s655_s1 + $0x9] sm:$0x1] %vm8_vm0, %v78_v41   ;;  %278 = vst.msk [vmem:[%s655_s1 + $0x28] sm:$0x2] %vm8_vm0, %v78_v41  }
  0x8e   :  { %279 = vst.msk [vmem:[%s655_s1 + $0xa] sm:$0x1] %vm8_vm0, %v86_v42   ;;  %280 = vst.msk [vmem:[%s655_s1 + $0x29] sm:$0x2] %vm8_vm0, %v86_v42  }
  0x90   :  { %v94_v43 = vpop.permute.xlu0 %93  }
  0x91   :  { %v102_v44 = vpop.permute.xlu1 %101   ;;  %281 = vst.msk [vmem:[%s655_s1 + $0xb] sm:$0x1] %vm8_vm0, %v94_v43   ;;  %282 = vst.msk [vmem:[%s655_s1 + $0x2a] sm:$0x2] %vm8_vm0, %v94_v43  }
  0x92   :  { %283 = vst.msk [vmem:[%s655_s1 + $0xc] sm:$0x1] %vm8_vm0, %v102_v44   ;;  %284 = vst.msk [vmem:[%s655_s1 + $0x2b] sm:$0x2] %vm8_vm0, %v102_v44  }
  0x94   :  { %v110_v45 = vpop.permute.xlu0 %109  }
  0x95   :  { %v118_v46 = vpop.permute.xlu1 %117   ;;  %285 = vst.msk [vmem:[%s655_s1 + $0xd] sm:$0x1] %vm8_vm0, %v110_v45   ;;  %286 = vst.msk [vmem:[%s655_s1 + $0x2c] sm:$0x2] %vm8_vm0, %v110_v45  }
  0x96   :  { %287 = vst.msk [vmem:[%s655_s1 + $0xe] sm:$0x1] %vm8_vm0, %v118_v46   ;;  %288 = vst.msk [vmem:[%s655_s1 + $0x2d] sm:$0x2] %vm8_vm0, %v118_v46  }
  0x98   :  { %v126_v47 = vpop.permute.xlu0 %125  }
  0x99   :  { %v134_v48 = vpop.permute.xlu1 %133   ;;  %289 = vst.msk [vmem:[%s655_s1 + $0xf] sm:$0x1] %vm8_vm0, %v126_v47   ;;  %290 = vst.msk [vmem:[%s655_s1 + $0x2e] sm:$0x2] %vm8_vm0, %v126_v47  }
  0x9a   :  { %291 = vst.msk [vmem:[%s655_s1 + $0x10] sm:$0x1] %vm8_vm0, %v134_v48   ;;  %292 = vst.msk [vmem:[%s655_s1 + $0x2f] sm:$0x2] %vm8_vm0, %v134_v48  }
  0x9c   :  { %v142_v49 = vpop.permute.xlu0 %141  }
  0x9d   :  { %v150_v50 = vpop.permute.xlu1 %149   ;;  %293 = vst.msk [vmem:[%s655_s1 + $0x11] sm:$0x1] %vm8_vm0, %v142_v49   ;;  %294 = vst.msk [vmem:[%s655_s1 + $0x30] sm:$0x2] %vm8_vm0, %v142_v49  }
  0x9e   :  { %295 = vst.msk [vmem:[%s655_s1 + $0x12] sm:$0x1] %vm8_vm0, %v150_v50   ;;  %296 = vst.msk [vmem:[%s655_s1 + $0x31] sm:$0x2] %vm8_vm0, %v150_v50  }
  0xa0   :  { %v158_v51 = vpop.permute.xlu0 %157  }
  0xa1   :  { %v166_v52 = vpop.permute.xlu1 %165   ;;  %297 = vst.msk [vmem:[%s655_s1 + $0x13] sm:$0x1] %vm8_vm0, %v158_v51   ;;  %298 = vst.msk [vmem:[%s655_s1 + $0x32] sm:$0x2] %vm8_vm0, %v158_v51  }
  0xa2   :  { %299 = vst.msk [vmem:[%s655_s1 + $0x14] sm:$0x1] %vm8_vm0, %v166_v52   ;;  %300 = vst.msk [vmem:[%s655_s1 + $0x33] sm:$0x2] %vm8_vm0, %v166_v52  }
  0xa4   :  { %v174_v53 = vpop.permute.xlu0 %173  }
  0xa5   :  { %v182_v54 = vpop.permute.xlu1 %181   ;;  %301 = vst.msk [vmem:[%s655_s1 + $0x15] sm:$0x1] %vm8_vm0, %v174_v53   ;;  %302 = vst.msk [vmem:[%s655_s1 + $0x34] sm:$0x2] %vm8_vm0, %v174_v53  }
  0xa6   :  { %303 = vst.msk [vmem:[%s655_s1 + $0x16] sm:$0x1] %vm8_vm0, %v182_v54   ;;  %304 = vst.msk [vmem:[%s655_s1 + $0x35] sm:$0x2] %vm8_vm0, %v182_v54  }
  0xa8   :  { %v190_v55 = vpop.permute.xlu0 %189  }
  0xa9   :  { %v198_v56 = vpop.permute.xlu1 %197   ;;  %305 = vst.msk [vmem:[%s655_s1 + $0x17] sm:$0x1] %vm8_vm0, %v190_v55   ;;  %306 = vst.msk [vmem:[%s655_s1 + $0x36] sm:$0x2] %vm8_vm0, %v190_v55  }
  0xaa   :  { %307 = vst.msk [vmem:[%s655_s1 + $0x18] sm:$0x1] %vm8_vm0, %v198_v56   ;;  %308 = vst.msk [vmem:[%s655_s1 + $0x37] sm:$0x2] %vm8_vm0, %v198_v56  }
  0xac   :  { %v206_v57 = vpop.permute.xlu0 %205  }
  0xad   :  { %v214_v58 = vpop.permute.xlu1 %213   ;;  %309 = vst.msk [vmem:[%s655_s1 + $0x19] sm:$0x1] %vm8_vm0, %v206_v57   ;;  %310 = vst.msk [vmem:[%s655_s1 + $0x38] sm:$0x2] %vm8_vm0, %v206_v57  }
  0xae   :  { %311 = vst.msk [vmem:[%s655_s1 + $0x1a] sm:$0x1] %vm8_vm0, %v214_v58   ;;  %312 = vst.msk [vmem:[%s655_s1 + $0x39] sm:$0x2] %vm8_vm0, %v214_v58  }
  0xb0   :  { %v222_v59 = vpop.permute.xlu0 %221  }
  0xb1   :  { %v230_v60 = vpop.permute.xlu1 %229   ;;  %313 = vst.msk [vmem:[%s655_s1 + $0x1b] sm:$0x1] %vm8_vm0, %v222_v59   ;;  %314 = vst.msk [vmem:[%s655_s1 + $0x3a] sm:$0x2] %vm8_vm0, %v222_v59  }
  0xb2   :  { %315 = vst.msk [vmem:[%s655_s1 + $0x1c] sm:$0x1] %vm8_vm0, %v230_v60   ;;  %316 = vst.msk [vmem:[%s655_s1 + $0x3b] sm:$0x2] %vm8_vm0, %v230_v60  }
  0xb4   :  { %v238_v61 = vpop.permute.xlu0 %237  }
  0xb5   :  { %v246_v62 = vpop.permute.xlu1 %245   ;;  %317 = vst.msk [vmem:[%s655_s1 + $0x1d] sm:$0x1] %vm8_vm0, %v238_v61   ;;  %318 = vst.msk [vmem:[%s655_s1 + $0x3c] sm:$0x2] %vm8_vm0, %v238_v61  }
  0xb6   :  { %319 = vst.msk [vmem:[%s655_s1 + $0x1e] sm:$0x1] %vm8_vm0, %v246_v62   ;;  %320 = vst.msk [vmem:[%s655_s1 + $0x3d] sm:$0x2] %vm8_vm0, %v246_v62  }
  0xb8   :  { %v254_v63 = vpop.permute.xlu0 %253  }
  0xb9   :  { %321 = vst.msk [vmem:[%s655_s1 + $0x1f] sm:$0x1] %vm8_vm0, %v254_v63   ;;  %322 = vst.msk [vmem:[%s655_s1 + $0x3e] sm:$0x2] %vm8_vm0, %v254_v63  }

// kernel: encoder_block_forward.1
= control target key start
LH: loop header
LB: loop body
LE: loop exit
PB: predicated region body
PF: predicated region fallthrough
CT: control target
= control target key end

     0   :  { %v6015_v0 = vmov 0   ;;  %s12878_s24 = smov 126   ;;  %s12876_s27 = smov 125   ;;  %s12500_s2 = inlined_call_operand.vmem [shape: f32[49,8,1], index: 2, kind: input, shape index: {}]   ;;  %s12501_s0 = inlined_call_operand.vmem [shape: f32[8,512], index: 0, kind: input, shape index: {}]   ;;  %s12502_s3 = inlined_call_operand.vmem [shape: f32[8,1], index: 3, kind: input, shape index: {}]   ;;  %s12503_s8 = inlined_call_operand.vmem [shape: f32[64,1], index: 8, kind: input, shape index: {}]   ;;  %s12504_s10 = inlined_call_operand.vmem [shape: f32[16,1], index: 10, kind: input, shape index: {}]   ;;  %s12505_s11 = inlined_call_operand.vmem [shape: f32[49,16,1], index: 11, kind: input, shape index: {}]   ;;  %s12506_s1 = inlined_call_operand.vmem [shape: f32[1,512], index: 1, kind: input, shape index: {}]   ;;  %s12507_s4 = inlined_call_operand.vmem [shape: f32[8,8], index: 4, kind: input, shape index: {}]   ;;  %s12508_s12 = inlined_call_operand.vmem [shape: f32[16,1], index: 12, kind: input, shape index: {}]   ;;  %s12509_s5 = inlined_call_operand.vmem [shape: f32[8,1], index: 5, kind: input, shape index: {}]   ;;  %s12510_s6 = inlined_call_operand.vmem [shape: f32[8,1], index: 6, kind: input, shape index: {}]   ;;  %s12511_s7 = inlined_call_operand.vmem [shape: f32[64,8], index: 7, kind: input, shape index: {}]   ;;  %s12512_s9 = inlined_call_operand.vmem [shape: f32[16,64], index: 9, kind: input, shape index: {}]   ;;  %s12513_s13 = inlined_call_operand.vmem [shape: f32[16,16], index: 13, kind: input, shape index: {}]   ;;  %s12514_s14 = inlined_call_operand.vmem [shape: f32[16,1], index: 14, kind: input, shape index: {}]   ;;  %s12515_s15 = inlined_call_operand.vmem [shape: f32[16,1], index: 15, kind: input, shape index: {}]   ;;  %s12516_s17 = inlined_call_operand.vmem [shape: f32[64,1], index: 17, kind: input, shape index: {}]   ;;  %s12517_s19 = inlined_call_operand.vmem [shape: f32[16,1], index: 19, kind: input, shape index: {}]   ;;  %s12518_s16 = inlined_call_operand.vmem [shape: f32[64,16], index: 16, kind: input, shape index: {}]   ;;  %s12519_s18 = inlined_call_operand.vmem [shape: f32[16,64], index: 18, kind: input, shape index: {}]   ;;  %s12520_s20 = inlined_call_operand.vmem [shape: f32[16,512], index: 20, kind: output, shape index: {}]  }
   0x1   :  { %13136 = sst [smem:[#allocation249_spill]] %s12500_s2  ;;  %6004 = vset.pattern.permute.xlu1 %v6015_v0  ;;  %6003 = vset.pattern.permute.xlu0 %v6015_v0  ;;  %s12874_s2 = smov 124  }
   0x2   :  { %13137 = sst [smem:[#allocation250_spill]] %s12501_s0  ;;  %s12872_s22 = smov 123  }
   0x3   :  { %13138 = sst [smem:[#allocation251_spill]] %s12502_s3  ;;  %s12525_s30 = smov 106  }
   0x4   :  { %13139 = sst [smem:[#allocation252_spill]] %s12503_s8  ;;  %s12773_s8 = smov 122  }
   0x5   :  { %13140 = sst [smem:[#allocation253_spill]] %s12504_s10  ;;  %s12880_s10 = smov 127  }
   0x6   :  { %13141 = sst [smem:[#allocation254_spill]] %s12513_s13  ;;  %s12529_s3 = smov 105  }
   0x7   :  { %13142 = sst [smem:[#allocation255_spill]] %s12514_s14  ;;  %s12527_s29 = smov 104  }
   0x8   :  { %13143 = sst [smem:[#allocation256_spill]] %s12515_s15  ;;  %s12771_s25 = smov 103  }
   0x9   :  { %13144 = sst [smem:[#allocation257_spill]] %s12516_s17  ;;  %s12672_s21 = smov 102  }
   0xa   :  { %13145 = sst [smem:[#allocation258_spill]] %s12517_s19  ;;  %s12531_s26 = smov 101  }
   0xb   :  { %13146 = sst [smem:[#allocation259_spill]] %s12518_s16  ;;  %s12533_s0 = smov 100  }
   0xc   :  { %13147 = sst [smem:[#allocation260_spill]] %s12519_s18  ;;  %s13555_s18 = smov 38  }
   0xd   :  { %13148 = sst [smem:[#allocation261_spill]] %s12520_s20  ;;  %s13554_s20 = smov 39  }
   0xe   :  { %s13149_s23 = sld [smem:[#allocation249_spill]]  ;;  %s13556_s16 = smov 37  }
   0xf   :  { %s13150_s28 = sld [smem:[#allocation250_spill]]  ;;  %s13557_s19 = smov 36  }
  0x10   :  { %s13558_s17 = smov 35   ;;  %s13559_s15 = smov 34  }
  0x11   :  { %s13560_s14 = smov 18   ;;  %s13561_s13 = smov 17  }
  0x14   :  { %v5760_v1 = vld [vmem:[%s13149_s23 + $0x10] sm:$0xff]  ;;  %v94_v2 = vld [vmem:[%s13149_s23] sm:$0xff]  ;;  %v5759_v3 = vld [vmem:[%s13149_s23 + $0x8] sm:$0xff] }
  0x15   :  { %151 = vperm.xlu1 %6004, %v5760_v1   ;;  %97 = vperm.xlu0 %6003, %v94_v2   ;;  %v6180_v4 = vld [vmem:[%s13150_s28 + $0x8] sm:$0xff]  ;;  %v6187_v5 = vld [vmem:[%s13150_s28 + $0x10] sm:$0xff]  ;;  %v5761_v6 = vld [vmem:[%s13149_s23 + $0x18] sm:$0xff] }
  0x16   :  { %v6197_v7 = vld [vmem:[%s13150_s28] sm:$0xff]  ;;  %v6211_v9 = vld [vmem:[%s13150_s28 + $0x18] sm:$0xff]  ;;  %v5763_v10 = vld [vmem:[%s13149_s23 + $0x28] sm:$0xff] }
  0x17   :  { %v5762_v8 = vld [vmem:[%s13149_s23 + $0x20] sm:$0xff]  ;;  %v5764_v11 = vld [vmem:[%s13149_s23 + $0x30] sm:$0xff]  ;;  %v5765_v12 = vld [vmem:[%s13149_s23 + $0x38] sm:$0xff] }
  0x18   :  { %v5766_v13 = vld [vmem:[%s13149_s23 + $0x40] sm:$0xff]  ;;  %v5767_v14 = vld [vmem:[%s13149_s23 + $0x48] sm:$0xff]  ;;  %v5768_v15 = vld [vmem:[%s13149_s23 + $0x50] sm:$0xff] }
  0x19   :  { %123 = vperm.xlu0 %6003, %v5759_v3   ;;  %106 = vrot.lane.b32.xlu1 %v6180_v4, %s12880_s10  ;;  %v5769_v16 = vld [vmem:[%s13149_s23 + $0x58] sm:$0xff]  ;;  %v5770_v17 = vld [vmem:[%s13149_s23 + $0x60] sm:$0xff]  ;;  %v5771_v18 = vld [vmem:[%s13149_s23 + $0x68] sm:$0xff] }
  0x1a   :  { %v5772_v19 = vld [vmem:[%s13149_s23 + $0x70] sm:$0xff]  ;;  %v5773_v22 = vld [vmem:[%s13149_s23 + $0x78] sm:$0xff]  ;;  %v5774_v27 = vld [vmem:[%s13149_s23 + $0x80] sm:$0xff] }
  0x1b   :  { %v5775_v34 = vld [vmem:[%s13149_s23 + $0x88] sm:$0xff]  ;;  %v5776_v39 = vld [vmem:[%s13149_s23 + $0x90] sm:$0xff]  ;;  %v5777_v46 = vld [vmem:[%s13149_s23 + $0x98] sm:$0xff] }
  0x1c   :  { %v5778_v51 = vld [vmem:[%s13149_s23 + $0xa0] sm:$0xff]  ;;  %v5779_v58 = vld [vmem:[%s13149_s23 + $0xa8] sm:$0xff]  ;;  %v5780_v63 = vld [vmem:[%s13149_s23 + $0xb0] sm:$0xff] }
  0x1d   :  { %108 = vrot.lane.b32.xlu0 %v6187_v5, %s12880_s10  ;;  %179 = vperm.xlu1 %6004, %v5761_v6  }
  0x21   :  { %136 = vrot.lane.b32.xlu1 %v6180_v4, %s12878_s24  ;;  %104 = vrot.lane.b32.xlu0 %v6197_v7, %s12880_s10 }
  0x25   :  { %207 = vperm.xlu1 %6004, %v5762_v8   ;;  %138 = vrot.lane.b32.xlu0 %v6187_v5, %s12878_s24 }
  0x29   :  { %110 = vrot.lane.b32.xlu1 %v6211_v9, %s12880_s10  ;;  %134 = vrot.lane.b32.xlu0 %v6197_v7, %s12878_s24 }
  0x2d   :  { %166 = vrot.lane.b32.xlu1 %v6187_v5, %s12876_s27  ;;  %164 = vrot.lane.b32.xlu0 %v6180_v4, %s12876_s27 }
  0x31   :  { %162 = vrot.lane.b32.xlu1 %v6197_v7, %s12876_s27  ;;  %235 = vperm.xlu0 %6003, %v5763_v10   ;;  %v5781_v10 = vld [vmem:[%s13149_s23 + $0xb8] sm:$0xff] }
  0x35   :  { %192 = vrot.lane.b32.xlu1 %v6180_v4, %s12874_s2  ;;  %140 = vrot.lane.b32.xlu0 %v6211_v9, %s12878_s24 }
  0x39   :  { %263 = vperm.xlu1 %6004, %v5764_v11   ;;  %194 = vrot.lane.b32.xlu0 %v6187_v5, %s12874_s2 }
  0x3d   :  { %168 = vrot.lane.b32.xlu1 %v6211_v9, %s12876_s27  ;;  %190 = vrot.lane.b32.xlu0 %v6197_v7, %s12874_s2 }
  0x41   :  { %222 = vrot.lane.b32.xlu1 %v6187_v5, %s12872_s22  ;;  %220 = vrot.lane.b32.xlu0 %v6180_v4, %s12872_s22 }
  0x45   :  { %218 = vrot.lane.b32.xlu1 %v6197_v7, %s12872_s22  ;;  %291 = vperm.xlu0 %6003, %v5765_v12  }
  0x49   :  { %248 = vrot.lane.b32.xlu1 %v6180_v4, %s12773_s8  ;;  %196 = vrot.lane.b32.xlu0 %v6211_v9, %s12874_s2 }
  0x4d   :  { %319 = vperm.xlu1 %6004, %v5766_v13   ;;  %250 = vrot.lane.b32.xlu0 %v6187_v5, %s12773_s8 }
  0x51   :  { %224 = vrot.lane.b32.xlu1 %v6211_v9, %s12872_s22  ;;  %246 = vrot.lane.b32.xlu0 %v6197_v7, %s12773_s8 }
  0x55   :  { %278 = vrot.lane.b32.xlu1 %v6187_v5, %s12525_s30  ;;  %276 = vrot.lane.b32.xlu0 %v6180_v4, %s12525_s30 }
  0x59   :  { %274 = vrot.lane.b32.xlu1 %v6197_v7, %s12525_s30  ;;  %347 = vperm.xlu0 %6003, %v5767_v14  }
  0x5d   :  { %304 = vrot.lane.b32.xlu1 %v6180_v4, %s12529_s3  ;;  %252 = vrot.lane.b32.xlu0 %v6211_v9, %s12773_s8  ;;  %s13534_s8 = smov 104  }
  0x61   :  { %375 = vperm.xlu1 %6004, %v5768_v15   ;;  %306 = vrot.lane.b32.xlu0 %v6187_v5, %s12529_s3  ;;  %v5782_v15 = vld [vmem:[%s13149_s23 + $0xc0] sm:$0xff] }
  0x65   :  { %280 = vrot.lane.b32.xlu1 %v6211_v9, %s12525_s30  ;;  %302 = vrot.lane.b32.xlu0 %v6197_v7, %s12529_s3  ;;  %s12535_s30 = smov 84  }
  0x69   :  { %334 = vrot.lane.b32.xlu1 %v6187_v5, %s12527_s29  ;;  %332 = vrot.lane.b32.xlu0 %v6180_v4, %s12527_s29 }
  0x6d   :  { %330 = vrot.lane.b32.xlu1 %v6197_v7, %s12527_s29  ;;  %403 = vperm.xlu0 %6003, %v5769_v16  }
  0x71   :  { %360 = vrot.lane.b32.xlu1 %v6180_v4, %s12771_s25  ;;  %308 = vrot.lane.b32.xlu0 %v6211_v9, %s12529_s3  ;;  %s12537_s3 = smov 83  }
  0x75   :  { %431 = vperm.xlu1 %6004, %v5770_v17   ;;  %362 = vrot.lane.b32.xlu0 %v6187_v5, %s12771_s25 }
  0x79   :  { %336 = vrot.lane.b32.xlu1 %v6211_v9, %s12527_s29  ;;  %358 = vrot.lane.b32.xlu0 %v6197_v7, %s12771_s25  ;;  %s13533_s29 = smov 105  }
  0x7d   :  { %390 = vrot.lane.b32.xlu1 %v6187_v5, %s12672_s21  ;;  %388 = vrot.lane.b32.xlu0 %v6180_v4, %s12672_s21 }
  0x81   :  { %386 = vrot.lane.b32.xlu1 %v6197_v7, %s12672_s21  ;;  %459 = vperm.xlu0 %6003, %v5771_v18  }
  0x85   :  { %416 = vrot.lane.b32.xlu1 %v6180_v4, %s12531_s26  ;;  %364 = vrot.lane.b32.xlu0 %v6211_v9, %s12771_s25  ;;  %s13535_s25 = smov 103  }
  0x89   :  { %487 = vperm.xlu1 %6004, %v5772_v19   ;;  %418 = vrot.lane.b32.xlu0 %v6187_v5, %s12531_s26 }
  0x8d   :  { %392 = vrot.lane.b32.xlu1 %v6211_v9, %s12672_s21  ;;  %414 = vrot.lane.b32.xlu0 %v6197_v7, %s12531_s26  ;;  %s12705_s21 = smov 120  }
  0x90   :  { %v6327_v20 = vpop.permute.xlu1 %151  ;;  %v6329_v21 = vpop.permute.xlu0 %97 }
  0x91   :  { %446 = vrot.lane.b32.xlu1 %v6187_v5, %s12533_s0  ;;  %444 = vrot.lane.b32.xlu0 %v6180_v4, %s12533_s0 }
  0x94   :  { %v6338_v23 = vpop.permute.xlu0 %123  ;;  %v6340_v24 = vpop.permute.xlu1 %106 }
  0x95   :  { %442 = vrot.lane.b32.xlu1 %v6197_v7, %s12533_s0  ;;  %515 = vperm.xlu0 %6003, %v5773_v22  }
  0x98   :  { %v6344_v25 = vpop.permute.xlu0 %108  ;;  %v6346_v26 = vpop.permute.xlu1 %179 }
  0x99   :  { %472 = vrot.lane.b32.xlu1 %v6180_v4, %s12535_s30  ;;  %420 = vrot.lane.b32.xlu0 %v6211_v9, %s12531_s26  ;;  %s12541_s26 = smov 81  }
  0x9c   :  { %v6355_v28 = vpop.permute.xlu1 %136  ;;  %v6357_v29 = vpop.permute.xlu0 %104 }
  0x9d   :  { %543 = vperm.xlu1 %6004, %v5774_v27   ;;  %474 = vrot.lane.b32.xlu0 %v6187_v5, %s12535_s30 }
  0xa0   :  { %v6361_v30 = vpop.permute.xlu1 %207  ;;  %v6363_v31 = vpop.permute.xlu0 %138 }
  0xa1   :  { %448 = vrot.lane.b32.xlu1 %v6211_v9, %s12533_s0  ;;  %470 = vrot.lane.b32.xlu0 %v6197_v7, %s12535_s30  ;;  %s12539_s0 = smov 82  }
  0xa4   :  { %v6369_v32 = vpop.permute.xlu1 %110  ;;  %v6371_v33 = vpop.permute.xlu0 %134 }
  0xa5   :  { %502 = vrot.lane.b32.xlu1 %v6187_v5, %s12537_s3  ;;  %500 = vrot.lane.b32.xlu0 %v6180_v4, %s12537_s3 }
  0xa8   :  { %v6380_v35 = vpop.permute.xlu1 %166  ;;  %v6382_v36 = vpop.permute.xlu0 %164 }
  0xa9   :  { %498 = vrot.lane.b32.xlu1 %v6197_v7, %s12537_s3  ;;  %571 = vperm.xlu0 %6003, %v5775_v34   ;;  %v5783_v34 = vld [vmem:[%s13149_s23 + $0xc8] sm:$0xff] }
  0xac   :  { %v6386_v37 = vpop.permute.xlu1 %162  ;;  %v6388_v38 = vpop.permute.xlu0 %235 }
  0xad   :  { %528 = vrot.lane.b32.xlu1 %v6180_v4, %s12539_s0  ;;  %476 = vrot.lane.b32.xlu0 %v6211_v9, %s12535_s30  ;;  %s12545_s30 = smov 79  }
  0xb0   :  { %v6397_v40 = vpop.permute.xlu1 %192  ;;  %v6399_v41 = vpop.permute.xlu0 %140 }
  0xb1   :  { %599 = vperm.xlu1 %6004, %v5776_v39   ;;  %530 = vrot.lane.b32.xlu0 %v6187_v5, %s12539_s0 }
  0xb4   :  { %v6403_v42 = vpop.permute.xlu1 %263  ;;  %v6405_v43 = vpop.permute.xlu0 %194 }
  0xb5   :  { %504 = vrot.lane.b32.xlu1 %v6211_v9, %s12537_s3  ;;  %526 = vrot.lane.b32.xlu0 %v6197_v7, %s12539_s0  ;;  %s12543_s3 = smov 80  }
  0xb8   :  { %v6411_v44 = vpop.permute.xlu1 %168  ;;  %v6413_v45 = vpop.permute.xlu0 %190 }
  0xb9   :  { %558 = vrot.lane.b32.xlu1 %v6187_v5, %s12541_s26  ;;  %556 = vrot.lane.b32.xlu0 %v6180_v4, %s12541_s26 }
  0xbc   :  { %v6422_v47 = vpop.permute.xlu1 %222  ;;  %v6424_v48 = vpop.permute.xlu0 %220 }
  0xbd   :  { %554 = vrot.lane.b32.xlu1 %v6197_v7, %s12541_s26  ;;  %627 = vperm.xlu0 %6003, %v5777_v46  }
  0xc0   :  { %v6428_v49 = vpop.permute.xlu1 %218  ;;  %v6430_v50 = vpop.permute.xlu0 %291 }
  0xc1   :  { %584 = vrot.lane.b32.xlu1 %v6180_v4, %s12543_s3  ;;  %532 = vrot.lane.b32.xlu0 %v6211_v9, %s12539_s0  ;;  %s12549_s0 = smov 62  }
  0xc4   :  { %v6439_v52 = vpop.permute.xlu1 %248  ;;  %v6441_v53 = vpop.permute.xlu0 %196 }
  0xc5   :  { %655 = vperm.xlu1 %6004, %v5778_v51   ;;  %586 = vrot.lane.b32.xlu0 %v6187_v5, %s12543_s3 }
  0xc8   :  { %v6445_v54 = vpop.permute.xlu1 %319  ;;  %v6447_v55 = vpop.permute.xlu0 %250 }
  0xc9   :  { %560 = vrot.lane.b32.xlu1 %v6211_v9, %s12541_s26  ;;  %582 = vrot.lane.b32.xlu0 %v6197_v7, %s12543_s3  ;;  %s12547_s26 = smov 78  }
  0xcc   :  { %v6453_v56 = vpop.permute.xlu1 %224  ;;  %v6455_v57 = vpop.permute.xlu0 %246 }
  0xcd   :  { %614 = vrot.lane.b32.xlu1 %v6187_v5, %s12545_s30  ;;  %612 = vrot.lane.b32.xlu0 %v6180_v4, %s12545_s30 }
  0xd0   :  { %v6464_v59 = vpop.permute.xlu1 %278  ;;  %v6466_v60 = vpop.permute.xlu0 %276 }
  0xd1   :  { %610 = vrot.lane.b32.xlu1 %v6197_v7, %s12545_s30  ;;  %683 = vperm.xlu0 %6003, %v5779_v58  }
  0xd4   :  { %v6470_v61 = vpop.permute.xlu1 %274  ;;  %v6472_v62 = vpop.permute.xlu0 %347 }
  0xd5   :  { %640 = vrot.lane.b32.xlu1 %v6180_v4, %s12547_s26  ;;  %588 = vrot.lane.b32.xlu0 %v6211_v9, %s12543_s3  ;;  %s12560_s3 = smov 60  }
  0xd8   :  { %v6481_v0 = vpop.permute.xlu1 %304  ;;  %v6483_v1 = vpop.permute.xlu0 %252 }
  0xd9   :  { %711 = vperm.xlu1 %6004, %v5780_v63   ;;  %642 = vrot.lane.b32.xlu0 %v6187_v5, %s12547_s26  ;;  %v5784_v63 = vld [vmem:[%s13149_s23 + $0xd0] sm:$0xff] }
  0xdc   :  { %v6487_v2 = vpop.permute.xlu1 %375  ;;  %v6489_v3 = vpop.permute.xlu0 %306 }
  0xdd   :  { %13151 = vst [vmem:[#allocation2_spill] sm:$0xff] %v6487_v2  ;;  %616 = vrot.lane.b32.xlu1 %v6211_v9, %s12545_s30  ;;  %638 = vrot.lane.b32.xlu0 %v6197_v7, %s12547_s26  ;;  %s12554_s30 = smov 61  }
  0xe0   :  { %v6495_v6 = vpop.permute.xlu1 %280  ;;  %v6497_v8 = vpop.permute.xlu0 %302 }
  0xe1   :  { %670 = vrot.lane.b32.xlu1 %v6187_v5, %s12549_s0  ;;  %668 = vrot.lane.b32.xlu0 %v6180_v4, %s12549_s0 }
  0xe4   :  { %v6506_v11 = vpop.permute.xlu1 %334  ;;  %v6508_v12 = vpop.permute.xlu0 %332 }
  0xe5   :  { %666 = vrot.lane.b32.xlu1 %v6197_v7, %s12549_s0  ;;  %739 = vperm.xlu0 %6003, %v5781_v10  }
  0xe8   :  { %v6512_v13 = vpop.permute.xlu1 %330  ;;  %v6514_v14 = vpop.permute.xlu0 %403 }
  0xe9   :  { %13152 = vst [vmem:[#allocation3_spill] sm:$0xff] %v6514_v14  ;;  %696 = vrot.lane.b32.xlu1 %v6180_v4, %s12554_s30  ;;  %644 = vrot.lane.b32.xlu0 %v6211_v9, %s12547_s26  ;;  %s12574_s26 = smov 58  }
  0xec   :  { %v6523_v16 = vpop.permute.xlu1 %360  ;;  %v6525_v17 = vpop.permute.xlu0 %308 }
  0xed   :  { %767 = vperm.xlu1 %6004, %v5782_v15   ;;  %698 = vrot.lane.b32.xlu0 %v6187_v5, %s12554_s30 }
  0xf0   :  { %v6529_v18 = vpop.permute.xlu1 %431  ;;  %v6531_v19 = vpop.permute.xlu0 %362 }
  0xf1   :  { %13153 = vst [vmem:[#allocation4_spill] sm:$0xff] %v6529_v18  ;;  %672 = vrot.lane.b32.xlu1 %v6211_v9, %s12549_s0  ;;  %694 = vrot.lane.b32.xlu0 %v6197_v7, %s12554_s30  ;;  %s12568_s0 = smov 59  }
  0xf4   :  { %v6537_v22 = vpop.permute.xlu1 %336  ;;  %v6539_v27 = vpop.permute.xlu0 %358 }
  0xf5   :  { %13154 = vst [vmem:[#allocation5_spill] sm:$0xff] %v6537_v22  ;;  %13155 = vst [vmem:[#allocation6_spill] sm:$0xff] %v6539_v27  ;;  %726 = vrot.lane.b32.xlu1 %v6187_v5, %s12560_s3  ;;  %724 = vrot.lane.b32.xlu0 %v6180_v4, %s12560_s3 }
  0xf8   :  { %v6548_v39 = vpop.permute.xlu1 %390  ;;  %v6550_v46 = vpop.permute.xlu0 %388 }
  0xf9   :  { %13156 = vst [vmem:[#allocation7_spill] sm:$0xff] %v6548_v39  ;;  %13157 = vst [vmem:[#allocation8_spill] sm:$0xff] %v6550_v46  ;;  %722 = vrot.lane.b32.xlu1 %v6197_v7, %s12560_s3  ;;  %795 = vperm.xlu0 %6003, %v5783_v34  }
  0xfc   :  { %v6554_v51 = vpop.permute.xlu1 %386  ;;  %v6556_v58 = vpop.permute.xlu0 %459 }
  0xfd   :  { %13158 = vst [vmem:[#allocation9_spill] sm:$0xff] %v6554_v51  ;;  %13159 = vst [vmem:[#allocation10_spill] sm:$0xff] %v6556_v58  ;;  %752 = vrot.lane.b32.xlu1 %v6180_v4, %s12568_s0  ;;  %700 = vrot.lane.b32.xlu0 %v6211_v9, %s12554_s30  ;;  %s12588_s30 = smov 56  }
 0x100   :  { %v6565_v10 = vpop.permute.xlu1 %416  ;;  %v6567_v15 = vpop.permute.xlu0 %364 }
 0x101   :  { %13160 = vst [vmem:[#allocation11_spill] sm:$0xff] %v6565_v10  ;;  %13161 = vst [vmem:[#allocation12_spill] sm:$0xff] %v6567_v15  ;;  %823 = vperm.xlu1 %6004, %v5784_v63   ;;  %754 = vrot.lane.b32.xlu0 %v6187_v5, %s12568_s0  ;;  %v5785_v63 = vld [vmem:[%s13149_s23 + $0xd8] sm:$0xff] }
 0x104   :  { %v6571_v34 = vpop.permute.xlu1 %487  ;;  %v6573_v58 = vpop.permute.xlu0 %418 }
 0x105   :  { %13162 = vst [vmem:[#allocation13_spill] sm:$0xff] %v6571_v34  ;;  %13163 = vst [vmem:[#allocation14_spill] sm:$0xff] %v6573_v58  ;;  %728 = vrot.lane.b32.xlu1 %v6211_v9, %s12560_s3  ;;  %750 = vrot.lane.b32.xlu0 %v6197_v7, %s12568_s0  ;;  %s12582_s3 = smov 57  }
 0x108   :  { %v6579_v18 = vpop.permute.xlu1 %392  ;;  %v6581_v14 = vpop.permute.xlu0 %414 }
 0x109   :  { %13164 = vst [vmem:[#allocation15_spill] sm:$0xff] %v6579_v18  ;;  %13165 = vst [vmem:[#allocation16_spill] sm:$0xff] %v6581_v14  ;;  %782 = vrot.lane.b32.xlu1 %v6187_v5, %s12574_s26  ;;  %780 = vrot.lane.b32.xlu0 %v6180_v4, %s12574_s26 }
 0x10c   :  { %v6590_v34 = vpop.permute.xlu1 %446  ;;  %v6592_v10 = vpop.permute.xlu0 %444 }
 0x10d   :  { %13166 = vst [vmem:[#allocation17_spill] sm:$0xff] %v6590_v34  ;;  %13167 = vst [vmem:[#allocation18_spill] sm:$0xff] %v6592_v10  ;;  %778 = vrot.lane.b32.xlu1 %v6197_v7, %s12574_s26  ;;  %851 = vperm.xlu0 %6003, %v5785_v63   ;;  %v5786_v34 = vld [vmem:[%s13149_s23 + $0xe0] sm:$0xff] }
 0x110   :  { %v6596_v14 = vpop.permute.xlu1 %442  ;;  %v6598_v18 = vpop.permute.xlu0 %515 }
 0x111   :  { %13168 = vst [vmem:[#allocation19_spill] sm:$0xff] %v6596_v14  ;;  %13169 = vst [vmem:[#allocation20_spill] sm:$0xff] %v6598_v18  ;;  %808 = vrot.lane.b32.xlu1 %v6180_v4, %s12582_s3  ;;  %756 = vrot.lane.b32.xlu0 %v6211_v9, %s12568_s0  ;;  %s12602_s0 = smov 39  }
 0x114   :  { %v6607_v10 = vpop.permute.xlu1 %472  ;;  %v6609_v58 = vpop.permute.xlu0 %420 }
 0x115   :  { %13170 = vst [vmem:[#allocation21_spill] sm:$0xff] %v6607_v10  ;;  %13171 = vst [vmem:[#allocation22_spill] sm:$0xff] %v6609_v58  ;;  %879 = vperm.xlu1 %6004, %v5786_v34   ;;  %810 = vrot.lane.b32.xlu0 %v6187_v5, %s12582_s3  ;;  %v5787_v34 = vld [vmem:[%s13149_s23 + $0xe8] sm:$0xff] }
 0x118   :  { %v6613_v63 = vpop.permute.xlu1 %543  ;;  %v6615_v18 = vpop.permute.xlu0 %474 }
 0x119   :  { %13172 = vst [vmem:[#allocation23_spill] sm:$0xff] %v6613_v63  ;;  %13173 = vst [vmem:[#allocation24_spill] sm:$0xff] %v6615_v18  ;;  %784 = vrot.lane.b32.xlu1 %v6211_v9, %s12574_s26  ;;  %806 = vrot.lane.b32.xlu0 %v6197_v7, %s12582_s3  ;;  %s12596_s26 = smov 40  }
 0x11c   :  { %v6621_v14 = vpop.permute.xlu1 %448  ;;  %v6623_v15 = vpop.permute.xlu0 %470 }
 0x11d   :  { %13174 = vst [vmem:[#allocation25_spill] sm:$0xff] %v6621_v14  ;;  %13175 = vst [vmem:[#allocation26_spill] sm:$0xff] %v6623_v15  ;;  %838 = vrot.lane.b32.xlu1 %v6187_v5, %s12588_s30  ;;  %836 = vrot.lane.b32.xlu0 %v6180_v4, %s12588_s30 }
 0x120   :  { %v6632_v63 = vpop.permute.xlu1 %502  ;;  %v6634_v10 = vpop.permute.xlu0 %500 }
 0x121   :  { %13176 = vst [vmem:[#allocation27_spill] sm:$0xff] %v6632_v63  ;;  %13177 = vst [vmem:[#allocation28_spill] sm:$0xff] %v6634_v10  ;;  %834 = vrot.lane.b32.xlu1 %v6197_v7, %s12588_s30  ;;  %907 = vperm.xlu0 %6003, %v5787_v34   ;;  %v5788_v63 = vld [vmem:[%s13149_s23 + $0xf0] sm:$0xff] }
 0x124   :  { %v6638_v15 = vpop.permute.xlu1 %498  ;;  %v6640_v14 = vpop.permute.xlu0 %571 }
 0x125   :  { %13178 = vst [vmem:[#allocation29_spill] sm:$0xff] %v6638_v15  ;;  %13179 = vst [vmem:[#allocation30_spill] sm:$0xff] %v6640_v14  ;;  %864 = vrot.lane.b32.xlu1 %v6180_v4, %s12596_s26  ;;  %812 = vrot.lane.b32.xlu0 %v6211_v9, %s12582_s3  ;;  %s12616_s3 = smov 37  }
 0x128   :  { %v6649_v10 = vpop.permute.xlu1 %528  ;;  %v6651_v18 = vpop.permute.xlu0 %476 }
 0x129   :  { %13180 = vst [vmem:[#allocation31_spill] sm:$0xff] %v6649_v10  ;;  %13181 = vst [vmem:[#allocation32_spill] sm:$0xff] %v6651_v18  ;;  %935 = vperm.xlu1 %6004, %v5788_v63   ;;  %866 = vrot.lane.b32.xlu0 %v6187_v5, %s12596_s26  ;;  %v5789_v63 = vld [vmem:[%s13149_s23 + $0xf8] sm:$0xff] }
 0x12c   :  { %v6655_v34 = vpop.permute.xlu1 %599  ;;  %v6657_v14 = vpop.permute.xlu0 %530 }
 0x12d   :  { %13182 = vst [vmem:[#allocation33_spill] sm:$0xff] %v6655_v34  ;;  %13183 = vst [vmem:[#allocation34_spill] sm:$0xff] %v6657_v14  ;;  %840 = vrot.lane.b32.xlu1 %v6211_v9, %s12588_s30  ;;  %862 = vrot.lane.b32.xlu0 %v6197_v7, %s12596_s26  ;;  %s12610_s30 = smov 38  }
 0x130   :  { %v6663_v15 = vpop.permute.xlu1 %504  ;;  %v6665_v58 = vpop.permute.xlu0 %526 }
 0x131   :  { %13184 = vst [vmem:[#allocation35_spill] sm:$0xff] %v6663_v15  ;;  %13185 = vst [vmem:[#allocation36_spill] sm:$0xff] %v6665_v58  ;;  %894 = vrot.lane.b32.xlu1 %v6187_v5, %s12602_s0  ;;  %892 = vrot.lane.b32.xlu0 %v6180_v4, %s12602_s0 }
 0x134   :  { %v6674_v34 = vpop.permute.xlu1 %558  ;;  %v6676_v10 = vpop.permute.xlu0 %556 }
 0x135   :  { %13186 = vst [vmem:[#allocation37_spill] sm:$0xff] %v6674_v34  ;;  %13187 = vst [vmem:[#allocation38_spill] sm:$0xff] %v6676_v10  ;;  %890 = vrot.lane.b32.xlu1 %v6197_v7, %s12602_s0  ;;  %963 = vperm.xlu0 %6003, %v5789_v63   ;;  %v5790_v34 = vld [vmem:[%s13149_s23 + $0x100] sm:$0xff] }
 0x138   :  { %v6680_v58 = vpop.permute.xlu1 %554  ;;  %v6682_v15 = vpop.permute.xlu0 %627 }
 0x139   :  { %13188 = vst [vmem:[#allocation39_spill] sm:$0xff] %v6680_v58  ;;  %13189 = vst [vmem:[#allocation40_spill] sm:$0xff] %v6682_v15  ;;  %920 = vrot.lane.b32.xlu1 %v6180_v4, %s12610_s30  ;;  %868 = vrot.lane.b32.xlu0 %v6211_v9, %s12596_s26  ;;  %s12630_s26 = smov 35  }
 0x13c   :  { %v6691_v10 = vpop.permute.xlu1 %584  ;;  %v6693_v14 = vpop.permute.xlu0 %532 }
 0x13d   :  { %13190 = vst [vmem:[#allocation41_spill] sm:$0xff] %v6691_v10  ;;  %13191 = vst [vmem:[#allocation42_spill] sm:$0xff] %v6693_v14  ;;  %991 = vperm.xlu1 %6004, %v5790_v34   ;;  %922 = vrot.lane.b32.xlu0 %v6187_v5, %s12610_s30  ;;  %v5791_v34 = vld [vmem:[%s13149_s23 + $0x108] sm:$0xff] }
 0x140   :  { %v6697_v63 = vpop.permute.xlu1 %655  ;;  %v6699_v15 = vpop.permute.xlu0 %586 }
 0x141   :  { %13192 = vst [vmem:[#allocation43_spill] sm:$0xff] %v6697_v63  ;;  %13193 = vst [vmem:[#allocation44_spill] sm:$0xff] %v6699_v15  ;;  %896 = vrot.lane.b32.xlu1 %v6211_v9, %s12602_s0  ;;  %918 = vrot.lane.b32.xlu0 %v6197_v7, %s12610_s30  ;;  %s12624_s0 = smov 36  }
 0x144   :  { %v6705_v58 = vpop.permute.xlu1 %560  ;;  %v6707_v18 = vpop.permute.xlu0 %582 }
 0x145   :  { %13194 = vst [vmem:[#allocation45_spill] sm:$0xff] %v6705_v58  ;;  %13195 = vst [vmem:[#allocation46_spill] sm:$0xff] %v6707_v18  ;;  %950 = vrot.lane.b32.xlu1 %v6187_v5, %s12616_s3  ;;  %948 = vrot.lane.b32.xlu0 %v6180_v4, %s12616_s3 }
 0x148   :  { %v6716_v63 = vpop.permute.xlu1 %614  ;;  %v6718_v10 = vpop.permute.xlu0 %612 }
 0x149   :  { %13196 = vst [vmem:[#allocation47_spill] sm:$0xff] %v6716_v63  ;;  %13197 = vst [vmem:[#allocation48_spill] sm:$0xff] %v6718_v10  ;;  %946 = vrot.lane.b32.xlu1 %v6197_v7, %s12616_s3  ;;  %1019 = vperm.xlu0 %6003, %v5791_v34   ;;  %v5792_v63 = vld [vmem:[%s13149_s23 + $0x110] sm:$0xff] }
 0x14c   :  { %v6722_v18 = vpop.permute.xlu1 %610  ;;  %v6724_v58 = vpop.permute.xlu0 %683 }
 0x14d   :  { %13198 = vst [vmem:[#allocation49_spill] sm:$0xff] %v6722_v18  ;;  %13199 = vst [vmem:[#allocation50_spill] sm:$0xff] %v6724_v58  ;;  %976 = vrot.lane.b32.xlu1 %v6180_v4, %s12624_s0  ;;  %924 = vrot.lane.b32.xlu0 %v6211_v9, %s12610_s30  ;;  %s12644_s30 = smov 18  }
 0x150   :  { %v6733_v10 = vpop.permute.xlu1 %640  ;;  %v6735_v15 = vpop.permute.xlu0 %588 }
 0x151   :  { %13200 = vst [vmem:[#allocation51_spill] sm:$0xff] %v6733_v10  ;;  %13201 = vst [vmem:[#allocation52_spill] sm:$0xff] %v6735_v15  ;;  %1047 = vperm.xlu1 %6004, %v5792_v63   ;;  %978 = vrot.lane.b32.xlu0 %v6187_v5, %s12624_s0  ;;  %v5793_v63 = vld [vmem:[%s13149_s23 + $0x118] sm:$0xff] }
 0x154   :  { %v6739_v34 = vpop.permute.xlu1 %711  ;;  %v6741_v58 = vpop.permute.xlu0 %642 }
 0x155   :  { %13202 = vst [vmem:[#allocation53_spill] sm:$0xff] %v6739_v34  ;;  %13203 = vst [vmem:[#allocation54_spill] sm:$0xff] %v6741_v58  ;;  %952 = vrot.lane.b32.xlu1 %v6211_v9, %s12616_s3  ;;  %974 = vrot.lane.b32.xlu0 %v6197_v7, %s12624_s0  ;;  %s12638_s3 = smov 34  }
 0x158   :  { %v6747_v18 = vpop.permute.xlu1 %616  ;;  %v6749_v14 = vpop.permute.xlu0 %638 }
 0x159   :  { %13204 = vst [vmem:[#allocation55_spill] sm:$0xff] %v6747_v18  ;;  %13205 = vst [vmem:[#allocation56_spill] sm:$0xff] %v6749_v14  ;;  %1006 = vrot.lane.b32.xlu1 %v6187_v5, %s12630_s26  ;;  %1004 = vrot.lane.b32.xlu0 %v6180_v4, %s12630_s26 }
 0x15c   :  { %v6758_v34 = vpop.permute.xlu1 %670  ;;  %v6760_v10 = vpop.permute.xlu0 %668 }
 0x15d   :  { %13206 = vst [vmem:[#allocation57_spill] sm:$0xff] %v6758_v34  ;;  %13207 = vst [vmem:[#allocation58_spill] sm:$0xff] %v6760_v10  ;;  %1002 = vrot.lane.b32.xlu1 %v6197_v7, %s12630_s26  ;;  %1075 = vperm.xlu0 %6003, %v5793_v63   ;;  %v5794_v34 = vld [vmem:[%s13149_s23 + $0x120] sm:$0xff] }
 0x160   :  { %v6764_v14 = vpop.permute.xlu1 %666  ;;  %v6766_v18 = vpop.permute.xlu0 %739 }
 0x161   :  { %13208 = vst [vmem:[#allocation59_spill] sm:$0xff] %v6764_v14  ;;  %13209 = vst [vmem:[#allocation60_spill] sm:$0xff] %v6766_v18  ;;  %1032 = vrot.lane.b32.xlu1 %v6180_v4, %s12638_s3  ;;  %980 = vrot.lane.b32.xlu0 %v6211_v9, %s12624_s0  ;;  %s12658_s0 = smov 16  }
 0x164   :  { %v6775_v10 = vpop.permute.xlu1 %696  ;;  %v6777_v58 = vpop.permute.xlu0 %644 }
 0x165   :  { %13210 = vst [vmem:[#allocation61_spill] sm:$0xff] %v6775_v10  ;;  %13211 = vst [vmem:[#allocation62_spill] sm:$0xff] %v6777_v58  ;;  %1103 = vperm.xlu1 %6004, %v5794_v34   ;;  %1034 = vrot.lane.b32.xlu0 %v6187_v5, %s12638_s3  ;;  %v5795_v34 = vld [vmem:[%s13149_s23 + $0x128] sm:$0xff] }
 0x168   :  { %v6781_v63 = vpop.permute.xlu1 %767  ;;  %v6783_v18 = vpop.permute.xlu0 %698 }
 0x169   :  { %13212 = vst [vmem:[#allocation63_spill] sm:$0xff] %v6781_v63  ;;  %13213 = vst [vmem:[#allocation64_spill] sm:$0xff] %v6783_v18  ;;  %1008 = vrot.lane.b32.xlu1 %v6211_v9, %s12630_s26  ;;  %1030 = vrot.lane.b32.xlu0 %v6197_v7, %s12638_s3  ;;  %s12652_s26 = smov 17  }
 0x16c   :  { %v6789_v14 = vpop.permute.xlu1 %672  ;;  %v6791_v15 = vpop.permute.xlu0 %694 }
 0x16d   :  { %13214 = vst [vmem:[#allocation65_spill] sm:$0xff] %v6789_v14  ;;  %13215 = vst [vmem:[#allocation66_spill] sm:$0xff] %v6791_v15  ;;  %1062 = vrot.lane.b32.xlu1 %v6187_v5, %s12644_s30  ;;  %1060 = vrot.lane.b32.xlu0 %v6180_v4, %s12644_s30 }
 0x170   :  { %v6800_v63 = vpop.permute.xlu1 %726  ;;  %v6802_v10 = vpop.permute.xlu0 %724 }
 0x171   :  { %13216 = vst [vmem:[#allocation67_spill] sm:$0xff] %v6800_v63  ;;  %13217 = vst [vmem:[#allocation68_spill] sm:$0xff] %v6802_v10  ;;  %1058 = vrot.lane.b32.xlu1 %v6197_v7, %s12644_s30  ;;  %1131 = vperm.xlu0 %6003, %v5795_v34   ;;  %v5796_v63 = vld [vmem:[%s13149_s23 + $0x130] sm:$0xff] }
 0x174   :  { %v6806_v15 = vpop.permute.xlu1 %722  ;;  %v6808_v14 = vpop.permute.xlu0 %795 }
 0x175   :  { %13218 = vst [vmem:[#allocation69_spill] sm:$0xff] %v6806_v15  ;;  %13219 = vst [vmem:[#allocation70_spill] sm:$0xff] %v6808_v14  ;;  %1088 = vrot.lane.b32.xlu1 %v6180_v4, %s12652_s26  ;;  %1036 = vrot.lane.b32.xlu0 %v6211_v9, %s12638_s3  ;;  %s12670_s3 = smov 14  }
 0x178   :  { %v6817_v10 = vpop.permute.xlu1 %752  ;;  %v6819_v18 = vpop.permute.xlu0 %700 }
 0x179   :  { %13220 = vst [vmem:[#allocation71_spill] sm:$0xff] %v6817_v10  ;;  %13221 = vst [vmem:[#allocation72_spill] sm:$0xff] %v6819_v18  ;;  %1159 = vperm.xlu1 %6004, %v5796_v63   ;;  %1090 = vrot.lane.b32.xlu0 %v6187_v5, %s12652_s26  ;;  %v5797_v63 = vld [vmem:[%s13149_s23 + $0x138] sm:$0xff] }
 0x17c   :  { %v6823_v34 = vpop.permute.xlu1 %823  ;;  %v6825_v14 = vpop.permute.xlu0 %754 }
 0x17d   :  { %13222 = vst [vmem:[#allocation73_spill] sm:$0xff] %v6823_v34  ;;  %13223 = vst [vmem:[#allocation74_spill] sm:$0xff] %v6825_v14  ;;  %1064 = vrot.lane.b32.xlu1 %v6211_v9, %s12644_s30  ;;  %1086 = vrot.lane.b32.xlu0 %v6197_v7, %s12652_s26  ;;  %s12666_s30 = smov 15  }
 0x180   :  { %v6831_v15 = vpop.permute.xlu1 %728  ;;  %v6833_v58 = vpop.permute.xlu0 %750 }
 0x181   :  { %13224 = vst [vmem:[#allocation75_spill] sm:$0xff] %v6831_v15  ;;  %13225 = vst [vmem:[#allocation76_spill] sm:$0xff] %v6833_v58  ;;  %1118 = vrot.lane.b32.xlu1 %v6187_v5, %s12658_s0  ;;  %1116 = vrot.lane.b32.xlu0 %v6180_v4, %s12658_s0 }
 0x184   :  { %v6842_v34 = vpop.permute.xlu1 %782  ;;  %v6844_v10 = vpop.permute.xlu0 %780 }
 0x185   :  { %13226 = vst [vmem:[#allocation77_spill] sm:$0xff] %v6842_v34  ;;  %13227 = vst [vmem:[#allocation78_spill] sm:$0xff] %v6844_v10  ;;  %1114 = vrot.lane.b32.xlu1 %v6197_v7, %s12658_s0  ;;  %1187 = vperm.xlu0 %6003, %v5797_v63   ;;  %v5798_v34 = vld [vmem:[%s13149_s23 + $0x140] sm:$0xff] }
 0x188   :  { %v6848_v58 = vpop.permute.xlu1 %778  ;;  %v6850_v15 = vpop.permute.xlu0 %851 }
 0x189   :  { %13228 = vst [vmem:[#allocation79_spill] sm:$0xff] %v6848_v58  ;;  %13229 = vst [vmem:[#allocation80_spill] sm:$0xff] %v6850_v15  ;;  %1144 = vrot.lane.b32.xlu1 %v6180_v4, %s12666_s30  ;;  %1092 = vrot.lane.b32.xlu0 %v6211_v9, %s12652_s26  ;;  %s12707_s26 = smov 12  }
 0x18c   :  { %v6859_v10 = vpop.permute.xlu1 %808  ;;  %v6861_v14 = vpop.permute.xlu0 %756 }
 0x18d   :  { %13230 = vst [vmem:[#allocation81_spill] sm:$0xff] %v6859_v10  ;;  %13231 = vst [vmem:[#allocation82_spill] sm:$0xff] %v6861_v14  ;;  %1215 = vperm.xlu1 %6004, %v5798_v34   ;;  %1146 = vrot.lane.b32.xlu0 %v6187_v5, %s12666_s30  ;;  %v5799_v34 = vld [vmem:[%s13149_s23 + $0x148] sm:$0xff] }
 0x190   :  { %v6865_v63 = vpop.permute.xlu1 %879  ;;  %v6867_v15 = vpop.permute.xlu0 %810 }
 0x191   :  { %13232 = vst [vmem:[#allocation83_spill] sm:$0xff] %v6865_v63  ;;  %13233 = vst [vmem:[#allocation84_spill] sm:$0xff] %v6867_v15  ;;  %1120 = vrot.lane.b32.xlu1 %v6211_v9, %s12658_s0  ;;  %1142 = vrot.lane.b32.xlu0 %v6197_v7, %s12666_s30  ;;  %s12681_s0 = smov 13  }
 0x194   :  { %v6873_v58 = vpop.permute.xlu1 %784  ;;  %v6875_v18 = vpop.permute.xlu0 %806 }
 0x195   :  { %13234 = vst [vmem:[#allocation85_spill] sm:$0xff] %v6873_v58  ;;  %13235 = vst [vmem:[#allocation86_spill] sm:$0xff] %v6875_v18  ;;  %1174 = vrot.lane.b32.xlu1 %v6187_v5, %s12670_s3  ;;  %1172 = vrot.lane.b32.xlu0 %v6180_v4, %s12670_s3 }
 0x198   :  { %v6884_v63 = vpop.permute.xlu1 %838  ;;  %v6886_v10 = vpop.permute.xlu0 %836 }
 0x199   :  { %13236 = vst [vmem:[#allocation87_spill] sm:$0xff] %v6884_v63  ;;  %13237 = vst [vmem:[#allocation88_spill] sm:$0xff] %v6886_v10  ;;  %1170 = vrot.lane.b32.xlu1 %v6197_v7, %s12670_s3  ;;  %1243 = vperm.xlu0 %6003, %v5799_v34   ;;  %v5800_v63 = vld [vmem:[%s13149_s23 + $0x150] sm:$0xff] }
 0x19c   :  { %v6890_v18 = vpop.permute.xlu1 %834  ;;  %v6892_v58 = vpop.permute.xlu0 %907 }
 0x19d   :  { %13238 = vst [vmem:[#allocation89_spill] sm:$0xff] %v6890_v18  ;;  %13239 = vst [vmem:[#allocation90_spill] sm:$0xff] %v6892_v58  ;;  %1200 = vrot.lane.b32.xlu1 %v6180_v4, %s12681_s0  ;;  %1148 = vrot.lane.b32.xlu0 %v6211_v9, %s12666_s30  ;;  %s13537_s30 = smov 101  }
 0x1a0   :  { %v6901_v10 = vpop.permute.xlu1 %864  ;;  %v6903_v15 = vpop.permute.xlu0 %812 }
 0x1a1   :  { %13240 = vst [vmem:[#allocation91_spill] sm:$0xff] %v6901_v10  ;;  %13241 = vst [vmem:[#allocation92_spill] sm:$0xff] %v6903_v15  ;;  %1258 = vperm.xlu1 %6004, %v5800_v63   ;;  %1202 = vrot.lane.b32.xlu0 %v6187_v5, %s12681_s0  ;;  %v5801_v63 = vld [vmem:[%s13149_s23 + $0x158] sm:$0xff] }
 0x1a4   :  { %v6907_v34 = vpop.permute.xlu1 %935  ;;  %v6909_v58 = vpop.permute.xlu0 %866 }
 0x1a5   :  { %13242 = vst [vmem:[#allocation93_spill] sm:$0xff] %v6907_v34  ;;  %13243 = vst [vmem:[#allocation94_spill] sm:$0xff] %v6909_v58  ;;  %1176 = vrot.lane.b32.xlu1 %v6211_v9, %s12670_s3  ;;  %1198 = vrot.lane.b32.xlu0 %v6197_v7, %s12681_s0  ;;  %s12767_s3 = smov 118  }
 0x1a8   :  { %v6915_v18 = vpop.permute.xlu1 %840  ;;  %v6917_v14 = vpop.permute.xlu0 %862 }
 0x1a9   :  { %13244 = vst [vmem:[#allocation95_spill] sm:$0xff] %v6915_v18  ;;  %13245 = vst [vmem:[#allocation96_spill] sm:$0xff] %v6917_v14  ;;  %1230 = vrot.lane.b32.xlu1 %v6187_v5, %s12707_s26  ;;  %1228 = vrot.lane.b32.xlu0 %v6180_v4, %s12707_s26  ;;  %v5802_v14 = vld [vmem:[%s13149_s23 + $0x160] sm:$0xff] }
 0x1ac   :  { %v6926_v34 = vpop.permute.xlu1 %894  ;;  %v6928_v10 = vpop.permute.xlu0 %892 }
 0x1ad   :  { %13246 = vst [vmem:[#allocation97_spill] sm:$0xff] %v6926_v34  ;;  %13247 = vst [vmem:[#allocation98_spill] sm:$0xff] %v6928_v10  ;;  %1226 = vrot.lane.b32.xlu1 %v6197_v7, %s12707_s26  ;;  %1273 = vperm.xlu0 %6003, %v5801_v63   ;;  %v5803_v10 = vld [vmem:[%s13149_s23 + $0x168] sm:$0xff]  ;;  %v5804_v63 = vld [vmem:[%s13149_s23 + $0x170] sm:$0xff] }
 0x1b0   :  { %v6935_v18 = vpop.permute.xlu1 %890  ;;  %v6937_v58 = vpop.permute.xlu0 %963 }
 0x1b1   :  { %13248 = vst [vmem:[#allocation99_spill] sm:$0xff] %v6935_v18  ;;  %13249 = vst [vmem:[#allocation100_spill] sm:$0xff] %v6937_v58  ;;  %1288 = vperm.xlu1 %6004, %v5802_v14   ;;  %1204 = vrot.lane.b32.xlu0 %v6211_v9, %s12681_s0  ;;  %s12703_s0 = smov 121  }
 0x1b4   :  { %v6944_v34 = vpop.permute.xlu1 %920  ;;  %v6946_v15 = vpop.permute.xlu0 %868 }
 0x1b5   :  { %13250 = vst [vmem:[#allocation101_spill] sm:$0xff] %v6944_v34  ;;  %13251 = vst [vmem:[#allocation102_spill] sm:$0xff] %v6946_v15  ;;  %1316 = vperm.xlu1 %6004, %v5803_v10   ;;  %1232 = vrot.lane.b32.xlu0 %v6211_v9, %s12707_s26  ;;  %v5805_v10 = vld [vmem:[%s13149_s23 + $0x178] sm:$0xff]  ;;  %v12689_v34 = vlaneseq  ;;  %s13272_s26 = sld [smem:[#allocation251_spill]] }
 0x1b8   :  { %v6953_v14 = vpop.permute.xlu1 %991  ;;  %v6955_v58 = vpop.permute.xlu0 %922 }
 0x1b9   :  { %13252 = vst [vmem:[#allocation103_spill] sm:$0xff] %v6953_v14  ;;  %13253 = vst [vmem:[#allocation104_spill] sm:$0xff] %v6955_v58  ;;  %1303 = vrot.lane.b32.xlu1 %v6187_v5, %s12703_s0  ;;  %1344 = vperm.xlu0 %6003, %v5804_v63   ;;  %v6969_v14 = vand.u32 127, %v12689_v34  ;;  %v5806_v63 = vld [vmem:[%s13149_s23 + $0x180] sm:$0xff]  ;;  %s12769_s23 = smov 119  }
 0x1bb   :  { %vm114_vm0 = vcmp.lt.s32.totalorder %v6969_v14, 127  ;;  %vm142_vm1 = vcmp.lt.s32.totalorder %v6969_v14, 126  ;;  %vm170_vm2 = vcmp.lt.s32.totalorder %v6969_v14, 125  ;;  %vm198_vm3 = vcmp.lt.s32.totalorder %v6969_v14, 124 }
 0x1bc   :  { %v6962_v15 = vpop.permute.xlu1 %896  ;;  %v6964_v18 = vpop.permute.xlu0 %918  ;;  %vm226_vm4 = vcmp.lt.s32.totalorder %v6969_v14, 123  ;;  %vm254_vm5 = vcmp.lt.s32.totalorder %v6969_v14, 122  ;;  %vm282_vm6 = vcmp.lt.s32.totalorder %v6969_v14, 106  ;;  %vm310_vm7 = vcmp.lt.s32.totalorder %v6969_v14, 105 }
 0x1bd   :  { %13254 = vst [vmem:[#allocation105_spill] sm:$0xff] %v6962_v15  ;;  %13255 = vst [vmem:[#allocation106_spill] sm:$0xff] %v6964_v18  ;;  %1372 = vperm.xlu1 %6004, %v5805_v10   ;;  %1305 = vrot.lane.b32.xlu0 %v6211_v9, %s12703_s0  ;;  %v118_v15 = vsel %vm114_vm0, %v6369_v32, %v6357_v29  ;;  %vm338_vm8 = vcmp.lt.s32.totalorder %v6969_v14, 104  ;;  %vm12709_vm9 = vcmp.lt.s32.totalorder %v6969_v14, 103  ;;  %vm12710_vm10 = vcmp.lt.s32.totalorder %v6969_v14, 102 }
 0x1be   :  { %v129_v39 = vmul.f32 %v6338_v23, %v118_v15  ;;  %vm12713_vm11 = vcmp.lt.s32.totalorder %v6969_v14, 101  ;;  %vm12716_vm12 = vcmp.lt.s32.totalorder %v6969_v14, 100  ;;  %vm12718_vm13 = vcmp.lt.s32.totalorder %v6969_v14, 84 }
 0x1bf   :  { %vm12721_vm14 = vcmp.lt.s32.totalorder %v6969_v14, 83  ;;  %vm12723_vm15 = vcmp.lt.s32.totalorder %v6969_v14, 82 }
 0x1c0   :  { %v6971_v58 = vpop.permute.xlu1 %950  ;;  %v6973_v51 = vpop.permute.xlu0 %948 }
 0x1c1   :  { %13256 = vst [vmem:[#allocation107_spill] sm:$0xff] %v6971_v58  ;;  %13257 = vst [vmem:[#allocation108_spill] sm:$0xff] %v6973_v51  ;;  %1331 = vrot.lane.b32.xlu1 %v6187_v5, %s12705_s21  ;;  %1301 = vrot.lane.b32.xlu0 %v6180_v4, %s12703_s0  ;;  %v116_v51 = vsel %vm114_vm0, %v6340_v24, %v6344_v25  ;;  %v117_v58 = vsel %vm114_vm0, %v6357_v29, %v6340_v24 }
 0x1c2   :  { %v126_v18 = vmul.f32 %v6338_v23, %v117_v58  ;;  %v101_v58 = vmul.f32 %v6329_v21, %v6180_v4  ;;  %v172_v29 = vsel %vm170_vm2, %v6382_v36, %v6380_v35 }
 0x1c3   :  { %v183_v2 = vmul.f32 %v6346_v26, %v172_v29 }
 0x1c4   :  { %v6983_v10 = vpop.permute.xlu1 %946  ;;  %v6986_v34 = vpop.permute.xlu0 %1019 }
 0x1c5   :  { %13258 = vst [vmem:[#allocation109_spill] sm:$0xff] %v6983_v10  ;;  %13259 = vst [vmem:[#allocation110_spill] sm:$0xff] %v6986_v34  ;;  %1400 = vperm.xlu1 %6004, %v5806_v63   ;;  %1333 = vrot.lane.b32.xlu0 %v6211_v9, %s12705_s21  ;;  %v144_v63 = vsel %vm142_vm1, %v6355_v28, %v6363_v31  ;;  %v115_v34 = vsel %vm114_vm0, %v6344_v25, %v6369_v32 }
 0x1c6   :  { %v127_v10 = vmul.f32 %v6338_v23, %v116_v51  ;;  %v145_v25 = vsel %vm142_vm1, %v6371_v33, %v6355_v28  ;;  %v100_v51 = vmul.f32 %v6329_v21, %v6197_v7  ;;  %v155_v28 = vmul.f32 %v6327_v20, %v144_v63 }
 0x1c7   :  { %v128_v32 = vmul.f32 %v6338_v23, %v115_v34  ;;  %v103_v63 = vmul.f32 %v6329_v21, %v6211_v9 }
 0x1c8   :  { %v7009_v24 = vpop.permute.xlu1 %976  ;;  %v7021_v46 = vpop.permute.xlu0 %924  ;;  %v130_v27 = vadd.f32 %v126_v18, %v100_v51 }
 0x1c9   :  { %13260 = vst [vmem:[#allocation111_spill] sm:$0xff] %v7009_v24  ;;  %13261 = vst [vmem:[#allocation112_spill] sm:$0xff] %v7021_v46  ;;  %1299 = vrot.lane.b32.xlu1 %v6197_v7, %s12703_s0  ;;  %1329 = vrot.lane.b32.xlu0 %v6180_v4, %s12705_s21  ;;  %v173_v7 = vsel %vm170_vm2, %v6386_v37, %v6382_v36  ;;  %v143_v24 = vsel %vm142_vm1, %v6363_v31, %v6399_v41  ;;  %s13531_s0 = smov 122  }
 0x1ca   :  { %v102_v46 = vmul.f32 %v6329_v21, %v6187_v5  ;;  %v154_v4 = vmul.f32 %v6327_v20, %v145_v25  ;;  %v131_v36 = vadd.f32 %v127_v10, %v101_v58  ;;  %v182_v23 = vmul.f32 %v6346_v26, %v173_v7 }
 0x1cb   :  { %v146_v31 = vsel %vm142_vm1, %v6399_v41, %v6371_v33  ;;  %v156_v15 = vmul.f32 %v6327_v20, %v143_v24  ;;  %v7070_v21 = vsel %vm198_vm3, %v6397_v40, %v6405_v43  ;;  %v171_v10 = vsel %vm170_vm2, %v6380_v35, %v6411_v44 }
 0x1cc   :  { %v7051_v34 = vpop.permute.xlu1 %1047  ;;  %v7056_v22 = vpop.permute.xlu0 %978  ;;  %13262 = vst [vmem:[#allocation113_spill] sm:$0xff] %v7070_v21  ;;  %v159_v18 = vadd.f32 %v155_v28, %v131_v36  ;;  %v133_v33 = vadd.f32 %v129_v39, %v103_v63  ;;  %v158_v41 = vadd.f32 %v154_v4, %v130_v27  ;;  %v174_v24 = vsel %vm170_vm2, %v6411_v44, %v6386_v37 }
 0x1cd   :  { %1361 = vrot.lane.b32.xlu1 %v6211_v9, %s12769_s23  ;;  %1359 = vrot.lane.b32.xlu0 %v6187_v5, %s12769_s23  ;;  %v132_v9 = vadd.f32 %v128_v32, %v102_v46  ;;  %v7087_v5 = vsel %vm198_vm3, %v6413_v45, %v6397_v40  ;;  %v157_v25 = vmul.f32 %v6327_v20, %v146_v31  ;;  %v7112_v20 = vld [vmem:[%s13150_s28] sm:$0xff]  ;;  %v6013_v31 = vld [vmem:[%s13150_s28 + $0x18] sm:$0xff] }
 0x1ce   :  { %13263 = vst [vmem:[#allocation114_spill] sm:$0xff] %v7087_v5  ;;  %v211_v35 = vmul.f32 %v6361_v30, %v7070_v21  ;;  %v7098_v27 = vsel %vm226_vm4, %v6424_v48, %v6422_v47  ;;  %v7104_v37 = vsel %vm198_vm3, %v6405_v43, %v6441_v53  ;;  %v187_v44 = vadd.f32 %v183_v2, %v159_v18  ;;  %v6012_v43 = vld [vmem:[%s13150_s28 + $0x8] sm:$0xff]  ;;  %v6014_v18 = vld [vmem:[%s13150_s28 + $0x10] sm:$0xff]  ;;  %s13301_s28 = sld [smem:[#allocation253_spill]] }
 0x1cf   :  { %13264 = vst [vmem:[#allocation115_spill] sm:$0xff] %v7098_v27  ;;  %13265 = vst [vmem:[#allocation116_spill] sm:$0xff] %v7104_v37  ;;  %v186_v39 = vadd.f32 %v182_v23, %v158_v41  ;;  %v160_v51 = vadd.f32 %v156_v15, %v132_v9  ;;  %v184_v58 = vmul.f32 %v6346_v26, %v171_v10 }
 0x1d0   :  { %v7089_v46 = vpop.permute.xlu1 %952  ;;  %v7107_v40 = vpop.permute.xlu0 %974  ;;  %v185_v29 = vmul.f32 %v6346_v26, %v174_v24  ;;  %v210_v28 = vmul.f32 %v6361_v30, %v7087_v5  ;;  %v7128_v2 = vsel %vm226_vm4, %v6428_v49, %v6424_v48  ;;  %v7134_v32 = vsel %vm198_vm3, %v6441_v53, %v6413_v45  ;;  %v13318_v5 = vld [vmem:[#allocation45_spill] sm:$0xff] }
 0x1d1   :  { %1327 = vrot.lane.b32.xlu1 %v7112_v20, %s12705_s21  ;;  %1357 = vrot.lane.b32.xlu0 %v6012_v43, %s12769_s23  ;;  %13266 = vst [vmem:[#allocation117_spill] sm:$0xff] %v7128_v2  ;;  %13267 = vst [vmem:[#allocation118_spill] sm:$0xff] %v7134_v32  ;;  %v239_v7 = vmul.f32 %v6388_v38, %v7098_v27  ;;  %v212_v26 = vmul.f32 %v6361_v30, %v7104_v37  ;;  %s13275_s21 = sld [smem:[#allocation252_spill]]  ;;  %v13339_v37 = vld [vmem:[#allocation65_spill] sm:$0xff] }
 0x1d2   :  { %v7144_v4 = vsel %vm254_vm5, %v6439_v52, %v6447_v55  ;;  %v7150_v48 = vsel %vm226_vm4, %v6422_v47, %v6453_v56  ;;  %v161_v53 = vadd.f32 %v157_v25, %v133_v33  ;;  %v215_v63 = vadd.f32 %v211_v35, %v187_v44 }
 0x1d3   :  { %13268 = vst [vmem:[#allocation119_spill] sm:$0xff] %v7144_v4  ;;  %13269 = vst [vmem:[#allocation120_spill] sm:$0xff] %v7150_v48  ;;  %v7159_v36 = vsel %vm226_vm4, %v6453_v56, %v6428_v49  ;;  %v7165_v23 = vsel %vm254_vm5, %v6455_v57, %v6439_v52  ;;  %v188_v15 = vadd.f32 %v184_v58, %v160_v51 }
 0x1d4   :  { %v7153_v45 = vpop.permute.xlu1 %1006  ;;  %13270 = vst [vmem:[#allocation121_spill] sm:$0xff] %v7159_v36  ;;  %13271 = vst [vmem:[#allocation122_spill] sm:$0xff] %v7165_v23  ;;  %v7167_v47 = vpop.permute.xlu0 %1004  ;;  %v238_v49 = vmul.f32 %v6388_v38, %v7128_v2  ;;  %v213_v56 = vmul.f32 %v6361_v30, %v7134_v32  ;;  %v284_v52 = vsel %vm282_vm6, %v6466_v60, %v6464_v59  ;;  %v70_v30 = vld [vmem:[%s13272_s26] sm:$0xff]  ;;  %v13323_v32 = vld [vmem:[#allocation49_spill] sm:$0xff]  ;;  %s13536_s26 = smov 102  }
 0x1d5   :  { %1389 = vrot.lane.b32.xlu1 %v6013_v31, %s12767_s3  ;;  %1387 = vrot.lane.b32.xlu0 %v6014_v18, %s12767_s3  ;;  %v189_v9 = vadd.f32 %v185_v29, %v161_v53  ;;  %v214_v10 = vadd.f32 %v210_v28, %v186_v39  ;;  %v267_v33 = vmul.f32 %v6403_v42, %v7144_v4 }
 0x1d6   :  { %v240_v41 = vmul.f32 %v6388_v38, %v7150_v48  ;;  %v243_v24 = vadd.f32 %v239_v7, %v215_v63  ;;  %v216_v25 = vadd.f32 %v212_v26, %v188_v15  ;;  %v241_v35 = vmul.f32 %v6388_v38, %v7159_v36  ;;  %v13313_v36 = vld [vmem:[#allocation39_spill] sm:$0xff] }
 0x1d7   :  { %v266_v44 = vmul.f32 %v6403_v42, %v7165_v23  ;;  %v295_v51 = vmul.f32 %v6430_v50, %v284_v52  ;;  %v285_v58 = vsel %vm282_vm6, %v6470_v61, %v6466_v60  ;;  %v7208_v29 = vsel %vm254_vm5, %v6447_v55, %v6483_v1  ;;  %v13302_v23 = vld [vmem:[#allocation29_spill] sm:$0xff]  ;;  %v13334_v48 = vld [vmem:[#allocation59_spill] sm:$0xff] }
 0x1d8   :  { %v7197_v39 = vpop.permute.xlu1 %1002  ;;  %13273 = vst [vmem:[#allocation123_spill] sm:$0xff] %v7208_v29  ;;  %v312_v38 = vsel %vm310_vm7, %v6481_v0, %v6489_v3  ;;  %v7214_v28 = vpop.permute.xlu0 %1075  ;;  %v242_v7 = vadd.f32 %v238_v49, %v214_v10  ;;  %v217_v26 = vadd.f32 %v213_v56, %v189_v9  ;;  %v7221_v60 = vsel %vm254_vm5, %v6483_v1, %v6455_v57 }
 0x1d9   :  { %1385 = vrot.lane.b32.xlu1 %v6012_v43, %s12767_s3  ;;  %13274 = vst [vmem:[#allocation124_spill] sm:$0xff] %v7221_v60  ;;  %1413 = vperm.xlu0 %6003, %v70_v30   ;;  %v271_v55 = vadd.f32 %v267_v33, %v243_v24  ;;  %v244_v53 = vadd.f32 %v240_v41, %v216_v25  ;;  %v88_v41 = vld [vmem:[%s13275_s21 + $0x30] sm:$0xff] }
 0x1da   :  { %v283_v63 = vsel %vm282_vm6, %v6464_v59, %v6495_v6  ;;  %v313_v43 = vsel %vm310_vm7, %v6497_v8, %v6481_v0  ;;  %v294_v31 = vmul.f32 %v6430_v50, %v285_v58  ;;  %v268_v57 = vmul.f32 %v6403_v42, %v7208_v29  ;;  %v13276_v58 = vld [vmem:[#allocation5_spill] sm:$0xff] }
 0x1db   :  { %v323_v1 = vmul.f32 %v6445_v54, %v312_v38  ;;  %v340_v15 = vsel %vm338_vm8, %v6508_v12, %v6506_v11  ;;  %v245_v59 = vadd.f32 %v241_v35, %v217_v26  ;;  %v270_v56 = vadd.f32 %v266_v44, %v242_v7 }
 0x1dc   :  { %v7240_v49 = vpop.permute.xlu1 %1032  ;;  %v299_v52 = vadd.f32 %v295_v51, %v271_v55  ;;  %v269_v0 = vmul.f32 %v6403_v42, %v7221_v60  ;;  %v7245_v18 = vpop.permute.xlu0 %980  ;;  %v286_v9 = vsel %vm282_vm6, %v6495_v6, %v6470_v61  ;;  %v296_v10 = vmul.f32 %v6430_v50, %v283_v63  ;;  %v13277_v55 = vld [vmem:[#allocation2_spill] sm:$0xff] }
 0x1dd   :  { %1383 = vrot.lane.b32.xlu1 %v7112_v20, %s12767_s3  ;;  %v322_v33 = vmul.f32 %v6445_v54, %v313_v43  ;;  %v341_v42 = vsel %vm338_vm8, %v6512_v13, %v6508_v12  ;;  %1355 = vrot.lane.b32.xlu0 %v7112_v20, %s12769_s23  ;;  %v351_v30 = vmul.f32 %v6472_v62, %v340_v15  ;;  %v12711_v20 = vmov 0.0   ;;  %v13279_v43 = vld [vmem:[#allocation7_spill] sm:$0xff]  ;;  %s13542_s23 = smov 81   ;;  %s13543_s3 = smov 80  }
 0x1de   :  { %v311_v61 = vsel %vm310_vm7, %v6489_v3, %v6525_v17  ;;  %v368_v6 = vsel %vm12709_vm9, %v6523_v16, %v6531_v19  ;;  %v298_v12 = vadd.f32 %v294_v31, %v270_v56  ;;  %v272_v24 = vadd.f32 %v268_v57, %v244_v53  ;;  %1513 = vmatprep.mubr.f32.mxu0 %v12711_v20  ;;  %v13280_v31 = vld [vmem:[#allocation8_spill] sm:$0xff] }
 0x1df   :  { %v327_v25 = vadd.f32 %v323_v1, %v299_v52  ;;  %1584 = vmatprep.mubr.f32.mxu1 %v12711_v20  ;;  %v297_v44 = vmul.f32 %v6430_v50, %v286_v9  ;;  %v350_v3 = vmul.f32 %v6472_v62, %v341_v42  ;;  %v314_v51 = vsel %vm310_vm7, %v6525_v17, %v6497_v8  ;;  %v13278_v50 = vld [vmem:[#allocation6_spill] sm:$0xff]  ;;  %v13281_v9 = vld [vmem:[#allocation9_spill] sm:$0xff] }
 0x1e0   :  { %v7274_v35 = vpop.permute.xlu1 %1103  ;;  %v339_v38 = vsel %vm338_vm8, %v6506_v11, %v13276_v58  ;;  %v7288_v7 = vpop.permute.xlu0 %1034  ;;  %v324_v26 = vmul.f32 %v6445_v54, %v311_v61  ;;  %v379_v53 = vmul.f32 %v13277_v55, %v368_v6  ;;  %v369_v63 = vsel %vm12709_vm9, %v13278_v50, %v6523_v16  ;;  %v86_v11 = vld [vmem:[%s13275_s21 + $0x20] sm:$0xff]  ;;  %v13296_v20 = vld [vmem:[#allocation25_spill] sm:$0xff] }
 0x1e1   :  { %1810 = vperm.xlu1 %6004, %v88_v41   ;;  %v396_v8 = vsel %vm12710_vm10, %v13280_v31, %v13279_v43  ;;  %v273_v17 = vadd.f32 %v269_v0, %v245_v59  ;;  %v300_v57 = vadd.f32 %v296_v10, %v272_v24  ;;  %v326_v1 = vadd.f32 %v322_v33, %v298_v12  ;;  %v13282_v10 = vld [vmem:[#allocation3_spill] sm:$0xff]  ;;  %v13283_v41 = vld [vmem:[#allocation12_spill] sm:$0xff] }
 0x1e2   :  { %v355_v15 = vadd.f32 %v351_v30, %v327_v25  ;;  %v325_v56 = vmul.f32 %v6445_v54, %v314_v51  ;;  %v342_v16 = vsel %vm338_vm8, %v13276_v58, %v6512_v13  ;;  %v352_v52 = vmul.f32 %v6472_v62, %v339_v38  ;;  %v13284_v30 = vld [vmem:[#allocation14_spill] sm:$0xff]  ;;  %v13285_v13 = vld [vmem:[#allocation11_spill] sm:$0xff]  ;;  %v84_v58 = vld [vmem:[%s13275_s21 + $0x10] sm:$0xff] }
 0x1e3   :  { %v397_v42 = vsel %vm12710_vm10, %v13281_v9, %v13280_v31  ;;  %v378_v0 = vmul.f32 %v13277_v55, %v369_v63  ;;  %v407_v33 = vmul.f32 %v13282_v10, %v396_v8  ;;  %v367_v54 = vsel %vm12709_vm9, %v6531_v19, %v13283_v41  ;;  %v13286_v31 = vld [vmem:[#allocation15_spill] sm:$0xff]  ;;  %v13288_v8 = vld [vmem:[#allocation16_spill] sm:$0xff] }
 0x1e4   :  { %v7314_v59 = vpop.permute.xlu1 %1008  ;;  %v424_v61 = vsel %vm12713_vm11, %v13285_v13, %v13284_v30  ;;  %v7326_v6 = vpop.permute.xlu0 %1030  ;;  %v301_v12 = vadd.f32 %v297_v44, %v273_v17  ;;  %v354_v24 = vadd.f32 %v350_v3, %v326_v1  ;;  %v328_v25 = vadd.f32 %v324_v26, %v300_v57  ;;  %v13287_v26 = vld [vmem:[#allocation4_spill] sm:$0xff]  ;;  %v13290_v17 = vld [vmem:[#allocation18_spill] sm:$0xff] }
 0x1e5   :  { %1800 = vperm.xlu1 %6004, %v86_v11   ;;  %v383_v51 = vadd.f32 %v379_v53, %v355_v15  ;;  %v353_v19 = vmul.f32 %v6472_v62, %v342_v16  ;;  %v406_v38 = vmul.f32 %v13282_v10, %v397_v42  ;;  %v370_v63 = vsel %vm12709_vm9, %v13283_v41, %v13278_v50  ;;  %v13289_v11 = vld [vmem:[#allocation17_spill] sm:$0xff] }
 0x1e6   :  { %v395_v44 = vsel %vm12710_vm10, %v13279_v43, %v13286_v31  ;;  %v380_v3 = vmul.f32 %v13277_v55, %v367_v54  ;;  %v435_v53 = vmul.f32 %v13287_v26, %v424_v61  ;;  %v425_v62 = vsel %vm12713_vm11, %v13288_v8, %v13285_v13  ;;  %v13291_v61 = vld [vmem:[#allocation19_spill] sm:$0xff] }
 0x1e7   :  { %v452_v57 = vsel %vm12716_vm12, %v13290_v17, %v13289_v11  ;;  %v329_v1 = vadd.f32 %v325_v56, %v301_v12  ;;  %v356_v15 = vadd.f32 %v352_v52, %v328_v25  ;;  %v382_v16 = vadd.f32 %v378_v0, %v354_v24  ;;  %v82_v52 = vld [vmem:[%s13275_s21] sm:$0xff]  ;;  %v13294_v24 = vld [vmem:[#allocation24_spill] sm:$0xff]  ;;  %v13295_v25 = vld [vmem:[#allocation21_spill] sm:$0xff] }
 0x1e8   :  { %v7352_v50 = vpop.permute.xlu1 %1062  ;;  %v411_v43 = vadd.f32 %v407_v33, %v383_v51  ;;  %vm12726_vm9 = vcmp.lt.s32.totalorder %v6969_v14, 81  ;;  %v7355_v42 = vpop.permute.xlu0 %1060  ;;  %v381_v41 = vmul.f32 %v13277_v55, %v370_v63  ;;  %v398_v54 = vsel %vm12710_vm10, %v13286_v31, %v13281_v9  ;;  %v13292_v33 = vld [vmem:[#allocation10_spill] sm:$0xff] }
 0x1e9   :  { %1790 = vperm.xlu1 %6004, %v84_v58   ;;  %v408_v13 = vmul.f32 %v13282_v10, %v395_v44  ;;  %v453_v56 = vsel %vm12716_vm12, %v13291_v61, %v13290_v17  ;;  %v434_v0 = vmul.f32 %v13287_v26, %v425_v62  ;;  %v463_v55 = vmul.f32 %v13292_v33, %v452_v57  ;;  %v13293_v12 = vld [vmem:[#allocation22_spill] sm:$0xff] }
 0x1ea   :  { %v423_v9 = vsel %vm12713_vm11, %v13284_v30, %v13293_v12  ;;  %v480_v51 = vsel %vm12718_vm13, %v13295_v25, %v13294_v24  ;;  %v357_v58 = vadd.f32 %v353_v19, %v329_v1  ;;  %v410_v63 = vadd.f32 %v406_v38, %v382_v16  ;;  %v13299_v16 = vld [vmem:[#allocation27_spill] sm:$0xff] }
 0x1eb   :  { %v384_v31 = vadd.f32 %v380_v3, %v356_v15  ;;  %v439_v44 = vadd.f32 %v435_v53, %v411_v43  ;;  %vm12728_vm10 = vcmp.lt.s32.totalorder %v6969_v14, 80  ;;  %v409_v62 = vmul.f32 %v13282_v10, %v398_v54  ;;  %v13297_v53 = vld [vmem:[#allocation13_spill] sm:$0xff]  ;;  %v13298_v10 = vld [vmem:[#allocation26_spill] sm:$0xff]  ;;  %v13300_v43 = vld [vmem:[#allocation28_spill] sm:$0xff] }
 0x1ec   :  { %v7381_v17 = vpop.permute.xlu1 %1058  ;;  %v462_v57 = vmul.f32 %v13292_v33, %v453_v56  ;;  %v426_v30 = vsel %vm12713_vm11, %v13293_v12, %v13288_v8  ;;  %v451_v19 = vsel %vm12716_vm12, %v13289_v11, %v13296_v20  ;;  %v7393_v38 = vpop.permute.xlu0 %1131  ;;  %v436_v3 = vmul.f32 %v13287_v26, %v423_v9  ;;  %v92_v11 = vld [vmem:[%s13301_s28] sm:$0xff] }
 0x1ed   :  { %1780 = vperm.xlu1 %6004, %v82_v52   ;;  %v491_v1 = vmul.f32 %v13297_v53, %v480_v51  ;;  %v481_v15 = vsel %vm12718_vm13, %v13298_v10, %v13295_v25  ;;  %v508_v8 = vsel %vm12721_vm14, %v13300_v43, %v13299_v16  ;;  %v385_v54 = vadd.f32 %v381_v41, %v357_v58  ;;  %v13304_v58 = vld [vmem:[#allocation32_spill] sm:$0xff] }
 0x1ee   :  { %v412_v56 = vadd.f32 %v408_v13, %v384_v31  ;;  %v438_v52 = vadd.f32 %v434_v0, %v410_v63  ;;  %v467_v12 = vadd.f32 %v463_v55, %v439_v44  ;;  %vm12731_vm11 = vcmp.lt.s32.totalorder %v6969_v14, 79  ;;  %v13303_v0 = vld [vmem:[#allocation20_spill] sm:$0xff]  ;;  %v13305_v63 = vld [vmem:[#allocation34_spill] sm:$0xff] }
 0x1ef   :  { %v437_v9 = vmul.f32 %v13287_v26, %v426_v30  ;;  %v454_v25 = vsel %vm12716_vm12, %v13296_v20, %v13291_v61  ;;  %v464_v51 = vmul.f32 %v13292_v33, %v451_v19  ;;  %v509_v60 = vsel %vm12721_vm14, %v13302_v23, %v13300_v43  ;;  %v13306_v20 = vld [vmem:[#allocation31_spill] sm:$0xff] }
 0x1f0   :  { %v7419_v41 = vpop.permute.xlu1 %1088  ;;  %v490_v13 = vmul.f32 %v13297_v53, %v481_v15  ;;  %v519_v55 = vmul.f32 %v13303_v0, %v508_v8  ;;  %v479_v26 = vsel %vm12718_vm13, %v13294_v24, %v13304_v58  ;;  %v536_v61 = vsel %vm12723_vm15, %v13306_v20, %v13305_v63  ;;  %v7431_v31 = vpop.permute.xlu0 %1036  ;;  %v5832_v15 = vld [vmem:[%s12505_s11 + $0x18] sm:$0xff] }
 0x1f1   :  { %2102 = vperm.xlu1 %6004, %v92_v11   ;;  %v413_v44 = vadd.f32 %v409_v62, %v385_v54  ;;  %v466_v30 = vadd.f32 %v462_v57, %v438_v52  ;;  %v440_v19 = vadd.f32 %v436_v3, %v412_v56  ;;  %v495_v43 = vadd.f32 %v491_v1, %v467_v12  ;;  %v13307_v11 = vld [vmem:[#allocation35_spill] sm:$0xff]  ;;  %v13309_v54 = vld [vmem:[#allocation36_spill] sm:$0xff]  ;;  %v13311_v56 = vld [vmem:[#allocation38_spill] sm:$0xff] }
 0x1f2   :  { %vm12733_vm12 = vcmp.lt.s32.totalorder %v6969_v14, 78  ;;  %v465_v24 = vmul.f32 %v13292_v33, %v454_v25  ;;  %v518_v8 = vmul.f32 %v13303_v0, %v509_v60  ;;  %v482_v2 = vsel %vm12718_vm13, %v13304_v58, %v13298_v10  ;;  %v13308_v3 = vld [vmem:[#allocation23_spill] sm:$0xff]  ;;  %v13310_v60 = vld [vmem:[#allocation37_spill] sm:$0xff] }
 0x1f3   :  { %v507_v62 = vsel %vm12721_vm14, %v13299_v16, %v13307_v11  ;;  %v492_v57 = vmul.f32 %v13297_v53, %v479_v26  ;;  %v547_v1 = vmul.f32 %v13308_v3, %v536_v61  ;;  %v537_v33 = vsel %vm12723_vm15, %v13309_v54, %v13306_v20 }
 0x1f4   :  { %v564_v52 = vsel %vm12726_vm9, %v13311_v56, %v13310_v60  ;;  %v7457_v10 = vpop.permute.xlu1 %1159  ;;  %v441_v12 = vadd.f32 %v437_v9, %v413_v44  ;;  %v468_v25 = vadd.f32 %v464_v51, %v440_v19  ;;  %v494_v58 = vadd.f32 %v490_v13, %v466_v30  ;;  %v7460_v26 = vpop.permute.xlu0 %1090  ;;  %v5831_v51 = vld [vmem:[%s12505_s11 + $0x10] sm:$0xff]  ;;  %v13317_v30 = vld [vmem:[#allocation41_spill] sm:$0xff] }
 0x1f5   :  { %13312 = vst [vmem:[#allocation5_spill] sm:$0xff] %v7457_v10  ;;  %v523_v16 = vadd.f32 %v519_v55, %v495_v43  ;;  %vm12736_vm13 = vcmp.lt.s32.totalorder %v6969_v14, 62  ;;  %2386 = vperm.xlu1 %6004, %v5832_v15   ;;  %v493_v61 = vmul.f32 %v13297_v53, %v482_v2  ;;  %v510_v20 = vsel %vm12721_vm14, %v13307_v11, %v13302_v23  ;;  %v13314_v55 = vld [vmem:[#allocation30_spill] sm:$0xff]  ;;  %v13316_v44 = vld [vmem:[#allocation44_spill] sm:$0xff] }
 0x1f6   :  { %v520_v4 = vmul.f32 %v13303_v0, %v507_v62  ;;  %v565_v9 = vsel %vm12726_vm9, %v13313_v36, %v13311_v56  ;;  %v546_v13 = vmul.f32 %v13308_v3, %v537_v33  ;;  %v575_v2 = vmul.f32 %v13314_v55, %v564_v52  ;;  %v13315_v53 = vld [vmem:[#allocation42_spill] sm:$0xff] }
 0x1f7   :  { %v535_v23 = vsel %vm12723_vm15, %v13305_v63, %v13315_v53  ;;  %v592_v19 = vsel %vm12728_vm10, %v13317_v30, %v13316_v44  ;;  %v469_v43 = vadd.f32 %v465_v24, %v441_v12  ;;  %v522_v15 = vadd.f32 %v518_v8, %v494_v58  ;;  %v13321_v58 = vld [vmem:[#allocation47_spill] sm:$0xff] }
 0x1f8   :  { %v496_v11 = vadd.f32 %v492_v57, %v468_v25  ;;  %v551_v62 = vadd.f32 %v547_v1, %v523_v16  ;;  %vm12738_vm14 = vcmp.lt.s32.totalorder %v6969_v14, 61  ;;  %v7486_v56 = vpop.permute.xlu1 %1064  ;;  %v521_v33 = vmul.f32 %v13303_v0, %v510_v20  ;;  %v7498_v8 = vpop.permute.xlu0 %1086  ;;  %v13319_v1 = vld [vmem:[#allocation33_spill] sm:$0xff]  ;;  %v13320_v0 = vld [vmem:[#allocation46_spill] sm:$0xff]  ;;  %v13322_v16 = vld [vmem:[#allocation48_spill] sm:$0xff] }
 0x1f9   :  { %v574_v52 = vmul.f32 %v13314_v55, %v565_v9  ;;  %v538_v63 = vsel %vm12723_vm15, %v13315_v53, %v13309_v54  ;;  %v563_v24 = vsel %vm12726_vm9, %v13310_v60, %v13318_v5  ;;  %2381 = vperm.xlu1 %6004, %v5831_v51   ;;  %v548_v57 = vmul.f32 %v13308_v3, %v535_v23  ;;  %v5833_v60 = vld [vmem:[%s12505_s11 + $0x20] sm:$0xff] }
 0x1fa   :  { %v603_v12 = vmul.f32 %v13319_v1, %v592_v19  ;;  %v593_v25 = vsel %vm12728_vm10, %v13320_v0, %v13317_v30  ;;  %v620_v54 = vsel %vm12731_vm11, %v13322_v16, %v13321_v58  ;;  %v497_v20 = vadd.f32 %v493_v61, %v469_v43  ;;  %v13325_v43 = vld [vmem:[#allocation52_spill] sm:$0xff] }
 0x1fb   :  { %v524_v9 = vadd.f32 %v520_v4, %v496_v11  ;;  %v550_v51 = vadd.f32 %v546_v13, %v522_v15  ;;  %v579_v53 = vadd.f32 %v575_v2, %v551_v62  ;;  %vm12741_vm15 = vcmp.lt.s32.totalorder %v6969_v14, 60  ;;  %v13324_v13 = vld [vmem:[#allocation40_spill] sm:$0xff]  ;;  %v13326_v15 = vld [vmem:[#allocation54_spill] sm:$0xff] }
 0x1fc   :  { %v549_v23 = vmul.f32 %v13308_v3, %v538_v63  ;;  %v566_v30 = vsel %vm12726_vm9, %v13318_v5, %v13313_v36  ;;  %v576_v19 = vmul.f32 %v13314_v55, %v563_v24  ;;  %v621_v27 = vsel %vm12731_vm11, %v13323_v32, %v13322_v16  ;;  %v7524_v61 = vpop.permute.xlu1 %1118  ;;  %v13327_v5 = vld [vmem:[#allocation51_spill] sm:$0xff]  ;;  %v7536_v11 = vpop.permute.xlu0 %1116 }
 0x1fd   :  { %v602_v4 = vmul.f32 %v13319_v1, %v593_v25  ;;  %v631_v2 = vmul.f32 %v13324_v13, %v620_v54  ;;  %v591_v3 = vsel %vm12728_vm10, %v13316_v44, %v13325_v43  ;;  %v648_v36 = vsel %vm12733_vm12, %v13327_v5, %v13326_v15  ;;  %2434 = vperm.xlu1 %6004, %v5833_v60   ;;  %v5838_v25 = vld [vmem:[%s12505_s11 + $0x48] sm:$0xff] }
 0x1fe   :  { %v525_v62 = vadd.f32 %v521_v33, %v497_v20  ;;  %v578_v63 = vadd.f32 %v574_v52, %v550_v51  ;;  %v552_v24 = vadd.f32 %v548_v57, %v524_v9  ;;  %v607_v16 = vadd.f32 %v603_v12, %v579_v53  ;;  %v13328_v60 = vld [vmem:[#allocation55_spill] sm:$0xff]  ;;  %v13330_v20 = vld [vmem:[#allocation56_spill] sm:$0xff]  ;;  %v13332_v9 = vld [vmem:[#allocation58_spill] sm:$0xff] }
 0x1ff   :  { %vm12743_vm9 = vcmp.lt.s32.totalorder %v6969_v14, 59  ;;  %v577_v44 = vmul.f32 %v13314_v55, %v566_v30  ;;  %v630_v54 = vmul.f32 %v13324_v13, %v621_v27  ;;  %v594_v29 = vsel %vm12728_vm10, %v13325_v43, %v13320_v0  ;;  %v13329_v57 = vld [vmem:[#allocation43_spill] sm:$0xff]  ;;  %v13331_v27 = vld [vmem:[#allocation57_spill] sm:$0xff] }
 0x200   :  { %v619_v33 = vsel %vm12731_vm11, %v13321_v58, %v13328_v60  ;;  %v604_v52 = vmul.f32 %v13319_v1, %v591_v3  ;;  %v659_v12 = vmul.f32 %v13329_v57, %v648_v36  ;;  %v649_v55 = vsel %vm12733_vm12, %v13330_v20, %v13327_v5  ;;  %v7562_v0 = vpop.permute.xlu1 %1114  ;;  %v7565_v3 = vpop.permute.xlu0 %1187 }
 0x201   :  { %v676_v51 = vsel %vm12736_vm13, %v13332_v9, %v13331_v27  ;;  %v553_v53 = vadd.f32 %v549_v23, %v525_v62  ;;  %v580_v30 = vadd.f32 %v576_v19, %v552_v24  ;;  %v606_v43 = vadd.f32 %v602_v4, %v578_v63  ;;  %13333 = vst [vmem:[#allocation2_spill] sm:$0xff] %v7565_v3  ;;  %v5837_v19 = vld [vmem:[%s12505_s11 + $0x40] sm:$0xff]  ;;  %v13337_v62 = vld [vmem:[#allocation64_spill] sm:$0xff]  ;;  %v13338_v63 = vld [vmem:[#allocation61_spill] sm:$0xff] }
 0x202   :  { %v635_v58 = vadd.f32 %v631_v2, %v607_v16  ;;  %vm12746_vm10 = vcmp.lt.s32.totalorder %v6969_v14, 58  ;;  %2545 = vperm.xlu1 %6004, %v5838_v25   ;;  %v605_v36 = vmul.f32 %v13319_v1, %v594_v29  ;;  %v622_v5 = vsel %vm12731_vm11, %v13328_v60, %v13323_v32  ;;  %v13335_v2 = vld [vmem:[#allocation50_spill] sm:$0xff]  ;;  %v13345_v3 = vld [vmem:[#allocation69_spill] sm:$0xff] }
 0x203   :  { %v632_v21 = vmul.f32 %v13324_v13, %v619_v33  ;;  %v677_v23 = vsel %vm12736_vm13, %v13334_v48, %v13332_v9  ;;  %v658_v4 = vmul.f32 %v13329_v57, %v649_v55  ;;  %v687_v29 = vmul.f32 %v13335_v2, %v676_v51  ;;  %v13336_v1 = vld [vmem:[#allocation62_spill] sm:$0xff] }
 0x204   :  { %v647_v32 = vsel %vm12733_vm12, %v13326_v15, %v13336_v1  ;;  %v704_v24 = vsel %vm12738_vm14, %v13338_v63, %v13337_v62  ;;  %v581_v16 = vadd.f32 %v577_v44, %v553_v53  ;;  %v634_v25 = vadd.f32 %v630_v54, %v606_v43  ;;  %v7591_v9 = vpop.permute.xlu1 %1144  ;;  %v7603_v54 = vpop.permute.xlu0 %1092  ;;  %v13343_v43 = vld [vmem:[#allocation67_spill] sm:$0xff] }
 0x205   :  { %v608_v60 = vadd.f32 %v604_v52, %v580_v30  ;;  %v663_v33 = vadd.f32 %v659_v12, %v635_v58  ;;  %vm12748_vm11 = vcmp.lt.s32.totalorder %v6969_v14, 57  ;;  %v633_v55 = vmul.f32 %v13324_v13, %v622_v5  ;;  %13340 = vst [vmem:[#allocation6_spill] sm:$0xff] %v7603_v54  ;;  %v13341_v12 = vld [vmem:[#allocation53_spill] sm:$0xff]  ;;  %v13342_v13 = vld [vmem:[#allocation66_spill] sm:$0xff]  ;;  %v13344_v58 = vld [vmem:[#allocation68_spill] sm:$0xff] }
 0x206   :  { %v686_v51 = vmul.f32 %v13335_v2, %v677_v23  ;;  %v650_v15 = vsel %vm12733_vm12, %v13336_v1, %v13330_v20  ;;  %v675_v44 = vsel %vm12736_vm13, %v13331_v27, %v13339_v37  ;;  %2540 = vperm.xlu1 %6004, %v5837_v19   ;;  %v660_v52 = vmul.f32 %v13329_v57, %v647_v32  ;;  %v5839_v27 = vld [vmem:[%s12505_s11 + $0x50] sm:$0xff] }
 0x207   :  { %v715_v53 = vmul.f32 %v13341_v12, %v704_v24  ;;  %v705_v30 = vsel %vm12738_vm14, %v13342_v13, %v13338_v63  ;;  %v732_v20 = vsel %vm12741_vm15, %v13344_v58, %v13343_v43  ;;  %v609_v5 = vadd.f32 %v605_v36, %v581_v16  ;;  %v13348_v16 = vld [vmem:[#allocation72_spill] sm:$0xff] }
 0x208   :  { %v636_v23 = vadd.f32 %v632_v21, %v608_v60  ;;  %v662_v19 = vadd.f32 %v658_v4, %v634_v25  ;;  %v691_v1 = vadd.f32 %v687_v29, %v663_v33  ;;  %vm12751_vm12 = vcmp.lt.s32.totalorder %v6969_v14, 56  ;;  %v7629_v36 = vpop.permute.xlu1 %1215  ;;  %v13347_v4 = vld [vmem:[#allocation60_spill] sm:$0xff]  ;;  %v13349_v25 = vld [vmem:[#allocation74_spill] sm:$0xff]  ;;  %v7641_v60 = vpop.permute.xlu0 %1146 }
 0x209   :  { %v661_v32 = vmul.f32 %v13329_v57, %v650_v15  ;;  %v678_v63 = vsel %vm12736_vm13, %v13339_v37, %v13334_v48  ;;  %v688_v24 = vmul.f32 %v13335_v2, %v675_v44  ;;  %v733_v10 = vsel %vm12741_vm15, %v13345_v3, %v13344_v58  ;;  %13346 = vst [vmem:[#allocation7_spill] sm:$0xff] %v7629_v36  ;;  %v13350_v37 = vld [vmem:[#allocation71_spill] sm:$0xff] }
 0x20a   :  { %v714_v21 = vmul.f32 %v13341_v12, %v705_v30  ;;  %v743_v29 = vmul.f32 %v13347_v4, %v732_v20  ;;  %v703_v57 = vsel %vm12738_vm14, %v13337_v62, %v13348_v16  ;;  %v760_v48 = vsel %vm12743_vm9, %v13350_v37, %v13349_v25  ;;  %2593 = vperm.xlu1 %6004, %v5839_v27   ;;  %v5841_v30 = vld [vmem:[%s12505_s11 + $0x60] sm:$0xff]  ;;  %v13351_v27 = vld [vmem:[#allocation75_spill] sm:$0xff] }
 0x20b   :  { %v637_v33 = vadd.f32 %v633_v55, %v609_v5  ;;  %v690_v15 = vadd.f32 %v686_v51, %v662_v19  ;;  %v664_v44 = vadd.f32 %v660_v52, %v636_v23  ;;  %v719_v58 = vadd.f32 %v715_v53, %v691_v1  ;;  %v13352_v52 = vld [vmem:[#allocation63_spill] sm:$0xff]  ;;  %v13353_v5 = vld [vmem:[#allocation76_spill] sm:$0xff]  ;;  %v13355_v23 = vld [vmem:[#allocation78_spill] sm:$0xff] }
 0x20c   :  { %vm12753_vm13 = vcmp.lt.s32.totalorder %v6969_v14, 40  ;;  %v689_v62 = vmul.f32 %v13335_v2, %v678_v63  ;;  %v742_v20 = vmul.f32 %v13347_v4, %v733_v10  ;;  %v706_v36 = vsel %vm12738_vm14, %v13348_v16, %v13342_v13  ;;  %v13354_v10 = vld [vmem:[#allocation77_spill] sm:$0xff]  ;;  %v7667_v13 = vpop.permute.xlu1 %1120 }
 0x20d   :  { %v731_v55 = vsel %vm12741_vm15, %v13343_v43, %v13351_v27  ;;  %v716_v51 = vmul.f32 %v13341_v12, %v703_v57  ;;  %v771_v53 = vmul.f32 %v13352_v52, %v760_v48  ;;  %v761_v2 = vsel %vm12743_vm9, %v13353_v5, %v13350_v37  ;;  %13356 = vst [vmem:[#allocation8_spill] sm:$0xff] %v7667_v13  ;;  %v7670_v57 = vpop.permute.xlu0 %1142  ;;  %v13358_v13 = vld [vmem:[#allocation79_spill] sm:$0xff] }
 0x20e   :  { %v788_v19 = vsel %vm12746_vm10, %v13355_v23, %v13354_v10  ;;  %v665_v1 = vadd.f32 %v661_v32, %v637_v33  ;;  %v692_v63 = vadd.f32 %v688_v24, %v664_v44  ;;  %v718_v16 = vadd.f32 %v714_v21, %v690_v15  ;;  %13357 = vst [vmem:[#allocation9_spill] sm:$0xff] %v7670_v57  ;;  %v5843_v24 = vld [vmem:[%s12505_s11 + $0x70] sm:$0xff]  ;;  %v13362_v15 = vld [vmem:[#allocation81_spill] sm:$0xff] }
 0x20f   :  { %v747_v43 = vadd.f32 %v743_v29, %v719_v58  ;;  %vm12756_vm14 = vcmp.lt.s32.totalorder %v6969_v14, 39  ;;  %2646 = vperm.xlu1 %6004, %v5841_v30   ;;  %v717_v48 = vmul.f32 %v13341_v12, %v706_v36  ;;  %v734_v37 = vsel %vm12741_vm15, %v13351_v27, %v13345_v3  ;;  %v13359_v29 = vld [vmem:[#allocation70_spill] sm:$0xff]  ;;  %v13361_v33 = vld [vmem:[#allocation84_spill] sm:$0xff]  ;;  %v13364_v57 = vld [vmem:[#allocation85_spill] sm:$0xff] }
 0x210   :  { %v744_v54 = vmul.f32 %v13347_v4, %v731_v55  ;;  %v789_v32 = vsel %vm12746_vm10, %v13358_v13, %v13355_v23  ;;  %v770_v21 = vmul.f32 %v13352_v52, %v761_v2  ;;  %v799_v12 = vmul.f32 %v13359_v29, %v788_v19  ;;  %v13360_v36 = vld [vmem:[#allocation82_spill] sm:$0xff]  ;;  %v7696_v23 = vpop.permute.xlu1 %1174 }
 0x211   :  { %v759_v3 = vsel %vm12743_vm9, %v13349_v25, %v13360_v36  ;;  %v816_v44 = vsel %vm12748_vm11, %v13362_v15, %v13361_v33  ;;  %v693_v58 = vadd.f32 %v689_v62, %v665_v1  ;;  %v746_v30 = vadd.f32 %v742_v20, %v718_v16  ;;  %13363 = vst [vmem:[#allocation3_spill] sm:$0xff] %v7696_v23  ;;  %v7708_v20 = vpop.permute.xlu0 %1172  ;;  %v13368_v16 = vld [vmem:[#allocation87_spill] sm:$0xff] }
 0x212   :  { %v720_v27 = vadd.f32 %v716_v51, %v692_v63  ;;  %v775_v55 = vadd.f32 %v771_v53, %v747_v43  ;;  %vm12757_vm15 = vcmp.lt.s32.totalorder %v6969_v14, 38  ;;  %v745_v2 = vmul.f32 %v13347_v4, %v734_v37  ;;  %13365 = vst [vmem:[#allocation12_spill] sm:$0xff] %v7708_v20  ;;  %v13366_v53 = vld [vmem:[#allocation73_spill] sm:$0xff]  ;;  %v13367_v4 = vld [vmem:[#allocation86_spill] sm:$0xff]  ;;  %v13369_v43 = vld [vmem:[#allocation88_spill] sm:$0xff] }
 0x213   :  { %v798_v19 = vmul.f32 %v13359_v29, %v789_v32  ;;  %v762_v25 = vsel %vm12743_vm9, %v13360_v36, %v13353_v5  ;;  %v787_v62 = vsel %vm12746_vm10, %v13354_v10, %v13364_v57  ;;  %2699 = vperm.xlu1 %6004, %v5843_v24   ;;  %v772_v51 = vmul.f32 %v13352_v52, %v759_v3  ;;  %v5845_v10 = vld [vmem:[%s12505_s11 + $0x80] sm:$0xff]  ;;  %v13370_v20 = vld [vmem:[#allocation89_spill] sm:$0xff] }
 0x214   :  { %v827_v1 = vmul.f32 %v13366_v53, %v816_v44  ;;  %v817_v63 = vsel %vm12748_vm11, %v13367_v4, %v13362_v15  ;;  %v844_v5 = vsel %vm12751_vm12, %v13369_v43, %v13368_v16  ;;  %v721_v37 = vadd.f32 %v717_v48, %v693_v58  ;;  %v7734_v48 = vpop.permute.xlu1 %1170  ;;  %v13373_v58 = vld [vmem:[#allocation92_spill] sm:$0xff] }
 0x215   :  { %v748_v32 = vadd.f32 %v744_v54, %v720_v27  ;;  %v774_v24 = vadd.f32 %v770_v21, %v746_v30  ;;  %v803_v36 = vadd.f32 %v799_v12, %v775_v55  ;;  %vm12758_vm9 = vcmp.lt.s32.totalorder %v6969_v14, 37  ;;  %13371 = vst [vmem:[#allocation14_spill] sm:$0xff] %v7734_v48  ;;  %v13372_v21 = vld [vmem:[#allocation80_spill] sm:$0xff]  ;;  %v13374_v30 = vld [vmem:[#allocation94_spill] sm:$0xff]  ;;  %v7746_v27 = vpop.permute.xlu0 %1243 }
 0x216   :  { %v773_v3 = vmul.f32 %v13352_v52, %v762_v25  ;;  %v790_v15 = vsel %vm12746_vm10, %v13364_v57, %v13358_v13  ;;  %v800_v44 = vmul.f32 %v13359_v29, %v787_v62  ;;  %v845_v23 = vsel %vm12751_vm12, %v13370_v20, %v13369_v43  ;;  %v13375_v13 = vld [vmem:[#allocation91_spill] sm:$0xff]  ;;  %13376 = vst [vmem:[#allocation11_spill] sm:$0xff] %v7746_v27 }
 0x217   :  { %v826_v54 = vmul.f32 %v13366_v53, %v817_v63  ;;  %v855_v12 = vmul.f32 %v13372_v21, %v844_v5  ;;  %v815_v52 = vsel %vm12748_vm11, %v13361_v33, %v13373_v58  ;;  %v872_v57 = vsel %vm12753_vm13, %v13375_v13, %v13374_v30  ;;  %2752 = vperm.xlu1 %6004, %v5845_v10   ;;  %v5847_v63 = vld [vmem:[%s12505_s11 + $0x90] sm:$0xff]  ;;  %v13377_v10 = vld [vmem:[#allocation95_spill] sm:$0xff] }
 0x218   :  { %v749_v55 = vadd.f32 %v745_v2, %v721_v37  ;;  %v802_v25 = vadd.f32 %v798_v19, %v774_v24  ;;  %v776_v62 = vadd.f32 %v772_v51, %v748_v32  ;;  %v831_v43 = vadd.f32 %v827_v1, %v803_v36  ;;  %v13378_v51 = vld [vmem:[#allocation83_spill] sm:$0xff]  ;;  %v13379_v37 = vld [vmem:[#allocation96_spill] sm:$0xff]  ;;  %v13381_v32 = vld [vmem:[#allocation98_spill] sm:$0xff] }
 0x219   :  { %vm12759_vm10 = vcmp.lt.s32.totalorder %v6969_v14, 36  ;;  %v801_v33 = vmul.f32 %v13359_v29, %v790_v15  ;;  %v854_v5 = vmul.f32 %v13372_v21, %v845_v23  ;;  %v818_v27 = vsel %vm12748_vm11, %v13373_v58, %v13367_v4  ;;  %v13380_v23 = vld [vmem:[#allocation97_spill] sm:$0xff]  ;;  %v7772_v4 = vpop.permute.xlu1 %1200 }
 0x21a   :  { %v843_v2 = vsel %vm12751_vm12, %v13368_v16, %v13377_v10  ;;  %v828_v19 = vmul.f32 %v13366_v53, %v815_v52  ;;  %v883_v1 = vmul.f32 %v13378_v51, %v872_v57  ;;  %v873_v29 = vsel %vm12753_vm13, %v13379_v37, %v13375_v13  ;;  %13382 = vst [vmem:[#allocation15_spill] sm:$0xff] %v7772_v4  ;;  %v7775_v52 = vpop.permute.xlu0 %1148  ;;  %v13384_v4 = vld [vmem:[#allocation99_spill] sm:$0xff] }
 0x21b   :  { %v900_v24 = vsel %vm12756_vm14, %v13381_v32, %v13380_v23  ;;  %v777_v36 = vadd.f32 %v773_v3, %v749_v55  ;;  %v804_v15 = vadd.f32 %v800_v44, %v776_v62  ;;  %v830_v58 = vadd.f32 %v826_v54, %v802_v25  ;;  %13383 = vst [vmem:[#allocation4_spill] sm:$0xff] %v7775_v52  ;;  %v5849_v44 = vld [vmem:[%s12505_s11 + $0xa0] sm:$0xff]  ;;  %v13387_v55 = vld [vmem:[#allocation104_spill] sm:$0xff]  ;;  %v13388_v25 = vld [vmem:[#allocation101_spill] sm:$0xff] }
 0x21c   :  { %v859_v16 = vadd.f32 %v855_v12, %v831_v43  ;;  %vm12760_vm11 = vcmp.lt.s32.totalorder %v6969_v14, 35  ;;  %2805 = vperm.xlu1 %6004, %v5847_v63   ;;  %v829_v57 = vmul.f32 %v13366_v53, %v818_v27  ;;  %v846_v13 = vsel %vm12751_vm12, %v13377_v10, %v13370_v20  ;;  %v13385_v12 = vld [vmem:[#allocation90_spill] sm:$0xff]  ;;  %v13390_v52 = vld [vmem:[#allocation105_spill] sm:$0xff] }
 0x21d   :  { %v856_v48 = vmul.f32 %v13372_v21, %v843_v2  ;;  %v901_v3 = vsel %vm12756_vm14, %v13384_v4, %v13381_v32  ;;  %v882_v54 = vmul.f32 %v13378_v51, %v873_v29  ;;  %v911_v53 = vmul.f32 %v13385_v12, %v900_v24  ;;  %v13386_v27 = vld [vmem:[#allocation102_spill] sm:$0xff]  ;;  %v7801_v32 = vpop.permute.xlu1 %1258 }
 0x21e   :  { %v871_v20 = vsel %vm12753_vm13, %v13374_v30, %v13386_v27  ;;  %v928_v62 = vsel %vm12757_vm15, %v13388_v25, %v13387_v55  ;;  %v805_v43 = vadd.f32 %v801_v33, %v777_v36  ;;  %v858_v63 = vadd.f32 %v854_v5, %v830_v58  ;;  %13389 = vst [vmem:[#allocation16_spill] sm:$0xff] %v7801_v32  ;;  %v7813_v5 = vpop.permute.xlu0 %1202  ;;  %v13394_v58 = vld [vmem:[#allocation107_spill] sm:$0xff]  ;;  %v13396_v32 = vld [vmem:[#allocation109_spill] sm:$0xff] }
 0x21f   :  { %v832_v10 = vadd.f32 %v828_v19, %v804_v15  ;;  %v887_v2 = vadd.f32 %v883_v1, %v859_v16  ;;  %vm1038_vm12 = vcmp.lt.s32.totalorder %v6969_v14, 34  ;;  %v857_v29 = vmul.f32 %v13372_v21, %v846_v13  ;;  %13391 = vst [vmem:[#allocation17_spill] sm:$0xff] %v7813_v5  ;;  %v13392_v1 = vld [vmem:[#allocation93_spill] sm:$0xff]  ;;  %v13393_v21 = vld [vmem:[#allocation106_spill] sm:$0xff]  ;;  %v13395_v16 = vld [vmem:[#allocation108_spill] sm:$0xff] }
 0x220   :  { %v910_v24 = vmul.f32 %v13385_v12, %v901_v3  ;;  %v874_v30 = vsel %vm12753_vm13, %v13386_v27, %v13379_v37  ;;  %v899_v33 = vsel %vm12756_vm14, %v13380_v23, %v13390_v52  ;;  %2858 = vperm.xlu1 %6004, %v5849_v44   ;;  %v884_v19 = vmul.f32 %v13378_v51, %v871_v20  ;;  %v5851_v23 = vld [vmem:[%s12505_s11 + $0xb0] sm:$0xff] }
 0x221   :  { %v939_v36 = vmul.f32 %v13392_v1, %v928_v62  ;;  %v929_v15 = vsel %vm12757_vm15, %v13393_v21, %v13388_v25  ;;  %v956_v37 = vsel %vm12758_vm9, %v13395_v16, %v13394_v58  ;;  %v833_v13 = vadd.f32 %v829_v57, %v805_v43  ;;  %v7839_v57 = vpop.permute.xlu1 %1176  ;;  %v13398_v43 = vld [vmem:[#allocation112_spill] sm:$0xff] }
 0x222   :  { %v860_v3 = vadd.f32 %v856_v48, %v832_v10  ;;  %v886_v44 = vadd.f32 %v882_v54, %v858_v63  ;;  %v915_v27 = vadd.f32 %v911_v53, %v887_v2  ;;  %vm12761_vm13 = vcmp.lt.s32.totalorder %v6969_v14, 18  ;;  %v13397_v54 = vld [vmem:[#allocation100_spill] sm:$0xff]  ;;  %v7851_v63 = vpop.permute.xlu0 %1198 }
 0x223   :  { %v885_v20 = vmul.f32 %v13378_v51, %v874_v30  ;;  %v902_v25 = vsel %vm12756_vm14, %v13390_v52, %v13384_v4  ;;  %v912_v62 = vmul.f32 %v13385_v12, %v899_v33  ;;  %v957_v5 = vsel %vm12758_vm9, %v13396_v32, %v13395_v16  ;;  %v13399_v4 = vld [vmem:[#allocation111_spill] sm:$0xff] }
 0x224   :  { %v938_v48 = vmul.f32 %v13392_v1, %v929_v15  ;;  %v967_v53 = vmul.f32 %v13397_v54, %v956_v37  ;;  %v927_v51 = vsel %vm12757_vm15, %v13387_v55, %v13398_v43  ;;  %v984_v52 = vsel %vm12759_vm10, %v13399_v4, %v7056_v22  ;;  %2911 = vperm.xlu1 %6004, %v5851_v23   ;;  %v5853_v15 = vld [vmem:[%s12505_s11 + $0xc0] sm:$0xff] }
 0x225   :  { %v861_v10 = vadd.f32 %v857_v29, %v833_v13  ;;  %v914_v2 = vadd.f32 %v910_v24, %v886_v44  ;;  %v888_v30 = vadd.f32 %v884_v19, %v860_v3  ;;  %v943_v33 = vadd.f32 %v939_v36, %v915_v27  ;;  %v13400_v19 = vld [vmem:[#allocation103_spill] sm:$0xff] }
 0x226   :  { %vm1094_vm14 = vcmp.lt.s32.totalorder %v6969_v14, 17  ;;  %v913_v55 = vmul.f32 %v13385_v12, %v902_v25  ;;  %v966_v16 = vmul.f32 %v13397_v54, %v957_v5  ;;  %v930_v37 = vsel %vm12757_vm15, %v13398_v43, %v13393_v21  ;;  %v7877_v21 = vpop.permute.xlu1 %1230  ;;  %v7880_v44 = vpop.permute.xlu0 %1228 }
 0x227   :  { %v955_v29 = vsel %vm12758_vm9, %v13394_v58, %v7089_v46  ;;  %v940_v24 = vmul.f32 %v13392_v1, %v927_v51  ;;  %v995_v36 = vmul.f32 %v13400_v19, %v984_v52  ;;  %v985_v12 = vsel %vm12759_vm10, %v7107_v40, %v13399_v4 }
 0x228   :  { %v1012_v5 = vsel %vm12760_vm11, %v7167_v47, %v7153_v45  ;;  %v889_v23 = vadd.f32 %v885_v20, %v861_v10  ;;  %v916_v13 = vadd.f32 %v912_v62, %v888_v30  ;;  %v942_v3 = vadd.f32 %v938_v48, %v914_v2  ;;  %2964 = vperm.xlu1 %6004, %v5853_v15   ;;  %v5855_v62 = vld [vmem:[%s12505_s11 + $0xd0] sm:$0xff] }
 0x229   :  { %v971_v58 = vadd.f32 %v967_v53, %v943_v33  ;;  %vm1122_vm15 = vcmp.lt.s32.totalorder %v6969_v14, 16  ;;  %v941_v27 = vmul.f32 %v13392_v1, %v930_v37  ;;  %v958_v25 = vsel %vm12758_vm9, %v7089_v46, %v13396_v32  ;;  %v13401_v53 = vld [vmem:[#allocation110_spill] sm:$0xff] }
 0x22a   :  { %v968_v43 = vmul.f32 %v13397_v54, %v955_v29  ;;  %v1013_v20 = vsel %vm12760_vm11, %v7197_v39, %v7167_v47  ;;  %v994_v48 = vmul.f32 %v13400_v19, %v985_v12  ;;  %v1023_v1 = vmul.f32 %v13401_v53, %v1012_v5  ;;  %v7906_v10 = vpop.permute.xlu1 %1226  ;;  %v7918_v15 = vpop.permute.xlu0 %1273 }
 0x22b   :  { %v983_v46 = vsel %vm12759_vm10, %v7056_v22, %v7245_v18  ;;  %v1040_v32 = vsel %vm1038_vm12, %v7240_v49, %v7288_v7  ;;  %v917_v51 = vadd.f32 %v913_v55, %v889_v23  ;;  %v970_v47 = vadd.f32 %v966_v16, %v942_v3 }
 0x22c   :  { %v944_v4 = vadd.f32 %v940_v24, %v916_v13  ;;  %v999_v52 = vadd.f32 %v995_v36, %v971_v58  ;;  %vm12765_vm9 = vcmp.lt.s32.totalorder %v6969_v14, 15  ;;  %v969_v2 = vmul.f32 %v13397_v54, %v958_v25  ;;  %3017 = vperm.xlu1 %6004, %v5855_v62  }
 0x22d   :  { %v1022_v30 = vmul.f32 %v13401_v53, %v1013_v20  ;;  %v986_v22 = vsel %vm12759_vm10, %v7245_v18, %v7107_v40  ;;  %v1011_v33 = vsel %vm12760_vm11, %v7153_v45, %v7314_v59  ;;  %v996_v55 = vmul.f32 %v13400_v19, %v983_v46  ;;  %v5857_v45 = vld [vmem:[%s12505_s11 + $0xe0] sm:$0xff] }
 0x22e   :  { %v1051_v16 = vmul.f32 %v7051_v34, %v1040_v32  ;;  %v1041_v54 = vsel %vm1038_vm12, %v7326_v6, %v7240_v49  ;;  %v1068_v40 = vsel %vm12761_vm13, %v7355_v42, %v7352_v50  ;;  %v945_v18 = vadd.f32 %v941_v27, %v917_v51  ;;  %v7944_v23 = vpop.permute.xlu1 %1288 }
 0x22f   :  { %v972_v37 = vadd.f32 %v968_v43, %v944_v4  ;;  %v998_v29 = vadd.f32 %v994_v48, %v970_v47  ;;  %v1027_v24 = vadd.f32 %v1023_v1, %v999_v52  ;;  %vm12762_vm10 = vcmp.lt.s32.totalorder %v6969_v14, 14  ;;  %v5859_v43 = vld [vmem:[%s12505_s11 + $0xf0] sm:$0xff] }
 0x230   :  { %v997_v36 = vmul.f32 %v13400_v19, %v986_v22  ;;  %v1014_v49 = vsel %vm12760_vm11, %v7314_v59, %v7197_v39  ;;  %v1024_v12 = vmul.f32 %v13401_v53, %v1011_v33  ;;  %v1069_v5 = vsel %vm12761_vm13, %v7381_v17, %v7355_v42  ;;  %v7957_v59 = vpop.permute.xlu0 %1204  ;;  %3070 = vperm.xlu1 %6004, %v5857_v45   ;;  %v5861_v22 = vld [vmem:[%s12505_s11 + $0x100] sm:$0xff] }
 0x231   :  { %v1050_v13 = vmul.f32 %v7051_v34, %v1041_v54  ;;  %v1079_v3 = vmul.f32 %v7214_v28, %v1068_v40  ;;  %v1039_v19 = vsel %vm1038_vm12, %v7288_v7, %v7431_v31  ;;  %v1096_v39 = vsel %vm1094_vm14, %v7419_v41, %v7460_v26 }
 0x232   :  { %vm12764_vm11 = vcmp.lt.s32.totalorder %v6969_v14, 13  ;;  %v973_v42 = vadd.f32 %v969_v2, %v945_v18  ;;  %v1026_v58 = vadd.f32 %v1022_v30, %v998_v29  ;;  %v1000_v27 = vadd.f32 %v996_v55, %v972_v37  ;;  %v13402_v18 = vld [vmem:[#allocation6_spill] sm:$0xff]  ;;  %v13403_v29 = vld [vmem:[#allocation9_spill] sm:$0xff] }
 0x233   :  { %v1055_v25 = vadd.f32 %v1051_v16, %v1027_v24  ;;  %v1025_v7 = vmul.f32 %v13401_v53, %v1014_v49  ;;  %v1078_v20 = vmul.f32 %v7214_v28, %v1069_v5  ;;  %v1042_v62 = vsel %vm1038_vm12, %v7431_v31, %v7326_v6  ;;  %v7982_v6 = vpop.permute.xlu1 %1316  ;;  %v13404_v5 = vld [vmem:[#allocation5_spill] sm:$0xff] }
 0x234   :  { %v1067_v48 = vsel %vm12761_vm13, %v7352_v50, %v7486_v56  ;;  %v1052_v1 = vmul.f32 %v7051_v34, %v1039_v19  ;;  %v1107_v46 = vmul.f32 %v7274_v35, %v1096_v39  ;;  %v1097_v53 = vsel %vm1094_vm14, %v7498_v8, %v7419_v41  ;;  %v7984_v4 = vpop.permute.xlu0 %1232  ;;  %3123 = vperm.xlu1 %6004, %v5859_v43  }
 0x235   :  { %v1124_v32 = vsel %vm1122_vm15, %v7536_v11, %v7524_v61  ;;  %v1001_v31 = vadd.f32 %v997_v36, %v973_v42  ;;  %v1028_v51 = vadd.f32 %v1024_v12, %v1000_v27  ;;  %v1054_v47 = vadd.f32 %v1050_v13, %v1026_v58  ;;  %v13407_v58 = vld [vmem:[#allocation8_spill] sm:$0xff] }
 0x236   :  { %v1083_v50 = vadd.f32 %v1079_v3, %v1055_v25  ;;  %v1053_v52 = vmul.f32 %v7051_v34, %v1042_v62  ;;  %v1070_v41 = vsel %vm12761_vm13, %v7486_v56, %v7381_v17  ;;  %v1080_v2 = vmul.f32 %v7214_v28, %v1067_v48  ;;  %v13406_v3 = vld [vmem:[#allocation12_spill] sm:$0xff]  ;;  %v13409_v62 = vld [vmem:[#allocation17_spill] sm:$0xff]  ;;  %v13410_v48 = vld [vmem:[#allocation15_spill] sm:$0xff] }
 0x237   :  { %v1125_v30 = vsel %vm1122_vm15, %v7562_v0, %v7536_v11  ;;  %v1106_v33 = vmul.f32 %v7274_v35, %v1097_v53  ;;  %v1135_v34 = vmul.f32 %v7393_v38, %v1124_v32  ;;  %v1152_v17 = vsel %vm12765_vm9, %v7591_v9, %v7641_v60  ;;  %v8006_v11 = vpop.permute.xlu1 %1303  ;;  %v13411_v32 = vld [vmem:[#allocation2_spill] sm:$0xff] }
 0x238   :  { %vm12763_vm13 = vcmp.lt.s32.totalorder %v6969_v14, 12  ;;  %v1029_v56 = vadd.f32 %v1025_v7, %v1001_v31  ;;  %v1082_v55 = vadd.f32 %v1078_v20, %v1054_v47  ;;  %v1056_v16 = vadd.f32 %v1052_v1, %v1028_v51  ;;  %v8018_v36 = vpop.permute.xlu0 %1344  ;;  %3176 = vperm.xlu1 %6004, %v5861_v22   ;;  %v13408_v7 = vld [vmem:[#allocation14_spill] sm:$0xff] }
 0x239   :  { %v1111_v54 = vadd.f32 %v1107_v46, %v1083_v50  ;;  %v1081_v40 = vmul.f32 %v7214_v28, %v1070_v41  ;;  %v1134_v45 = vmul.f32 %v7393_v38, %v1125_v30  ;;  %v1095_v37 = vsel %vm1094_vm14, %v7460_v26, %v13402_v18  ;;  %v13405_v28 = vld [vmem:[#allocation3_spill] sm:$0xff]  ;;  %v5863_v26 = vld [vmem:[%s12505_s11 + $0x110] sm:$0xff] }
 0x23a   :  { %v1153_v24 = vsel %vm12765_vm9, %v13403_v29, %v7591_v9  ;;  %v1057_v49 = vadd.f32 %v1053_v52, %v1029_v56  ;;  %v1084_v12 = vadd.f32 %v1080_v2, %v1056_v16  ;;  %v1163_v13 = vmul.f32 %v13404_v5, %v1152_v17  ;;  %v5865_v2 = vld [vmem:[%s12505_s11 + $0x120] sm:$0xff]  ;;  %v13412_v30 = vld [vmem:[#allocation4_spill] sm:$0xff] }
 0x23b   :  { %v1180_v19 = vsel %vm12762_vm10, %v13406_v3, %v13405_v28  ;;  %v1110_v39 = vadd.f32 %v1106_v33, %v1082_v55  ;;  %v1139_v42 = vadd.f32 %v1135_v34, %v1111_v54  ;;  %v1098_v9 = vsel %vm1094_vm14, %v13402_v18, %v7498_v8  ;;  %v8046_v8 = vpop.permute.xlu1 %1372 }
 0x23c   :  { %v1123_v27 = vsel %vm1122_vm15, %v7524_v61, %v13407_v58  ;;  %v1108_v25 = vmul.f32 %v7274_v35, %v1095_v37  ;;  %v1162_v43 = vmul.f32 %v13404_v5, %v1153_v24  ;;  %v1181_v20 = vsel %vm12762_vm10, %v13408_v7, %v13406_v3  ;;  %v8053_v51 = vpop.permute.xlu0 %1305  ;;  %3229 = vperm.xlu1 %6004, %v5863_v26  }
 0x23d   :  { %v1208_v1 = vsel %vm12764_vm11, %v13410_v48, %v13409_v62  ;;  %v1085_v46 = vadd.f32 %v1081_v40, %v1057_v49  ;;  %v1138_v53 = vadd.f32 %v1134_v45, %v1110_v39  ;;  %v1126_v61 = vsel %vm1122_vm15, %v13407_v58, %v7562_v0  ;;  %v13414_v45 = vld [vmem:[#allocation11_spill] sm:$0xff] }
 0x23e   :  { %v1191_v31 = vmul.f32 %v13411_v32, %v1180_v19  ;;  %v1109_v47 = vmul.f32 %v7274_v35, %v1098_v9  ;;  %v1167_v50 = vadd.f32 %v1163_v13, %v1139_v42  ;;  %v1136_v52 = vmul.f32 %v7393_v38, %v1123_v27  ;;  %v13413_v35 = vld [vmem:[#allocation7_spill] sm:$0xff] }
 0x23f   :  { %v1236_v41 = vsel %vm12763_vm13, %v7880_v44, %v7877_v21  ;;  %v1190_v0 = vmul.f32 %v13411_v32, %v1181_v20  ;;  %v1151_v22 = vsel %vm12765_vm9, %v7641_v60, %v13412_v30  ;;  %v1219_v33 = vmul.f32 %v13413_v35, %v1208_v1  ;;  %v8079_v54 = vpop.permute.xlu1 %1331  ;;  %v5869_v20 = vld [vmem:[%s12505_s11 + $0x140] sm:$0xff] }
 0x240   :  { %v1209_v34 = vsel %vm12764_vm11, %v7851_v63, %v13410_v48  ;;  %v1112_v17 = vadd.f32 %v1108_v25, %v1084_v12  ;;  %v1137_v56 = vmul.f32 %v7393_v38, %v1126_v61  ;;  %v1166_v55 = vadd.f32 %v1162_v43, %v1138_v53  ;;  %v8090_v37 = vpop.permute.xlu0 %1301  ;;  %3282 = vperm.xlu1 %6004, %v5865_v2   ;;  %v5867_v12 = vld [vmem:[%s12505_s11 + $0x130] sm:$0xff] }
 0x241   :  { %v1154_v16 = vsel %vm12765_vm9, %v13412_v30, %v13403_v29  ;;  %v1195_v40 = vadd.f32 %v1191_v31, %v1167_v50  ;;  %v1179_v60 = vsel %vm12762_vm10, %v13405_v28, %v7839_v57  ;;  %v1247_v18 = vmul.f32 %v13414_v45, %v1236_v41  ;;  %v13416_v48 = vld [vmem:[#allocation16_spill] sm:$0xff] }
 0x242   :  { %v1237_v38 = vsel %vm12763_vm13, %v7906_v10, %v7880_v44  ;;  %v1113_v24 = vadd.f32 %v1109_v47, %v1085_v46  ;;  %v1164_v29 = vmul.f32 %v13404_v5, %v1151_v22  ;;  %v1218_v49 = vmul.f32 %v13413_v35, %v1209_v34  ;;  %v13417_v50 = vld [vmem:[#allocation120_spill] sm:$0xff] }
 0x243   :  { %v1140_v13 = vadd.f32 %v1136_v52, %v1112_v17  ;;  %v1194_v28 = vadd.f32 %v1190_v0, %v1166_v55  ;;  %v1165_v3 = vmul.f32 %v13404_v5, %v1154_v16  ;;  %v1223_v19 = vadd.f32 %v1219_v33, %v1195_v40  ;;  %v8108_v9 = vpop.permute.xlu1 %1400  ;;  %v13418_v0 = vld [vmem:[#allocation113_spill] sm:$0xff]  ;;  %v13420_v16 = vld [vmem:[#allocation123_spill] sm:$0xff] }
 0x244   :  { %v1182_v44 = vsel %vm12762_vm10, %v7839_v57, %v13408_v7  ;;  %v1192_v26 = vmul.f32 %v13411_v32, %v1179_v60  ;;  %v1246_v39 = vmul.f32 %v13414_v45, %v1237_v38  ;;  %v1207_v42 = vsel %vm12764_vm11, %v13409_v62, %v7957_v59  ;;  %v8110_v5 = vpop.permute.xlu0 %1333  ;;  %3335 = vperm.xlu1 %6004, %v5867_v12   ;;  %v13415_v62 = vld [vmem:[#allocation116_spill] sm:$0xff]  ;;  %v5873_v12 = vld [vmem:[%s12505_s11 + $0x160] sm:$0xff] }
 0x245   :  { %v1141_v58 = vadd.f32 %v1137_v56, %v1113_v24  ;;  %v1251_v27 = vadd.f32 %v1247_v18, %v1223_v19  ;;  %v1168_v25 = vadd.f32 %v1164_v29, %v1140_v13  ;;  %v1222_v43 = vadd.f32 %v1218_v49, %v1194_v28  ;;  %v13421_v24 = vld [vmem:[#allocation115_spill] sm:$0xff]  ;;  %v13422_v13 = vld [vmem:[#allocation118_spill] sm:$0xff] }
 0x246   :  { %v1210_v57 = vsel %vm12764_vm11, %v7957_v59, %v7851_v63  ;;  %v1235_v7 = vsel %vm12763_vm13, %v7877_v21, %v7984_v4  ;;  %v1262_v1 = vmul.f32 %v13416_v48, %v13415_v62  ;;  %v1193_v46 = vmul.f32 %v13411_v32, %v1182_v44  ;;  %v8191_v62 = vld [vmem:[%s12506_s1] sm:$0xf]  ;;  %s13539_s1 = smov 84  }
 0x247   :  { %v1220_v53 = vmul.f32 %v13413_v35, %v1207_v42  ;;  %vm13063_vm10 = vcmp.lt.s32.totalorder %v6969_v14, 121  ;;  %v1169_v61 = vadd.f32 %v1165_v3, %v1141_v58  ;;  %v1196_v63 = vadd.f32 %v1192_v26, %v1168_v25  ;;  %v8132_v31 = vpop.permute.xlu1 %1299  ;;  %v13423_v26 = vld [vmem:[#allocation114_spill] sm:$0xff] }
 0x248   :  { %v1250_v59 = vadd.f32 %v1246_v39, %v1222_v43  ;;  %v1238_v21 = vsel %vm12763_vm13, %v7984_v4, %v7906_v10  ;;  %v1266_v47 = vadd.f32 %v1262_v1, %v1251_v27  ;;  %v1277_v52 = vmul.f32 %v7918_v15, %v13417_v50  ;;  %v8138_v2 = vpop.permute.xlu0 %1329  ;;  %3388 = vperm.xlu1 %6004, %v5869_v20   ;;  %v5871_v10 = vld [vmem:[%s12505_s11 + $0x150] sm:$0xff] }
 0x249   :  { %v1221_v32 = vmul.f32 %v13413_v35, %v1210_v57  ;;  %v1248_v41 = vmul.f32 %v13414_v45, %v1235_v7  ;;  %v1261_v30 = vmul.f32 %v13416_v48, %v13418_v0  ;;  %v1197_v4 = vadd.f32 %v1193_v46, %v1169_v61  ;;  %v13425_v46 = vld [vmem:[#allocation119_spill] sm:$0xff] }
 0x24a   :  { %v1224_v22 = vadd.f32 %v1220_v53, %v1196_v63  ;;  %v1249_v33 = vmul.f32 %v13414_v45, %v1238_v21  ;;  %vm13062_vm13 = vcmp.lt.s32.totalorder %v6969_v14, 120  ;;  %v1308_v35 = vsel %vm13063_vm10, %v8006_v11, %v8053_v51 }
 0x24b   :  { %v1265_v34 = vadd.f32 %v1261_v30, %v1250_v59  ;;  %v8151_v17 = vpop.permute.xlu1 %1361  ;;  %vm13061_vm11 = vcmp.lt.s32.totalorder %v6969_v14, 119  ;;  %v13419_v56 = vlaneseq  ;;  %v1292_v40 = vmul.f32 %v7944_v23, %v13420_v16  ;;  %v13427_v30 = vld [vmem:[#allocation117_spill] sm:$0xff] }
 0x24c   :  { %v1225_v60 = vadd.f32 %v1221_v32, %v1197_v4  ;;  %v1252_v45 = vadd.f32 %v1248_v41, %v1224_v22  ;;  %v1281_v18 = vadd.f32 %v1277_v52, %v1266_v47  ;;  %v1360_v38 = vpop.permute.xlu0 %1359  ;;  %3441 = vperm.xlu1 %6004, %v5871_v10   ;;  %v1276_v29 = vmul.f32 %v7918_v15, %v13421_v24 }
 0x24d   :  { %v8155_v55 = vshrl.u32 %v13419_v56, 7  ;;  %v1336_v49 = vsel %vm13062_vm13, %v8079_v54, %v8110_v5  ;;  %v1263_v28 = vmul.f32 %v13416_v48, %v13422_v13  ;;  %v1320_v19 = vmul.f32 %v7982_v6, %v1308_v35 }
 0x24e   :  { %v1253_v3 = vadd.f32 %v1249_v33, %v1225_v60  ;;  %v1309_v44 = vsel %vm13063_vm10, %v8090_v37, %v8006_v11  ;;  %v1264_v39 = vmul.f32 %v13416_v48, %v13423_v26  ;;  %v1280_v42 = vadd.f32 %v1276_v29, %v1265_v34  ;;  %v13424_v48 = vld [vmem:[#allocation121_spill] sm:$0xff] }
 0x24f   :  { %v1364_v58 = vsel %vm13061_vm11, %v1360_v38, %v8151_v17  ;;  %v1328_v27 = vpop.permute.xlu1 %1327  ;;  %v1427_v25 = vsub.s32 1, %v8155_v55  ;;  %v1267_v43 = vadd.f32 %v1263_v28, %v1252_v45  ;;  %v1296_v57 = vadd.f32 %v1292_v40, %v1281_v18  ;;  %v5877_v40 = vld [vmem:[%s12505_s11 + $0x180] sm:$0xff] }
 0x250   :  { %v1348_v7 = vmul.f32 %v8018_v36, %v1336_v49  ;;  %v1337_v11 = vsel %vm13062_vm13, %v8138_v2, %v8079_v54  ;;  %v8186_v20 = vpop.permute.xlu0 %1357  ;;  %3494 = vperm.xlu1 %6004, %v5873_v12   ;;  %v1278_v1 = vmul.f32 %v7918_v15, %v13424_v48  ;;  %v1291_v53 = vmul.f32 %v7944_v23, %v13425_v46  ;;  %v5875_v54 = vld [vmem:[%s12505_s11 + $0x170] sm:$0xff]  ;;  %v13429_v12 = vld [vmem:[#allocation122_spill] sm:$0xff] }
 0x251   :  { %v1319_v61 = vmul.f32 %v7982_v6, %v1309_v44  ;;  %vm12766_vm9 = vcmp.lt.s32.totalorder %v6969_v14, 118  ;;  %v1268_v63 = vadd.f32 %v1264_v39, %v1253_v3  ;;  %v1324_v59 = vadd.f32 %v1320_v19, %v1296_v57 }
 0x252   :  { %v1376_v21 = vmul.f32 %v8046_v8, %v1364_v58  ;;  %v1365_v47 = vsel %vm13061_vm11, %v8186_v20, %v1360_v38  ;;  %v1295_v50 = vadd.f32 %v1291_v53, %v1280_v42  ;;  %v1347_v52 = vmul.f32 %v8018_v36, %v1337_v11  ;;  %v13428_v38 = vld [vmem:[#allocation124_spill] sm:$0xff] }
 0x253   :  { %v1390_v32 = vpop.permute.xlu1 %1389  ;;  %v8208_v41 = vrot.slane %v8191_v62, %v1427_v25  ;;  %v1423_v0 = vsub.s32 0, %v8155_v55  ;;  %v1279_v10 = vmul.f32 %v7918_v15, %v13427_v30  ;;  %v1352_v4 = vadd.f32 %v1348_v7, %v1324_v59  ;;  %v5881_v59 = vld [vmem:[%s12505_s11 + $0x1a0] sm:$0xff] }
 0x254   :  { %v1282_v22 = vadd.f32 %v1278_v1, %v1267_v43  ;;  %v1311_v33 = vsel %vm13063_vm10, %v8053_v51, %v8132_v31  ;;  %v1388_v34 = vpop.permute.xlu0 %1387  ;;  %3547 = vperm.xlu1 %6004, %v5875_v54   ;;  %v1323_v35 = vadd.f32 %v1319_v61, %v1295_v50  ;;  %v1310_v56 = vsel %vm13063_vm10, %v8132_v31, %v8090_v37  ;;  %v8281_v30 = vld [vmem:[%s12507_s4] sm:$0xff]  ;;  %s13538_s4 = smov 100  }
 0x255   :  { %13426 = vst [vmem:[#allocation18_spill] sm:$0xff] %v8208_v41  ;;  %v1375_v16 = vmul.f32 %v8046_v8, %v1365_v47  ;;  %v1392_v15 = vsel %vm12766_vm9, %v1388_v34, %v1390_v32  ;;  %v1283_v60 = vadd.f32 %v1279_v10, %v1268_v63  ;;  %v1380_v45 = vadd.f32 %v1376_v21, %v1352_v4 }
 0x256   :  { %v1339_v51 = vsel %vm13062_vm13, %v8110_v5, %v1328_v27  ;;  %v1404_v18 = vmul.f32 %v8108_v9, %v1392_v15  ;;  %v1293_v37 = vmul.f32 %v7944_v23, %v13428_v38  ;;  %v1321_v31 = vmul.f32 %v7982_v6, %v1311_v33  ;;  %v5887_v15 = vld [vmem:[%s12505_s11 + $0x1d0] sm:$0xff] }
 0x257   :  { %v1351_v24 = vadd.f32 %v1347_v52, %v1323_v35  ;;  %v1338_v29 = vsel %vm13062_vm13, %v1328_v27, %v8138_v2  ;;  %v1386_v49 = vpop.permute.xlu1 %1385  ;;  %v1294_v13 = vmul.f32 %v7944_v23, %v13429_v12  ;;  %v1322_v28 = vmul.f32 %v7982_v6, %v1310_v56  ;;  %v5879_v2 = vld [vmem:[%s12505_s11 + $0x190] sm:$0xff]  ;;  %v5885_v56 = vld [vmem:[%s12505_s11 + $0x1c0] sm:$0xff] }
 0x258   :  { %v1393_v5 = vsel %vm12766_vm9, %v1386_v49, %v1388_v34  ;;  %v1414_v3 = vpop.permute.xlu0 %1413  ;;  %3600 = vperm.xlu1 %6004, %v5877_v40   ;;  %v1408_v19 = vadd.f32 %v1404_v18, %v1380_v45  ;;  %v1297_v44 = vadd.f32 %v1293_v37, %v1282_v22  ;;  %v1349_v26 = vmul.f32 %v8018_v36, %v1339_v51  ;;  %v5889_v40 = vld [vmem:[%s12505_s11 + $0x1e0] sm:$0xff]  ;;  %v5895_v51 = vld [vmem:[%s12505_s11 + $0x210] sm:$0xff] }
 0x259   :  { %v1379_v39 = vadd.f32 %v1375_v16, %v1351_v24  ;;  %v1403_v42 = vmul.f32 %v8108_v9, %v1393_v5  ;;  %v1298_v58 = vadd.f32 %v1294_v13, %v1283_v60  ;;  %v1350_v23 = vmul.f32 %v8018_v36, %v1338_v29  ;;  %v5891_v60 = vld [vmem:[%s12505_s11 + $0x1f0] sm:$0xff]  ;;  %v5893_v45 = vld [vmem:[%s12505_s11 + $0x200] sm:$0xff] }
 0x25a   :  { %v8248_v6 = vadd.f32 %v1414_v3, %v1408_v19  ;;  %v1325_v27 = vadd.f32 %v1321_v31, %v1297_v44  ;;  %v8251_v57 = vrot.slane %v8191_v62, %v1423_v0  ;;  %v1435_v7 = vsub.s32 3, %v8155_v55  ;;  %v5897_v18 = vld [vmem:[%s12505_s11 + $0x220] sm:$0xff]  ;;  %v5899_v38 = vld [vmem:[%s12505_s11 + $0x230] sm:$0xff]  ;;  %v5920_v19 = vld [vmem:[%s12505_s11 + $0x2d8] sm:$0xff] }
 0x25b   :  { %v1407_v25 = vadd.f32 %v1403_v42, %v1379_v39  ;;  %v1384_v43 = vpop.permute.xlu1 %1383  ;;  %v1326_v11 = vadd.f32 %v1322_v28, %v1298_v58  ;;  %v1431_v36 = vsub.s32 2, %v8155_v55  ;;  %v13433_v35 = vmov 0.0   ;;  %v5901_v37 = vld [vmem:[%s12505_s11 + $0x240] sm:$0xff]  ;;  %v5903_v31 = vld [vmem:[%s12505_s11 + $0x250] sm:$0xff] }
 0x25c   :  { %13430 = vst [vmem:[#allocation19_spill] sm:$0xff] %v8251_v57  ;;  %v1395_v48 = vsel %vm12766_vm9, %v1390_v32, %v1384_v43  ;;  %v1356_v1 = vpop.permute.xlu0 %1355  ;;  %3653 = vperm.xlu1 %6004, %v5879_v2   ;;  %v1442_v46 = vmul.f32 %v8208_v41, %v8248_v6  ;;  %v1353_v53 = vadd.f32 %v1349_v26, %v1325_v27  ;;  %v5905_v24 = vld [vmem:[%s12505_s11 + $0x260] sm:$0xff]  ;;  %v5907_v29 = vld [vmem:[%s12505_s11 + $0x270] sm:$0xff]  ;;  %v5926_v2 = vld [vmem:[%s12505_s11 + $0x308] sm:$0xff] }
 0x25d   :  { %v1394_v61 = vsel %vm12766_vm9, %v1384_v43, %v1386_v49  ;;  %v1366_v54 = vsel %vm13061_vm11, %v1356_v1, %v8186_v20  ;;  %v1367_v63 = vsel %vm13061_vm11, %v8151_v17, %v1356_v1  ;;  %v1354_v21 = vadd.f32 %v1350_v23, %v1326_v11  ;;  %v5909_v49 = vld [vmem:[%s12505_s11 + $0x280] sm:$0xff]  ;;  %v5911_v12 = vld [vmem:[%s12505_s11 + $0x290] sm:$0xff] }
 0x25e   :  { %v1377_v47 = vmul.f32 %v8046_v8, %v1367_v63  ;;  %v1378_v55 = vmul.f32 %v8046_v8, %v1366_v54  ;;  %1479 = vmatprep.subr.mxu0 %v1442_v46  ;;  %v8272_v50 = vadd.f32 %v1414_v3, %v1407_v25  ;;  %v1405_v52 = vmul.f32 %v8108_v9, %v1395_v48  ;;  %v5883_v8 = vld [vmem:[%s12505_s11 + $0x1b0] sm:$0xff]  ;;  %v5913_v13 = vld [vmem:[%s12505_s11 + $0x2a0] sm:$0xff]  ;;  %v85_v54 = vld [vmem:[%s13275_s21 + $0x18] sm:$0xff] }
 0x25f   :  { %vm1445_vm9 = vcmask 64512   ;;  %v1406_v20 = vmul.f32 %v8108_v9, %v1394_v61  ;;  %v8287_v4 = vrot.slane %v8191_v62, %v1435_v7  ;;  %v8290_v22 = vrot.slane %v8191_v62, %v1431_v36  ;;  %v8351_v28 = vpop.permute.xlu1 %1810  ;;  %v5915_v5 = vld [vmem:[%s12505_s11 + $0x2b0] sm:$0xff]  ;;  %v5921_v39 = vld [vmem:[%s12505_s11 + $0x2e0] sm:$0xff]  ;;  %v87_v61 = vld [vmem:[%s13275_s21 + $0x28] sm:$0xff] }
 0x260   :  { %v1381_v32 = vadd.f32 %v1377_v47, %v1353_v53  ;;  %v1382_v0 = vadd.f32 %v1378_v55, %v1354_v21  ;;  %3706 = vperm.xlu1 %6004, %v5881_v59   ;;  %v1441_v17 = vmul.f32 %v8251_v57, %v8272_v50  ;;  %v5919_v44 = vld [vmem:[%s12505_s11 + $0x2d0] sm:$0xff]  ;;  %v5925_v58 = vld [vmem:[%s12505_s11 + $0x300] sm:$0xff]  ;;  %v89_v53 = vld [vmem:[%s13275_s21 + $0x38] sm:$0xff]  ;;  %vm13746_vm11 = vcmp.lt.s32.totalorder %v6969_v14, 102 }
 0x261   :  { %13431 = vst [vmem:[#allocation10_spill] sm:$0xff] %v8287_v4  ;;  %13432 = vst [vmem:[#allocation22_spill] sm:$0xff] %v8290_v22  ;;  %v2304_v27 = vld [vmem:[%s12508_s12] sm:$0xff]  ;;  %v83_v63 = vld [vmem:[%s13275_s21 + $0x8] sm:$0xff]  ;;  %s13547_s21 = smov 61  }
 0x262   :  { %1480 = vmatpush1.msra.mxu0 %v1441_v17  ;;  %v1410_v10 = vadd.f32 %v1406_v20, %v1382_v0  ;;  %v1409_v9 = vadd.f32 %v1405_v52, %v1381_v32  ;;  %v93_v59 = vld [vmem:[%s13301_s28 + $0x8] sm:$0xff]  ;;  %v2332_v47 = vld [vmem:[%s12505_s11] sm:$0xff]  ;;  %v5836_v52 = vld [vmem:[%s12505_s11 + $0x38] sm:$0xff]  ;;  %s13532_s28 = smov 106  }
 0x263   :  { %5807 = vmatmul.mubr.msk.f32.vlgmr.msra.gmra.mxu0 %vm1445_vm9, %v8281_v30  ;;  %v2333_v21 = vld [vmem:[%s12505_s11 + $0x8] sm:$0xff]  ;;  %v5835_v20 = vld [vmem:[%s12505_s11 + $0x30] sm:$0xff]  ;;  %v5840_v32 = vld [vmem:[%s12505_s11 + $0x58] sm:$0xff] }
 0x264   :  { %3759 = vperm.xlu1 %6004, %v5883_v8   ;;  %v8294_v33 = vadd.f32 %v1414_v3, %v1410_v10  ;;  %v8296_v34 = vadd.f32 %v1414_v3, %v1409_v9  ;;  %1672 = vmatprep.mubr.f32.mxu0 %v13433_v35  ;;  %v8356_v3 = vpop.permute.xlu1 %1800  ;;  %v5834_v55 = vld [vmem:[%s12505_s11 + $0x28] sm:$0xff]  ;;  %v5844_v17 = vld [vmem:[%s12505_s11 + $0x78] sm:$0xff] }
 0x265   :  { %v5842_v0 = vld [vmem:[%s12505_s11 + $0x68] sm:$0xff]  ;;  %v5848_v10 = vld [vmem:[%s12505_s11 + $0x98] sm:$0xff] }
 0x266   :  { %v1444_v16 = vmul.f32 %v8287_v4, %v8294_v33  ;;  %v1443_v62 = vmul.f32 %v8290_v22, %v8296_v34  ;;  %v5846_v8 = vld [vmem:[%s12505_s11 + $0x88] sm:$0xff] }
 0x267   :  { %v5850_v9 = vld [vmem:[%s12505_s11 + $0xa8] sm:$0xff] }
 0x268   :  { %1550 = vmatprep.subr.mxu1 %v1444_v16  ;;  %3812 = vperm.xlu1 %6004, %v5885_v56   ;;  %v8364_v26 = vpop.permute.xlu1 %1790  ;;  %v5852_v56 = vld [vmem:[%s12505_s11 + $0xb8] sm:$0xff]  ;;  %v5854_v16 = vld [vmem:[%s12505_s11 + $0xc8] sm:$0xff] }
 0x269   :  { %1551 = vmatpush1.msra.mxu1 %v1443_v62  ;;  %v5856_v62 = vld [vmem:[%s12505_s11 + $0xd8] sm:$0xff] }
 0x26a   :  { %5808 = vmatmul.mubr.msk.f32.vlgmr.msra.gmra.mxu1 %vm1445_vm9, %v8281_v30 }
 0x26b   :  { %1743 = vmatprep.mubr.f32.mxu1 %v13433_v35 }
 0x26c   :  { %3865 = vperm.xlu1 %6004, %v5887_v15   ;;  %v8369_v42 = vpop.permute.xlu1 %1780  ;;  %v5858_v15 = vld [vmem:[%s12505_s11 + $0xe8] sm:$0xff] }
 0x270   :  { %3918 = vperm.xlu1 %6004, %v5889_v40   ;;  %v8377_v23 = vpop.permute.xlu1 %2102  ;;  %v5860_v40 = vld [vmem:[%s12505_s11 + $0xf8] sm:$0xff] }
 0x274   :  { %3971 = vperm.xlu1 %6004, %v5891_v60   ;;  %v8382_v25 = vpop.permute.xlu1 %2386  ;;  %v5862_v60 = vld [vmem:[%s12505_s11 + $0x108] sm:$0xff] }
 0x275   :  { %13434 = vst [vmem:[#allocation24_spill] sm:$0xff] %v8382_v25 }
 0x278   :  { %4024 = vperm.xlu1 %6004, %v5893_v45   ;;  %v5864_v45 = vld [vmem:[%s12505_s11 + $0x118] sm:$0xff] }
 0x27c   :  { %4077 = vperm.xlu1 %6004, %v5895_v51   ;;  %v5866_v51 = vld [vmem:[%s12505_s11 + $0x128] sm:$0xff] }
 0x280   :  { %4130 = vperm.xlu1 %6004, %v5897_v18   ;;  %v5868_v18 = vld [vmem:[%s12505_s11 + $0x138] sm:$0xff] }
 0x284   :  { %4183 = vperm.xlu1 %6004, %v5899_v38   ;;  %v5870_v38 = vld [vmem:[%s12505_s11 + $0x148] sm:$0xff] }
 0x288   :  { %4236 = vperm.xlu1 %6004, %v5901_v37   ;;  %v5872_v37 = vld [vmem:[%s12505_s11 + $0x158] sm:$0xff] }
 0x28c   :  { %4289 = vperm.xlu1 %6004, %v5903_v31   ;;  %v5874_v31 = vld [vmem:[%s12505_s11 + $0x168] sm:$0xff] }
 0x290   :  { %4342 = vperm.xlu1 %6004, %v5905_v24   ;;  %v5876_v24 = vld [vmem:[%s12505_s11 + $0x178] sm:$0xff] }
 0x294   :  { %4395 = vperm.xlu1 %6004, %v5907_v29   ;;  %v5878_v29 = vld [vmem:[%s12505_s11 + $0x188] sm:$0xff] }
 0x298   :  { %4448 = vperm.xlu1 %6004, %v5909_v49  }
 0x29c   :  { %4501 = vperm.xlu1 %6004, %v5911_v12  }
 0x2a0   :  { %4530 = vperm.xlu1 %6004, %v5913_v13  }
 0x2a4   :  { %4559 = vperm.xlu1 %6004, %v5915_v5  }
 0x2a8   :  { %4646 = vperm.xlu1 %6004, %v5920_v19  }
 0x2ac   :  { %4641 = vperm.xlu1 %6004, %v5919_v44   ;;  %v5880_v44 = vld [vmem:[%s12505_s11 + $0x198] sm:$0xff] }
 0x2b0   :  { %4694 = vperm.xlu1 %6004, %v5921_v39  }
 0x2b4   :  { %4805 = vperm.xlu1 %6004, %v5926_v2  }
 0x2b8   :  { %4800 = vperm.xlu1 %6004, %v5925_v58  }
 0x2bc   :  { %4826 = vperm.xlu1 %6004, %v2304_v27  }
 0x323   :  { %v1515_v43 = vpop.f32.mrf.mxu0 }
 0x325   :  { %v1517_v7 = vpop.f32.mrf.mxu0 }
 0x326   :  { %v1591_v11 = vadd.f32 %v1517_v7, %v1515_v43 }
 0x32a   :  { %v1586_v48 = vpop.f32.mrf.mxu1 }
 0x32b   :  { %v1592_v1 = vadd.f32 %v1591_v11, %v1586_v48 }
 0x32c   :  { %v1588_v46 = vpop.f32.mrf.mxu1 }
 0x32d   :  { %v1593_v36 = vadd.f32 %v1592_v1, %v1588_v46  ;;  %v5882_v1 = vld [vmem:[%s12505_s11 + $0x1a8] sm:$0xff]  ;;  %v5884_v46 = vld [vmem:[%s12505_s11 + $0x1b8] sm:$0xff] }
 0x32f   :  { %1594 = vadd.xlane.f32.xlu0 %v1593_v36  ;;  %v5886_v36 = vld [vmem:[%s12505_s11 + $0x1c8] sm:$0xff] }
 0x345   :  { %1815 = vperm.xlu0 %6003, %v89_v53   ;;  %v5888_v53 = vld [vmem:[%s12505_s11 + $0x1d8] sm:$0xff] }
 0x349   :  { %1805 = vperm.xlu0 %6003, %v87_v61   ;;  %v5892_v61 = vld [vmem:[%s12505_s11 + $0x1f8] sm:$0xff] }
 0x34d   :  { %1795 = vperm.xlu0 %6003, %v85_v54   ;;  %v5894_v54 = vld [vmem:[%s12505_s11 + $0x208] sm:$0xff] }
 0x351   :  { %1785 = vperm.xlu0 %6003, %v83_v63   ;;  %v5896_v63 = vld [vmem:[%s12505_s11 + $0x218] sm:$0xff] }
 0x355   :  { %2107 = vperm.xlu0 %6003, %v93_v59   ;;  %v5898_v59 = vld [vmem:[%s12505_s11 + $0x228] sm:$0xff] }
 0x359   :  { %2341 = vperm.xlu0 %6003, %v2333_v21   ;;  %v5900_v21 = vld [vmem:[%s12505_s11 + $0x238] sm:$0xff] }
 0x35d   :  { %2336 = vperm.xlu0 %6003, %v2332_v47   ;;  %v5902_v47 = vld [vmem:[%s12505_s11 + $0x248] sm:$0xff] }
 0x361   :  { %2439 = vperm.xlu0 %6003, %v5834_v55   ;;  %v5904_v55 = vld [vmem:[%s12505_s11 + $0x258] sm:$0xff] }
 0x365   :  { %2492 = vperm.xlu0 %6003, %v5836_v52   ;;  %v5906_v52 = vld [vmem:[%s12505_s11 + $0x268] sm:$0xff] }
 0x369   :  { %2487 = vperm.xlu0 %6003, %v5835_v20   ;;  %v8536_v20 = vpop.permute.xlu1 %2381 }
 0x36d   :  { %2598 = vperm.xlu0 %6003, %v5840_v32   ;;  %v5908_v32 = vld [vmem:[%s12505_s11 + $0x278] sm:$0xff] }
 0x371   :  { %2651 = vperm.xlu0 %6003, %v5842_v0   ;;  %v8541_v0 = vpop.permute.xlu1 %2434 }
 0x375   :  { %2704 = vperm.xlu0 %6003, %v5844_v17   ;;  %v5910_v17 = vld [vmem:[%s12505_s11 + $0x288] sm:$0xff] }
 0x379   :  { %2757 = vperm.xlu0 %6003, %v5846_v8   ;;  %v5912_v8 = vld [vmem:[%s12505_s11 + $0x298] sm:$0xff] }
 0x37d   :  { %2810 = vperm.xlu0 %6003, %v5848_v10   ;;  %v8549_v10 = vpop.permute.xlu1 %2545 }
 0x37e   :  { %13435 = vst [vmem:[#allocation21_spill] sm:$0xff] %v8549_v10 }
 0x381   :  { %2863 = vperm.xlu0 %6003, %v5850_v9   ;;  %v5914_v9 = vld [vmem:[%s12505_s11 + $0x2a8] sm:$0xff] }
 0x385   :  { %2916 = vperm.xlu0 %6003, %v5852_v56  }
 0x389   :  { %2969 = vperm.xlu0 %6003, %v5854_v16   ;;  %v8556_v16 = vpop.permute.xlu1 %2540 }
 0x38a   :  { %13436 = vst [vmem:[#allocation25_spill] sm:$0xff] %v8556_v16 }
 0x38d   :  { %3022 = vperm.xlu0 %6003, %v5856_v62   ;;  %v5916_v62 = vld [vmem:[%s12505_s11 + $0x2b8] sm:$0xff] }
 0x391   :  { %3075 = vperm.xlu0 %6003, %v5858_v15  }
 0x395   :  { %3128 = vperm.xlu0 %6003, %v5860_v40   ;;  %v5918_v40 = vld [vmem:[%s12505_s11 + $0x2c8] sm:$0xff] }
 0x399   :  { %3181 = vperm.xlu0 %6003, %v5862_v60   ;;  %v8566_v60 = vpop.permute.xlu1 %2593 }
 0x39a   :  { %13437 = vst [vmem:[#allocation13_spill] sm:$0xff] %v8566_v60 }
 0x39d   :  { %3234 = vperm.xlu0 %6003, %v5864_v45   ;;  %v5917_v45 = vld [vmem:[%s12505_s11 + $0x2c0] sm:$0xff] }
 0x3a1   :  { %3287 = vperm.xlu0 %6003, %v5866_v51  }
 0x3a5   :  { %3340 = vperm.xlu0 %6003, %v5868_v18   ;;  %v8573_v18 = vpop.permute.xlu1 %2646 }
 0x3a6   :  { %13438 = vst [vmem:[#allocation26_spill] sm:$0xff] %v8573_v18 }
 0x3a9   :  { %3393 = vperm.xlu0 %6003, %v5870_v38   ;;  %v5922_v38 = vld [vmem:[%s12505_s11 + $0x2e8] sm:$0xff] }
 0x3ad   :  { %3446 = vperm.xlu0 %6003, %v5872_v37  }
 0x3b1   :  { %3499 = vperm.xlu0 %6003, %v5874_v31   ;;  %v5924_v31 = vld [vmem:[%s12505_s11 + $0x2f8] sm:$0xff] }
 0x3b5   :  { %3552 = vperm.xlu0 %6003, %v5876_v24   ;;  %v8583_v24 = vpop.permute.xlu1 %2699 }
 0x3b6   :  { %13439 = vst [vmem:[#allocation27_spill] sm:$0xff] %v8583_v24 }
 0x3b8   :  { %v8474_v49 = vpop.xlane.xlu0 %1594 }
 0x3b9   :  { %3605 = vperm.xlu0 %6003, %v5878_v29   ;;  %v1597_v12 = vsub.f32 %v8248_v6, %v8474_v49  ;;  %v1599_v13 = vsub.f32 %v8294_v33, %v8474_v49  ;;  %v1596_v5 = vsub.f32 %v8272_v50, %v8474_v49  ;;  %v1598_v19 = vsub.f32 %v8296_v34, %v8474_v49  ;;  %v5923_v29 = vld [vmem:[%s12505_s11 + $0x2f0] sm:$0xff] }
 0x3bb   :  { %v1601_v39 = vmul.f32 %v1597_v12, %v1597_v12  ;;  %v1603_v2 = vmul.f32 %v1599_v13, %v1599_v13  ;;  %v1600_v58 = vmul.f32 %v1596_v5, %v1596_v5  ;;  %v1602_v27 = vmul.f32 %v1598_v19, %v1598_v19  ;;  %v8590_v13 = vpop.permute.xlu1 %2752  ;;  %v2305_v5 = vld [vmem:[%s12508_s12 + $0x8] sm:$0xff]  ;;  %s13541_s12 = smov 82  }
 0x3bc   :  { %13440 = vst [vmem:[#allocation28_spill] sm:$0xff] %v8590_v13 }
 0x3bd   :  { %3658 = vperm.xlu0 %6003, %v5880_v44   ;;  %v1605_v43 = vmul.f32 %v1601_v39, %v8208_v41  ;;  %v1607_v7 = vmul.f32 %v1603_v2, %v8287_v4  ;;  %v1604_v11 = vmul.f32 %v1600_v58, %v8251_v57  ;;  %v1606_v48 = vmul.f32 %v1602_v27, %v8290_v22 }
 0x3bf   :  { %1638 = vmatprep.subr.mxu0 %v1605_v43  ;;  %1709 = vmatprep.subr.mxu1 %v1607_v7  ;;  %v8597_v44 = vpop.permute.xlu1 %2805 }
 0x3c0   :  { %1639 = vmatpush1.msra.mxu0 %v1604_v11  ;;  %1710 = vmatpush1.msra.mxu1 %v1606_v48  ;;  %v8554_v56 = vpop.permute.xlu0 %1815  ;;  %13442 = vst [vmem:[#allocation20_spill] sm:$0xff] %v8597_v44 }
 0x3c1   :  { %3711 = vperm.xlu0 %6003, %v5882_v1   ;;  %5809 = vmatmul.mubr.msk.f32.vlgmr.msra.gmra.mxu0 %vm1445_vm9, %v8281_v30 }
 0x3c2   :  { %5810 = vmatmul.mubr.msk.f32.vlgmr.msra.gmra.mxu1 %vm1445_vm9, %v8281_v30  ;;  %1906 = vmatprep.mubr.f32.mxu0 %v13433_v35  ;;  %v5890_v30 = vld [vmem:[%s12505_s11 + $0x1e8] sm:$0xff]  ;;  %s13540_s11 = smov 83  }
 0x3c3   :  { %2019 = vmatprep.mubr.f32.mxu1 %v13433_v35  ;;  %v8599_v39 = vpop.permute.xlu1 %2858 }
 0x3c4   :  { %v8561_v15 = vpop.permute.xlu0 %1805  ;;  %13443 = vst [vmem:[#allocation32_spill] sm:$0xff] %v8599_v39 }
 0x3c5   :  { %3764 = vperm.xlu0 %6003, %v5884_v46  }
 0x3c7   :  { %v8601_v2 = vpop.permute.xlu1 %2911 }
 0x3c8   :  { %v8571_v51 = vpop.permute.xlu0 %1795  ;;  %13444 = vst [vmem:[#allocation34_spill] sm:$0xff] %v8601_v2 }
 0x3c9   :  { %3817 = vperm.xlu0 %6003, %v5886_v36  }
 0x3cb   :  { %v8603_v58 = vpop.permute.xlu1 %2964 }
 0x3cc   :  { %v8578_v37 = vpop.permute.xlu0 %1785  ;;  %13445 = vst [vmem:[#allocation31_spill] sm:$0xff] %v8603_v58 }
 0x3cd   :  { %3870 = vperm.xlu0 %6003, %v5888_v53  }
 0x3cf   :  { %v8605_v27 = vpop.permute.xlu1 %3017 }
 0x3d0   :  { %v8588_v12 = vpop.permute.xlu0 %2107  ;;  %13446 = vst [vmem:[#allocation35_spill] sm:$0xff] %v8605_v27 }
 0x3d1   :  { %3923 = vperm.xlu0 %6003, %v5890_v30  }
 0x3d3   :  { %v8607_v43 = vpop.permute.xlu1 %3070 }
 0x3d4   :  { %v8595_v19 = vpop.permute.xlu0 %2341  ;;  %13447 = vst [vmem:[#allocation23_spill] sm:$0xff] %v8607_v43 }
 0x3d5   :  { %3976 = vperm.xlu0 %6003, %v5892_v61   ;;  %13441 = vst [vmem:[#allocation29_spill] sm:$0xff] %v8595_v19 }
 0x3d7   :  { %v8609_v7 = vpop.permute.xlu1 %3123 }
 0x3d8   :  { %13448 = vst [vmem:[#allocation36_spill] sm:$0xff] %v8609_v7 }
 0x3d9   :  { %4029 = vperm.xlu0 %6003, %v5894_v54  }
 0x3db   :  { %v8611_v11 = vpop.permute.xlu1 %3176 }
 0x3dc   :  { %13449 = vst [vmem:[#allocation37_spill] sm:$0xff] %v8611_v11 }
 0x3dd   :  { %4082 = vperm.xlu0 %6003, %v5896_v63   ;;  %v8629_v63 = vpop.permute.xlu0 %2336 }
 0x3df   :  { %v8613_v48 = vpop.permute.xlu1 %3229 }
 0x3e0   :  { %13450 = vst [vmem:[#allocation38_spill] sm:$0xff] %v8613_v48 }
 0x3e1   :  { %4135 = vperm.xlu0 %6003, %v5898_v59  }
 0x3e3   :  { %v8615_v1 = vpop.permute.xlu1 %3282 }
 0x3e4   :  { %13451 = vst [vmem:[#allocation39_spill] sm:$0xff] %v8615_v1 }
 0x3e5   :  { %4188 = vperm.xlu0 %6003, %v5900_v21  }
 0x3e7   :  { %v8617_v46 = vpop.permute.xlu1 %3335 }
 0x3e8   :  { %13452 = vst [vmem:[#allocation30_spill] sm:$0xff] %v8617_v46 }
 0x3e9   :  { %4241 = vperm.xlu0 %6003, %v5902_v47   ;;  %v8633_v47 = vpop.permute.xlu0 %2439 }
 0x3ea   :  { %13459 = vst [vmem:[#allocation47_spill] sm:$0xff] %v8633_v47 }
 0x3eb   :  { %v8619_v36 = vpop.permute.xlu1 %3388 }
 0x3ec   :  { %13453 = vst [vmem:[#allocation42_spill] sm:$0xff] %v8619_v36 }
 0x3ed   :  { %4294 = vperm.xlu0 %6003, %v5904_v55  }
 0x3ef   :  { %v8621_v53 = vpop.permute.xlu1 %3441 }
 0x3f0   :  { %13454 = vst [vmem:[#allocation44_spill] sm:$0xff] %v8621_v53 }
 0x3f1   :  { %4347 = vperm.xlu0 %6003, %v5906_v52  }
 0x3f3   :  { %v8623_v30 = vpop.permute.xlu1 %3494 }
 0x3f4   :  { %13455 = vst [vmem:[#allocation41_spill] sm:$0xff] %v8623_v30 }
 0x3f5   :  { %4400 = vperm.xlu0 %6003, %v5908_v32  }
 0x3f7   :  { %v8625_v61 = vpop.permute.xlu1 %3547 }
 0x3f8   :  { %13456 = vst [vmem:[#allocation45_spill] sm:$0xff] %v8625_v61 }
 0x3f9   :  { %4453 = vperm.xlu0 %6003, %v5910_v17  }
 0x3fb   :  { %v8627_v54 = vpop.permute.xlu1 %3600 }
 0x3fc   :  { %13457 = vst [vmem:[#allocation33_spill] sm:$0xff] %v8627_v54 }
 0x3fd   :  { %4506 = vperm.xlu0 %6003, %v5912_v8  }
 0x3ff   :  { %v8631_v59 = vpop.permute.xlu1 %3653 }
 0x400   :  { %13458 = vst [vmem:[#allocation46_spill] sm:$0xff] %v8631_v59 }
 0x401   :  { %4535 = vperm.xlu0 %6003, %v5914_v9  }
 0x403   :  { %v8635_v17 = vpop.permute.xlu1 %3706 }
 0x404   :  { %13460 = vst [vmem:[#allocation48_spill] sm:$0xff] %v8635_v17 }
 0x405   :  { %4564 = vperm.xlu0 %6003, %v5916_v62  }
 0x409   :  { %4593 = vperm.xlu0 %6003, %v5918_v40   ;;  %v8637_v40 = vpop.permute.xlu0 %2492 }
 0x40a   :  { %13461 = vst [vmem:[#allocation49_spill] sm:$0xff] %v8637_v40 }
 0x40d   :  { %4588 = vperm.xlu0 %6003, %v5917_v45   ;;  %v8639_v45 = vpop.permute.xlu1 %3759 }
 0x40e   :  { %13462 = vst [vmem:[#allocation40_spill] sm:$0xff] %v8639_v45 }
 0x411   :  { %4699 = vperm.xlu0 %6003, %v5922_v38   ;;  %v8641_v38 = vpop.permute.xlu0 %2487 }
 0x415   :  { %4752 = vperm.xlu0 %6003, %v5924_v31   ;;  %v8643_v31 = vpop.permute.xlu1 %3812 }
 0x416   :  { %13463 = vst [vmem:[#allocation52_spill] sm:$0xff] %v8643_v31 }
 0x419   :  { %4747 = vperm.xlu0 %6003, %v5923_v29   ;;  %v8645_v29 = vpop.permute.xlu0 %2598 }
 0x41a   :  { %13464 = vst [vmem:[#allocation54_spill] sm:$0xff] %v8645_v29 }
 0x41d   :  { %4831 = vperm.xlu0 %6003, %v2305_v5   ;;  %v8647_v5 = vpop.permute.xlu1 %3865  ;;  %v8649_v47 = vpop.permute.xlu0 %2651 }
 0x41e   :  { %13465 = vst [vmem:[#allocation51_spill] sm:$0xff] %v8647_v5  ;;  %13466 = vst [vmem:[#allocation55_spill] sm:$0xff] %v8649_v47 }
 0x481   :  { %v1674_v21 = vpop.f32.mrf.mxu0 }
 0x482   :  { %v1745_v52 = vpop.f32.mrf.mxu1 }
 0x483   :  { %v1676_v55 = vpop.f32.mrf.mxu0 }
 0x484   :  { %v1750_v32 = vadd.f32 %v1676_v55, %v1674_v21  ;;  %v1747_v9 = vpop.f32.mrf.mxu1  ;;  %v8651_v21 = vpop.permute.xlu1 %3918 }
 0x485   :  { %13467 = vst [vmem:[#allocation43_spill] sm:$0xff] %v8651_v21  ;;  %v8653_v55 = vpop.permute.xlu0 %2704 }
 0x486   :  { %v1751_v8 = vadd.f32 %v1750_v32, %v1745_v52  ;;  %13468 = vst [vmem:[#allocation56_spill] sm:$0xff] %v8653_v55 }
 0x488   :  { %v1752_v62 = vadd.f32 %v1751_v8, %v1747_v9  ;;  %v8655_v52 = vpop.permute.xlu1 %3971 }
 0x489   :  { %13469 = vst [vmem:[#allocation57_spill] sm:$0xff] %v8655_v52  ;;  %v8657_v32 = vpop.permute.xlu0 %2757 }
 0x48a   :  { %1753 = vadd.xlane.f32.xlu1 %v1752_v62  ;;  %13470 = vst [vmem:[#allocation58_spill] sm:$0xff] %v8657_v32 }
 0x48c   :  { %v8659_v8 = vpop.permute.xlu1 %4024 }
 0x48d   :  { %13471 = vst [vmem:[#allocation59_spill] sm:$0xff] %v8659_v8  ;;  %v8661_v9 = vpop.permute.xlu0 %2810 }
 0x48e   :  { %13472 = vst [vmem:[#allocation50_spill] sm:$0xff] %v8661_v9 }
 0x490   :  { %v8663_v62 = vpop.permute.xlu1 %4077 }
 0x491   :  { %13473 = vst [vmem:[#allocation62_spill] sm:$0xff] %v8663_v62  ;;  %v8665_v10 = vpop.permute.xlu0 %2863 }
 0x492   :  { %13474 = vst [vmem:[#allocation64_spill] sm:$0xff] %v8665_v10 }
 0x494   :  { %v8667_v29 = vpop.permute.xlu1 %4130 }
 0x495   :  { %13475 = vst [vmem:[#allocation61_spill] sm:$0xff] %v8667_v29  ;;  %v8669_v40 = vpop.permute.xlu0 %2916 }
 0x496   :  { %13476 = vst [vmem:[#allocation65_spill] sm:$0xff] %v8669_v40 }
 0x498   :  { %v8671_v47 = vpop.permute.xlu1 %4183 }
 0x499   :  { %13477 = vst [vmem:[#allocation53_spill] sm:$0xff] %v8671_v47  ;;  %v8673_v19 = vpop.permute.xlu0 %2969 }
 0x49a   :  { %13478 = vst [vmem:[#allocation66_spill] sm:$0xff] %v8673_v19 }
 0x49c   :  { %v8675_v55 = vpop.permute.xlu1 %4236 }
 0x49d   :  { %13479 = vst [vmem:[#allocation67_spill] sm:$0xff] %v8675_v55  ;;  %v8677_v25 = vpop.permute.xlu0 %3022 }
 0x49e   :  { %13480 = vst [vmem:[#allocation68_spill] sm:$0xff] %v8677_v25 }
 0x4a0   :  { %v8679_v32 = vpop.permute.xlu1 %4289 }
 0x4a1   :  { %13481 = vst [vmem:[#allocation69_spill] sm:$0xff] %v8679_v32  ;;  %v8681_v8 = vpop.permute.xlu0 %3075 }
 0x4a2   :  { %13482 = vst [vmem:[#allocation60_spill] sm:$0xff] %v8681_v8 }
 0x4a4   :  { %v8683_v9 = vpop.permute.xlu1 %4342 }
 0x4a5   :  { %13483 = vst [vmem:[#allocation72_spill] sm:$0xff] %v8683_v9  ;;  %v8685_v62 = vpop.permute.xlu0 %3128 }
 0x4a6   :  { %13484 = vst [vmem:[#allocation74_spill] sm:$0xff] %v8685_v62 }
 0x4a8   :  { %v8687_v10 = vpop.permute.xlu1 %4395 }
 0x4a9   :  { %13485 = vst [vmem:[#allocation71_spill] sm:$0xff] %v8687_v10  ;;  %v8689_v29 = vpop.permute.xlu0 %3181 }
 0x4aa   :  { %13486 = vst [vmem:[#allocation75_spill] sm:$0xff] %v8689_v29 }
 0x4ac   :  { %v8691_v40 = vpop.permute.xlu1 %4448 }
 0x4ad   :  { %13487 = vst [vmem:[#allocation63_spill] sm:$0xff] %v8691_v40  ;;  %v8693_v47 = vpop.permute.xlu0 %3234 }
 0x4ae   :  { %13488 = vst [vmem:[#allocation76_spill] sm:$0xff] %v8693_v47 }
 0x4b0   :  { %v8695_v19 = vpop.permute.xlu1 %4501 }
 0x4b1   :  { %13489 = vst [vmem:[#allocation77_spill] sm:$0xff] %v8695_v19  ;;  %v8697_v55 = vpop.permute.xlu0 %3287 }
 0x4b2   :  { %13490 = vst [vmem:[#allocation78_spill] sm:$0xff] %v8697_v55 }
 0x4b4   :  { %v8699_v25 = vpop.permute.xlu1 %4530 }
 0x4b5   :  { %13491 = vst [vmem:[#allocation79_spill] sm:$0xff] %v8699_v25  ;;  %v8701_v32 = vpop.permute.xlu0 %3340 }
 0x4b6   :  { %13492 = vst [vmem:[#allocation70_spill] sm:$0xff] %v8701_v32 }
 0x4b8   :  { %v8703_v8 = vpop.permute.xlu1 %4559 }
 0x4b9   :  { %13493 = vst [vmem:[#allocation82_spill] sm:$0xff] %v8703_v8  ;;  %v8705_v9 = vpop.permute.xlu0 %3393 }
 0x4ba   :  { %13494 = vst [vmem:[#allocation84_spill] sm:$0xff] %v8705_v9 }
 0x4bc   :  { %v8707_v62 = vpop.permute.xlu1 %4646 }
 0x4bd   :  { %13495 = vst [vmem:[#allocation81_spill] sm:$0xff] %v8707_v62  ;;  %v8709_v10 = vpop.permute.xlu0 %3446 }
 0x4be   :  { %13496 = vst [vmem:[#allocation85_spill] sm:$0xff] %v8709_v10 }
 0x4c0   :  { %v8711_v29 = vpop.permute.xlu1 %4641 }
 0x4c1   :  { %13497 = vst [vmem:[#allocation73_spill] sm:$0xff] %v8711_v29  ;;  %v8713_v40 = vpop.permute.xlu0 %3499 }
 0x4c2   :  { %13498 = vst [vmem:[#allocation86_spill] sm:$0xff] %v8713_v40 }
 0x4c4   :  { %v8715_v47 = vpop.permute.xlu1 %4694 }
 0x4c5   :  { %13499 = vst [vmem:[#allocation87_spill] sm:$0xff] %v8715_v47  ;;  %v8717_v19 = vpop.permute.xlu0 %3552 }
 0x4c6   :  { %13500 = vst [vmem:[#allocation88_spill] sm:$0xff] %v8717_v19 }
 0x4c8   :  { %v8719_v55 = vpop.permute.xlu1 %4805 }
 0x4c9   :  { %13501 = vst [vmem:[#allocation89_spill] sm:$0xff] %v8719_v55  ;;  %v8721_v25 = vpop.permute.xlu0 %3605  ;;  %v72_v55 = vld [vmem:[%s12509_s5] sm:$0xff]  ;;  %s13545_s5 = smov 78  }
 0x4ca   :  { %13502 = vst [vmem:[#allocation80_spill] sm:$0xff] %v8721_v25 }
 0x4cc   :  { %v8723_v32 = vpop.permute.xlu1 %4800 }
 0x4cd   :  { %13503 = vst [vmem:[#allocation92_spill] sm:$0xff] %v8723_v32  ;;  %v8725_v8 = vpop.permute.xlu0 %3658 }
 0x4ce   :  { %13504 = vst [vmem:[#allocation94_spill] sm:$0xff] %v8725_v8 }
 0x4d0   :  { %v8727_v9 = vpop.permute.xlu1 %4826 }
 0x4d1   :  { %13505 = vst [vmem:[#allocation91_spill] sm:$0xff] %v8727_v9  ;;  %v8729_v62 = vpop.permute.xlu0 %3711  ;;  %v73_v9 = vld [vmem:[%s12510_s6] sm:$0xff]  ;;  %s13546_s6 = smov 62  }
 0x4d2   :  { %13506 = vst [vmem:[#allocation95_spill] sm:$0xff] %v8729_v62 }
 0x4d5   :  { %v8731_v40 = vpop.permute.xlu0 %3764 }
 0x4d6   :  { %13507 = vst [vmem:[#allocation83_spill] sm:$0xff] %v8731_v40 }
 0x4d9   :  { %v8733_v47 = vpop.permute.xlu0 %3817 }
 0x4da   :  { %13508 = vst [vmem:[#allocation96_spill] sm:$0xff] %v8733_v47 }
 0x4dd   :  { %v8738_v32 = vpop.permute.xlu0 %3870 }
 0x4de   :  { %13509 = vst [vmem:[#allocation97_spill] sm:$0xff] %v8738_v32 }
 0x4e1   :  { %v8744_v40 = vpop.permute.xlu0 %3923 }
 0x4e2   :  { %13510 = vst [vmem:[#allocation98_spill] sm:$0xff] %v8744_v40 }
 0x4e5   :  { %v8746_v47 = vpop.permute.xlu0 %3976 }
 0x4e6   :  { %13511 = vst [vmem:[#allocation99_spill] sm:$0xff] %v8746_v47 }
 0x4e9   :  { %v8748_v62 = vpop.permute.xlu0 %4029 }
 0x4ea   :  { %13512 = vst [vmem:[#allocation90_spill] sm:$0xff] %v8748_v62 }
 0x4ed   :  { %v8750_v8 = vpop.permute.xlu0 %4082 }
 0x4ee   :  { %13513 = vst [vmem:[#allocation102_spill] sm:$0xff] %v8750_v8 }
 0x513   :  { %v1754_v10 = vpop.xlane.xlu1 %1753 }
 0x514   :  { %v1755_v29 = vadd.f32 1e-05, %v1754_v10 }
 0x516   :  { %6005 = vrsqrt.f32 %v1755_v29 }
 0x523   :  { %v6006_v25 = vpop.eup %6005 }
 0x524   :  { %v1757_v19 = vmul.f32 %v6006_v25, %v72_v55  ;;  %v8752_v25 = vpop.permute.xlu0 %4135 }
 0x525   :  { %13514 = vst [vmem:[#allocation104_spill] sm:$0xff] %v8752_v25 }
 0x526   :  { %1762 = vperm.xlu0 %6003, %v1757_v19   ;;  %v1758_v10 = vmul.f32 %v1757_v19, %v8474_v49 }
 0x528   :  { %v1759_v29 = vsub.f32 %v73_v9, %v1758_v10  ;;  %v8754_v55 = vpop.permute.xlu0 %4188 }
 0x529   :  { %13515 = vst [vmem:[#allocation101_spill] sm:$0xff] %v8754_v55 }
 0x52a   :  { %1771 = vperm.xlu1 %6004, %v1759_v29  }
 0x52c   :  { %v8756_v32 = vpop.permute.xlu0 %4241 }
 0x52d   :  { %13516 = vst [vmem:[#allocation105_spill] sm:$0xff] %v8756_v32 }
 0x530   :  { %v8758_v52 = vpop.permute.xlu0 %4294 }
 0x531   :  { %13517 = vst [vmem:[#allocation93_spill] sm:$0xff] %v8758_v52 }
 0x534   :  { %v8760_v21 = vpop.permute.xlu0 %4347 }
 0x535   :  { %13518 = vst [vmem:[#allocation106_spill] sm:$0xff] %v8760_v21 }
 0x538   :  { %v8762_v49 = vpop.permute.xlu0 %4400 }
 0x539   :  { %13519 = vst [vmem:[#allocation107_spill] sm:$0xff] %v8762_v49 }
 0x53c   :  { %v8764_v19 = vpop.permute.xlu0 %4453 }
 0x53d   :  { %13520 = vst [vmem:[#allocation108_spill] sm:$0xff] %v8764_v19 }
 0x540   :  { %v8766_v9 = vpop.permute.xlu0 %4506 }
 0x541   :  { %13521 = vst [vmem:[#allocation109_spill] sm:$0xff] %v8766_v9 }
 0x544   :  { %v8768_v10 = vpop.permute.xlu0 %4535 }
 0x545   :  { %13522 = vst [vmem:[#allocation100_spill] sm:$0xff] %v8768_v10 }
 0x548   :  { %v8770_v29 = vpop.permute.xlu0 %4564 }
 0x549   :  { %13523 = vst [vmem:[#allocation112_spill] sm:$0xff] %v8770_v29 }
 0x54c   :  { %v8772_v8 = vpop.permute.xlu0 %4593 }
 0x54d   :  { %13524 = vst [vmem:[#allocation111_spill] sm:$0xff] %v8772_v8 }
 0x550   :  { %v8774_v25 = vpop.permute.xlu0 %4588 }
 0x551   :  { %13525 = vst [vmem:[#allocation103_spill] sm:$0xff] %v8774_v25 }
 0x554   :  { %v8776_v55 = vpop.permute.xlu0 %4699 }
 0x555   :  { %13526 = vst [vmem:[#allocation110_spill] sm:$0xff] %v8776_v55 }
 0x558   :  { %v8778_v32 = vpop.permute.xlu0 %4752 }
 0x559   :  { %13527 = vst [vmem:[#allocation6_spill] sm:$0xff] %v8778_v32  ;;  %v74_v32 = vld [vmem:[%s12511_s7] sm:$0xff] }
 0x55c   :  { %v8780_v52 = vpop.permute.xlu0 %4747 }
 0x55d   :  { %13528 = vst [vmem:[#allocation9_spill] sm:$0xff] %v8780_v52 }
 0x560   :  { %v8782_v21 = vpop.permute.xlu0 %4831 }
 0x561   :  { %13529 = vst [vmem:[#allocation5_spill] sm:$0xff] %v8782_v21 }
 0x5a1   :  { %v1763_v49 = vpop.permute.xlu0 %1762 }
 0x5a2   :  { %v1765_v19 = vmul.f32 %v1763_v49, %v8272_v50  ;;  %v1767_v9 = vmul.f32 %v1763_v49, %v8296_v34  ;;  %v1766_v10 = vmul.f32 %v1763_v49, %v8248_v6  ;;  %v1768_v29 = vmul.f32 %v1763_v49, %v8294_v33  ;;  %v75_v6 = vld [vmem:[%s12511_s7 + $0x8] sm:$0xff]  ;;  %v76_v50 = vld [vmem:[%s12511_s7 + $0x10] sm:$0xff]  ;;  %v77_v33 = vld [vmem:[%s12511_s7 + $0x18] sm:$0xff] }
 0x5a3   :  { %v78_v34 = vld [vmem:[%s12511_s7 + $0x20] sm:$0xff] }
 0x5a5   :  { %v1772_v8 = vpop.permute.xlu1 %1771 }
 0x5a6   :  { %v1775_v62 = vadd.f32 %v1772_v8, %v1766_v10  ;;  %v1777_v47 = vadd.f32 %v1772_v8, %v1768_v29  ;;  %v1774_v40 = vadd.f32 %v1772_v8, %v1765_v19  ;;  %v1776_v55 = vadd.f32 %v1772_v8, %v1767_v9 }
 0x5a8   :  { %1872 = vmatprep.subr.mxu0 %v1775_v62  ;;  %1985 = vmatprep.subr.mxu1 %v1777_v47  ;;  %v79_v47 = vld [vmem:[%s12511_s7 + $0x28] sm:$0xff] }
 0x5a9   :  { %1873 = vmatpush1.msra.mxu0 %v1774_v40  ;;  %1986 = vmatpush1.msra.mxu1 %v1776_v55  ;;  %v80_v40 = vld [vmem:[%s12511_s7 + $0x30] sm:$0xff] }
 0x5aa   :  { %5811 = vmatmul.mubr.msk.f32.vlgmr.msra.gmra.mxu0 %vm1445_vm9, %v74_v32  ;;  %5819 = vmatmul.mubr.msk.f32.vlgmr.msra.gmra.mxu1 %vm1445_vm9, %v74_v32  ;;  %v81_v32 = vld [vmem:[%s12511_s7 + $0x38] sm:$0xff]  ;;  %s13544_s7 = smov 79  }
 0x5ab   :  { %1912 = vmatprep.mubr.f32.mxu0 %v13433_v35  ;;  %2025 = vmatprep.mubr.f32.mxu1 %v13433_v35 }
 0x5ae   :  { %5812 = vmatmul.mubr.msk.f32.gmra.mxu0 %vm1445_vm9, %v75_v6  ;;  %5820 = vmatmul.mubr.msk.f32.gmra.mxu1 %vm1445_vm9, %v75_v6 }
 0x5af   :  { %1918 = vmatprep.mubr.f32.mxu0 %v13433_v35  ;;  %2031 = vmatprep.mubr.f32.mxu1 %v13433_v35 }
 0x5b2   :  { %5813 = vmatmul.mubr.msk.f32.gmra.mxu0 %vm1445_vm9, %v76_v50  ;;  %5821 = vmatmul.mubr.msk.f32.gmra.mxu1 %vm1445_vm9, %v76_v50 }
 0x5b3   :  { %1924 = vmatprep.mubr.f32.mxu0 %v13433_v35  ;;  %2037 = vmatprep.mubr.f32.mxu1 %v13433_v35 }
 0x5b6   :  { %5814 = vmatmul.mubr.msk.f32.gmra.mxu0 %vm1445_vm9, %v77_v33  ;;  %5822 = vmatmul.mubr.msk.f32.gmra.mxu1 %vm1445_vm9, %v77_v33 }
 0x5b7   :  { %1930 = vmatprep.mubr.f32.mxu0 %v13433_v35  ;;  %2043 = vmatprep.mubr.f32.mxu1 %v13433_v35 }
 0x5ba   :  { %5815 = vmatmul.mubr.msk.f32.gmra.mxu0 %vm1445_vm9, %v78_v34  ;;  %5823 = vmatmul.mubr.msk.f32.gmra.mxu1 %vm1445_vm9, %v78_v34 }
 0x5bb   :  { %1936 = vmatprep.mubr.f32.mxu0 %v13433_v35  ;;  %2049 = vmatprep.mubr.f32.mxu1 %v13433_v35 }
 0x5be   :  { %5816 = vmatmul.mubr.msk.f32.gmra.mxu0 %vm1445_vm9, %v79_v47  ;;  %5824 = vmatmul.mubr.msk.f32.gmra.mxu1 %vm1445_vm9, %v79_v47 }
 0x5bf   :  { %1942 = vmatprep.mubr.f32.mxu0 %v13433_v35  ;;  %2055 = vmatprep.mubr.f32.mxu1 %v13433_v35 }
 0x5c2   :  { %5817 = vmatmul.mubr.msk.f32.gmra.mxu0 %vm1445_vm9, %v80_v40  ;;  %5825 = vmatmul.mubr.msk.f32.gmra.mxu1 %vm1445_vm9, %v80_v40 }
 0x5c3   :  { %1948 = vmatprep.mubr.f32.mxu0 %v13433_v35  ;;  %2061 = vmatprep.mubr.f32.mxu1 %v13433_v35 }
 0x5c6   :  { %5818 = vmatmul.mubr.msk.f32.gmra.mxu0 %vm1445_vm9, %v81_v32  ;;  %5826 = vmatmul.mubr.msk.f32.gmra.mxu1 %vm1445_vm9, %v81_v32  ;;  %vm12871_vm9 = vcmask 523264  }
 0x5c7   :  { %2181 = vmatprep.mubr.f32.mxu0 %v13433_v35  ;;  %2258 = vmatprep.mubr.f32.mxu1 %v13433_v35 }
 0x66a   :  { %v8844_v8 = vpop.f32.mrf.mxu0  ;;  %v8846_v62 = vpop.f32.mrf.mxu1 }
 0x66c   :  { %v8848_v55 = vpop.f32.mrf.mxu0  ;;  %v8850_v49 = vpop.f32.mrf.mxu1 }
 0x66e   :  { %v8852_v19 = vpop.f32.mrf.mxu0  ;;  %v8854_v9 = vpop.f32.mrf.mxu1 }
 0x670   :  { %v8856_v10 = vpop.f32.mrf.mxu0  ;;  %v8858_v29 = vpop.f32.mrf.mxu1 }
 0x672   :  { %v8860_v6 = vpop.f32.mrf.mxu0  ;;  %v8862_v50 = vpop.f32.mrf.mxu1 }
 0x674   :  { %v1922_v33 = vpop.f32.mrf.mxu0  ;;  %v2035_v34 = vpop.f32.mrf.mxu1 }
 0x676   :  { %v1926_v47 = vpop.f32.mrf.mxu0  ;;  %v2039_v40 = vpop.f32.mrf.mxu1 }
 0x678   :  { %v1928_v32 = vpop.f32.mrf.mxu0  ;;  %v2041_v21 = vpop.f32.mrf.mxu1 }
 0x67a   :  { %v1932_v52 = vpop.f32.mrf.mxu0  ;;  %v2045_v25 = vpop.f32.mrf.mxu1 }
 0x67c   :  { %v1934_v5 = vpop.f32.mrf.mxu0  ;;  %v2047_v31 = vpop.f32.mrf.mxu1 }
 0x67e   :  { %v1938_v45 = vpop.f32.mrf.mxu0  ;;  %v2051_v17 = vpop.f32.mrf.mxu1 }
 0x67f   :  { %v1939_v60 = vadd.f32 %v1938_v45, %v8561_v15 }
 0x680   :  { %v1940_v59 = vpop.f32.mrf.mxu0  ;;  %v2053_v54 = vpop.f32.mrf.mxu1 }
 0x681   :  { %v1941_v24 = vadd.f32 %v1940_v59, %v8561_v15 }
 0x682   :  { %v1944_v61 = vpop.f32.mrf.mxu0  ;;  %v2057_v30 = vpop.f32.mrf.mxu1 }
 0x683   :  { %v1945_v44 = vadd.f32 %v1944_v61, %v8351_v28  ;;  %v2058_v13 = vadd.f32 %v2057_v30, %v8351_v28  ;;  %v2046_v30 = vadd.f32 %v2045_v25, %v8356_v3 }
 0x684   :  { %v1946_v53 = vpop.f32.mrf.mxu0  ;;  %v2059_v36 = vpop.f32.mrf.mxu1 }
 0x685   :  { %v1947_v27 = vadd.f32 %v1946_v53, %v8351_v28  ;;  %v2060_v58 = vadd.f32 %v2059_v36, %v8351_v28  ;;  %v2052_v53 = vadd.f32 %v2051_v17, %v8561_v15  ;;  %v1933_v28 = vadd.f32 %v1932_v52, %v8356_v3 }
 0x686   :  { %v1950_v46 = vpop.f32.mrf.mxu0  ;;  %v2063_v1 = vpop.f32.mrf.mxu1  ;;  %v2034_v17 = vadd.f32 %v8862_v50, %v8364_v26  ;;  %v1915_v52 = vadd.f32 %v8852_v19, %v8578_v37  ;;  %v1909_v19 = vadd.f32 %v8844_v8, %v8369_v42 }
 0x687   :  { %v1951_v48 = vadd.f32 %v1950_v46, %v8554_v56  ;;  %v2064_v11 = vadd.f32 %v2063_v1, %v8554_v56  ;;  %v2054_v46 = vadd.f32 %v2053_v54, %v8561_v15  ;;  %v2095_v61 = vmax.f32 %v2060_v58, 0.0 }
 0x688   :  { %v1952_v7 = vpop.f32.mrf.mxu0  ;;  %v2065_v43 = vpop.f32.mrf.mxu1  ;;  %v1929_v15 = vadd.f32 %v1928_v32, %v8571_v51  ;;  %v1927_v58 = vadd.f32 %v1926_v47, %v8571_v51  ;;  %v2090_v59 = vmax.f32 %v2052_v53, 0.0  ;;  %v2084_v45 = vmax.f32 %v1933_v28, 0.0 }
 0x689   :  { %v1953_v2 = vadd.f32 %v1952_v7, %v8554_v56  ;;  %v2066_v39 = vadd.f32 %v2065_v43, %v8554_v56  ;;  %v2096_v16 = vmax.f32 %v1951_v48, 0.0  ;;  %v2098_v36 = vmax.f32 %v2064_v11, 0.0 }
 0x68a   :  { %v1935_v7 = vadd.f32 %v1934_v5, %v8356_v3  ;;  %v2048_v56 = vadd.f32 %v2047_v31, %v8356_v3  ;;  %v2093_v43 = vmax.f32 %v1947_v27, 0.0  ;;  %v2042_v11 = vadd.f32 %v2041_v21, %v8571_v51 }
 0x68b   :  { %v2097_v18 = vmax.f32 %v1953_v2, 0.0  ;;  %v2099_v1 = vmax.f32 %v2066_v39, 0.0  ;;  %v2092_v2 = vmax.f32 %v1945_v44, 0.0  ;;  %v2094_v39 = vmax.f32 %v2058_v13, 0.0 }
 0x68c   :  { %v2089_v48 = vmax.f32 %v1941_v24, 0.0  ;;  %v2091_v54 = vmax.f32 %v2054_v46, 0.0  ;;  %v2088_v27 = vmax.f32 %v1939_v60, 0.0  ;;  %v1923_v3 = vadd.f32 %v1922_v33, %v8364_v26 }
 0x68d   :  { %2133 = vmatprep.subr.mxu0 %v2097_v18  ;;  %2210 = vmatprep.subr.mxu1 %v2099_v1  ;;  %v2040_v18 = vadd.f32 %v2039_v40, %v8571_v51  ;;  %v2085_v13 = vmax.f32 %v1935_v7, 0.0  ;;  %v2087_v44 = vmax.f32 %v2048_v56, 0.0  ;;  %v1921_v24 = vadd.f32 %v8860_v6, %v8364_v26 }
 0x68e   :  { %2134 = vmatpush1.msra.mxu0 %v2096_v16  ;;  %2211 = vmatpush1.msra.mxu1 %v2098_v36  ;;  %v2036_v16 = vadd.f32 %v2035_v34, %v8364_v26  ;;  %v2086_v51 = vmax.f32 %v2046_v30, 0.0  ;;  %v1917_v60 = vadd.f32 %v8856_v10, %v8578_v37  ;;  %v2030_v31 = vadd.f32 %v8858_v29, %v8578_v37 }
 0x68f   :  { %2135 = vmatprep.subr.mxu0 %v2093_v43  ;;  %2212 = vmatprep.subr.mxu1 %v2095_v61  ;;  %v2081_v5 = vmax.f32 %v1929_v15, 0.0  ;;  %v2083_v21 = vmax.f32 %v2042_v11, 0.0  ;;  %v2028_v26 = vadd.f32 %v8854_v9, %v8578_v37  ;;  %v2080_v25 = vmax.f32 %v1927_v58, 0.0 }
 0x690   :  { %2136 = vmatpush1.msra.mxu0 %v2092_v2  ;;  %2213 = vmatpush1.msra.mxu1 %v2094_v39  ;;  %v2082_v6 = vmax.f32 %v2040_v18, 0.0  ;;  %v1911_v10 = vadd.f32 %v8848_v55, %v8369_v42  ;;  %v2024_v29 = vadd.f32 %v8850_v49, %v8369_v42  ;;  %v2077_v50 = vmax.f32 %v1923_v3, 0.0 }
 0x691   :  { %2137 = vmatprep.subr.mxu0 %v2089_v48  ;;  %2214 = vmatprep.subr.mxu1 %v2091_v54  ;;  %v2079_v33 = vmax.f32 %v2036_v16, 0.0  ;;  %v2022_v37 = vadd.f32 %v8846_v62, %v8369_v42  ;;  %v2076_v9 = vmax.f32 %v1921_v24, 0.0  ;;  %v2078_v34 = vmax.f32 %v2034_v17, 0.0  ;;  %v90_v42 = vld [vmem:[%s12512_s9] sm:$0xff]  ;;  %v91_v62 = vld [vmem:[%s12512_s9 + $0x8] sm:$0xff]  ;;  %s6062_s9 = smov 69  }
 0x692   :  { %2138 = vmatpush1.msra.mxu0 %v2088_v27  ;;  %2215 = vmatpush1.msra.mxu1 %v2090_v59  ;;  %v2073_v47 = vmax.f32 %v1917_v60, 0.0  ;;  %v2075_v40 = vmax.f32 %v2030_v31, 0.0  ;;  %v2072_v55 = vmax.f32 %v1915_v52, 0.0  ;;  %v2074_v49 = vmax.f32 %v2028_v26, 0.0 }
 0x693   :  { %2139 = vmatprep.subr.mxu0 %v2085_v13  ;;  %2216 = vmatprep.subr.mxu1 %v2087_v44  ;;  %v2069_v32 = vmax.f32 %v1911_v10, 0.0  ;;  %v2071_v46 = vmax.f32 %v2024_v29, 0.0  ;;  %v2068_v8 = vmax.f32 %v1909_v19, 0.0  ;;  %v2070_v1 = vmax.f32 %v2022_v37, 0.0 }
 0x694   :  { %2140 = vmatpush1.msra.mxu0 %v2084_v45  ;;  %2217 = vmatpush1.msra.mxu1 %v2086_v51 }
 0x695   :  { %2141 = vmatprep.subr.mxu0 %v2081_v5  ;;  %2218 = vmatprep.subr.mxu1 %v2083_v21 }
 0x696   :  { %2142 = vmatpush1.msra.mxu0 %v2080_v25  ;;  %2219 = vmatpush1.msra.mxu1 %v2082_v6 }
 0x697   :  { %2143 = vmatprep.subr.mxu0 %v2077_v50  ;;  %2220 = vmatprep.subr.mxu1 %v2079_v33 }
 0x698   :  { %2144 = vmatpush1.msra.mxu0 %v2076_v9  ;;  %2221 = vmatpush1.msra.mxu1 %v2078_v34 }
 0x699   :  { %2145 = vmatprep.subr.mxu0 %v2073_v47  ;;  %2222 = vmatprep.subr.mxu1 %v2075_v40 }
 0x69a   :  { %2146 = vmatpush1.msra.mxu0 %v2072_v55  ;;  %2223 = vmatpush1.msra.mxu1 %v2074_v49 }
 0x69b   :  { %2147 = vmatprep.subr.mxu0 %v2069_v32  ;;  %2224 = vmatprep.subr.mxu1 %v2071_v46 }
 0x69c   :  { %2148 = vmatpush1.msra.mxu0 %v2068_v8  ;;  %2225 = vmatpush1.msra.mxu1 %v2070_v1 }
 0x69d   :  { %5827 = vmatmul.mubr.msk.f32.vlgmr.msra.gmra.mxu0 %vm12871_vm9, %v90_v42  ;;  %5829 = vmatmul.mubr.msk.f32.vlgmr.msra.gmra.mxu1 %vm12871_vm9, %v90_v42 }
 0x69e   :  { %2187 = vmatprep.mubr.f32.mxu0 %v13433_v35  ;;  %2264 = vmatprep.mubr.f32.mxu1 %v13433_v35 }
 0x6a1   :  { %5828 = vmatmul.mubr.msk.f32.gmra.mxu0 %vm12871_vm9, %v91_v62  ;;  %5830 = vmatmul.mubr.msk.f32.gmra.mxu1 %vm12871_vm9, %v91_v62  ;;  %vm2295_vm9 = vcmp.lt.s32.totalorder %v6969_v14, 69 }
 0x6a2   :  { %4921 = vmatprep.mubr.f32.mxu0 %v13433_v35  ;;  %4998 = vmatprep.mubr.f32.mxu1 %v13433_v35 }
 0x75d   :  { %v2183_v53 = vpop.f32.mrf.mxu0  ;;  %v2260_v36 = vpop.f32.mrf.mxu1 }
 0x75e   :  { %v2184_v7 = vadd.f32 %v2183_v53, %v8377_v23  ;;  %v2261_v28 = vadd.f32 %v2260_v36, %v8377_v23 }
 0x75f   :  { %v2185_v56 = vpop.f32.mrf.mxu0  ;;  %v2262_v43 = vpop.f32.mrf.mxu1 }
 0x760   :  { %v2271_v61 = vmul.f32 %v2184_v7, %v8251_v57  ;;  %v2186_v30 = vadd.f32 %v2185_v56, %v8377_v23  ;;  %v2263_v15 = vadd.f32 %v2262_v43, %v8377_v23  ;;  %v2273_v54 = vmul.f32 %v2261_v28, %v8290_v22 }
 0x761   :  { %v2189_v2 = vpop.f32.mrf.mxu0  ;;  %v2266_v11 = vpop.f32.mrf.mxu1 }
 0x762   :  { %v2272_v39 = vmul.f32 %v2186_v30, %v8208_v41  ;;  %2279 = vrot.lane.b32.xlu0 %v2271_v61, %s6062_s9  ;;  %v2190_v58 = vadd.f32 %v2189_v2, %v8588_v12  ;;  %v2274_v18 = vmul.f32 %v2263_v15, %v8287_v4  ;;  %v2267_v16 = vadd.f32 %v2266_v11, %v8588_v12 }
 0x763   :  { %v2191_v48 = vpop.f32.mrf.mxu0  ;;  %v2268_v59 = vpop.f32.mrf.mxu1 }
 0x764   :  { %2283 = vrot.lane.b32.xlu1 %v2272_v39, %s6062_s9  ;;  %v2192_v27 = vadd.f32 %v2191_v48, %v8588_v12  ;;  %v2275_v3 = vmul.f32 %v2190_v58, %v8251_v57  ;;  %v2269_v13 = vadd.f32 %v2268_v59, %v8588_v12  ;;  %v2277_v44 = vmul.f32 %v2267_v16, %v8290_v22 }
 0x766   :  { %2287 = vrot.lane.b32.xlu0 %v2273_v54, %s6062_s9  ;;  %v2276_v23 = vmul.f32 %v2192_v27, %v8208_v41  ;;  %v2278_v24 = vmul.f32 %v2269_v13, %v8287_v4 }
 0x768   :  { %2291 = vrot.lane.b32.xlu1 %v2274_v18, %s6062_s9 }
 0x76a   :  { %2281 = vrot.lane.b32.xlu0 %v2275_v3, %s6062_s9 }
 0x76c   :  { %2285 = vrot.lane.b32.xlu1 %v2276_v23, %s6062_s9 }
 0x76e   :  { %2289 = vrot.lane.b32.xlu0 %v2277_v44, %s6062_s9 }
 0x770   :  { %2293 = vrot.lane.b32.xlu1 %v2278_v24, %s6062_s9  ;;  %s13548_s9 = smov 60  }
 0x7d4   :  { %v2280_v17 = vpop.permute.xlu0 %2279 }
 0x7d6   :  { %v2284_v45 = vpop.permute.xlu1 %2283 }
 0x7d7   :  { %v8939_v51 = vsel %vm2295_vm9, %v2280_v17, %v2284_v45 }
 0x7d8   :  { %2356 = vrot.lane.b32.xlu0 %v8939_v51, %s12880_s10  ;;  %v2288_v12 = vpop.permute.xlu0 %2287 }
 0x7d9   :  { %v8945_v60 = vsel %vm2295_vm9, %v2284_v45, %v2288_v12 }
 0x7da   :  { %v2292_v31 = vpop.permute.xlu1 %2291  ;;  %2360 = vrot.lane.b32.xlu1 %v8945_v60, %s12880_s10 }
 0x7db   :  { %v8951_v5 = vsel %vm2295_vm9, %v2292_v31, %v2280_v17  ;;  %v8965_v21 = vsel %vm2295_vm9, %v2288_v12, %v2292_v31 }
 0x7dc   :  { %13530 = vst [vmem:[#allocation3_spill] sm:$0xff] %v8951_v5  ;;  %2352 = vrot.lane.b32.xlu0 %v8951_v5, %s12880_s10  ;;  %v9057_v52 = vpop.permute.xlu0 %2281 }
 0x7de   :  { %2409 = vrot.lane.b32.xlu1 %v8939_v51, %s12878_s24  ;;  %v9061_v26 = vpop.permute.xlu1 %2285 }
 0x7df   :  { %v9281_v41 = vsel %vm2295_vm9, %v9057_v52, %v9061_v26 }
 0x7e0   :  { %2413 = vrot.lane.b32.xlu0 %v8945_v60, %s12878_s24  ;;  %v9067_v25 = vpop.permute.xlu0 %2289  ;;  %13585 = vst [vmem:[#allocation123_spill] sm:$0xff] %v9281_v41 }
 0x7e1   :  { %v9267_v22 = vsel %vm2295_vm9, %v9061_v26, %v9067_v25 }
 0x7e2   :  { %2405 = vrot.lane.b32.xlu1 %v8951_v5, %s12878_s24  ;;  %v9071_v6 = vpop.permute.xlu1 %2293 }
 0x7e4   :  { %2466 = vrot.lane.b32.xlu0 %v8945_v60, %s12876_s27 }
 0x7e6   :  { %2364 = vrot.lane.b32.xlu1 %v8965_v21, %s12880_s10  ;;  %s13553_s10 = smov 40  }
 0x7e8   :  { %2519 = vrot.lane.b32.xlu0 %v8945_v60, %s12874_s2 }
 0x7ea   :  { %2462 = vrot.lane.b32.xlu1 %v8939_v51, %s12876_s27 }
 0x7ec   :  { %2572 = vrot.lane.b32.xlu0 %v8945_v60, %s12872_s22 }
 0x7ee   :  { %2458 = vrot.lane.b32.xlu1 %v8951_v5, %s12876_s27 }
 0x7f0   :  { %2625 = vrot.lane.b32.xlu0 %v8945_v60, %s13531_s0 }
 0x7f2   :  { %2417 = vrot.lane.b32.xlu1 %v8965_v21, %s12878_s24  ;;  %s13552_s24 = smov 56  }
 0x7f4   :  { %2678 = vrot.lane.b32.xlu0 %v8945_v60, %s13532_s28 }
 0x7f6   :  { %2515 = vrot.lane.b32.xlu1 %v8939_v51, %s12874_s2 }
 0x7f8   :  { %2731 = vrot.lane.b32.xlu0 %v8945_v60, %s13533_s29 }
 0x7fa   :  { %2511 = vrot.lane.b32.xlu1 %v8951_v5, %s12874_s2 }
 0x7fc   :  { %2784 = vrot.lane.b32.xlu0 %v8945_v60, %s13534_s8 }
 0x7fe   :  { %2470 = vrot.lane.b32.xlu1 %v8965_v21, %s12876_s27  ;;  %s13551_s27 = smov 57  }
 0x800   :  { %2837 = vrot.lane.b32.xlu0 %v8945_v60, %s13535_s25 }
 0x802   :  { %2568 = vrot.lane.b32.xlu1 %v8939_v51, %s12872_s22 }
 0x804   :  { %2890 = vrot.lane.b32.xlu0 %v8945_v60, %s13536_s26 }
 0x806   :  { %2564 = vrot.lane.b32.xlu1 %v8951_v5, %s12872_s22 }
 0x808   :  { %2943 = vrot.lane.b32.xlu0 %v8945_v60, %s13537_s30 }
 0x80a   :  { %2523 = vrot.lane.b32.xlu1 %v8965_v21, %s12874_s2  ;;  %s13550_s2 = smov 58  }
 0x80c   :  { %2996 = vrot.lane.b32.xlu0 %v8945_v60, %s13538_s4 }
 0x80e   :  { %2621 = vrot.lane.b32.xlu1 %v8939_v51, %s13531_s0 }
 0x810   :  { %3049 = vrot.lane.b32.xlu0 %v8945_v60, %s13539_s1 }
 0x812   :  { %2617 = vrot.lane.b32.xlu1 %v8951_v5, %s13531_s0 }
 0x814   :  { %3102 = vrot.lane.b32.xlu0 %v8945_v60, %s13540_s11 }
 0x816   :  { %2576 = vrot.lane.b32.xlu1 %v8965_v21, %s12872_s22  ;;  %s13549_s22 = smov 59  }
 0x818   :  { %3155 = vrot.lane.b32.xlu0 %v8945_v60, %s13541_s12 }
 0x81a   :  { %2674 = vrot.lane.b32.xlu1 %v8939_v51, %s13532_s28 }
 0x81c   :  { %3208 = vrot.lane.b32.xlu0 %v8945_v60, %s13542_s23 }
 0x81e   :  { %2670 = vrot.lane.b32.xlu1 %v8951_v5, %s13532_s28 }
 0x820   :  { %3261 = vrot.lane.b32.xlu0 %v8945_v60, %s13543_s3 }
 0x822   :  { %2629 = vrot.lane.b32.xlu1 %v8965_v21, %s13531_s0 }
 0x824   :  { %3314 = vrot.lane.b32.xlu0 %v8945_v60, %s13544_s7 }
 0x826   :  { %2727 = vrot.lane.b32.xlu1 %v8939_v51, %s13533_s29 }
 0x828   :  { %3367 = vrot.lane.b32.xlu0 %v8945_v60, %s13545_s5 }
 0x82a   :  { %2723 = vrot.lane.b32.xlu1 %v8951_v5, %s13533_s29 }
 0x82c   :  { %3420 = vrot.lane.b32.xlu0 %v8945_v60, %s13546_s6 }
 0x82e   :  { %2682 = vrot.lane.b32.xlu1 %v8965_v21, %s13532_s28 }
 0x830   :  { %3473 = vrot.lane.b32.xlu0 %v8945_v60, %s13547_s21 }
 0x832   :  { %2780 = vrot.lane.b32.xlu1 %v8939_v51, %s13534_s8 }
 0x834   :  { %3526 = vrot.lane.b32.xlu0 %v8945_v60, %s13548_s9 }
 0x836   :  { %2776 = vrot.lane.b32.xlu1 %v8951_v5, %s13534_s8 }
 0x838   :  { %3579 = vrot.lane.b32.xlu0 %v8945_v60, %s13549_s22 }
 0x83a   :  { %2735 = vrot.lane.b32.xlu1 %v8965_v21, %s13533_s29 }
 0x83c   :  { %3632 = vrot.lane.b32.xlu0 %v8945_v60, %s13550_s2 }
 0x83e   :  { %2833 = vrot.lane.b32.xlu1 %v8939_v51, %s13535_s25 }
 0x840   :  { %3685 = vrot.lane.b32.xlu0 %v8945_v60, %s13551_s27 }
 0x842   :  { %2829 = vrot.lane.b32.xlu1 %v8951_v5, %s13535_s25 }
 0x844   :  { %3738 = vrot.lane.b32.xlu0 %v8945_v60, %s13552_s24 }
 0x846   :  { %2788 = vrot.lane.b32.xlu1 %v8965_v21, %s13534_s8 }
 0x848   :  { %3791 = vrot.lane.b32.xlu0 %v8945_v60, %s13553_s10 }
 0x84a   :  { %2886 = vrot.lane.b32.xlu1 %v8939_v51, %s13536_s26  ;;  %v9077_v10 = vpop.permute.xlu0 %2356 }
 0x84c   :  { %3844 = vrot.lane.b32.xlu0 %v8945_v60, %s13554_s20  ;;  %v9081_v29 = vpop.permute.xlu1 %2360 }
 0x84e   :  { %2882 = vrot.lane.b32.xlu1 %v8951_v5, %s13536_s26  ;;  %v9085_v50 = vpop.permute.xlu0 %2352 }
 0x850   :  { %3897 = vrot.lane.b32.xlu0 %v8945_v60, %s13555_s18  ;;  %v9089_v33 = vpop.permute.xlu1 %2409 }
 0x852   :  { %2841 = vrot.lane.b32.xlu1 %v8965_v21, %s13535_s25  ;;  %v9093_v19 = vpop.permute.xlu0 %2413 }
 0x854   :  { %3950 = vrot.lane.b32.xlu0 %v8945_v60, %s13556_s16  ;;  %v9097_v37 = vpop.permute.xlu1 %2405 }
 0x856   :  { %2939 = vrot.lane.b32.xlu1 %v8939_v51, %s13537_s30  ;;  %v9101_v9 = vpop.permute.xlu0 %2466 }
 0x858   :  { %4003 = vrot.lane.b32.xlu0 %v8945_v60, %s13557_s19  ;;  %v9105_v34 = vpop.permute.xlu1 %2364 }
 0x85a   :  { %2935 = vrot.lane.b32.xlu1 %v8951_v5, %s13537_s30  ;;  %v9109_v47 = vpop.permute.xlu0 %2519 }
 0x85c   :  { %4056 = vrot.lane.b32.xlu0 %v8945_v60, %s13558_s17  ;;  %v9113_v40 = vpop.permute.xlu1 %2462 }
 0x85e   :  { %2894 = vrot.lane.b32.xlu1 %v8965_v21, %s13536_s26  ;;  %v9117_v55 = vpop.permute.xlu0 %2572 }
 0x860   :  { %4109 = vrot.lane.b32.xlu0 %v8945_v60, %s13559_s15  ;;  %v9121_v49 = vpop.permute.xlu1 %2458  ;;  %s13562_s15 = smov 16  }
 0x862   :  { %2992 = vrot.lane.b32.xlu1 %v8939_v51, %s13538_s4  ;;  %v9125_v32 = vpop.permute.xlu0 %2625 }
 0x864   :  { %4162 = vrot.lane.b32.xlu0 %v8945_v60, %s13560_s14  ;;  %v9129_v46 = vpop.permute.xlu1 %2417  ;;  %s13563_s14 = smov 15  }
 0x866   :  { %2988 = vrot.lane.b32.xlu1 %v8951_v5, %s13538_s4  ;;  %v9133_v8 = vpop.permute.xlu0 %2678 }
 0x868   :  { %4215 = vrot.lane.b32.xlu0 %v8945_v60, %s13561_s13  ;;  %v9137_v1 = vpop.permute.xlu1 %2515  ;;  %s13564_s13 = smov 14  }
 0x86a   :  { %2947 = vrot.lane.b32.xlu1 %v8965_v21, %s13537_s30  ;;  %v9141_v42 = vpop.permute.xlu0 %2731 }
 0x86c   :  { %4268 = vrot.lane.b32.xlu0 %v8945_v60, %s13562_s15  ;;  %v9145_v62 = vpop.permute.xlu1 %2511  ;;  %s13565_s15 = smov 13  }
 0x86e   :  { %3045 = vrot.lane.b32.xlu1 %v8939_v51, %s13539_s1  ;;  %v9149_v53 = vpop.permute.xlu0 %2784 }
 0x870   :  { %4321 = vrot.lane.b32.xlu0 %v8945_v60, %s13563_s14  ;;  %v9153_v36 = vpop.permute.xlu1 %2470  ;;  %s13567_s14 = smov 12  }
 0x872   :  { %3041 = vrot.lane.b32.xlu1 %v8951_v5, %s13539_s1  ;;  %v9157_v7 = vpop.permute.xlu0 %2837 }
 0x874   :  { %4374 = vrot.lane.b32.xlu0 %v8945_v60, %s13564_s13  ;;  %v9161_v56 = vpop.permute.xlu1 %2568  ;;  %s13571_s13 = smov 121  }
 0x876   :  { %3000 = vrot.lane.b32.xlu1 %v8965_v21, %s13538_s4  ;;  %v9165_v43 = vpop.permute.xlu0 %2890 }
 0x878   :  { %4427 = vrot.lane.b32.xlu0 %v8945_v60, %s13565_s15  ;;  %v9169_v61 = vpop.permute.xlu1 %2564 }
 0x87a   :  { %3098 = vrot.lane.b32.xlu1 %v8939_v51, %s13540_s11  ;;  %v9173_v28 = vpop.permute.xlu0 %2943 }
 0x87b   :  { %13566 = vst [vmem:[#allocation12_spill] sm:$0xff] %v9173_v28 }
 0x87c   :  { %4480 = vrot.lane.b32.xlu0 %v8945_v60, %s13567_s14  ;;  %v9177_v30 = vpop.permute.xlu1 %2523 }
 0x87e   :  { %3094 = vrot.lane.b32.xlu1 %v8951_v5, %s13540_s11  ;;  %v9181_v2 = vpop.permute.xlu0 %2996 }
 0x87f   :  { %13568 = vst [vmem:[#allocation8_spill] sm:$0xff] %v9181_v2 }
 0x880   :  { %4431 = vrot.lane.b32.xlu0 %v8965_v21, %s13565_s15  ;;  %v9185_v39 = vpop.permute.xlu1 %2621  ;;  %s13578_s15 = smov 119  }
 0x882   :  { %3053 = vrot.lane.b32.xlu1 %v8965_v21, %s13539_s1  ;;  %v9189_v15 = vpop.permute.xlu0 %3049 }
 0x883   :  { %13569 = vst [vmem:[#allocation14_spill] sm:$0xff] %v9189_v15 }
 0x884   :  { %4484 = vrot.lane.b32.xlu0 %v8965_v21, %s13567_s14  ;;  %v9193_v11 = vpop.permute.xlu1 %2617  ;;  %s13574_s14 = smov 120  }
 0x886   :  { %3151 = vrot.lane.b32.xlu1 %v8939_v51, %s13541_s12  ;;  %v9197_v48 = vpop.permute.xlu0 %3102 }
 0x887   :  { %13570 = vst [vmem:[#allocation17_spill] sm:$0xff] %v9197_v48 }
 0x888   :  { %4620 = vrot.lane.b32.xlu0 %v8945_v60, %s13571_s13  ;;  %v9201_v54 = vpop.permute.xlu1 %2576 }
 0x88a   :  { %3147 = vrot.lane.b32.xlu1 %v8951_v5, %s13541_s12  ;;  %v9205_v58 = vpop.permute.xlu0 %3155 }
 0x88b   :  { %13572 = vst [vmem:[#allocation15_spill] sm:$0xff] %v9205_v58 }
 0x88c   :  { %4616 = vrot.lane.b32.xlu0 %v8939_v51, %s13571_s13  ;;  %v9209_v18 = vpop.permute.xlu1 %2674 }
 0x88e   :  { %3106 = vrot.lane.b32.xlu1 %v8965_v21, %s13540_s11  ;;  %v9213_v27 = vpop.permute.xlu0 %3208 }
 0x88f   :  { %13573 = vst [vmem:[#allocation2_spill] sm:$0xff] %v9213_v27 }
 0x890   :  { %4677 = vrot.lane.b32.xlu0 %v8965_v21, %s13574_s14  ;;  %v9217_v59 = vpop.permute.xlu1 %2670 }
 0x892   :  { %3204 = vrot.lane.b32.xlu1 %v8939_v51, %s13542_s23  ;;  %v9221_v3 = vpop.permute.xlu0 %3261 }
 0x893   :  { %13575 = vst [vmem:[#allocation4_spill] sm:$0xff] %v9221_v3 }
 0x894   :  { %v9223_v16 = vpop.permute.xlu1 %2629  ;;  %4669 = vrot.lane.b32.xlu0 %v8939_v51, %s13574_s14  ;;  %s13580_s14 = smov 118  }
 0x896   :  { %3200 = vrot.lane.b32.xlu1 %v8951_v5, %s13542_s23  ;;  %v9229_v23 = vpop.permute.xlu0 %3314 }
 0x897   :  { %13576 = vst [vmem:[#allocation7_spill] sm:$0xff] %v9229_v23 }
 0x898   :  { %v9231_v13 = vpop.permute.xlu1 %2727  ;;  %4612 = vrot.lane.b32.xlu0 %v8951_v5, %s13571_s13  ;;  %s13589_s13 = smov 125  }
 0x89a   :  { %3159 = vrot.lane.b32.xlu1 %v8965_v21, %s13541_s12  ;;  %v9237_v44 = vpop.permute.xlu0 %3367 }
 0x89b   :  { %13577 = vst [vmem:[#allocation11_spill] sm:$0xff] %v9237_v44 }
 0x89c   :  { %v9239_v24 = vpop.permute.xlu1 %2723  ;;  %4726 = vrot.lane.b32.xlu0 %v8945_v60, %s13578_s15  ;;  %s13583_s15 = smov 127  }
 0x89e   :  { %3257 = vrot.lane.b32.xlu1 %v8939_v51, %s13543_s3  ;;  %v9245_v17 = vpop.permute.xlu0 %3420 }
 0x89f   :  { %13579 = vst [vmem:[#allocation116_spill] sm:$0xff] %v9245_v17 }
 0x8a0   :  { %v9247_v45 = vpop.permute.xlu1 %2682  ;;  %4783 = vrot.lane.b32.xlu0 %v8965_v21, %s13580_s14 }
 0x8a2   :  { %3253 = vrot.lane.b32.xlu1 %v8951_v5, %s13543_s3  ;;  %v9253_v12 = vpop.permute.xlu0 %3473 }
 0x8a3   :  { %13581 = vst [vmem:[#allocation16_spill] sm:$0xff] %v9253_v12 }
 0x8a4   :  { %v9255_v31 = vpop.permute.xlu1 %2780  ;;  %4775 = vrot.lane.b32.xlu0 %v8939_v51, %s13580_s14  ;;  %s13586_s14 = smov 126  }
 0x8a6   :  { %3212 = vrot.lane.b32.xlu1 %v8965_v21, %s13542_s23  ;;  %v9261_v35 = vpop.permute.xlu0 %3526 }
 0x8a7   :  { %13582 = vst [vmem:[#allocation120_spill] sm:$0xff] %v9261_v35 }
 0x8a8   :  { %v9269_v4 = vpop.permute.xlu1 %2776  ;;  %2362 = vrot.lane.b32.xlu0 %v9267_v22, %s13583_s15 }
 0x8aa   :  { %3310 = vrot.lane.b32.xlu1 %v8939_v51, %s13544_s7  ;;  %v9275_v57 = vpop.permute.xlu0 %3579 }
 0x8ab   :  { %13584 = vst [vmem:[#allocation113_spill] sm:$0xff] %v9275_v57  ;;  %v9295_v57 = vsel %vm2295_vm9, %v9067_v25, %v9071_v6 }
 0x8ac   :  { %v9283_v35 = vpop.permute.xlu1 %2735  ;;  %2411 = vrot.lane.b32.xlu0 %v9281_v41, %s13586_s14 }
 0x8ae   :  { %3306 = vrot.lane.b32.xlu1 %v8951_v5, %s13544_s7  ;;  %v9289_v12 = vpop.permute.xlu0 %3632 }
 0x8af   :  { %13587 = vst [vmem:[#allocation115_spill] sm:$0xff] %v9289_v12  ;;  %v9317_v12 = vsel %vm2295_vm9, %v9071_v6, %v9057_v52  ;;  %vm13743_vm9 = vcmp.lt.s32.totalorder %v6969_v14, 103 }
 0x8b0   :  { %v9297_v17 = vpop.permute.xlu1 %2833  ;;  %2366 = vrot.lane.b32.xlu0 %v9295_v57, %s13583_s15  ;;  %s13594_s15 = smov 124   ;;  %vm13748_vm13 = vmmov %vm13743_vm9 }
 0x8b2   :  { %3265 = vrot.lane.b32.xlu1 %v8965_v21, %s13543_s3  ;;  %v9303_v26 = vpop.permute.xlu0 %3685 }
 0x8b3   :  { %13588 = vst [vmem:[#allocation118_spill] sm:$0xff] %v9303_v26 }
 0x8b4   :  { %v9305_v44 = vpop.permute.xlu1 %2829  ;;  %2468 = vrot.lane.b32.xlu0 %v9267_v22, %s13589_s13 }
 0x8b6   :  { %3363 = vrot.lane.b32.xlu1 %v8939_v51, %s13545_s5  ;;  %v9311_v25 = vpop.permute.xlu0 %3738 }
 0x8b7   :  { %13590 = vst [vmem:[#allocation114_spill] sm:$0xff] %v9311_v25 }
 0x8b8   :  { %v9319_v23 = vpop.permute.xlu1 %2788  ;;  %2460 = vrot.lane.b32.xlu0 %v9317_v12, %s13589_s13 }
 0x8ba   :  { %3359 = vrot.lane.b32.xlu1 %v8951_v5, %s13545_s5  ;;  %v9325_v26 = vpop.permute.xlu0 %3791 }
 0x8bb   :  { %13591 = vst [vmem:[#allocation121_spill] sm:$0xff] %v9325_v26 }
 0x8bc   :  { %v9327_v3 = vpop.permute.xlu1 %2886  ;;  %2419 = vrot.lane.b32.xlu0 %v9295_v57, %s13586_s14  ;;  %s13601_s14 = smov 123  }
 0x8be   :  { %3318 = vrot.lane.b32.xlu1 %v8965_v21, %s13544_s7  ;;  %v9333_v52 = vpop.permute.xlu0 %3844 }
 0x8bf   :  { %13592 = vst [vmem:[#allocation119_spill] sm:$0xff] %v9333_v52 }
 0x8c0   :  { %v9335_v6 = vpop.permute.xlu1 %2882  ;;  %2521 = vrot.lane.b32.xlu0 %v9267_v22, %s13594_s15 }
 0x8c1   :  { %13593 = vst [vmem:[#allocation117_spill] sm:$0xff] %v9335_v6 }
 0x8c2   :  { %3416 = vrot.lane.b32.xlu1 %v8939_v51, %s13546_s6  ;;  %v9341_v25 = vpop.permute.xlu0 %3897 }
 0x8c3   :  { %13595 = vst [vmem:[#allocation124_spill] sm:$0xff] %v9341_v25 }
 0x8c4   :  { %v9343_v26 = vpop.permute.xlu1 %2841  ;;  %2513 = vrot.lane.b32.xlu0 %v9317_v12, %s13594_s15 }
 0x8c5   :  { %13596 = vst [vmem:[#allocation122_spill] sm:$0xff] %v9343_v26 }
 0x8c6   :  { %3412 = vrot.lane.b32.xlu1 %v8951_v5, %s13546_s6  ;;  %v9349_v27 = vpop.permute.xlu0 %3950 }
 0x8c7   :  { %13597 = vst [vmem:[#allocation125_spill] sm:$0xff] %v9349_v27 }
 0x8c8   :  { %v9351_v52 = vpop.permute.xlu1 %2939  ;;  %2472 = vrot.lane.b32.xlu0 %v9295_v57, %s13589_s13 }
 0x8c9   :  { %13598 = vst [vmem:[#allocation126_spill] sm:$0xff] %v9351_v52 }
 0x8ca   :  { %3371 = vrot.lane.b32.xlu1 %v8965_v21, %s13545_s5  ;;  %v9357_v58 = vpop.permute.xlu0 %4003 }
 0x8cb   :  { %13599 = vst [vmem:[#allocation127_spill] sm:$0xff] %v9357_v58 }
 0x8cc   :  { %v9359_v25 = vpop.permute.xlu1 %2935  ;;  %2574 = vrot.lane.b32.xlu0 %v9267_v22, %s13601_s14 }
 0x8cd   :  { %13600 = vst [vmem:[#allocation128_spill] sm:$0xff] %v9359_v25  ;;  %v2423_v25 = vsel %vm142_vm1, %v9089_v33, %v9093_v19 }
 0x8ce   :  { %3469 = vrot.lane.b32.xlu1 %v8939_v51, %s13547_s21  ;;  %v9365_v48 = vpop.permute.xlu0 %4056  ;;  %v2443_v52 = vmul.f32 %v8541_v0, %v2423_v25 }
 0x8cf   :  { %13602 = vst [vmem:[#allocation129_spill] sm:$0xff] %v9365_v48 }
 0x8d0   :  { %v9367_v27 = vpop.permute.xlu1 %2894  ;;  %2566 = vrot.lane.b32.xlu0 %v9317_v12, %s13601_s14 }
 0x8d1   :  { %13603 = vst [vmem:[#allocation130_spill] sm:$0xff] %v9367_v27  ;;  %v2425_v27 = vsel %vm142_vm1, %v9097_v37, %v9089_v33 }
 0x8d2   :  { %3465 = vrot.lane.b32.xlu1 %v8951_v5, %s13547_s21  ;;  %v9373_v41 = vpop.permute.xlu0 %4109  ;;  %v2442_v25 = vmul.f32 %v8541_v0, %v2425_v27 }
 0x8d3   :  { %13604 = vst [vmem:[#allocation131_spill] sm:$0xff] %v9373_v41 }
 0x8d4   :  { %v9375_v58 = vpop.permute.xlu1 %2992  ;;  %2525 = vrot.lane.b32.xlu0 %v9295_v57, %s13594_s15 }
 0x8d5   :  { %13605 = vst [vmem:[#allocation132_spill] sm:$0xff] %v9375_v58 }
 0x8d6   :  { %3424 = vrot.lane.b32.xlu1 %v8965_v21, %s13546_s6  ;;  %v9381_v15 = vpop.permute.xlu0 %4162 }
 0x8d7   :  { %13606 = vst [vmem:[#allocation133_spill] sm:$0xff] %v9381_v15 }
 0x8d8   :  { %v9383_v48 = vpop.permute.xlu1 %2988  ;;  %2627 = vrot.lane.b32.xlu0 %v9267_v22, %s13531_s0 }
 0x8d9   :  { %13607 = vst [vmem:[#allocation134_spill] sm:$0xff] %v9383_v48 }
 0x8da   :  { %3522 = vrot.lane.b32.xlu1 %v8939_v51, %s13548_s9  ;;  %v9389_v2 = vpop.permute.xlu0 %4215 }
 0x8db   :  { %13608 = vst [vmem:[#allocation135_spill] sm:$0xff] %v9389_v2 }
 0x8dc   :  { %v9391_v41 = vpop.permute.xlu1 %2947  ;;  %2619 = vrot.lane.b32.xlu0 %v9317_v12, %s13531_s0 }
 0x8dd   :  { %13609 = vst [vmem:[#allocation136_spill] sm:$0xff] %v9391_v41 }
 0x8de   :  { %3518 = vrot.lane.b32.xlu1 %v8951_v5, %s13548_s9  ;;  %v9397_v58 = vpop.permute.xlu0 %4268 }
 0x8df   :  { %13610 = vst [vmem:[#allocation137_spill] sm:$0xff] %v9397_v58 }
 0x8e0   :  { %v9399_v15 = vpop.permute.xlu1 %3045  ;;  %2578 = vrot.lane.b32.xlu0 %v9295_v57, %s13601_s14 }
 0x8e1   :  { %13611 = vst [vmem:[#allocation138_spill] sm:$0xff] %v9399_v15 }
 0x8e2   :  { %3477 = vrot.lane.b32.xlu1 %v8965_v21, %s13547_s21  ;;  %v9405_v48 = vpop.permute.xlu0 %4321 }
 0x8e3   :  { %13612 = vst [vmem:[#allocation139_spill] sm:$0xff] %v9405_v48 }
 0x8e4   :  { %v9407_v2 = vpop.permute.xlu1 %3041  ;;  %2680 = vrot.lane.b32.xlu0 %v9267_v22, %s13532_s28 }
 0x8e5   :  { %13613 = vst [vmem:[#allocation140_spill] sm:$0xff] %v9407_v2 }
 0x8e6   :  { %3575 = vrot.lane.b32.xlu1 %v8939_v51, %s13549_s22  ;;  %v9413_v41 = vpop.permute.xlu0 %4374 }
 0x8e7   :  { %13614 = vst [vmem:[#allocation141_spill] sm:$0xff] %v9413_v41 }
 0x8e8   :  { %v9415_v58 = vpop.permute.xlu1 %3000  ;;  %2672 = vrot.lane.b32.xlu0 %v9317_v12, %s13532_s28 }
 0x8e9   :  { %13615 = vst [vmem:[#allocation142_spill] sm:$0xff] %v9415_v58 }
 0x8ea   :  { %3571 = vrot.lane.b32.xlu1 %v8951_v5, %s13549_s22  ;;  %v9421_v15 = vpop.permute.xlu0 %4427 }
 0x8eb   :  { %13616 = vst [vmem:[#allocation143_spill] sm:$0xff] %v9421_v15 }
 0x8ec   :  { %v9423_v48 = vpop.permute.xlu1 %3098  ;;  %2631 = vrot.lane.b32.xlu0 %v9295_v57, %s13531_s0 }
 0x8ed   :  { %13617 = vst [vmem:[#allocation144_spill] sm:$0xff] %v9423_v48 }
 0x8ee   :  { %3530 = vrot.lane.b32.xlu1 %v8965_v21, %s13548_s9  ;;  %v9429_v2 = vpop.permute.xlu0 %4480 }
 0x8ef   :  { %13618 = vst [vmem:[#allocation145_spill] sm:$0xff] %v9429_v2 }
 0x8f0   :  { %v9431_v41 = vpop.permute.xlu1 %3094  ;;  %2733 = vrot.lane.b32.xlu0 %v9267_v22, %s13533_s29 }
 0x8f1   :  { %13619 = vst [vmem:[#allocation146_spill] sm:$0xff] %v9431_v41 }
 0x8f2   :  { %3628 = vrot.lane.b32.xlu1 %v8939_v51, %s13550_s2  ;;  %v9437_v58 = vpop.permute.xlu0 %4431 }
 0x8f3   :  { %13620 = vst [vmem:[#allocation147_spill] sm:$0xff] %v9437_v58 }
 0x8f4   :  { %v9439_v15 = vpop.permute.xlu1 %3053  ;;  %2725 = vrot.lane.b32.xlu0 %v9317_v12, %s13533_s29 }
 0x8f5   :  { %13621 = vst [vmem:[#allocation148_spill] sm:$0xff] %v9439_v15 }
 0x8f6   :  { %3624 = vrot.lane.b32.xlu1 %v8951_v5, %s13550_s2  ;;  %v9445_v48 = vpop.permute.xlu0 %4484 }
 0x8f7   :  { %13622 = vst [vmem:[#allocation149_spill] sm:$0xff] %v9445_v48 }
 0x8f8   :  { %v9447_v2 = vpop.permute.xlu1 %3151  ;;  %2684 = vrot.lane.b32.xlu0 %v9295_v57, %s13532_s28 }
 0x8f9   :  { %13623 = vst [vmem:[#allocation150_spill] sm:$0xff] %v9447_v2 }
 0x8fa   :  { %3583 = vrot.lane.b32.xlu1 %v8965_v21, %s13549_s22  ;;  %v9453_v41 = vpop.permute.xlu0 %4620 }
 0x8fb   :  { %13624 = vst [vmem:[#allocation151_spill] sm:$0xff] %v9453_v41 }
 0x8fc   :  { %v9455_v58 = vpop.permute.xlu1 %3147  ;;  %2786 = vrot.lane.b32.xlu0 %v9267_v22, %s13534_s8 }
 0x8fd   :  { %13625 = vst [vmem:[#allocation152_spill] sm:$0xff] %v9455_v58 }
 0x8fe   :  { %3681 = vrot.lane.b32.xlu1 %v8939_v51, %s13551_s27  ;;  %v9461_v15 = vpop.permute.xlu0 %4616 }
 0x8ff   :  { %13626 = vst [vmem:[#allocation153_spill] sm:$0xff] %v9461_v15 }
 0x900   :  { %v9463_v48 = vpop.permute.xlu1 %3106  ;;  %2778 = vrot.lane.b32.xlu0 %v9317_v12, %s13534_s8 }
 0x901   :  { %13627 = vst [vmem:[#allocation154_spill] sm:$0xff] %v9463_v48 }
 0x902   :  { %3677 = vrot.lane.b32.xlu1 %v8951_v5, %s13551_s27  ;;  %v9469_v2 = vpop.permute.xlu0 %4677 }
 0x903   :  { %13628 = vst [vmem:[#allocation155_spill] sm:$0xff] %v9469_v2 }
 0x904   :  { %v9471_v41 = vpop.permute.xlu1 %3204  ;;  %2737 = vrot.lane.b32.xlu0 %v9295_v57, %s13533_s29 }
 0x905   :  { %13629 = vst [vmem:[#allocation156_spill] sm:$0xff] %v9471_v41 }
 0x906   :  { %3636 = vrot.lane.b32.xlu1 %v8965_v21, %s13550_s2  ;;  %v9477_v58 = vpop.permute.xlu0 %4669 }
 0x907   :  { %13630 = vst [vmem:[#allocation157_spill] sm:$0xff] %v9477_v58 }
 0x908   :  { %v9479_v15 = vpop.permute.xlu1 %3200  ;;  %2839 = vrot.lane.b32.xlu0 %v9267_v22, %s13535_s25 }
 0x909   :  { %13631 = vst [vmem:[#allocation158_spill] sm:$0xff] %v9479_v15 }
 0x90a   :  { %3734 = vrot.lane.b32.xlu1 %v8939_v51, %s13552_s24  ;;  %v9485_v48 = vpop.permute.xlu0 %4612 }
 0x90b   :  { %13632 = vst [vmem:[#allocation159_spill] sm:$0xff] %v9485_v48 }
 0x90c   :  { %v9487_v2 = vpop.permute.xlu1 %3159  ;;  %2831 = vrot.lane.b32.xlu0 %v9317_v12, %s13535_s25 }
 0x90d   :  { %13633 = vst [vmem:[#allocation160_spill] sm:$0xff] %v9487_v2 }
 0x90e   :  { %3730 = vrot.lane.b32.xlu1 %v8951_v5, %s13552_s24  ;;  %v9493_v41 = vpop.permute.xlu0 %4726 }
 0x90f   :  { %13634 = vst [vmem:[#allocation161_spill] sm:$0xff] %v9493_v41 }
 0x910   :  { %v9495_v58 = vpop.permute.xlu1 %3257  ;;  %2790 = vrot.lane.b32.xlu0 %v9295_v57, %s13534_s8 }
 0x911   :  { %13635 = vst [vmem:[#allocation162_spill] sm:$0xff] %v9495_v58 }
 0x912   :  { %3689 = vrot.lane.b32.xlu1 %v8965_v21, %s13551_s27  ;;  %v9501_v15 = vpop.permute.xlu0 %4783 }
 0x913   :  { %13636 = vst [vmem:[#allocation163_spill] sm:$0xff] %v9501_v15 }
 0x914   :  { %v9503_v48 = vpop.permute.xlu1 %3253  ;;  %2892 = vrot.lane.b32.xlu0 %v9267_v22, %s13536_s26 }
 0x915   :  { %13637 = vst [vmem:[#allocation164_spill] sm:$0xff] %v9503_v48 }
 0x916   :  { %3787 = vrot.lane.b32.xlu1 %v8939_v51, %s13553_s10  ;;  %v9509_v2 = vpop.permute.xlu0 %4775 }
 0x917   :  { %13638 = vst [vmem:[#allocation165_spill] sm:$0xff] %v9509_v2 }
 0x918   :  { %v9511_v41 = vpop.permute.xlu1 %3212  ;;  %2884 = vrot.lane.b32.xlu0 %v9317_v12, %s13536_s26 }
 0x919   :  { %13639 = vst [vmem:[#allocation166_spill] sm:$0xff] %v9511_v41 }
 0x91a   :  { %3783 = vrot.lane.b32.xlu1 %v8951_v5, %s13553_s10  ;;  %v9517_v58 = vpop.permute.xlu0 %2362 }
 0x91b   :  { %13640 = vst [vmem:[#allocation167_spill] sm:$0xff] %v9517_v58 }
 0x91c   :  { %v9519_v15 = vpop.permute.xlu1 %3310  ;;  %2843 = vrot.lane.b32.xlu0 %v9295_v57, %s13535_s25 }
 0x91d   :  { %13641 = vst [vmem:[#allocation168_spill] sm:$0xff] %v9519_v15 }
 0x91e   :  { %3742 = vrot.lane.b32.xlu1 %v8965_v21, %s13552_s24  ;;  %v9525_v48 = vpop.permute.xlu0 %2411 }
 0x91f   :  { %13642 = vst [vmem:[#allocation169_spill] sm:$0xff] %v9525_v48 }
 0x920   :  { %v9527_v2 = vpop.permute.xlu1 %3306  ;;  %2945 = vrot.lane.b32.xlu0 %v9267_v22, %s13537_s30 }
 0x921   :  { %13643 = vst [vmem:[#allocation170_spill] sm:$0xff] %v9527_v2 }
 0x922   :  { %3840 = vrot.lane.b32.xlu1 %v8939_v51, %s13554_s20  ;;  %v9533_v41 = vpop.permute.xlu0 %2366 }
 0x923   :  { %13644 = vst [vmem:[#allocation171_spill] sm:$0xff] %v9533_v41 }
 0x924   :  { %v9535_v58 = vpop.permute.xlu1 %3265  ;;  %2937 = vrot.lane.b32.xlu0 %v9317_v12, %s13537_s30 }
 0x925   :  { %13645 = vst [vmem:[#allocation172_spill] sm:$0xff] %v9535_v58 }
 0x926   :  { %3836 = vrot.lane.b32.xlu1 %v8951_v5, %s13554_s20  ;;  %v9541_v15 = vpop.permute.xlu0 %2468 }
 0x927   :  { %13646 = vst [vmem:[#allocation173_spill] sm:$0xff] %v9541_v15 }
 0x928   :  { %v9543_v48 = vpop.permute.xlu1 %3363  ;;  %2896 = vrot.lane.b32.xlu0 %v9295_v57, %s13536_s26 }
 0x929   :  { %13647 = vst [vmem:[#allocation174_spill] sm:$0xff] %v9543_v48 }
 0x92a   :  { %3795 = vrot.lane.b32.xlu1 %v8965_v21, %s13553_s10  ;;  %v9549_v2 = vpop.permute.xlu0 %2460 }
 0x92b   :  { %13648 = vst [vmem:[#allocation175_spill] sm:$0xff] %v9549_v2 }
 0x92c   :  { %v9551_v41 = vpop.permute.xlu1 %3359  ;;  %2998 = vrot.lane.b32.xlu0 %v9267_v22, %s13538_s4 }
 0x92d   :  { %13649 = vst [vmem:[#allocation176_spill] sm:$0xff] %v9551_v41 }
 0x92e   :  { %3893 = vrot.lane.b32.xlu1 %v8939_v51, %s13555_s18  ;;  %v9557_v58 = vpop.permute.xlu0 %2419 }
 0x92f   :  { %13650 = vst [vmem:[#allocation177_spill] sm:$0xff] %v9557_v58 }
 0x930   :  { %v9559_v15 = vpop.permute.xlu1 %3318  ;;  %2990 = vrot.lane.b32.xlu0 %v9317_v12, %s13538_s4 }
 0x931   :  { %13651 = vst [vmem:[#allocation178_spill] sm:$0xff] %v9559_v15 }
 0x932   :  { %3889 = vrot.lane.b32.xlu1 %v8951_v5, %s13555_s18  ;;  %v9565_v48 = vpop.permute.xlu0 %2521 }
 0x933   :  { %13652 = vst [vmem:[#allocation179_spill] sm:$0xff] %v9565_v48 }
 0x934   :  { %v9567_v2 = vpop.permute.xlu1 %3416  ;;  %2949 = vrot.lane.b32.xlu0 %v9295_v57, %s13537_s30 }
 0x935   :  { %13653 = vst [vmem:[#allocation180_spill] sm:$0xff] %v9567_v2 }
 0x936   :  { %3848 = vrot.lane.b32.xlu1 %v8965_v21, %s13554_s20  ;;  %v9573_v41 = vpop.permute.xlu0 %2513 }
 0x937   :  { %13654 = vst [vmem:[#allocation181_spill] sm:$0xff] %v9573_v41 }
 0x938   :  { %v9575_v58 = vpop.permute.xlu1 %3412  ;;  %3051 = vrot.lane.b32.xlu0 %v9267_v22, %s13539_s1 }
 0x939   :  { %13655 = vst [vmem:[#allocation182_spill] sm:$0xff] %v9575_v58 }
 0x93a   :  { %3946 = vrot.lane.b32.xlu1 %v8939_v51, %s13556_s16  ;;  %v9581_v15 = vpop.permute.xlu0 %2472 }
 0x93b   :  { %13656 = vst [vmem:[#allocation183_spill] sm:$0xff] %v9581_v15 }
 0x93c   :  { %v9583_v48 = vpop.permute.xlu1 %3371  ;;  %3043 = vrot.lane.b32.xlu0 %v9317_v12, %s13539_s1 }
 0x93d   :  { %13657 = vst [vmem:[#allocation184_spill] sm:$0xff] %v9583_v48 }
 0x93e   :  { %3942 = vrot.lane.b32.xlu1 %v8951_v5, %s13556_s16  ;;  %v9589_v2 = vpop.permute.xlu0 %2574 }
 0x93f   :  { %13658 = vst [vmem:[#allocation185_spill] sm:$0xff] %v9589_v2 }
 0x940   :  { %v9591_v41 = vpop.permute.xlu1 %3469  ;;  %3002 = vrot.lane.b32.xlu0 %v9295_v57, %s13538_s4 }
 0x941   :  { %13659 = vst [vmem:[#allocation186_spill] sm:$0xff] %v9591_v41 }
 0x942   :  { %3901 = vrot.lane.b32.xlu1 %v8965_v21, %s13555_s18  ;;  %v9597_v58 = vpop.permute.xlu0 %2566 }
 0x943   :  { %13660 = vst [vmem:[#allocation187_spill] sm:$0xff] %v9597_v58 }
 0x944   :  { %v9599_v15 = vpop.permute.xlu1 %3465  ;;  %3104 = vrot.lane.b32.xlu0 %v9267_v22, %s13540_s11 }
 0x945   :  { %13661 = vst [vmem:[#allocation188_spill] sm:$0xff] %v9599_v15 }
 0x946   :  { %3999 = vrot.lane.b32.xlu1 %v8939_v51, %s13557_s19  ;;  %v9605_v48 = vpop.permute.xlu0 %2525 }
 0x947   :  { %13662 = vst [vmem:[#allocation189_spill] sm:$0xff] %v9605_v48 }
 0x948   :  { %v9607_v2 = vpop.permute.xlu1 %3424  ;;  %3096 = vrot.lane.b32.xlu0 %v9317_v12, %s13540_s11 }
 0x949   :  { %13663 = vst [vmem:[#allocation190_spill] sm:$0xff] %v9607_v2 }
 0x94a   :  { %3995 = vrot.lane.b32.xlu1 %v8951_v5, %s13557_s19  ;;  %v9613_v41 = vpop.permute.xlu0 %2627 }
 0x94b   :  { %13664 = vst [vmem:[#allocation191_spill] sm:$0xff] %v9613_v41 }
 0x94c   :  { %v9615_v58 = vpop.permute.xlu1 %3522  ;;  %3055 = vrot.lane.b32.xlu0 %v9295_v57, %s13539_s1  ;;  %s13674_s1 = smov 34  }
 0x94d   :  { %13665 = vst [vmem:[#allocation192_spill] sm:$0xff] %v9615_v58 }
 0x94e   :  { %3954 = vrot.lane.b32.xlu1 %v8965_v21, %s13556_s16  ;;  %v9621_v15 = vpop.permute.xlu0 %2619 }
 0x94f   :  { %13666 = vst [vmem:[#allocation193_spill] sm:$0xff] %v9621_v15 }
 0x950   :  { %v9623_v48 = vpop.permute.xlu1 %3518  ;;  %3157 = vrot.lane.b32.xlu0 %v9267_v22, %s13541_s12 }
 0x951   :  { %13667 = vst [vmem:[#allocation194_spill] sm:$0xff] %v9623_v48 }
 0x952   :  { %4052 = vrot.lane.b32.xlu1 %v8939_v51, %s13558_s17  ;;  %v9629_v2 = vpop.permute.xlu0 %2578 }
 0x953   :  { %13668 = vst [vmem:[#allocation195_spill] sm:$0xff] %v9629_v2 }
 0x954   :  { %v9631_v41 = vpop.permute.xlu1 %3477  ;;  %3149 = vrot.lane.b32.xlu0 %v9317_v12, %s13541_s12 }
 0x955   :  { %13669 = vst [vmem:[#allocation196_spill] sm:$0xff] %v9631_v41 }
 0x956   :  { %4048 = vrot.lane.b32.xlu1 %v8951_v5, %s13558_s17  ;;  %v9637_v58 = vpop.permute.xlu0 %2680 }
 0x957   :  { %13670 = vst [vmem:[#allocation197_spill] sm:$0xff] %v9637_v58 }
 0x958   :  { %v9639_v15 = vpop.permute.xlu1 %3575  ;;  %3108 = vrot.lane.b32.xlu0 %v9295_v57, %s13540_s11  ;;  %s13681_s11 = smov 18  }
 0x959   :  { %13671 = vst [vmem:[#allocation198_spill] sm:$0xff] %v9639_v15 }
 0x95a   :  { %4007 = vrot.lane.b32.xlu1 %v8965_v21, %s13557_s19  ;;  %v9645_v48 = vpop.permute.xlu0 %2672 }
 0x95b   :  { %13672 = vst [vmem:[#allocation199_spill] sm:$0xff] %v9645_v48 }
 0x95c   :  { %v9647_v2 = vpop.permute.xlu1 %3571  ;;  %3210 = vrot.lane.b32.xlu0 %v9267_v22, %s13542_s23 }
 0x95d   :  { %13673 = vst [vmem:[#allocation200_spill] sm:$0xff] %v9647_v2 }
 0x95e   :  { %4105 = vrot.lane.b32.xlu1 %v8939_v51, %s13674_s1  ;;  %v9653_v41 = vpop.permute.xlu0 %2631 }
 0x95f   :  { %13675 = vst [vmem:[#allocation201_spill] sm:$0xff] %v9653_v41 }
 0x960   :  { %v9655_v58 = vpop.permute.xlu1 %3530  ;;  %3202 = vrot.lane.b32.xlu0 %v9317_v12, %s13542_s23 }
 0x961   :  { %13676 = vst [vmem:[#allocation202_spill] sm:$0xff] %v9655_v58 }
 0x962   :  { %4101 = vrot.lane.b32.xlu1 %v8951_v5, %s13674_s1  ;;  %v9661_v15 = vpop.permute.xlu0 %2733 }
 0x963   :  { %13677 = vst [vmem:[#allocation203_spill] sm:$0xff] %v9661_v15 }
 0x964   :  { %v9663_v48 = vpop.permute.xlu1 %3628  ;;  %3161 = vrot.lane.b32.xlu0 %v9295_v57, %s13541_s12 }
 0x965   :  { %13678 = vst [vmem:[#allocation204_spill] sm:$0xff] %v9663_v48 }
 0x966   :  { %4060 = vrot.lane.b32.xlu1 %v8965_v21, %s13558_s17  ;;  %v9669_v2 = vpop.permute.xlu0 %2725  ;;  %s13688_s17 = smov 17  }
 0x967   :  { %13679 = vst [vmem:[#allocation205_spill] sm:$0xff] %v9669_v2 }
 0x968   :  { %v9671_v41 = vpop.permute.xlu1 %3624  ;;  %3263 = vrot.lane.b32.xlu0 %v9267_v22, %s13543_s3 }
 0x969   :  { %13680 = vst [vmem:[#allocation206_spill] sm:$0xff] %v9671_v41 }
 0x96a   :  { %4158 = vrot.lane.b32.xlu1 %v8939_v51, %s13681_s11  ;;  %v9677_v58 = vpop.permute.xlu0 %2684 }
 0x96b   :  { %13682 = vst [vmem:[#allocation207_spill] sm:$0xff] %v9677_v58 }
 0x96c   :  { %v9679_v15 = vpop.permute.xlu1 %3583  ;;  %3255 = vrot.lane.b32.xlu0 %v9317_v12, %s13543_s3 }
 0x96d   :  { %13683 = vst [vmem:[#allocation208_spill] sm:$0xff] %v9679_v15 }
 0x96e   :  { %4154 = vrot.lane.b32.xlu1 %v8951_v5, %s13681_s11  ;;  %v9685_v48 = vpop.permute.xlu0 %2786 }
 0x96f   :  { %13684 = vst [vmem:[#allocation209_spill] sm:$0xff] %v9685_v48 }
 0x970   :  { %v9687_v2 = vpop.permute.xlu1 %3681  ;;  %3214 = vrot.lane.b32.xlu0 %v9295_v57, %s13542_s23 }
 0x971   :  { %13685 = vst [vmem:[#allocation210_spill] sm:$0xff] %v9687_v2 }
 0x972   :  { %4113 = vrot.lane.b32.xlu1 %v8965_v21, %s13674_s1  ;;  %v9693_v41 = vpop.permute.xlu0 %2778  ;;  %s13695_s1 = smov 16  }
 0x973   :  { %13686 = vst [vmem:[#allocation211_spill] sm:$0xff] %v9693_v41 }
 0x974   :  { %v9695_v58 = vpop.permute.xlu1 %3677  ;;  %3316 = vrot.lane.b32.xlu0 %v9267_v22, %s13544_s7 }
 0x975   :  { %13687 = vst [vmem:[#allocation212_spill] sm:$0xff] %v9695_v58 }
 0x976   :  { %4211 = vrot.lane.b32.xlu1 %v8939_v51, %s13688_s17  ;;  %v9701_v15 = vpop.permute.xlu0 %2737 }
 0x977   :  { %13689 = vst [vmem:[#allocation213_spill] sm:$0xff] %v9701_v15 }
 0x978   :  { %v9703_v48 = vpop.permute.xlu1 %3636  ;;  %3308 = vrot.lane.b32.xlu0 %v9317_v12, %s13544_s7 }
 0x979   :  { %13690 = vst [vmem:[#allocation214_spill] sm:$0xff] %v9703_v48 }
 0x97a   :  { %4207 = vrot.lane.b32.xlu1 %v8951_v5, %s13688_s17  ;;  %v9709_v2 = vpop.permute.xlu0 %2839 }
 0x97b   :  { %13691 = vst [vmem:[#allocation215_spill] sm:$0xff] %v9709_v2 }
 0x97c   :  { %v9711_v41 = vpop.permute.xlu1 %3734  ;;  %3267 = vrot.lane.b32.xlu0 %v9295_v57, %s13543_s3 }
 0x97d   :  { %13692 = vst [vmem:[#allocation216_spill] sm:$0xff] %v9711_v41 }
 0x97e   :  { %4166 = vrot.lane.b32.xlu1 %v8965_v21, %s13681_s11  ;;  %v9717_v58 = vpop.permute.xlu0 %2831  ;;  %s13702_s11 = smov 15  }
 0x97f   :  { %13693 = vst [vmem:[#allocation217_spill] sm:$0xff] %v9717_v58 }
 0x980   :  { %v9719_v15 = vpop.permute.xlu1 %3730  ;;  %3369 = vrot.lane.b32.xlu0 %v9267_v22, %s13545_s5 }
 0x981   :  { %13694 = vst [vmem:[#allocation218_spill] sm:$0xff] %v9719_v15 }
 0x982   :  { %4264 = vrot.lane.b32.xlu1 %v8939_v51, %s13695_s1  ;;  %v9725_v48 = vpop.permute.xlu0 %2790 }
 0x983   :  { %13696 = vst [vmem:[#allocation219_spill] sm:$0xff] %v9725_v48 }
 0x984   :  { %v9727_v2 = vpop.permute.xlu1 %3689  ;;  %3361 = vrot.lane.b32.xlu0 %v9317_v12, %s13545_s5 }
 0x985   :  { %13697 = vst [vmem:[#allocation220_spill] sm:$0xff] %v9727_v2 }
 0x986   :  { %4260 = vrot.lane.b32.xlu1 %v8951_v5, %s13695_s1  ;;  %v9733_v41 = vpop.permute.xlu0 %2892 }
 0x987   :  { %13698 = vst [vmem:[#allocation221_spill] sm:$0xff] %v9733_v41 }
 0x988   :  { %v9735_v58 = vpop.permute.xlu1 %3787  ;;  %3320 = vrot.lane.b32.xlu0 %v9295_v57, %s13544_s7 }
 0x989   :  { %13699 = vst [vmem:[#allocation222_spill] sm:$0xff] %v9735_v58 }
 0x98a   :  { %4219 = vrot.lane.b32.xlu1 %v8965_v21, %s13688_s17  ;;  %v9741_v15 = vpop.permute.xlu0 %2884  ;;  %s13709_s17 = smov 14  }
 0x98b   :  { %13700 = vst [vmem:[#allocation223_spill] sm:$0xff] %v9741_v15 }
 0x98c   :  { %v9743_v48 = vpop.permute.xlu1 %3783  ;;  %3422 = vrot.lane.b32.xlu0 %v9267_v22, %s13546_s6 }
 0x98d   :  { %13701 = vst [vmem:[#allocation224_spill] sm:$0xff] %v9743_v48 }
 0x98e   :  { %4317 = vrot.lane.b32.xlu1 %v8939_v51, %s13702_s11  ;;  %v9749_v2 = vpop.permute.xlu0 %2843 }
 0x98f   :  { %13703 = vst [vmem:[#allocation225_spill] sm:$0xff] %v9749_v2 }
 0x990   :  { %v9751_v41 = vpop.permute.xlu1 %3742  ;;  %3414 = vrot.lane.b32.xlu0 %v9317_v12, %s13546_s6 }
 0x991   :  { %13704 = vst [vmem:[#allocation226_spill] sm:$0xff] %v9751_v41 }
 0x992   :  { %4313 = vrot.lane.b32.xlu1 %v8951_v5, %s13702_s11  ;;  %v9757_v58 = vpop.permute.xlu0 %2945 }
 0x993   :  { %13705 = vst [vmem:[#allocation227_spill] sm:$0xff] %v9757_v58 }
 0x994   :  { %v9759_v15 = vpop.permute.xlu1 %3840  ;;  %3373 = vrot.lane.b32.xlu0 %v9295_v57, %s13545_s5 }
 0x995   :  { %13706 = vst [vmem:[#allocation228_spill] sm:$0xff] %v9759_v15 }
 0x996   :  { %4272 = vrot.lane.b32.xlu1 %v8965_v21, %s13695_s1  ;;  %v9765_v48 = vpop.permute.xlu0 %2937  ;;  %s13716_s1 = smov 13  }
 0x997   :  { %13707 = vst [vmem:[#allocation229_spill] sm:$0xff] %v9765_v48 }
 0x998   :  { %v9767_v2 = vpop.permute.xlu1 %3836  ;;  %3475 = vrot.lane.b32.xlu0 %v9267_v22, %s13547_s21 }
 0x999   :  { %13708 = vst [vmem:[#allocation230_spill] sm:$0xff] %v9767_v2 }
 0x99a   :  { %4370 = vrot.lane.b32.xlu1 %v8939_v51, %s13709_s17  ;;  %v9773_v41 = vpop.permute.xlu0 %2896 }
 0x99b   :  { %13710 = vst [vmem:[#allocation231_spill] sm:$0xff] %v9773_v41 }
 0x99c   :  { %v9775_v58 = vpop.permute.xlu1 %3795  ;;  %3467 = vrot.lane.b32.xlu0 %v9317_v12, %s13547_s21 }
 0x99d   :  { %13711 = vst [vmem:[#allocation232_spill] sm:$0xff] %v9775_v58 }
 0x99e   :  { %4366 = vrot.lane.b32.xlu1 %v8951_v5, %s13709_s17  ;;  %v9781_v15 = vpop.permute.xlu0 %2998 }
 0x99f   :  { %13712 = vst [vmem:[#allocation233_spill] sm:$0xff] %v9781_v15 }
 0x9a0   :  { %v9783_v48 = vpop.permute.xlu1 %3893  ;;  %3426 = vrot.lane.b32.xlu0 %v9295_v57, %s13546_s6 }
 0x9a1   :  { %13713 = vst [vmem:[#allocation234_spill] sm:$0xff] %v9783_v48 }
 0x9a2   :  { %4325 = vrot.lane.b32.xlu1 %v8965_v21, %s13702_s11  ;;  %v9789_v2 = vpop.permute.xlu0 %2990 }
 0x9a3   :  { %13714 = vst [vmem:[#allocation235_spill] sm:$0xff] %v9789_v2  ;;  %v2370_v2 = vsel %vm114_vm0, %v9077_v10, %v9081_v29 }
 0x9a4   :  { %v9791_v41 = vpop.permute.xlu1 %3889  ;;  %3528 = vrot.lane.b32.xlu0 %v9267_v22, %s13548_s9 }
 0x9a5   :  { %13715 = vst [vmem:[#allocation236_spill] sm:$0xff] %v9791_v41 }
 0x9a6   :  { %4423 = vrot.lane.b32.xlu1 %v8939_v51, %s13716_s1  ;;  %v9797_v58 = vpop.permute.xlu0 %2949 }
 0x9a7   :  { %13717 = vst [vmem:[#allocation237_spill] sm:$0xff] %v9797_v58  ;;  %v2372_v58 = vsel %vm114_vm0, %v9085_v50, %v9077_v10 }
 0x9a8   :  { %v9799_v15 = vpop.permute.xlu1 %3848  ;;  %3520 = vrot.lane.b32.xlu0 %v9317_v12, %s13548_s9 }
 0x9a9   :  { %13718 = vst [vmem:[#allocation238_spill] sm:$0xff] %v9799_v15  ;;  %v2390_v15 = vmul.f32 %v8536_v20, %v2370_v2  ;;  %v2389_v2 = vmul.f32 %v8536_v20, %v2372_v58  ;;  %v2421_v58 = vsel %vm142_vm1, %v9093_v19, %v9129_v46  ;;  %v2478_v19 = vsel %vm170_vm2, %v9121_v49, %v9113_v40 }
 0x9aa   :  { %4419 = vrot.lane.b32.xlu1 %v8951_v5, %s13716_s1  ;;  %v9809_v41 = vpop.permute.xlu0 %3051  ;;  %s13723_s1 = smov 12  }
 0x9ab   :  { %13719 = vst [vmem:[#allocation239_spill] sm:$0xff] %v9809_v41  ;;  %v2368_v41 = vsel %vm114_vm0, %v9081_v29, %v9105_v34  ;;  %v2374_v29 = vsel %vm114_vm0, %v9105_v34, %v9085_v50  ;;  %v2346_v50 = vmul.f32 %v8629_v63, %v8945_v60 }
 0x9ac   :  { %v9815_v48 = vpop.permute.xlu1 %3946  ;;  %3479 = vrot.lane.b32.xlu0 %v9295_v57, %s13547_s21  ;;  %v2391_v28 = vmul.f32 %v8536_v20, %v2368_v41  ;;  %v2344_v41 = vmul.f32 %v8629_v63, %v8951_v5  ;;  %v2392_v6 = vmul.f32 %v8536_v20, %v2374_v29  ;;  %v9881_v20 = vsel %vm198_vm3, %v9137_v1, %v9109_v47 }
 0x9ad   :  { %13720 = vst [vmem:[#allocation240_spill] sm:$0xff] %v9815_v48  ;;  %v2345_v48 = vmul.f32 %v8629_v63, %v8939_v51 }
 0x9ae   :  { %4378 = vrot.lane.b32.xlu1 %v8965_v21, %s13709_s17  ;;  %v9830_v10 = vpop.permute.xlu0 %3043  ;;  %v2399_v29 = vadd.f32 %v2391_v28, %v2346_v50  ;;  %v13725_v28 = vld [vmem:[#allocation25_spill] sm:$0xff]  ;;  %s13740_s17 = smov 119  }
 0x9af   :  { %13721 = vst [vmem:[#allocation241_spill] sm:$0xff] %v9830_v10  ;;  %v2476_v10 = vsel %vm170_vm2, %v9113_v40, %v9101_v9  ;;  %v2398_v34 = vadd.f32 %v2390_v15, %v2345_v48  ;;  %v2444_v48 = vmul.f32 %v8541_v0, %v2421_v58  ;;  %v2347_v40 = vmul.f32 %v8629_v63, %v8965_v21 }
 0x9b0   :  { %v9853_v33 = vpop.permute.xlu1 %3942  ;;  %3581 = vrot.lane.b32.xlu0 %v9267_v22, %s13549_s22  ;;  %v2496_v15 = vmul.f32 %v8641_v38, %v2476_v10  ;;  %v2495_v58 = vmul.f32 %v8641_v38, %v2478_v19  ;;  %v2480_v63 = vsel %vm170_vm2, %v9153_v36, %v9121_v49 }
 0x9b1   :  { %13722 = vst [vmem:[#allocation242_spill] sm:$0xff] %v9853_v33  ;;  %v2427_v33 = vsel %vm142_vm1, %v9129_v46, %v9097_v37  ;;  %v2474_v37 = vsel %vm170_vm2, %v9101_v9, %v9153_v36  ;;  %v2397_v46 = vadd.f32 %v2389_v2, %v2344_v41  ;;  %v2451_v27 = vadd.f32 %v2443_v52, %v2398_v34 }
 0x9b2   :  { %4476 = vrot.lane.b32.xlu1 %v8939_v51, %s13723_s1  ;;  %v9873_v26 = vpop.permute.xlu0 %3002  ;;  %v9899_v9 = vsel %vm198_vm3, %v9145_v62, %v9137_v1  ;;  %v2549_v52 = vmul.f32 %v13725_v28, %v9881_v20  ;;  %v2497_v2 = vmul.f32 %v8641_v38, %v2474_v37  ;;  %v9918_v1 = vsel %vm198_vm3, %v9109_v47, %v9177_v30 }
 0x9b3   :  { %13724 = vst [vmem:[#allocation243_spill] sm:$0xff] %v9873_v26  ;;  %v2445_v26 = vmul.f32 %v8541_v0, %v2427_v33  ;;  %v9912_v0 = vsel %vm226_vm4, %v9161_v56, %v9117_v55  ;;  %v2450_v36 = vadd.f32 %v2442_v25, %v2397_v46  ;;  %v2400_v33 = vadd.f32 %v2392_v6, %v2347_v40  ;;  %v13729_v25 = vld [vmem:[#allocation13_spill] sm:$0xff] }
 0x9b4   :  { %v9889_v10 = vpop.permute.xlu1 %3901  ;;  %3573 = vrot.lane.b32.xlu0 %v9317_v12, %s13549_s22  ;;  %13726 = vst [vmem:[#allocation25_spill] sm:$0xff] %v9912_v0  ;;  %v2504_v50 = vadd.f32 %v2496_v15, %v2451_v27  ;;  %v2452_v41 = vadd.f32 %v2444_v48, %v2399_v29  ;;  %v2548_v34 = vmul.f32 %v13725_v28, %v9899_v9 }
 0x9b5   :  { %v2498_v19 = vmul.f32 %v8641_v38, %v2480_v63  ;;  %v9931_v47 = vsel %vm226_vm4, %v9169_v61, %v9161_v56  ;;  %v9937_v37 = vsel %vm198_vm3, %v9177_v30, %v9145_v62  ;;  %v2602_v38 = vmul.f32 %v13729_v25, %v9912_v0 }
 0x9b6   :  { %4472 = vrot.lane.b32.xlu1 %v8951_v5, %s13723_s1  ;;  %v9922_v49 = vpop.permute.xlu0 %3104  ;;  %13728 = vst [vmem:[#allocation245_spill] sm:$0xff] %v9931_v47  ;;  %v2550_v15 = vmul.f32 %v13725_v28, %v9918_v1  ;;  %v9951_v56 = vsel %vm254_vm5, %v9185_v39, %v9125_v32  ;;  %v9957_v62 = vsel %vm226_vm4, %v9117_v55, %v9201_v54  ;;  %s13731_s1 = smov 121  }
 0x9b7   :  { %13727 = vst [vmem:[#allocation244_spill] sm:$0xff] %v9922_v49  ;;  %13730 = vst [vmem:[#allocation13_spill] sm:$0xff] %v9951_v56  ;;  %v2503_v30 = vadd.f32 %v2495_v58, %v2450_v36  ;;  %v2453_v48 = vadd.f32 %v2445_v26, %v2400_v33  ;;  %v2557_v40 = vadd.f32 %v2549_v52, %v2504_v50  ;;  %v13734_v58 = vld [vmem:[#allocation26_spill] sm:$0xff] }
 0x9b8   :  { %v9939_v6 = vpop.permute.xlu1 %3999  ;;  %3532 = vrot.lane.b32.xlu0 %v9295_v57, %s13548_s9  ;;  %v2505_v46 = vadd.f32 %v2497_v2, %v2452_v41  ;;  %v2601_v29 = vmul.f32 %v13729_v25, %v9931_v47  ;;  %v2551_v63 = vmul.f32 %v13725_v28, %v9937_v37  ;;  %v9971_v55 = vsel %vm254_vm5, %v9193_v11, %v9185_v39 }
 0x9b9   :  { %13733 = vst [vmem:[#allocation247_spill] sm:$0xff] %v9971_v55  ;;  %v9977_v26 = vsel %vm226_vm4, %v9201_v54, %v9169_v61  ;;  %v2655_v52 = vmul.f32 %v13734_v58, %v9951_v56  ;;  %v2603_v2 = vmul.f32 %v13729_v25, %v9957_v62  ;;  %v2688_v28 = vsel %vm282_vm6, %v9209_v18, %v9133_v8 }
 0x9ba   :  { %4624 = vrot.lane.b32.xlu1 %v8965_v21, %s13731_s1  ;;  %v9961_v27 = vpop.permute.xlu0 %3096  ;;  %v9991_v39 = vsel %vm254_vm5, %v9125_v32, %v9223_v16  ;;  %v2556_v61 = vadd.f32 %v2548_v34, %v2503_v30  ;;  %v2506_v54 = vadd.f32 %v2498_v19, %v2453_v48  ;;  %v2610_v33 = vadd.f32 %v2602_v38, %v2557_v40  ;;  %s13736_s1 = smov 120   ;;  %v13738_v19 = vld [vmem:[#allocation27_spill] sm:$0xff] }
 0x9bb   :  { %13732 = vst [vmem:[#allocation246_spill] sm:$0xff] %v9961_v27  ;;  %v2558_v50 = vadd.f32 %v2550_v15, %v2505_v46  ;;  %v2654_v41 = vmul.f32 %v13734_v58, %v9971_v55  ;;  %v2604_v27 = vmul.f32 %v13729_v25, %v9977_v26  ;;  %v2690_v32 = vsel %vm282_vm6, %v9217_v59, %v9209_v18 }
 0x9bc   :  { %v9993_v36 = vpop.permute.xlu1 %3995  ;;  %3634 = vrot.lane.b32.xlu0 %v9267_v22, %s13550_s2  ;;  %v10009_v49 = vsel %vm254_vm5, %v9223_v16, %v9193_v11  ;;  %v2708_v38 = vmul.f32 %v13738_v19, %v2688_v28  ;;  %v2656_v25 = vmul.f32 %v13734_v58, %v9991_v39  ;;  %v2741_v18 = vsel %vm310_vm7, %v9231_v13, %v9141_v42 }
 0x9bd   :  { %13735 = vst [vmem:[#allocation26_spill] sm:$0xff] %v10009_v49  ;;  %v2686_v11 = vsel %vm282_vm6, %v9133_v8, %v9247_v45  ;;  %v2609_v16 = vadd.f32 %v2601_v29, %v2556_v61  ;;  %v2559_v15 = vadd.f32 %v2551_v63, %v2506_v54  ;;  %v2663_v30 = vadd.f32 %v2655_v52, %v2610_v33  ;;  %v13739_v29 = vld [vmem:[#allocation28_spill] sm:$0xff] }
 0x9be   :  { %4673 = vrot.lane.b32.xlu1 %v8945_v60, %s13736_s1  ;;  %v10013_v34 = vpop.permute.xlu0 %3055  ;;  %v2611_v48 = vadd.f32 %v2603_v2, %v2558_v50  ;;  %v2707_v46 = vmul.f32 %v13738_v19, %v2690_v32  ;;  %v2657_v28 = vmul.f32 %v13734_v58, %v10009_v49  ;;  %v2692_v8 = vsel %vm282_vm6, %v9247_v45, %v9217_v59 }
 0x9bf   :  { %13737 = vst [vmem:[#allocation248_spill] sm:$0xff] %v10013_v34  ;;  %v2743_v34 = vsel %vm310_vm7, %v9239_v24, %v9231_v13  ;;  %v2761_v63 = vmul.f32 %v13739_v29, %v2741_v18  ;;  %v2709_v52 = vmul.f32 %v13738_v19, %v2686_v11  ;;  %v2794_v2 = vsel %vm338_vm8, %v9255_v31, %v9149_v53 }
 0x9c0   :  { %v10026_v40 = vpop.permute.xlu1 %3954  ;;  %3626 = vrot.lane.b32.xlu0 %v9317_v12, %s13550_s2  ;;  %v2739_v58 = vsel %vm310_vm7, %v9141_v42, %v9283_v35  ;;  %v2662_v59 = vadd.f32 %v2654_v41, %v2609_v16  ;;  %v2612_v45 = vadd.f32 %v2604_v27, %v2559_v15  ;;  %v2716_v61 = vadd.f32 %v2708_v38, %v2663_v30  ;;  %v13742_v27 = vld [vmem:[#allocation20_spill] sm:$0xff] }
 0x9c1   :  { %v2664_v54 = vadd.f32 %v2656_v25, %v2611_v48  ;;  %v2760_v33 = vmul.f32 %v13739_v29, %v2743_v34  ;;  %v2710_v50 = vmul.f32 %v13738_v19, %v2692_v8  ;;  %v2796_v32 = vsel %vm338_vm8, %v9269_v4, %v9255_v31  ;;  %v13745_v30 = vld [vmem:[#allocation32_spill] sm:$0xff] }
 0x9c2   :  { %4730 = vrot.lane.b32.xlu1 %v8965_v21, %s13740_s17  ;;  %v10053_v13 = vpop.permute.xlu0 %3157  ;;  %v2745_v21 = vsel %vm310_vm7, %v9283_v35, %v9239_v24  ;;  %v2814_v41 = vmul.f32 %v13742_v27, %v2794_v2  ;;  %v2762_v34 = vmul.f32 %v13739_v29, %v2739_v58  ;;  %v2847_v19 = vsel %vm13743_vm9, %v9297_v17, %v9157_v7  ;;  %v13749_v58 = vld [vmem:[#allocation117_spill] sm:$0xff] }
 0x9c3   :  { %13741 = vst [vmem:[#allocation27_spill] sm:$0xff] %v10053_v13  ;;  %v2792_v31 = vsel %vm338_vm8, %v9149_v53, %v9319_v23  ;;  %v2715_v35 = vadd.f32 %v2707_v46, %v2662_v59  ;;  %v2665_v24 = vadd.f32 %v2657_v28, %v2612_v45  ;;  %v2769_v38 = vadd.f32 %v2761_v63, %v2716_v61  ;;  %v13747_v28 = vld [vmem:[#allocation122_spill] sm:$0xff] }
 0x9c4   :  { %v10065_v42 = vpop.permute.xlu1 %4052  ;;  %3585 = vrot.lane.b32.xlu0 %v9295_v57, %s13549_s22  ;;  %v2717_v25 = vadd.f32 %v2709_v52, %v2664_v54  ;;  %v2813_v11 = vmul.f32 %v13742_v27, %v2796_v32  ;;  %v2763_v16 = vmul.f32 %v13739_v29, %v2745_v21  ;;  %v2849_v15 = vsel %vm13743_vm9, %v9305_v44, %v9297_v17  ;;  %v13752_v61 = vld [vmem:[#allocation34_spill] sm:$0xff] }
 0x9c5   :  { %v2798_v53 = vsel %vm338_vm8, %v9319_v23, %v9269_v4  ;;  %v2867_v48 = vmul.f32 %v13745_v30, %v2847_v19  ;;  %v2900_v46 = vsel %vm13746_vm11, %v9327_v3, %v9165_v43  ;;  %v2845_v8 = vsel %vm13748_vm13, %v9157_v7, %v13747_v28  ;;  %vm13750_vm13 = vmmov %vm13743_vm9  ;;  %v13754_v32 = vld [vmem:[#allocation126_spill] sm:$0xff] }
 0x9c6   :  { %4722 = vrot.lane.b32.xlu1 %v8939_v51, %s13740_s17  ;;  %v10081_v18 = vpop.permute.xlu0 %3149  ;;  %v2815_v51 = vmul.f32 %v13742_v27, %v2792_v31  ;;  %v2768_v4 = vadd.f32 %v2760_v33, %v2715_v35  ;;  %v2718_v23 = vadd.f32 %v2710_v50, %v2665_v24  ;;  %v2822_v29 = vadd.f32 %v2814_v41, %v2769_v38  ;;  %v13753_v50 = vld [vmem:[#allocation12_spill] sm:$0xff]  ;;  %s13766_s17 = smov 118  }
 0x9c7   :  { %13744 = vst [vmem:[#allocation28_spill] sm:$0xff] %v10081_v18  ;;  %v2770_v63 = vadd.f32 %v2762_v34, %v2717_v25  ;;  %v2866_v52 = vmul.f32 %v13745_v30, %v2849_v15  ;;  %v2816_v2 = vmul.f32 %v13742_v27, %v2798_v53  ;;  %v2902_v59 = vsel %vm13746_vm11, %v13749_v58, %v9327_v3  ;;  %v13756_v3 = vld [vmem:[#allocation130_spill] sm:$0xff]  ;;  %v13757_v38 = vld [vmem:[#allocation128_spill] sm:$0xff] }
 0x9c8   :  { %v10103_v17 = vpop.permute.xlu1 %4048  ;;  %3687 = vrot.lane.b32.xlu0 %v9267_v22, %s13551_s27  ;;  %v2851_v7 = vsel %vm13750_vm13, %v13747_v28, %v9305_v44  ;;  %v2920_v54 = vmul.f32 %v13752_v61, %v2900_v46  ;;  %v2868_v33 = vmul.f32 %v13745_v30, %v2845_v8  ;;  %vm13755_vm9 = vcmp.lt.s32.totalorder %v6969_v14, 101  ;;  %v13761_v53 = vld [vmem:[#allocation8_spill] sm:$0xff] }
 0x9c9   :  { %v2953_v21 = vsel %vm13755_vm9, %v13754_v32, %v13753_v50  ;;  %v2898_v27 = vsel %vm13746_vm11, %v9165_v43, %v13756_v3  ;;  %v2821_v44 = vadd.f32 %v2813_v11, %v2768_v4  ;;  %v2771_v41 = vadd.f32 %v2763_v16, %v2718_v23  ;;  %vm13758_vm13 = vmmov %vm13755_vm9  ;;  %v13760_v11 = vld [vmem:[#allocation31_spill] sm:$0xff] }
 0x9ca   :  { %4665 = vrot.lane.b32.xlu1 %v8951_v5, %s13736_s1  ;;  %v10119_v45 = vpop.permute.xlu0 %3108  ;;  %v2875_v34 = vadd.f32 %v2867_v48, %v2822_v29  ;;  %v2823_v19 = vadd.f32 %v2815_v51, %v2770_v63  ;;  %v2919_v35 = vmul.f32 %v13752_v61, %v2902_v59  ;;  %v2869_v24 = vmul.f32 %v13745_v30, %v2851_v7  ;;  %vm13759_vm9 = vmmov %vm13746_vm11  ;;  %v13762_v48 = vld [vmem:[#allocation132_spill] sm:$0xff]  ;;  %v13768_v59 = vld [vmem:[#allocation134_spill] sm:$0xff] }
 0x9cb   :  { %13751 = vst [vmem:[#allocation20_spill] sm:$0xff] %v10119_v45  ;;  %v2955_v25 = vsel %vm13758_vm13, %v13757_v38, %v13754_v32  ;;  %v2904_v43 = vsel %vm13759_vm9, %v13756_v3, %v13749_v58  ;;  %v2973_v16 = vmul.f32 %v13760_v11, %v2953_v21  ;;  %v2921_v15 = vmul.f32 %v13752_v61, %v2898_v27  ;;  %v13764_v30 = vld [vmem:[#allocation136_spill] sm:$0xff]  ;;  %vm13765_vm10 = vmmov %vm13758_vm13  ;;  %v13774_v21 = vld [vmem:[#allocation142_spill] sm:$0xff] }
 0x9cc   :  { %v10131_v31 = vpop.permute.xlu1 %4007  ;;  %3679 = vrot.lane.b32.xlu0 %v9317_v12, %s13551_s27  ;;  %vm13763_vm11 = vcmp.lt.s32.totalorder %v6969_v14, 100  ;;  %v2951_v46 = vsel %vm13765_vm10, %v13753_v50, %v13764_v30  ;;  %v2874_v8 = vadd.f32 %v2866_v52, %v2821_v44  ;;  %v2824_v4 = vadd.f32 %v2816_v2, %v2771_v41  ;;  %v13770_v52 = vld [vmem:[#allocation35_spill] sm:$0xff] }
 0x9cd   :  { %v3006_v51 = vsel %vm13763_vm11, %v13762_v48, %v13761_v53  ;;  %v2928_v23 = vadd.f32 %v2920_v54, %v2875_v34  ;;  %v2876_v29 = vadd.f32 %v2868_v33, %v2823_v19  ;;  %v2972_v63 = vmul.f32 %v13760_v11, %v2955_v25  ;;  %vm13769_vm13 = vmmov %vm13763_vm11  ;;  %v13772_v33 = vld [vmem:[#allocation138_spill] sm:$0xff]  ;;  %v13776_v19 = vld [vmem:[#allocation123_spill] sm:$0xff] }
 0x9ce   :  { %4779 = vrot.lane.b32.xlu1 %v8945_v60, %s13766_s17  ;;  %v10157_v28 = vpop.permute.xlu0 %3210  ;;  %v2922_v58 = vmul.f32 %v13752_v61, %v2904_v43  ;;  %v3008_v7 = vsel %vm13769_vm13, %v13768_v59, %v13762_v48  ;;  %v2957_v60 = vsel %vm13765_vm10, %v13764_v30, %v13757_v38  ;;  %v3026_v2 = vmul.f32 %v13770_v52, %v3006_v51  ;;  %v13771_v61 = vld [vmem:[#allocation14_spill] sm:$0xff]  ;;  %s13775_s17 = smov 127   ;;  %v13778_v48 = vld [vmem:[#allocation140_spill] sm:$0xff]  ;;  %vm13780_vm10 = vmmov %vm13763_vm11 }
 0x9cf   :  { %13767 = vst [vmem:[#allocation32_spill] sm:$0xff] %v10157_v28  ;;  %v2974_v54 = vmul.f32 %v13760_v11, %v2951_v46  ;;  %vm13773_vm9 = vcmp.lt.s32.totalorder %v6969_v14, 84  ;;  %v3004_v3 = vsel %vm13763_vm11, %v13761_v53, %v13774_v21  ;;  %v2927_v27 = vadd.f32 %v2919_v35, %v2874_v8  ;;  %v13782_v53 = vld [vmem:[#allocation17_spill] sm:$0xff]  ;;  %v13783_v30 = vld [vmem:[#allocation144_spill] sm:$0xff] }
 0x9d0   :  { %v10169_v50 = vpop.permute.xlu1 %4105  ;;  %3638 = vrot.lane.b32.xlu0 %v9295_v57, %s13550_s2  ;;  %v3059_v32 = vsel %vm13773_vm9, %v13772_v33, %v13771_v61  ;;  %v2877_v44 = vadd.f32 %v2869_v24, %v2824_v4  ;;  %v2981_v41 = vadd.f32 %v2973_v16, %v2928_v23  ;;  %v2929_v34 = vadd.f32 %v2921_v15, %v2876_v29  ;;  %vm13779_vm13 = vmmov %vm13773_vm9  ;;  %v13781_v24 = vld [vmem:[#allocation23_spill] sm:$0xff] }
 0x9d1   :  { %v3025_v25 = vmul.f32 %v13770_v52, %v3008_v7  ;;  %v2975_v43 = vmul.f32 %v13760_v11, %v2957_v60  ;;  %v3061_v51 = vsel %vm13779_vm13, %v13778_v48, %v13772_v33  ;;  %v3010_v35 = vsel %vm13780_vm10, %v13774_v21, %v13768_v59  ;;  %v13785_v11 = vld [vmem:[#allocation148_spill] sm:$0xff]  ;;  %vm13786_vm11 = vmmov %vm13779_vm13 }
 0x9d2   :  { %2358 = vrot.lane.b32.xlu1 %v13776_v19, %s13775_s17  ;;  %v10185_v38 = vpop.permute.xlu0 %3202  ;;  %v3079_v16 = vmul.f32 %v13781_v24, %v3059_v32  ;;  %v3027_v15 = vmul.f32 %v13770_v52, %v3004_v3  ;;  %vm13784_vm9 = vcmp.lt.s32.totalorder %v6969_v14, 83  ;;  %v3057_v8 = vsel %vm13786_vm11, %v13771_v61, %v13785_v11  ;;  %v13787_v32 = vld [vmem:[#allocation146_spill] sm:$0xff]  ;;  %vm13789_vm10 = vmmov %vm13786_vm11 }
 0x9d3   :  { %13777 = vst [vmem:[#allocation122_spill] sm:$0xff] %v10185_v38  ;;  %v3112_v46 = vsel %vm13784_vm9, %v13783_v30, %v13782_v53  ;;  %v2980_v23 = vadd.f32 %v2972_v63, %v2927_v27  ;;  %v2930_v29 = vadd.f32 %v2922_v58, %v2877_v44  ;;  %v3034_v59 = vadd.f32 %v3026_v2, %v2981_v41  ;;  %vm13788_vm13 = vmmov %vm13784_vm9  ;;  %v13791_v58 = vld [vmem:[#allocation36_spill] sm:$0xff]  ;;  %v13793_v3 = vld [vmem:[#allocation150_spill] sm:$0xff] }
 0x9d4   :  { %v10207_v4 = vpop.permute.xlu1 %4101  ;;  %3740 = vrot.lane.b32.xlu0 %v9267_v22, %s13552_s24  ;;  %v2982_v7 = vadd.f32 %v2974_v54, %v2929_v34  ;;  %v3078_v60 = vmul.f32 %v13781_v24, %v3061_v51  ;;  %v3028_v33 = vmul.f32 %v13770_v52, %v3010_v35  ;;  %v3114_v21 = vsel %vm13788_vm13, %v13787_v32, %v13783_v30  ;;  %v13792_v52 = vld [vmem:[#allocation15_spill] sm:$0xff]  ;;  %v13795_v44 = vld [vmem:[#allocation154_spill] sm:$0xff]  ;;  %vm13796_vm11 = vmmov %vm13788_vm13 }
 0x9d5   :  { %v3063_v61 = vsel %vm13789_vm10, %v13785_v11, %v13778_v48  ;;  %v3132_v2 = vmul.f32 %v13791_v58, %v3112_v46  ;;  %v3080_v54 = vmul.f32 %v13781_v24, %v3057_v8  ;;  %vm13794_vm9 = vcmp.lt.s32.totalorder %v6969_v14, 82  ;;  %v13797_v8 = vld [vmem:[#allocation152_spill] sm:$0xff]  ;;  %vm13799_vm10 = vmmov %vm13796_vm11 }
 0x9d6   :  { %2354 = vrot.lane.b32.xlu1 %v9317_v12, %s13775_s17  ;;  %v10223_v63 = vpop.permute.xlu0 %3161  ;;  %v3165_v27 = vsel %vm13794_vm9, %v13793_v3, %v13792_v52  ;;  %v3110_v41 = vsel %vm13796_vm11, %v13782_v53, %v13795_v44  ;;  %v3033_v34 = vadd.f32 %v3025_v25, %v2980_v23  ;;  %v2983_v48 = vadd.f32 %v2975_v43, %v2930_v29  ;;  %vm13798_vm13 = vmmov %vm13794_vm9  ;;  %v13800_v43 = vld [vmem:[#allocation37_spill] sm:$0xff]  ;;  %v13801_v53 = vld [vmem:[#allocation2_spill] sm:$0xff]  ;;  %s13806_s17 = smov 126  }
 0x9d7   :  { %13790 = vst [vmem:[#allocation117_spill] sm:$0xff] %v10223_v63  ;;  %v3087_v51 = vadd.f32 %v3079_v16, %v3034_v59  ;;  %v3035_v35 = vadd.f32 %v3027_v15, %v2982_v7  ;;  %v3131_v46 = vmul.f32 %v13791_v58, %v3114_v21  ;;  %v3081_v11 = vmul.f32 %v13781_v24, %v3063_v61  ;;  %v13802_v23 = vld [vmem:[#allocation156_spill] sm:$0xff]  ;;  %vm13805_vm11 = vmmov %vm13798_vm13 }
 0x9d8   :  { %v10235_v30 = vpop.permute.xlu1 %4060  ;;  %3732 = vrot.lane.b32.xlu0 %v9317_v12, %s13552_s24  ;;  %v3167_v5 = vsel %vm13798_vm13, %v13797_v8, %v13793_v3  ;;  %v3116_v25 = vsel %vm13799_vm10, %v13795_v44, %v13787_v32  ;;  %v3185_v16 = vmul.f32 %v13800_v43, %v3165_v27  ;;  %v3133_v15 = vmul.f32 %v13791_v58, %v3110_v41  ;;  %v13804_v24 = vld [vmem:[#allocation160_spill] sm:$0xff]  ;;  %v13808_v41 = vld [vmem:[#allocation158_spill] sm:$0xff]  ;;  %vm13810_vm10 = vmmov %vm13805_vm11 }
 0x9d9   :  { %vm13803_vm9 = vcmp.lt.s32.totalorder %v6969_v14, 81  ;;  %v3163_v59 = vsel %vm13805_vm11, %v13792_v52, %v13804_v24  ;;  %v3086_v32 = vadd.f32 %v3078_v60, %v3033_v34  ;;  %v3036_v21 = vadd.f32 %v3028_v33, %v2983_v48  ;;  %v13811_v60 = vld [vmem:[#allocation38_spill] sm:$0xff] }
 0x9da   :  { %v3218_v29 = vsel %vm13803_vm9, %v13802_v23, %v13801_v53  ;;  %2415 = vrot.lane.b32.xlu1 %v9267_v22, %s13806_s17  ;;  %v10261_v7 = vpop.permute.xlu0 %3263  ;;  %v3140_v61 = vadd.f32 %v3132_v2, %v3087_v51  ;;  %v3088_v3 = vadd.f32 %v3080_v54, %v3035_v35  ;;  %v3184_v27 = vmul.f32 %v13800_v43, %v3167_v5  ;;  %vm13809_vm13 = vmmov %vm13803_vm9  ;;  %v13813_v2 = vld [vmem:[#allocation162_spill] sm:$0xff] }
 0x9db   :  { %13807 = vst [vmem:[#allocation34_spill] sm:$0xff] %v10261_v7  ;;  %v3134_v44 = vmul.f32 %v13791_v58, %v3116_v25  ;;  %v3220_v38 = vsel %vm13809_vm13, %v13808_v41, %v13802_v23  ;;  %v3169_v52 = vsel %vm13810_vm10, %v13804_v24, %v13797_v8  ;;  %v3238_v33 = vmul.f32 %v13811_v60, %v3218_v29  ;;  %v13812_v58 = vld [vmem:[#allocation4_spill] sm:$0xff]  ;;  %v13815_v34 = vld [vmem:[#allocation166_spill] sm:$0xff]  ;;  %vm13816_vm11 = vmmov %vm13809_vm13 }
 0x9dc   :  { %v10273_v28 = vpop.permute.xlu1 %4158  ;;  %3691 = vrot.lane.b32.xlu0 %v9295_v57, %s13551_s27  ;;  %v3186_v5 = vmul.f32 %v13800_v43, %v3163_v59  ;;  %vm13814_vm9 = vcmp.lt.s32.totalorder %v6969_v14, 80  ;;  %v3216_v48 = vsel %vm13816_vm11, %v13801_v53, %v13815_v34  ;;  %v3139_v51 = vadd.f32 %v3131_v46, %v3086_v32  ;;  %v13818_v59 = vld [vmem:[#allocation164_spill] sm:$0xff]  ;;  %vm13820_vm10 = vmmov %vm13816_vm11  ;;  %v13822_v53 = vld [vmem:[#allocation7_spill] sm:$0xff] }
 0x9dd   :  { %v3271_v54 = vsel %vm13814_vm9, %v13813_v2, %v13812_v58  ;;  %v3089_v35 = vadd.f32 %v3081_v11, %v3036_v21  ;;  %v3193_v8 = vadd.f32 %v3185_v16, %v3140_v61  ;;  %v3141_v25 = vadd.f32 %v3133_v15, %v3088_v3  ;;  %vm13819_vm13 = vmmov %vm13814_vm9  ;;  %v13821_v11 = vld [vmem:[#allocation39_spill] sm:$0xff]  ;;  %v13823_v32 = vld [vmem:[#allocation168_spill] sm:$0xff] }
 0x9de   :  { %2407 = vrot.lane.b32.xlu1 %v9317_v12, %s13806_s17  ;;  %v10289_v23 = vpop.permute.xlu0 %3255  ;;  %v3237_v29 = vmul.f32 %v13811_v60, %v3220_v38  ;;  %v3187_v24 = vmul.f32 %v13800_v43, %v3169_v52  ;;  %v3273_v7 = vsel %vm13819_vm13, %v13818_v59, %v13813_v2  ;;  %v3222_v46 = vsel %vm13820_vm10, %v13815_v34, %v13808_v41  ;;  %v13825_v43 = vld [vmem:[#allocation172_spill] sm:$0xff]  ;;  %vm13826_vm11 = vmmov %vm13819_vm13  ;;  %s14431_s17 = sld [smem:[#allocation257_spill]] }
 0x9df   :  { %13817 = vst [vmem:[#allocation12_spill] sm:$0xff] %v10289_v23  ;;  %v3291_v16 = vmul.f32 %v13821_v11, %v3271_v54  ;;  %v3239_v15 = vmul.f32 %v13811_v60, %v3216_v48  ;;  %vm13824_vm9 = vcmp.lt.s32.totalorder %v6969_v14, 79  ;;  %v3269_v21 = vsel %vm13826_vm11, %v13812_v58, %v13825_v43  ;;  %v13827_v48 = vld [vmem:[#allocation170_spill] sm:$0xff]  ;;  %vm13829_vm10 = vmmov %vm13826_vm11 }
 0x9e0   :  { %v3324_v38 = vsel %vm13824_vm9, %v13823_v32, %v13822_v53  ;;  %v10311_v61 = vpop.permute.xlu1 %4154  ;;  %3793 = vrot.lane.b32.xlu0 %v9267_v22, %s13553_s10  ;;  %v3192_v3 = vadd.f32 %v3184_v27, %v3139_v51  ;;  %v3142_v41 = vadd.f32 %v3134_v44, %v3089_v35  ;;  %v3246_v52 = vadd.f32 %v3238_v33, %v3193_v8  ;;  %vm13828_vm13 = vmmov %vm13824_vm9  ;;  %v13831_v44 = vld [vmem:[#allocation30_spill] sm:$0xff] }
 0x9e1   :  { %v3194_v2 = vadd.f32 %v3186_v5, %v3141_v25  ;;  %v3290_v54 = vmul.f32 %v13821_v11, %v3273_v7  ;;  %v3240_v34 = vmul.f32 %v13811_v60, %v3222_v46  ;;  %v3326_v23 = vsel %vm13828_vm13, %v13827_v48, %v13823_v32  ;;  %v13832_v60 = vld [vmem:[#allocation11_spill] sm:$0xff]  ;;  %v13833_v5 = vld [vmem:[#allocation174_spill] sm:$0xff]  ;;  %vm13836_vm11 = vmmov %vm13828_vm13 }
 0x9e2   :  { %v3275_v58 = vsel %vm13829_vm10, %v13825_v43, %v13818_v59  ;;  %2464 = vrot.lane.b32.xlu1 %v13776_v19, %s13589_s13  ;;  %v10327_v27 = vpop.permute.xlu0 %3214  ;;  %v3344_v33 = vmul.f32 %v13831_v44, %v3324_v38  ;;  %v3292_v7 = vmul.f32 %v13821_v11, %v3269_v21  ;;  %vm13834_vm9 = vcmp.lt.s32.totalorder %v6969_v14, 78  ;;  %v13835_v35 = vld [vmem:[#allocation178_spill] sm:$0xff]  ;;  %vm13839_vm10 = vmmov %vm13836_vm11  ;;  %s13960_s13 = smov 84  }
 0x9e3   :  { %13830 = vst [vmem:[#allocation126_spill] sm:$0xff] %v10327_v27  ;;  %v3377_v51 = vsel %vm13834_vm9, %v13833_v5, %v13832_v60  ;;  %v3322_v8 = vsel %vm13836_vm11, %v13822_v53, %v13835_v35  ;;  %v3245_v25 = vadd.f32 %v3237_v29, %v3192_v3  ;;  %v3195_v59 = vadd.f32 %v3187_v24, %v3142_v41  ;;  %v13837_v27 = vld [vmem:[#allocation176_spill] sm:$0xff]  ;;  %vm13838_vm13 = vmmov %vm13834_vm9  ;;  %v13840_v24 = vld [vmem:[#allocation42_spill] sm:$0xff] }
 0x9e4   :  { %v3299_v46 = vadd.f32 %v3291_v16, %v3246_v52  ;;  %v3247_v32 = vadd.f32 %v3239_v15, %v3194_v2  ;;  %v10339_v43 = vpop.permute.xlu1 %4113  ;;  %3785 = vrot.lane.b32.xlu0 %v9317_v12, %s13553_s10  ;;  %v3343_v38 = vmul.f32 %v13831_v44, %v3326_v23  ;;  %v3293_v21 = vmul.f32 %v13821_v11, %v3275_v58  ;;  %v13841_v53 = vld [vmem:[#allocation116_spill] sm:$0xff]  ;;  %vm13845_vm11 = vmmov %vm13838_vm13 }
 0x9e5   :  { %v3379_v18 = vsel %vm13838_vm13, %v13837_v27, %v13833_v5  ;;  %v3328_v29 = vsel %vm13839_vm10, %v13835_v35, %v13827_v48  ;;  %v3397_v16 = vmul.f32 %v13840_v24, %v3377_v51  ;;  %v3345_v15 = vmul.f32 %v13831_v44, %v3322_v8  ;;  %v13842_v3 = vld [vmem:[#allocation180_spill] sm:$0xff]  ;;  %v13847_v8 = vld [vmem:[#allocation182_spill] sm:$0xff]  ;;  %vm13849_vm10 = vmmov %vm13845_vm11 }
 0x9e6   :  { %vm13843_vm9 = vcmp.lt.s32.totalorder %v6969_v14, 62  ;;  %v13844_v11 = vld [vmem:[#allocation184_spill] sm:$0xff]  ;;  %2517 = vrot.lane.b32.xlu1 %v13776_v19, %s13594_s15  ;;  %v10365_v52 = vpop.permute.xlu0 %3316  ;;  %v3298_v2 = vadd.f32 %v3290_v54, %v3245_v25  ;;  %v3248_v48 = vadd.f32 %v3240_v34, %v3195_v59  ;;  %v3352_v58 = vadd.f32 %v3344_v33, %v3299_v46  ;;  %v13852_v33 = vld [vmem:[#allocation186_spill] sm:$0xff]  ;;  %s13981_s15 = smov 35  }
 0x9e7   :  { %v3430_v23 = vsel %vm13843_vm9, %v13842_v3, %v13841_v53  ;;  %v3375_v41 = vsel %vm13845_vm11, %v13832_v60, %v13844_v11  ;;  %13846 = vst [vmem:[#allocation130_spill] sm:$0xff] %v10365_v52  ;;  %v3300_v5 = vadd.f32 %v3292_v7, %v3247_v32  ;;  %v3396_v51 = vmul.f32 %v13840_v24, %v3379_v18  ;;  %vm13848_vm13 = vmmov %vm13843_vm9  ;;  %v13850_v54 = vld [vmem:[#allocation44_spill] sm:$0xff]  ;;  %v13854_v25 = vld [vmem:[#allocation190_spill] sm:$0xff] }
 0x9e8   :  { %v3346_v35 = vmul.f32 %v13831_v44, %v3328_v29  ;;  %v3432_v13 = vsel %vm13848_vm13, %v13847_v8, %v13842_v3  ;;  %v3381_v60 = vsel %vm13849_vm10, %v13844_v11, %v13837_v27  ;;  %v10377_v63 = vpop.permute.xlu1 %4211  ;;  %3744 = vrot.lane.b32.xlu0 %v9295_v57, %s13552_s24  ;;  %v3450_v34 = vmul.f32 %v13850_v54, %v3430_v23  ;;  %v13851_v44 = vld [vmem:[#allocation16_spill] sm:$0xff]  ;;  %vm13855_vm11 = vmmov %vm13848_vm13 }
 0x9e9   :  { %v3398_v18 = vmul.f32 %v13840_v24, %v3375_v41  ;;  %vm13853_vm9 = vcmp.lt.s32.totalorder %v6969_v14, 61  ;;  %v3428_v59 = vsel %vm13855_vm11, %v13841_v53, %v13854_v25  ;;  %v3351_v27 = vadd.f32 %v3343_v38, %v3298_v2  ;;  %v13857_v41 = vld [vmem:[#allocation188_spill] sm:$0xff]  ;;  %vm13859_vm10 = vmmov %vm13855_vm11 }
 0x9ea   :  { %v3483_v7 = vsel %vm13853_vm9, %v13852_v33, %v13851_v44  ;;  %v3301_v46 = vadd.f32 %v3293_v21, %v3248_v48  ;;  %v3405_v32 = vadd.f32 %v3397_v16, %v3352_v58  ;;  %v3353_v29 = vadd.f32 %v3345_v15, %v3300_v5  ;;  %2570 = vrot.lane.b32.xlu1 %v13776_v19, %s13601_s14  ;;  %v10393_v3 = vpop.permute.xlu0 %3308  ;;  %vm13858_vm13 = vmmov %vm13853_vm9  ;;  %v13860_v21 = vld [vmem:[#allocation41_spill] sm:$0xff]  ;;  %v13861_v53 = vld [vmem:[#allocation120_spill] sm:$0xff]  ;;  %s13966_s14 = smov 83  }
 0x9eb   :  { %13856 = vst [vmem:[#allocation128_spill] sm:$0xff] %v10393_v3  ;;  %v3449_v23 = vmul.f32 %v13850_v54, %v3432_v13  ;;  %v3399_v11 = vmul.f32 %v13840_v24, %v3381_v60  ;;  %v3485_v52 = vsel %vm13858_vm13, %v13857_v41, %v13852_v33  ;;  %v3434_v38 = vsel %vm13859_vm10, %v13854_v25, %v13847_v8  ;;  %v13862_v2 = vld [vmem:[#allocation192_spill] sm:$0xff]  ;;  %vm13865_vm11 = vmmov %vm13858_vm13 }
 0x9ec   :  { %v3503_v16 = vmul.f32 %v13860_v21, %v3483_v7  ;;  %v3451_v15 = vmul.f32 %v13850_v54, %v3428_v59  ;;  %vm13863_vm9 = vcmp.lt.s32.totalorder %v6969_v14, 60  ;;  %v13864_v24 = vld [vmem:[#allocation196_spill] sm:$0xff]  ;;  %v10415_v58 = vpop.permute.xlu1 %4207  ;;  %3846 = vrot.lane.b32.xlu0 %v9267_v22, %s13554_s20  ;;  %v3404_v5 = vadd.f32 %v3396_v51, %v3351_v27  ;;  %v13866_v59 = vld [vmem:[#allocation194_spill] sm:$0xff]  ;;  %vm13868_vm10 = vmmov %vm13865_vm11 }
 0x9ed   :  { %v3536_v13 = vsel %vm13863_vm9, %v13862_v2, %v13861_v53  ;;  %v3481_v48 = vsel %vm13865_vm11, %v13851_v44, %v13864_v24  ;;  %v3354_v8 = vadd.f32 %v3346_v35, %v3301_v46  ;;  %v3458_v60 = vadd.f32 %v3450_v34, %v3405_v32  ;;  %vm13867_vm13 = vmmov %vm13863_vm9  ;;  %v13870_v35 = vld [vmem:[#allocation45_spill] sm:$0xff]  ;;  %v13874_v46 = vld [vmem:[#allocation202_spill] sm:$0xff] }
 0x9ee   :  { %v3406_v33 = vadd.f32 %v3398_v18, %v3353_v29  ;;  %v3502_v7 = vmul.f32 %v13860_v21, %v3485_v52  ;;  %v3452_v25 = vmul.f32 %v13850_v54, %v3434_v38  ;;  %v3538_v3 = vsel %vm13867_vm13, %v13866_v59, %v13862_v2  ;;  %2623 = vrot.lane.b32.xlu1 %v13776_v19, %s13531_s0  ;;  %v10431_v51 = vpop.permute.xlu0 %3267  ;;  %v13871_v54 = vld [vmem:[#allocation113_spill] sm:$0xff]  ;;  %v13872_v18 = vld [vmem:[#allocation198_spill] sm:$0xff]  ;;  %vm13875_vm11 = vmmov %vm13867_vm13  ;;  %s14003_s0 = smov 34  }
 0x9ef   :  { %v3487_v44 = vsel %vm13868_vm10, %v13864_v24, %v13857_v41  ;;  %13869 = vst [vmem:[#allocation31_spill] sm:$0xff] %v10431_v51  ;;  %v3556_v34 = vmul.f32 %v13870_v35, %v3536_v13  ;;  %v3504_v52 = vmul.f32 %v13860_v21, %v3481_v48  ;;  %vm13873_vm9 = vcmp.lt.s32.totalorder %v6969_v14, 59  ;;  %v13876_v51 = vld [vmem:[#allocation200_spill] sm:$0xff]  ;;  %vm13878_vm10 = vmmov %vm13875_vm11 }
 0x9f0   :  { %v3589_v27 = vsel %vm13873_vm9, %v13872_v18, %v13871_v54  ;;  %v3534_v32 = vsel %vm13875_vm11, %v13861_v53, %v13874_v46  ;;  %v3457_v29 = vadd.f32 %v3449_v23, %v3404_v5  ;;  %v3407_v41 = vadd.f32 %v3399_v11, %v3354_v8  ;;  %v10443_v24 = vpop.permute.xlu1 %4166  ;;  %3838 = vrot.lane.b32.xlu0 %v9317_v12, %s13554_s20  ;;  %vm13877_vm13 = vmmov %vm13873_vm9  ;;  %v13879_v11 = vld [vmem:[#allocation33_spill] sm:$0xff]  ;;  %v13880_v53 = vld [vmem:[#allocation115_spill] sm:$0xff] }
 0x9f1   :  { %v3511_v38 = vadd.f32 %v3503_v16, %v3458_v60  ;;  %v3459_v2 = vadd.f32 %v3451_v15, %v3406_v33  ;;  %v3555_v13 = vmul.f32 %v13870_v35, %v3538_v3  ;;  %v3505_v48 = vmul.f32 %v13860_v21, %v3487_v44  ;;  %v13881_v5 = vld [vmem:[#allocation204_spill] sm:$0xff]  ;;  %vm13884_vm11 = vmmov %vm13877_vm13 }
 0x9f2   :  { %v3591_v45 = vsel %vm13877_vm13, %v13876_v51, %v13872_v18  ;;  %v3540_v23 = vsel %vm13878_vm10, %v13874_v46, %v13866_v59  ;;  %v3609_v16 = vmul.f32 %v13879_v11, %v3589_v27  ;;  %v3557_v15 = vmul.f32 %v13870_v35, %v3534_v32  ;;  %v13883_v21 = vld [vmem:[#allocation208_spill] sm:$0xff]  ;;  %2676 = vrot.lane.b32.xlu1 %v13776_v19, %s13532_s28  ;;  %v10469_v60 = vpop.permute.xlu0 %3369  ;;  %v13886_v32 = vld [vmem:[#allocation206_spill] sm:$0xff]  ;;  %vm13888_vm10 = vmmov %vm13884_vm11  ;;  %s14022_s28 = smov 18  }
 0x9f3   :  { %vm13882_vm9 = vcmp.lt.s32.totalorder %v6969_v14, 58  ;;  %v3587_v8 = vsel %vm13884_vm11, %v13871_v54, %v13883_v21  ;;  %13885 = vst [vmem:[#allocation8_spill] sm:$0xff] %v10469_v60  ;;  %v3510_v33 = vadd.f32 %v3502_v7, %v3457_v29  ;;  %v3460_v59 = vadd.f32 %v3452_v25, %v3407_v41  ;;  %v13889_v7 = vld [vmem:[#allocation46_spill] sm:$0xff] }
 0x9f4   :  { %v3642_v3 = vsel %vm13882_vm9, %v13881_v5, %v13880_v53  ;;  %v3564_v44 = vadd.f32 %v3556_v34, %v3511_v38  ;;  %v3512_v18 = vadd.f32 %v3504_v52, %v3459_v2  ;;  %v3608_v27 = vmul.f32 %v13879_v11, %v3591_v45  ;;  %vm13887_vm13 = vmmov %vm13882_vm9  ;;  %v10481_v56 = vpop.permute.xlu1 %4264  ;;  %3797 = vrot.lane.b32.xlu0 %v9295_v57, %s13553_s10  ;;  %v13891_v34 = vld [vmem:[#allocation210_spill] sm:$0xff] }
 0x9f5   :  { %v3558_v46 = vmul.f32 %v13870_v35, %v3540_v23  ;;  %v3644_v55 = vsel %vm13887_vm13, %v13886_v32, %v13881_v5  ;;  %v3593_v54 = vsel %vm13888_vm10, %v13883_v21, %v13876_v51  ;;  %v3662_v25 = vmul.f32 %v13889_v7, %v3642_v3  ;;  %v13890_v35 = vld [vmem:[#allocation118_spill] sm:$0xff]  ;;  %vm13894_vm11 = vmmov %vm13887_vm13 }
 0x9f6   :  { %v3610_v45 = vmul.f32 %v13879_v11, %v3587_v8  ;;  %vm13892_vm9 = vcmp.lt.s32.totalorder %v6969_v14, 57  ;;  %v13893_v29 = vld [vmem:[#allocation214_spill] sm:$0xff]  ;;  %v3563_v51 = vadd.f32 %v3555_v13, %v3510_v33  ;;  %v3513_v38 = vadd.f32 %v3505_v48, %v3460_v59  ;;  %2729 = vrot.lane.b32.xlu1 %v13776_v19, %s13533_s29  ;;  %v10497_v5 = vpop.permute.xlu0 %3361  ;;  %v13896_v8 = vld [vmem:[#allocation212_spill] sm:$0xff]  ;;  %vm13898_vm10 = vmmov %vm13894_vm11  ;;  %s14432_s29 = sld [smem:[#allocation258_spill]] }
 0x9f7   :  { %v3695_v52 = vsel %vm13892_vm9, %v13891_v34, %v13890_v35  ;;  %v3640_v41 = vsel %vm13894_vm11, %v13880_v53, %v13893_v29  ;;  %v3617_v2 = vadd.f32 %v3609_v16, %v3564_v44  ;;  %v3565_v23 = vadd.f32 %v3557_v15, %v3512_v18  ;;  %13895 = vst [vmem:[#allocation132_spill] sm:$0xff] %v10497_v5  ;;  %vm13897_vm13 = vmmov %vm13892_vm9  ;;  %v13899_v48 = vld [vmem:[#allocation48_spill] sm:$0xff]  ;;  %v13900_v53 = vld [vmem:[#allocation114_spill] sm:$0xff] }
 0x9f8   :  { %v3661_v3 = vmul.f32 %v13889_v7, %v3644_v55  ;;  %v3611_v21 = vmul.f32 %v13879_v11, %v3593_v54  ;;  %v3697_v60 = vsel %vm13897_vm13, %v13896_v8, %v13891_v34  ;;  %v3646_v13 = vsel %vm13898_vm10, %v13893_v29, %v13886_v32  ;;  %v13901_v33 = vld [vmem:[#allocation216_spill] sm:$0xff]  ;;  %vm13904_vm11 = vmmov %vm13897_vm13  ;;  %v10519_v44 = vpop.permute.xlu1 %4260  ;;  %3899 = vrot.lane.b32.xlu0 %v9267_v22, %s13555_s18 }
 0x9f9   :  { %v3715_v16 = vmul.f32 %v13899_v48, %v3695_v52  ;;  %v3663_v15 = vmul.f32 %v13889_v7, %v3640_v41  ;;  %vm13902_vm9 = vcmp.lt.s32.totalorder %v6969_v14, 56  ;;  %v13903_v11 = vld [vmem:[#allocation220_spill] sm:$0xff]  ;;  %v3616_v18 = vadd.f32 %v3608_v27, %v3563_v51  ;;  %v13905_v41 = vld [vmem:[#allocation218_spill] sm:$0xff]  ;;  %vm13907_vm10 = vmmov %vm13904_vm11 }
 0x9fa   :  { %v3748_v55 = vsel %vm13902_vm9, %v13901_v33, %v13900_v53  ;;  %v3693_v59 = vsel %vm13904_vm11, %v13890_v35, %v13903_v11  ;;  %v3566_v32 = vadd.f32 %v3558_v46, %v3513_v38  ;;  %v3670_v54 = vadd.f32 %v3662_v25, %v3617_v2  ;;  %vm13906_vm13 = vmmov %vm13902_vm9  ;;  %2782 = vrot.lane.b32.xlu1 %v13776_v19, %s13534_s8  ;;  %v10535_v27 = vpop.permute.xlu0 %3320  ;;  %v13909_v46 = vld [vmem:[#allocation40_spill] sm:$0xff]  ;;  %v13913_v38 = vld [vmem:[#allocation226_spill] sm:$0xff]  ;;  %s14425_s8 = sld [smem:[#allocation254_spill]] }
 0x9fb   :  { %v3618_v34 = vadd.f32 %v3610_v45, %v3565_v23  ;;  %v3714_v52 = vmul.f32 %v13899_v48, %v3697_v60  ;;  %v3664_v29 = vmul.f32 %v13889_v7, %v3646_v13  ;;  %v3750_v5 = vsel %vm13906_vm13, %v13905_v41, %v13901_v33  ;;  %13908 = vst [vmem:[#allocation136_spill] sm:$0xff] %v10535_v27  ;;  %v13910_v7 = vld [vmem:[#allocation121_spill] sm:$0xff]  ;;  %v13911_v45 = vld [vmem:[#allocation222_spill] sm:$0xff]  ;;  %vm13914_vm11 = vmmov %vm13906_vm13 }
 0x9fc   :  { %v3699_v35 = vsel %vm13907_vm10, %v13903_v11, %v13896_v8  ;;  %v3768_v25 = vmul.f32 %v13909_v46, %v3748_v55  ;;  %v3716_v60 = vmul.f32 %v13899_v48, %v3693_v59  ;;  %vm13912_vm9 = vcmp.lt.s32.totalorder %v6969_v14, 40  ;;  %v10547_v11 = vpop.permute.xlu1 %4219  ;;  %3891 = vrot.lane.b32.xlu0 %v9317_v12, %s13555_s18  ;;  %v13915_v27 = vld [vmem:[#allocation224_spill] sm:$0xff]  ;;  %vm13917_vm10 = vmmov %vm13914_vm11 }
 0x9fd   :  { %v3801_v51 = vsel %vm13912_vm9, %v13911_v45, %v13910_v7  ;;  %v3746_v2 = vsel %vm13914_vm11, %v13900_v53, %v13913_v38  ;;  %v3669_v23 = vadd.f32 %v3661_v3, %v3616_v18  ;;  %v3619_v8 = vadd.f32 %v3611_v21, %v3566_v32  ;;  %vm13916_vm13 = vmmov %vm13912_vm9  ;;  %v13918_v21 = vld [vmem:[#allocation52_spill] sm:$0xff]  ;;  %v13919_v53 = vld [vmem:[#allocation119_spill] sm:$0xff] }
 0x9fe   :  { %v3723_v13 = vadd.f32 %v3715_v16, %v3670_v54  ;;  %v3671_v33 = vadd.f32 %v3663_v15, %v3618_v34  ;;  %v3767_v55 = vmul.f32 %v13909_v46, %v3750_v5  ;;  %v3717_v59 = vmul.f32 %v13899_v48, %v3699_v35  ;;  %v13920_v18 = vld [vmem:[#allocation228_spill] sm:$0xff]  ;;  %vm13923_vm11 = vmmov %vm13916_vm13  ;;  %2835 = vrot.lane.b32.xlu1 %v13776_v19, %s13535_s25  ;;  %v10573_v54 = vpop.permute.xlu0 %3422 }
 0x9ff   :  { %v3803_v47 = vsel %vm13916_vm13, %v13915_v27, %v13911_v45  ;;  %v3752_v3 = vsel %vm13917_vm10, %v13913_v38, %v13905_v41  ;;  %v3821_v16 = vmul.f32 %v13918_v21, %v3801_v51  ;;  %v3769_v15 = vmul.f32 %v13909_v46, %v3746_v2  ;;  %v13922_v48 = vld [vmem:[#allocation232_spill] sm:$0xff]  ;;  %13924 = vst [vmem:[#allocation134_spill] sm:$0xff] %v10573_v54  ;;  %v13925_v2 = vld [vmem:[#allocation230_spill] sm:$0xff]  ;;  %vm13927_vm10 = vmmov %vm13923_vm11 }
 0xa00   :  { %vm13921_vm9 = vcmp.lt.s32.totalorder %v6969_v14, 39  ;;  %v3799_v32 = vsel %vm13923_vm11, %v13910_v7, %v13922_v48  ;;  %v3722_v34 = vadd.f32 %v3714_v52, %v3669_v23  ;;  %v3672_v41 = vadd.f32 %v3664_v29, %v3619_v8  ;;  %v10585_v49 = vpop.permute.xlu1 %4317  ;;  %3850 = vrot.lane.b32.xlu0 %v9295_v57, %s13554_s20  ;;  %v13928_v52 = vld [vmem:[#allocation51_spill] sm:$0xff]  ;;  %v13932_v23 = vld [vmem:[#allocation238_spill] sm:$0xff] }
 0xa01   :  { %v3854_v5 = vsel %vm13921_vm9, %v13920_v18, %v13919_v53  ;;  %v3776_v35 = vadd.f32 %v3768_v25, %v3723_v13  ;;  %v3724_v45 = vadd.f32 %v3716_v60, %v3671_v33  ;;  %v3820_v51 = vmul.f32 %v13918_v21, %v3803_v47  ;;  %vm13926_vm13 = vmmov %vm13921_vm9  ;;  %v13930_v25 = vld [vmem:[#allocation234_spill] sm:$0xff] }
 0xa02   :  { %v3770_v38 = vmul.f32 %v13909_v46, %v3752_v3  ;;  %v3856_v0 = vsel %vm13926_vm13, %v13925_v2, %v13920_v18  ;;  %v3805_v7 = vsel %vm13927_vm10, %v13922_v48, %v13915_v27  ;;  %v3874_v29 = vmul.f32 %v13928_v52, %v3854_v5  ;;  %v13929_v46 = vld [vmem:[#allocation124_spill] sm:$0xff]  ;;  %vm13933_vm11 = vmmov %vm13926_vm13  ;;  %2888 = vrot.lane.b32.xlu1 %v13776_v19, %s13536_s26  ;;  %v10601_v18 = vpop.permute.xlu0 %3414 }
 0xa03   :  { %v3822_v47 = vmul.f32 %v13918_v21, %v3799_v32  ;;  %vm13931_vm9 = vcmp.lt.s32.totalorder %v6969_v14, 38  ;;  %v3852_v8 = vsel %vm13933_vm11, %v13919_v53, %v13932_v23  ;;  %v3775_v27 = vadd.f32 %v3767_v55, %v3722_v34  ;;  %v13934_v32 = vld [vmem:[#allocation236_spill] sm:$0xff]  ;;  %vm13936_vm10 = vmmov %vm13933_vm11  ;;  %v13938_v53 = vld [vmem:[#allocation125_spill] sm:$0xff] }
 0xa04   :  { %v3907_v60 = vsel %vm13931_vm9, %v13930_v25, %v13929_v46  ;;  %v3725_v13 = vadd.f32 %v3717_v59, %v3672_v41  ;;  %v3829_v33 = vadd.f32 %v3821_v16, %v3776_v35  ;;  %v3777_v3 = vadd.f32 %v3769_v15, %v3724_v45  ;;  %vm13935_vm13 = vmmov %vm13931_vm9  ;;  %v13937_v59 = vld [vmem:[#allocation43_spill] sm:$0xff]  ;;  %v13939_v34 = vld [vmem:[#allocation240_spill] sm:$0xff]  ;;  %v10623_v41 = vpop.permute.xlu1 %4313  ;;  %3952 = vrot.lane.b32.xlu0 %v9267_v22, %s13556_s16 }
 0xa05   :  { %v3873_v5 = vmul.f32 %v13928_v52, %v3856_v0  ;;  %v3823_v48 = vmul.f32 %v13918_v21, %v3805_v7  ;;  %v3909_v54 = vsel %vm13935_vm13, %v13934_v32, %v13930_v25  ;;  %v3858_v55 = vsel %vm13936_vm10, %v13932_v23, %v13925_v2  ;;  %vm13941_vm11 = vmmov %vm13935_vm13  ;;  %v13942_v23 = vld [vmem:[#allocation242_spill] sm:$0xff] }
 0xa06   :  { %v3927_v16 = vmul.f32 %v13937_v59, %v3907_v60  ;;  %v3875_v15 = vmul.f32 %v13928_v52, %v3852_v8  ;;  %vm13940_vm9 = vcmp.lt.s32.totalorder %v6969_v14, 37  ;;  %v3905_v21 = vsel %vm13941_vm11, %v13929_v46, %v9889_v10  ;;  %vm13944_vm10 = vmmov %vm13941_vm11  ;;  %2941 = vrot.lane.b32.xlu1 %v13776_v19, %s13537_s30 }
 0xa07   :  { %v3960_v0 = vsel %vm13940_vm9, %v13939_v34, %v13938_v53  ;;  %v3828_v35 = vadd.f32 %v3820_v51, %v3775_v27  ;;  %v3778_v45 = vadd.f32 %v3770_v38, %v3725_v13  ;;  %v3882_v2 = vadd.f32 %v3874_v29, %v3829_v33  ;;  %vm13943_vm13 = vmmov %vm13940_vm9  ;;  %v10639_v51 = vpop.permute.xlu0 %3373  ;;  %v13945_v38 = vld [vmem:[#allocation57_spill] sm:$0xff] }
 0xa08   :  { %v3830_v7 = vadd.f32 %v3822_v47, %v3777_v3  ;;  %v3926_v25 = vmul.f32 %v13937_v59, %v3909_v54  ;;  %v3876_v60 = vmul.f32 %v13928_v52, %v3858_v55  ;;  %v3962_v8 = vsel %vm13943_vm13, %v13942_v23, %v13939_v34  ;;  %v13946_v52 = vld [vmem:[#allocation127_spill] sm:$0xff]  ;;  %vm13948_vm11 = vmmov %vm13943_vm13  ;;  %3944 = vrot.lane.b32.xlu0 %v9317_v12, %s13556_s16 }
 0xa09   :  { %v3911_v46 = vsel %vm13944_vm10, %v9889_v10, %v13934_v32  ;;  %v3980_v29 = vmul.f32 %v13945_v38, %v3960_v0  ;;  %v3928_v54 = vmul.f32 %v13937_v59, %v3905_v21  ;;  %vm13947_vm9 = vcmp.lt.s32.totalorder %v6969_v14, 36  ;;  %v10651_v32 = vpop.permute.xlu1 %4272  ;;  %vm13950_vm10 = vmmov %vm13948_vm11 }
 0xa0a   :  { %v4013_v47 = vsel %vm13947_vm9, %v9939_v6, %v13946_v52  ;;  %v3958_v27 = vsel %vm13948_vm11, %v13938_v53, %v10026_v40  ;;  %v3881_v10 = vadd.f32 %v3873_v5, %v3828_v35  ;;  %v3831_v13 = vadd.f32 %v3823_v48, %v3778_v45  ;;  %vm13949_vm13 = vmmov %vm13947_vm9  ;;  %v13951_v48 = vld [vmem:[#allocation59_spill] sm:$0xff]  ;;  %v13952_v53 = vld [vmem:[#allocation129_spill] sm:$0xff]  ;;  %2994 = vrot.lane.b32.xlu1 %v13776_v19, %s13538_s4 }
 0xa0b   :  { %v3935_v33 = vadd.f32 %v3927_v16, %v3882_v2  ;;  %v3883_v3 = vadd.f32 %v3875_v15, %v3830_v7  ;;  %v3979_v55 = vmul.f32 %v13945_v38, %v3962_v8  ;;  %v3929_v34 = vmul.f32 %v13937_v59, %v3911_v46  ;;  %vm13954_vm11 = vmmov %vm13949_vm13 }
 0xa0c   :  { %v4015_v0 = vsel %vm13949_vm13, %v9993_v36, %v9939_v6  ;;  %v3964_v5 = vsel %vm13950_vm10, %v10026_v40, %v13942_v23  ;;  %v4033_v16 = vmul.f32 %v13951_v48, %v4013_v47  ;;  %v3981_v15 = vmul.f32 %v13945_v38, %v3958_v27  ;;  %v10677_v6 = vpop.permute.xlu0 %3475  ;;  %vm13957_vm10 = vmmov %vm13954_vm11  ;;  %3903 = vrot.lane.b32.xlu0 %v9295_v57, %s13555_s18 }
 0xa0d   :  { %vm13953_vm9 = vcmp.lt.s32.totalorder %v6969_v14, 35  ;;  %v4011_v59 = vsel %vm13954_vm11, %v13946_v52, %v10131_v31  ;;  %13955 = vst [vmem:[#allocation35_spill] sm:$0xff] %v10677_v6  ;;  %v3934_v40 = vadd.f32 %v3926_v25, %v3881_v10  ;;  %v3884_v35 = vadd.f32 %v3876_v60, %v3831_v13  ;;  %v10689_v52 = vpop.permute.xlu1 %4370  ;;  %v13958_v25 = vld [vmem:[#allocation62_spill] sm:$0xff] }
 0xa0e   :  { %v4066_v21 = vsel %vm13953_vm9, %v10065_v42, %v13952_v53  ;;  %v3988_v45 = vadd.f32 %v3980_v29, %v3935_v33  ;;  %v3936_v2 = vadd.f32 %v3928_v54, %v3883_v3  ;;  %v4032_v7 = vmul.f32 %v13951_v48, %v4015_v0  ;;  %vm13956_vm13 = vmmov %vm13953_vm9  ;;  %3047 = vrot.lane.b32.xlu1 %v13776_v19, %s13960_s13 }
 0xa0f   :  { %v3982_v23 = vmul.f32 %v13945_v38, %v3964_v5  ;;  %v4068_v8 = vsel %vm13956_vm13, %v10103_v17, %v10065_v42  ;;  %v4017_v46 = vsel %vm13957_vm10, %v10131_v31, %v9993_v36  ;;  %v4086_v60 = vmul.f32 %v13958_v25, %v4066_v21  ;;  %v13959_v38 = vld [vmem:[#allocation131_spill] sm:$0xff]  ;;  %vm13961_vm11 = vmmov %vm13953_vm9 }
 0xa10   :  { %v4034_v29 = vmul.f32 %v13951_v48, %v4011_v59  ;;  %v4119_v54 = vsel %vm1038_vm12, %v10169_v50, %v13959_v38  ;;  %v4064_v42 = vsel %vm13953_vm9, %v13952_v53, %v10235_v30  ;;  %v3987_v36 = vadd.f32 %v3979_v55, %v3934_v40  ;;  %v10705_v10 = vpop.permute.xlu0 %3467  ;;  %4005 = vrot.lane.b32.xlu0 %v9267_v22, %s13557_s19 }
 0xa11   :  { %v3937_v31 = vadd.f32 %v3929_v34, %v3884_v35  ;;  %v4041_v47 = vadd.f32 %v4033_v16, %v3988_v45  ;;  %v3989_v27 = vadd.f32 %v3981_v15, %v3936_v2  ;;  %v4085_v13 = vmul.f32 %v13958_v25, %v4068_v8  ;;  %v13962_v34 = vld [vmem:[#allocation61_spill] sm:$0xff] }
 0xa12   :  { %v4035_v33 = vmul.f32 %v13951_v48, %v4017_v46  ;;  %v4121_v3 = vsel %vm1038_vm12, %v10207_v4, %v10169_v50  ;;  %v4070_v55 = vsel %vm13961_vm11, %v10235_v30, %v10103_v17  ;;  %v4139_v0 = vmul.f32 %v13962_v34, %v4119_v54  ;;  %v13963_v16 = vld [vmem:[#allocation133_spill] sm:$0xff]  ;;  %v10727_v50 = vpop.permute.xlu1 %4366  ;;  %3100 = vrot.lane.b32.xlu1 %v13776_v19, %s13966_s14 }
 0xa13   :  { %v4087_v5 = vmul.f32 %v13958_v25, %v4064_v42  ;;  %vm13964_vm13 = vcmp.lt.s32.totalorder %v6969_v14, 18  ;;  %v4117_v48 = vsel %vm1038_vm12, %v13959_v38, %v10339_v43  ;;  %v4040_v17 = vadd.f32 %v4032_v7, %v3987_v36  ;;  %v13969_v38 = vld [vmem:[#allocation135_spill] sm:$0xff] }
 0xa14   :  { %v4172_v15 = vsel %vm13964_vm13, %v10273_v28, %v13963_v16  ;;  %v3990_v30 = vadd.f32 %v3982_v23, %v3937_v31  ;;  %v4094_v53 = vadd.f32 %v4086_v60, %v4041_v47  ;;  %v4042_v21 = vadd.f32 %v4034_v29, %v3989_v27  ;;  %vm13965_vm10 = vmmov %vm13964_vm13  ;;  %v10743_v2 = vpop.permute.xlu0 %3426  ;;  %v13967_v23 = vld [vmem:[#allocation53_spill] sm:$0xff]  ;;  %3997 = vrot.lane.b32.xlu0 %v9317_v12, %s13557_s19 }
 0xa15   :  { %v4138_v59 = vmul.f32 %v13962_v34, %v4121_v3  ;;  %v4088_v40 = vmul.f32 %v13958_v25, %v4070_v55  ;;  %v4174_v35 = vsel %vm13965_vm10, %v10311_v61, %v10273_v28  ;;  %v4123_v45 = vsel %vm1038_vm12, %v10339_v43, %v10207_v4  ;;  %vm13968_vm9 = vmmov %vm13965_vm10  ;;  %v13972_v55 = vld [vmem:[#allocation67_spill] sm:$0xff] }
 0xa16   :  { %v4093_v7 = vadd.f32 %v4085_v13, %v4040_v17  ;;  %v4192_v8 = vmul.f32 %v13967_v23, %v4172_v15  ;;  %v4140_v46 = vmul.f32 %v13962_v34, %v4117_v48  ;;  %v4170_v28 = vsel %vm13968_vm9, %v13963_v16, %v10443_v24  ;;  %v4326_v43 = vpop.permute.xlu1 %4325  ;;  %vm13970_vm11 = vmmov %vm13968_vm9  ;;  %3153 = vrot.lane.b32.xlu1 %v13776_v19, %s13541_s12 }
 0xa17   :  { %v4043_v25 = vadd.f32 %v4035_v33, %v3990_v30  ;;  %v4147_v60 = vadd.f32 %v4139_v0, %v4094_v53  ;;  %v4095_v29 = vadd.f32 %v4087_v5, %v4042_v21  ;;  %v4225_v4 = vsel %vm1094_vm14, %v10377_v63, %v13969_v38  ;;  %v13973_v0 = vld [vmem:[#allocation137_spill] sm:$0xff] }
 0xa18   :  { %v4191_v54 = vmul.f32 %v13967_v23, %v4174_v35  ;;  %v4141_v42 = vmul.f32 %v13962_v34, %v4123_v45  ;;  %v4176_v36 = vsel %vm13970_vm11, %v10443_v24, %v10311_v61  ;;  %v4223_v31 = vsel %vm1094_vm14, %v13969_v38, %v10547_v11  ;;  %v10774_v3 = vpop.permute.xlu0 %3528  ;;  %3956 = vrot.lane.b32.xlu0 %v9295_v57, %s13556_s16 }
 0xa19   :  { %v4146_v47 = vadd.f32 %v4138_v59, %v4093_v7  ;;  %v4096_v27 = vadd.f32 %v4088_v40, %v4043_v25  ;;  %v4227_v13 = vsel %vm1094_vm14, %v10415_v58, %v10377_v63  ;;  %v4193_v33 = vmul.f32 %v13967_v23, %v4170_v28  ;;  %13971 = vst [vmem:[#allocation14_spill] sm:$0xff] %v10774_v3  ;;  %v13974_v59 = vld [vmem:[#allocation139_spill] sm:$0xff]  ;;  %v13976_v40 = vld [vmem:[#allocation69_spill] sm:$0xff] }
 0xa1a   :  { %v4200_v61 = vadd.f32 %v4192_v8, %v4147_v60  ;;  %v4148_v24 = vadd.f32 %v4140_v46, %v4095_v29  ;;  %v4245_v34 = vmul.f32 %v13972_v55, %v4225_v4  ;;  %v4278_v5 = vsel %vm1122_vm15, %v10481_v56, %v13973_v0  ;;  %v4424_v17 = vpop.permute.xlu1 %4423  ;;  %3206 = vrot.lane.b32.xlu1 %v13776_v19, %s13542_s23  ;;  %v13979_v29 = vld [vmem:[#allocation72_spill] sm:$0xff]  ;;  %s14430_s23 = sld [smem:[#allocation256_spill]] }
 0xa1b   :  { %v4194_v16 = vmul.f32 %v13967_v23, %v4176_v36  ;;  %v4229_v63 = vsel %vm1094_vm14, %v10547_v11, %v10415_v58  ;;  %v4246_v15 = vmul.f32 %v13972_v55, %v4223_v31  ;;  %v4276_v48 = vsel %vm1122_vm15, %v13973_v0, %v10651_v32 }
 0xa1c   :  { %v4199_v30 = vadd.f32 %v4191_v54, %v4146_v47  ;;  %v4149_v53 = vadd.f32 %v4141_v42, %v4096_v27  ;;  %v4244_v21 = vmul.f32 %v13972_v55, %v4227_v13  ;;  %vm13975_vm13 = vcmp.lt.s32.totalorder %v6969_v14, 15  ;;  %v10808_v23 = vpop.permute.xlu0 %3520  ;;  %4058 = vrot.lane.b32.xlu0 %v9267_v22, %s13981_s15  ;;  %v13983_v42 = vld [vmem:[#allocation141_spill] sm:$0xff]  ;;  %v13985_v47 = vld [vmem:[#allocation147_spill] sm:$0xff] }
 0xa1d   :  { %v4331_v58 = vsel %vm13975_vm13, %v10585_v49, %v13974_v59  ;;  %v4201_v11 = vadd.f32 %v4193_v33, %v4148_v24  ;;  %v4298_v35 = vmul.f32 %v13976_v40, %v4278_v5  ;;  %v4282_v45 = vsel %vm1122_vm15, %v10651_v32, %v10519_v44  ;;  %vm13977_vm10 = vmmov %vm13975_vm13  ;;  %13978 = vst [vmem:[#allocation138_spill] sm:$0xff] %v10808_v23 }
 0xa1e   :  { %v4329_v7 = vsel %vm13977_vm10, %v13974_v59, %v4326_v43  ;;  %v4253_v8 = vadd.f32 %v4245_v34, %v4200_v61  ;;  %v4280_v46 = vsel %vm1122_vm15, %v10519_v44, %v10481_v56  ;;  %v4247_v28 = vmul.f32 %v13972_v55, %v4229_v63  ;;  %vm13980_vm9 = vmmov %vm13977_vm10  ;;  %v4420_v54 = vpop.permute.xlu1 %4419  ;;  %3259 = vrot.lane.b32.xlu1 %v13776_v19, %s13543_s3 }
 0xa1f   :  { %v4299_v25 = vmul.f32 %v13976_v40, %v4276_v48  ;;  %v4202_v32 = vadd.f32 %v4194_v16, %v4149_v53  ;;  %v4254_v60 = vadd.f32 %v4246_v15, %v4201_v11  ;;  %v4351_v38 = vmul.f32 %v13979_v29, %v4331_v58  ;;  %vm13982_vm11 = vmmov %vm13980_vm9  ;;  %v13989_v16 = vld [vmem:[#allocation71_spill] sm:$0xff] }
 0xa20   :  { %v4335_v4 = vsel %vm13980_vm9, %v4326_v43, %v10623_v41  ;;  %v4333_v56 = vsel %vm13982_vm11, %v10623_v41, %v10585_v49  ;;  %v4300_v44 = vmul.f32 %v13976_v40, %v4282_v45  ;;  %vm13984_vm13 = vcmp.lt.s32.totalorder %v6969_v14, 14  ;;  %v13986_v43 = vld [vmem:[#allocation143_spill] sm:$0xff]  ;;  %v10839_v49 = vpop.permute.xlu0 %3479  ;;  %4050 = vrot.lane.b32.xlu0 %v9317_v12, %s13981_s15 }
 0xa21   :  { %v4384_v36 = vsel %vm13984_vm13, %v10689_v52, %v13983_v42  ;;  %v4352_v31 = vmul.f32 %v13979_v29, %v4329_v7  ;;  %vm13987_vm10 = vcmp.lt.s32.totalorder %v6969_v14, 13  ;;  %v4252_v13 = vadd.f32 %v4244_v21, %v4199_v30  ;;  %vm13990_vm11 = vmmov %vm13984_vm13  ;;  %v13993_v58 = vld [vmem:[#allocation63_spill] sm:$0xff]  ;;  %v13995_v7 = vld [vmem:[#allocation149_spill] sm:$0xff] }
 0xa22   :  { %v4435_v27 = vsel %vm13987_vm10, %v13986_v43, %v13985_v47  ;;  %v4306_v33 = vadd.f32 %v4298_v35, %v4253_v8  ;;  %v4297_v61 = vmul.f32 %v13976_v40, %v4280_v46  ;;  %v4255_v41 = vadd.f32 %v4247_v28, %v4202_v32  ;;  %vm13988_vm9 = vmmov %vm13987_vm10  ;;  %v4379_v48 = vpop.permute.xlu1 %4378  ;;  %3312 = vrot.lane.b32.xlu1 %v13776_v19, %s13544_s7  ;;  %v13996_v8 = vld [vmem:[#allocation145_spill] sm:$0xff] }
 0xa23   :  { %v4307_v24 = vadd.f32 %v4299_v25, %v4254_v60  ;;  %v4353_v55 = vmul.f32 %v13979_v29, %v4335_v4  ;;  %v4437_v34 = vsel %vm13988_vm9, %v4424_v17, %v13986_v43  ;;  %v4350_v5 = vmul.f32 %v13979_v29, %v4333_v56  ;;  %vm13991_vm13 = vmmov %vm13990_vm11 }
 0xa24   :  { %v4359_v0 = vadd.f32 %v4351_v38, %v4306_v33  ;;  %v4404_v63 = vmul.f32 %v13989_v16, %v4384_v36  ;;  %v4386_v15 = vsel %vm13990_vm11, %v10727_v50, %v10689_v52  ;;  %v4308_v30 = vadd.f32 %v4300_v44, %v4255_v41  ;;  %vm13992_vm10 = vmmov %vm13990_vm11  ;;  %v10866_v45 = vpop.permute.xlu0 %3581  ;;  %4009 = vrot.lane.b32.xlu0 %v9295_v57, %s13557_s19  ;;  %v14000_v36 = vld [vmem:[#allocation77_spill] sm:$0xff] }
 0xa25   :  { %v4360_v53 = vadd.f32 %v4352_v31, %v4307_v24  ;;  %v4382_v21 = vsel %vm13991_vm13, %v13983_v42, %v4379_v48  ;;  %v4388_v59 = vsel %vm13992_vm10, %v4379_v48, %v10727_v50  ;;  %v4457_v11 = vmul.f32 %v13993_v58, %v4437_v34  ;;  %13994 = vst [vmem:[#allocation142_spill] sm:$0xff] %v10866_v45  ;;  %vm13998_vm13 = vmmov %vm13988_vm9 }
 0xa26   :  { %v4439_v40 = vsel %vm13988_vm9, %v4420_v54, %v4424_v17  ;;  %v4405_v52 = vmul.f32 %v13989_v16, %v4382_v21  ;;  %v4406_v35 = vmul.f32 %v13989_v16, %v4388_v59  ;;  %vm13997_vm11 = vcmp.lt.s32.totalorder %v6969_v14, 12  ;;  %v4477_v38 = vpop.permute.xlu1 %4476  ;;  %3365 = vrot.lane.b32.xlu1 %v13776_v19, %s13545_s5  ;;  %v14006_v21 = vld [vmem:[#allocation82_spill] sm:$0xff] }
 0xa27   :  { %v4488_v46 = vsel %vm13997_vm11, %v13996_v8, %v13995_v7  ;;  %v4305_v50 = vadd.f32 %v4297_v61, %v4252_v13  ;;  %v4403_v28 = vmul.f32 %v13989_v16, %v4386_v15  ;;  %v4361_v25 = vadd.f32 %v4353_v55, %v4308_v30  ;;  %vm13999_vm10 = vmmov %vm13997_vm11  ;;  %v14002_v61 = vld [vmem:[#allocation79_spill] sm:$0xff] }
 0xa28   :  { %v4458_v17 = vmul.f32 %v13993_v58, %v4435_v27  ;;  %v4412_v32 = vadd.f32 %v4404_v63, %v4359_v0  ;;  %v4441_v60 = vsel %vm13998_vm13, %v13985_v47, %v4420_v54  ;;  %v4413_v29 = vadd.f32 %v4405_v52, %v4360_v53  ;;  %v10887_v54 = vpop.permute.xlu0 %3573  ;;  %4111 = vrot.lane.b32.xlu0 %v9267_v22, %s14003_s0  ;;  %vm14004_vm9 = vmmov %vm13999_vm10 }
 0xa29   :  { %v4358_v4 = vadd.f32 %v4350_v5, %v4305_v50  ;;  %v4456_v56 = vmul.f32 %v13993_v58, %v4439_v40  ;;  %v4414_v44 = vadd.f32 %v4406_v35, %v4361_v25  ;;  %v4490_v42 = vsel %vm13999_vm10, %v4477_v38, %v13996_v8  ;;  %14001 = vst [vmem:[#allocation123_spill] sm:$0xff] %v10887_v54  ;;  %vm14005_vm11 = vmmov %vm14004_vm9  ;;  %v14008_v8 = vld [vmem:[#allocation103_spill] sm:$0xff]  ;;  %v14010_v25 = vld [vmem:[#allocation25_spill] sm:$0xff] }
 0xa2a   :  { %v4511_v31 = vmul.f32 %v14000_v36, %v4488_v46  ;;  %v4465_v43 = vadd.f32 %v4457_v11, %v4412_v32  ;;  %v4466_v27 = vadd.f32 %v4458_v17, %v4413_v29  ;;  %v4510_v13 = vmul.f32 %v14000_v36, %v4490_v42  ;;  %v4473_v0 = vpop.permute.xlu1 %4472  ;;  %3418 = vrot.lane.b32.xlu1 %v13776_v19, %s13546_s6  ;;  %v14011_v17 = vld [vmem:[#allocation245_spill] sm:$0xff] }
 0xa2b   :  { %v4411_v47 = vadd.f32 %v4403_v28, %v4358_v4  ;;  %v4459_v33 = vmul.f32 %v13993_v58, %v4441_v60  ;;  %v4539_v41 = vmul.f32 %v14002_v61, %v9918_v1  ;;  %v4540_v24 = vmul.f32 %v14002_v61, %v9937_v37  ;;  %v14015_v4 = vld [vmem:[#allocation13_spill] sm:$0xff] }
 0xa2c   :  { %v4519_v55 = vadd.f32 %v4511_v31, %v4466_v27  ;;  %v4518_v34 = vadd.f32 %v4510_v13, %v4465_v43  ;;  %v4492_v63 = vsel %vm14004_vm9, %v4473_v0, %v4477_v38  ;;  %v4494_v15 = vsel %vm14005_vm11, %v13995_v7, %v4473_v0  ;;  %v10905_v30 = vpop.permute.xlu0 %3532  ;;  %4103 = vrot.lane.b32.xlu0 %v9317_v12, %s14003_s0  ;;  %v14027_v0 = vld [vmem:[#allocation171_spill] sm:$0xff] }
 0xa2d   :  { %v4464_v5 = vadd.f32 %v4456_v56, %v4411_v47  ;;  %v4467_v16 = vadd.f32 %v4459_v33, %v4414_v44  ;;  %v4509_v1 = vmul.f32 %v14000_v36, %v4492_v63  ;;  %v4512_v37 = vmul.f32 %v14000_v36, %v4494_v15  ;;  %v14016_v44 = vld [vmem:[#allocation247_spill] sm:$0xff] }
 0xa2e   :  { %v4547_v48 = vadd.f32 %v4539_v41, %v4518_v34  ;;  %v4548_v53 = vadd.f32 %v4540_v24, %v4519_v55  ;;  %v4568_v59 = vmul.f32 %v14006_v21, %v9957_v62  ;;  %v4569_v58 = vmul.f32 %v14006_v21, %v9977_v26  ;;  %v10915_v7 = vpop.permute.xlu1 %4624  ;;  %v14009_v62 = vld [vmem:[#allocation26_spill] sm:$0xff]  ;;  %3471 = vrot.lane.b32.xlu1 %v13776_v19, %s13547_s21 }
 0xa2f   :  { %v4538_v11 = vmul.f32 %v14002_v61, %v9881_v20  ;;  %v4541_v40 = vmul.f32 %v14002_v61, %v9899_v9  ;;  %v4517_v52 = vadd.f32 %v4509_v1, %v4464_v5  ;;  %v4520_v35 = vadd.f32 %v4512_v37, %v4467_v16  ;;  %14007 = vst [vmem:[#allocation140_spill] sm:$0xff] %v10915_v7  ;;  %v14028_v5 = vld [vmem:[#allocation167_spill] sm:$0xff]  ;;  %v14063_v7 = vld [vmem:[#allocation205_spill] sm:$0xff] }
 0xa30   :  { %v4597_v46 = vmul.f32 %v14008_v8, %v9991_v39  ;;  %v4598_v50 = vmul.f32 %v14008_v8, %v14009_v62  ;;  %v4576_v26 = vadd.f32 %v4568_v59, %v4547_v48  ;;  %v4577_v28 = vadd.f32 %v4569_v58, %v4548_v53  ;;  %v10929_v29 = vpop.permute.xlu0 %3634  ;;  %4062 = vrot.lane.b32.xlu0 %v9295_v57, %s13981_s15  ;;  %v14032_v48 = vld [vmem:[#allocation24_spill] sm:$0xff]  ;;  %v14033_v53 = vld [vmem:[#allocation29_spill] sm:$0xff]  ;;  %v14034_v59 = vld [vmem:[#allocation183_spill] sm:$0xff] }
 0xa31   :  { %v4567_v20 = vmul.f32 %v14006_v21, %v14010_v25  ;;  %v4570_v9 = vmul.f32 %v14006_v21, %v14011_v17  ;;  %v4546_v32 = vadd.f32 %v4538_v11, %v4517_v52  ;;  %v4549_v60 = vadd.f32 %v4541_v40, %v4520_v35  ;;  %14012 = vst [vmem:[#allocation23_spill] sm:$0xff] %v10929_v29  ;;  %v14035_v58 = vld [vmem:[#allocation173_spill] sm:$0xff]  ;;  %v14036_v40 = vld [vmem:[#allocation175_spill] sm:$0xff] }
 0xa32   :  { %v10931_v38 = vadd.f32 %v4597_v46, %v4576_v26  ;;  %v10933_v39 = vadd.f32 %v4598_v50, %v4577_v28  ;;  %v4596_v56 = vmul.f32 %v14008_v8, %v14015_v4  ;;  %v4599_v42 = vmul.f32 %v14008_v8, %v14016_v44  ;;  %v10939_v43 = vpop.permute.xlu1 %4673  ;;  %3524 = vrot.lane.b32.xlu1 %v13776_v19, %s13548_s9  ;;  %v14038_v8 = vld [vmem:[#allocation189_spill] sm:$0xff]  ;;  %v14039_v46 = vld [vmem:[#allocation179_spill] sm:$0xff] }
 0xa33   :  { %v4575_v36 = vadd.f32 %v4567_v20, %v4546_v32  ;;  %v4578_v31 = vadd.f32 %v4570_v9, %v4549_v60  ;;  %14017 = vst [vmem:[#allocation148_spill] sm:$0xff] %v10939_v43  ;;  %v2369_v16 = vsel %vm114_vm0, %v14028_v5, %v14027_v0  ;;  %v2350_v21 = vmul.f32 %v14033_v53, %v9267_v22  ;;  %v14041_v50 = vld [vmem:[#allocation181_spill] sm:$0xff]  ;;  %v14043_v28 = vld [vmem:[#allocation195_spill] sm:$0xff] }
 0xa34   :  { %14013 = vst [vmem:[#allocation17_spill] sm:$0xff] %v10931_v38  ;;  %14014 = vst [vmem:[#allocation144_spill] sm:$0xff] %v10933_v39  ;;  %v10947_v13 = vpop.permute.xlu0 %3626  ;;  %4164 = vrot.lane.b32.xlu0 %v9267_v22, %s14022_s28  ;;  %v2395_v1 = vmul.f32 %v14032_v48, %v2369_v16  ;;  %v2475_v11 = vsel %vm170_vm2, %v14035_v58, %v14034_v59  ;;  %v2481_v52 = vsel %vm170_vm2, %v14034_v59, %v14036_v40  ;;  %v14044_v25 = vld [vmem:[#allocation185_spill] sm:$0xff]  ;;  %v14048_v60 = vld [vmem:[#allocation187_spill] sm:$0xff] }
 0xa35   :  { %v10943_v27 = vadd.f32 %v4596_v56, %v4575_v36  ;;  %14019 = vst [vmem:[#allocation36_spill] sm:$0xff] %v10947_v13  ;;  %v10949_v47 = vadd.f32 %v4599_v42, %v4578_v31  ;;  %v11004_v35 = vmul.f32 %v14033_v53, %v13776_v19  ;;  %v11010_v62 = vsel %vm198_vm3, %v14039_v46, %v14038_v8  ;;  %v14050_v44 = vld [vmem:[#allocation49_spill] sm:$0xff]  ;;  %v14052_v16 = vld [vmem:[#allocation191_spill] sm:$0xff]  ;;  %v14068_v13 = vld [vmem:[#allocation56_spill] sm:$0xff] }
 0xa36   :  { %v10951_v33 = vpop.permute.xlu1 %4730  ;;  %3577 = vrot.lane.b32.xlu1 %v13776_v19, %s13549_s22  ;;  %14040 = vst [vmem:[#allocation38_spill] sm:$0xff] %v11010_v62  ;;  %v11016_v26 = vsel %vm198_vm3, %v14038_v8, %v14041_v50  ;;  %v11022_v20 = vsel %vm226_vm4, %v14044_v25, %v14043_v28  ;;  %v11030_v9 = vmul.f32 %v14033_v53, %v9317_v12  ;;  %v14051_v31 = vld [vmem:[#allocation201_spill] sm:$0xff]  ;;  %vm14072_vm13 = vcmp.lt.s32.totalorder %v6969_v14, 103  ;;  %v14105_v58 = vld [vmem:[#allocation68_spill] sm:$0xff] }
 0xa37   :  { %14018 = vst [vmem:[#allocation146_spill] sm:$0xff] %v10943_v27  ;;  %14020 = vst [vmem:[#allocation15_spill] sm:$0xff] %v10949_v47  ;;  %v2403_v32 = vadd.f32 %v2395_v1, %v2350_v21  ;;  %v11036_v4 = vsel %vm226_vm4, %v14043_v28, %v14048_v60  ;;  %v2351_v56 = vmul.f32 %v14033_v53, %v9295_v57  ;;  %v14054_v1 = vld [vmem:[#allocation193_spill] sm:$0xff]  ;;  %v14057_v28 = vld [vmem:[#allocation54_spill] sm:$0xff]  ;;  %vm14081_vm9 = vcmp.lt.s32.totalorder %v6969_v14, 102 }
 0xa38   :  { %14021 = vst [vmem:[#allocation150_spill] sm:$0xff] %v10951_v33  ;;  %v10957_v61 = vpop.permute.xlu0 %3585  ;;  %4156 = vrot.lane.b32.xlu0 %v9317_v12, %s14022_s28  ;;  %14037 = vst [vmem:[#allocation158_spill] sm:$0xff] %v11004_v35  ;;  %v2501_v42 = vmul.f32 %v14050_v44, %v2475_v11  ;;  %v11042_v36 = vmul.f32 %v14050_v44, %v2481_v52  ;;  %v11048_v59 = vsel %vm254_vm5, %v14052_v16, %v14051_v31  ;;  %v14056_v53 = vld [vmem:[#allocation21_spill] sm:$0xff]  ;;  %v14062_v33 = vld [vmem:[#allocation203_spill] sm:$0xff] }
 0xa39   :  { %14042 = vst [vmem:[#allocation4_spill] sm:$0xff] %v11016_v26  ;;  %14045 = vst [vmem:[#allocation162_spill] sm:$0xff] %v11022_v20  ;;  %v11054_v21 = vsel %vm254_vm5, %v14051_v31, %v14054_v1  ;;  %v2554_v11 = vmul.f32 %v14056_v53, %v11010_v62  ;;  %v11064_v52 = vmul.f32 %v14056_v53, %v11016_v26  ;;  %v14059_v47 = vld [vmem:[#allocation197_spill] sm:$0xff]  ;;  %v14079_v1 = vld [vmem:[#allocation231_spill] sm:$0xff] }
 0xa3a   :  { %v10959_v41 = vpop.permute.xlu1 %4722  ;;  %3630 = vrot.lane.b32.xlu1 %v13776_v19, %s13550_s2  ;;  %s14030_s2 = smov 17   ;;  %14047 = vst [vmem:[#allocation164_spill] sm:$0xff] %v11030_v9  ;;  %14049 = vst [vmem:[#allocation39_spill] sm:$0xff] %v11036_v4  ;;  %v11076_v39 = vmul.f32 %v14057_v28, %v11036_v4  ;;  %v14061_v38 = vld [vmem:[#allocation213_spill] sm:$0xff]  ;;  %v14084_v60 = vld [vmem:[#allocation64_spill] sm:$0xff] }
 0xa3b   :  { %14023 = vst [vmem:[#allocation154_spill] sm:$0xff] %v10959_v41  ;;  %14053 = vst [vmem:[#allocation7_spill] sm:$0xff] %v11048_v59  ;;  %v14060_v41 = vld [vmem:[#allocation199_spill] sm:$0xff]  ;;  %v2740_v43 = vsel %vm310_vm7, %v14062_v33, %v14061_v38  ;;  %v2746_v26 = vsel %vm310_vm7, %v14061_v38, %v14063_v7  ;;  %v14080_v16 = vld [vmem:[#allocation221_spill] sm:$0xff] }
 0xa3c   :  { %v10965_v24 = vpop.permute.xlu0 %3687  ;;  %4115 = vrot.lane.b32.xlu0 %v9295_v57, %s14003_s0  ;;  %14055 = vst [vmem:[#allocation168_spill] sm:$0xff] %v11054_v21  ;;  %v14069_v7 = vld [vmem:[#allocation211_spill] sm:$0xff]  ;;  %vm14074_vm10 = vmmov %vm14072_vm13 }
 0xa3d   :  { %14024 = vst [vmem:[#allocation152_spill] sm:$0xff] %v10965_v24  ;;  %v14071_v33 = vld [vmem:[#allocation215_spill] sm:$0xff]  ;;  %vm14086_vm11 = vmmov %vm14081_vm9 }
 0xa3e   :  { %v10967_v55 = vpop.permute.xlu1 %4665  ;;  %3683 = vrot.lane.b32.xlu1 %v13776_v19, %s13551_s27  ;;  %v14085_v44 = vld [vmem:[#allocation223_spill] sm:$0xff]  ;;  %s14278_s27 = smov 118  }
 0xa3f   :  { %14025 = vst [vmem:[#allocation37_spill] sm:$0xff] %v10967_v55  ;;  %v11068_v55 = vmul.f32 %v14057_v28, %v11022_v20  ;;  %v14065_v20 = vld [vmem:[#allocation55_spill] sm:$0xff] }
 0xa40   :  { %v10973_v34 = vpop.permute.xlu0 %3679  ;;  %4217 = vrot.lane.b32.xlu0 %v9267_v22, %s14030_s2  ;;  %v11096_v62 = vmul.f32 %v14065_v20, %v11048_v59 }
 0xa41   :  { %14026 = vst [vmem:[#allocation2_spill] sm:$0xff] %v10973_v34  ;;  %v14067_v34 = vld [vmem:[#allocation209_spill] sm:$0xff] }
 0xa42   :  { %v10979_v63 = vpop.permute.xlu1 %4779  ;;  %3736 = vrot.lane.b32.xlu1 %v13776_v19, %s13552_s24  ;;  %s14270_s24 = smov 119  }
 0xa43   :  { %14029 = vst [vmem:[#allocation156_spill] sm:$0xff] %v10979_v63  ;;  %v14058_v63 = vld [vmem:[#allocation207_spill] sm:$0xff] }
 0xa44   :  { %v10985_v15 = vpop.permute.xlu0 %3638  ;;  %4209 = vrot.lane.b32.xlu0 %v9317_v12, %s14030_s2  ;;  %v2687_v31 = vsel %vm282_vm6, %v14059_v47, %v14058_v63  ;;  %v2693_v27 = vsel %vm282_vm6, %v14058_v63, %v14060_v41  ;;  %v11100_v63 = vmul.f32 %v14065_v20, %v11054_v21  ;;  %v14070_v21 = vld [vmem:[#allocation225_spill] sm:$0xff] }
 0xa45   :  { %14031 = vst [vmem:[#allocation160_spill] sm:$0xff] %v10985_v15  ;;  %v2846_v20 = vsel %vm14072_vm13, %v14071_v33, %v14070_v21  ;;  %v14073_v41 = vld [vmem:[#allocation217_spill] sm:$0xff]  ;;  %vm14089_vm13 = vcmp.lt.s32.totalorder %v6969_v14, 101 }
 0xa46   :  { %v10988_v37 = vpop.permute.xlu1 %2358  ;;  %3789 = vrot.lane.b32.xlu1 %v13776_v19, %s13553_s10  ;;  %v14077_v33 = vld [vmem:[#allocation177_spill] sm:$0xff]  ;;  %s14243_s10 = smov 121  }
 0xa48   :  { %v11026_v17 = vpop.permute.xlu0 %3740  ;;  %4168 = vrot.lane.b32.xlu0 %v9295_v57, %s14022_s28 }
 0xa49   :  { %14046 = vst [vmem:[#allocation166_spill] sm:$0xff] %v11026_v17  ;;  %v14066_v17 = vld [vmem:[#allocation219_spill] sm:$0xff] }
 0xa4a   :  { %v11056_v8 = vpop.permute.xlu1 %2354  ;;  %3842 = vrot.lane.b32.xlu1 %v13776_v19, %s13554_s20  ;;  %v2793_v24 = vsel %vm338_vm8, %v14067_v34, %v14066_v17  ;;  %v2799_v59 = vsel %vm338_vm8, %v14066_v17, %v14069_v7  ;;  %v2852_v34 = vsel %vm14074_vm10, %v14070_v21, %v14073_v41  ;;  %s14075_s20 = smov 16   ;;  %v14078_v21 = vld [vmem:[#allocation50_spill] sm:$0xff]  ;;  %vm14091_vm10 = vmmov %vm14089_vm13 }
 0xa4b   :  { %v2375_v38 = vsel %vm114_vm0, %v14027_v0, %v11056_v8  ;;  %v11130_v0 = vmul.f32 %v14068_v13, %v2693_v27  ;;  %v11143_v41 = vmul.f32 %v14078_v21, %v2793_v24  ;;  %v2899_v27 = vsel %vm14081_vm9, %v14080_v16, %v14079_v1  ;;  %v14088_v16 = vld [vmem:[#allocation227_spill] sm:$0xff] }
 0xa4c   :  { %v11092_v4 = vpop.permute.xlu0 %3732  ;;  %4270 = vrot.lane.b32.xlu0 %v9267_v22, %s14075_s20  ;;  %v11159_v24 = vmul.f32 %v14084_v60, %v2846_v20  ;;  %v11162_v25 = vmul.f32 %v14084_v60, %v2852_v34  ;;  %v14092_v20 = vld [vmem:[#allocation243_spill] sm:$0xff]  ;;  %vm14094_vm9 = vcmp.lt.s32.totalorder %v6969_v14, 100 }
 0xa4d   :  { %14064 = vst [vmem:[#allocation172_spill] sm:$0xff] %v11092_v4  ;;  %v11111_v4 = vmul.f32 %v14068_v13, %v2687_v31  ;;  %v14076_v31 = vld [vmem:[#allocation58_spill] sm:$0xff]  ;;  %v2396_v13 = vmul.f32 %v14032_v48, %v2375_v38  ;;  %v2905_v38 = vsel %vm14086_vm11, %v14079_v1, %v14085_v44  ;;  %v14095_v1 = vld [vmem:[#allocation65_spill] sm:$0xff]  ;;  %vm14097_vm11 = vmmov %vm14094_vm9 }
 0xa4e   :  { %v11125_v47 = vpop.permute.xlu1 %2415  ;;  %v11133_v17 = vmul.f32 %v14076_v31, %v2740_v43  ;;  %v11136_v7 = vmul.f32 %v14076_v31, %v2746_v26  ;;  %v14082_v43 = vld [vmem:[#allocation47_spill] sm:$0xff]  ;;  %3895 = vrot.lane.b32.xlu1 %v13776_v19, %s13555_s18  ;;  %v11156_v31 = vmul.f32 %v14078_v21, %v2799_v59  ;;  %v14093_v21 = vld [vmem:[#allocation233_spill] sm:$0xff]  ;;  %v11185_v44 = vmul.f32 %v14095_v1, %v2899_v27  ;;  %s14194_s18 = smov 13  }
 0xa4f   :  { %v2422_v28 = vsel %vm142_vm1, %v11125_v47, %v14077_v33  ;;  %v3005_v34 = vsel %vm14094_vm9, %v14093_v21, %v14092_v20  ;;  %v2404_v21 = vadd.f32 %v2396_v13, %v2351_v56  ;;  %v14106_v13 = vld [vmem:[#allocation20_spill] sm:$0xff]  ;;  %vm14108_vm9 = vcmp.lt.s32.totalorder %v6969_v14, 83 }
 0xa50   :  { %v2448_v53 = vmul.f32 %v14082_v43, %v2422_v28  ;;  %v11153_v26 = vpop.permute.xlu0 %3691  ;;  %v14087_v28 = vld [vmem:[#allocation237_spill] sm:$0xff]  ;;  %4262 = vrot.lane.b32.xlu0 %v9317_v12, %s14075_s20 }
 0xa51   :  { %14083 = vst [vmem:[#allocation170_spill] sm:$0xff] %v11153_v26  ;;  %v2952_v9 = vsel %vm14089_vm13, %v14088_v16, %v14087_v28  ;;  %v14090_v26 = vld [vmem:[#allocation229_spill] sm:$0xff]  ;;  %v14096_v16 = vld [vmem:[#allocation235_spill] sm:$0xff]  ;;  %vm14100_vm13 = vcmp.lt.s32.totalorder %v6969_v14, 84 }
 0xa52   :  { %v2958_v59 = vsel %vm14091_vm10, %v14087_v28, %v14090_v26  ;;  %v2456_v60 = vadd.f32 %v2448_v53, %v2403_v32  ;;  %v11180_v35 = vpop.permute.xlu1 %2407  ;;  %v3011_v50 = vsel %vm14097_vm11, %v14092_v20, %v14096_v16  ;;  %v14098_v28 = vld [vmem:[#allocation248_spill] sm:$0xff]  ;;  %v14099_v26 = vld [vmem:[#allocation239_spill] sm:$0xff]  ;;  %v14101_v53 = vld [vmem:[#allocation241_spill] sm:$0xff]  ;;  %3948 = vrot.lane.b32.xlu1 %v13776_v19, %s13556_s16  ;;  %s14163_s16 = smov 14  }
 0xa53   :  { %v3058_v46 = vsel %vm14100_vm13, %v14099_v26, %v14098_v28  ;;  %v2428_v32 = vsel %vm142_vm1, %v14077_v33, %v11180_v35  ;;  %vm14102_vm10 = vmmov %vm14100_vm13  ;;  %v11209_v26 = vmul.f32 %v14095_v1, %v2905_v38  ;;  %v14104_v16 = vld [vmem:[#allocation66_spill] sm:$0xff]  ;;  %v14115_v1 = vld [vmem:[#allocation27_spill] sm:$0xff]  ;;  %vm14116_vm13 = vcmp.lt.s32.totalorder %v6969_v14, 82 }
 0xa54   :  { %v3064_v27 = vsel %vm14102_vm10, %v14098_v28, %v14101_v53  ;;  %v2509_v29 = vadd.f32 %v2501_v42, %v2456_v60  ;;  %v2449_v15 = vmul.f32 %v14082_v43, %v2428_v32  ;;  %v11206_v20 = vpop.permute.xlu0 %3793  ;;  %v11212_v40 = vmul.f32 %v14104_v16, %v2952_v9  ;;  %v14107_v60 = vld [vmem:[#allocation244_spill] sm:$0xff]  ;;  %v14109_v42 = vld [vmem:[#allocation246_spill] sm:$0xff]  ;;  %vm14110_vm11 = vmmov %vm14108_vm9  ;;  %4221 = vrot.lane.b32.xlu0 %v9295_v57, %s14030_s2 }
 0xa55   :  { %14103 = vst [vmem:[#allocation30_spill] sm:$0xff] %v11206_v20  ;;  %v11215_v33 = vmul.f32 %v14104_v16, %v2958_v59  ;;  %v11218_v28 = vmul.f32 %v14105_v58, %v3005_v34  ;;  %v3111_v56 = vsel %vm14108_vm9, %v14107_v60, %v14106_v13  ;;  %v3117_v38 = vsel %vm14110_vm11, %v14106_v13, %v14109_v42  ;;  %v14112_v34 = vld [vmem:[#allocation60_spill] sm:$0xff]  ;;  %v14114_v16 = vld [vmem:[#allocation117_spill] sm:$0xff]  ;;  %vm14118_vm10 = vmmov %vm14116_vm13 }
 0xa56   :  { %v2562_v32 = vadd.f32 %v2554_v11, %v2509_v29  ;;  %v2457_v53 = vadd.f32 %v2449_v15, %v2404_v21  ;;  %v11228_v9 = vpop.permute.xlu1 %2464  ;;  %v11233_v59 = vmul.f32 %v14105_v58, %v3011_v50  ;;  %v11236_v20 = vmul.f32 %v14112_v34, %v3058_v46  ;;  %v14117_v15 = vld [vmem:[#allocation28_spill] sm:$0xff]  ;;  %v14119_v21 = vld [vmem:[#allocation126_spill] sm:$0xff]  ;;  %4001 = vrot.lane.b32.xlu1 %v13776_v19, %s13557_s19  ;;  %s14222_s19 = smov 12  }
 0xa57   :  { %v11239_v60 = vmul.f32 %v14112_v34, %v3064_v27  ;;  %v3164_v29 = vsel %vm14116_vm13, %v14115_v1, %v14114_v16  ;;  %v3170_v11 = vsel %vm14118_vm10, %v14114_v16, %v14117_v15  ;;  %v14120_v13 = vld [vmem:[#allocation32_spill] sm:$0xff]  ;;  %vm14121_vm9 = vcmp.lt.s32.totalorder %v6969_v14, 81  ;;  %v14123_v1 = vld [vmem:[#allocation74_spill] sm:$0xff]  ;;  %v14127_v15 = vld [vmem:[#allocation31_spill] sm:$0xff] }
 0xa58   :  { %14111 = vst [vmem:[#allocation11_spill] sm:$0xff] %v11233_v59  ;;  %v3217_v50 = vsel %vm14121_vm9, %v14120_v13, %v14119_v21  ;;  %v2615_v46 = vadd.f32 %v11068_v55, %v2562_v32  ;;  %v2510_v27 = vadd.f32 %v11042_v36, %v2457_v53  ;;  %v11257_v42 = vpop.permute.xlu0 %3785  ;;  %v11260_v34 = vmul.f32 %v14123_v1, %v3111_v56  ;;  %v14125_v16 = vld [vmem:[#allocation122_spill] sm:$0xff]  ;;  %vm14126_vm11 = vmmov %vm14121_vm9  ;;  %v14130_v53 = vld [vmem:[#allocation12_spill] sm:$0xff] }
 0xa59   :  { %14113 = vst [vmem:[#allocation174_spill] sm:$0xff] %v11239_v60  ;;  %14122 = vst [vmem:[#allocation178_spill] sm:$0xff] %v11257_v42  ;;  %v11263_v58 = vmul.f32 %v14123_v1, %v3117_v38  ;;  %v3223_v13 = vsel %vm14126_vm11, %v14119_v21, %v14125_v16  ;;  %v14128_v55 = vld [vmem:[#allocation34_spill] sm:$0xff]  ;;  %vm14129_vm13 = vcmp.lt.s32.totalorder %v6969_v14, 80  ;;  %v14132_v56 = vld [vmem:[#allocation136_spill] sm:$0xff]  ;;  %vm14134_vm9 = vcmp.lt.s32.totalorder %v6969_v14, 79  ;;  %4323 = vrot.lane.b32.xlu0 %v9267_v22, %s13702_s11 }
 0xa5a   :  { %v3270_v36 = vsel %vm14129_vm13, %v14128_v55, %v14127_v15  ;;  %vm14131_vm10 = vmmov %vm14129_vm13  ;;  %v14133_v42 = vld [vmem:[#allocation130_spill] sm:$0xff]  ;;  %v2668_v1 = vadd.f32 %v11096_v62, %v2615_v46  ;;  %v11283_v21 = vpop.permute.xlu1 %2517  ;;  %v14135_v55 = vld [vmem:[#allocation75_spill] sm:$0xff]  ;;  %vm14141_vm13 = vcmp.lt.s32.totalorder %v6969_v14, 78  ;;  %4054 = vrot.lane.b32.xlu1 %v13776_v19, %s13981_s15 }
 0xa5b   :  { %14124 = vst [vmem:[#allocation176_spill] sm:$0xff] %v11263_v58  ;;  %v3276_v32 = vsel %vm14131_vm10, %v14127_v15, %v14130_v53  ;;  %v3323_v38 = vsel %vm14134_vm9, %v14133_v42, %v14132_v56  ;;  %v2563_v58 = vadd.f32 %v11064_v52, %v2510_v27  ;;  %v11288_v16 = vmul.f32 %v14135_v55, %v3164_v29  ;;  %v14137_v15 = vld [vmem:[#allocation76_spill] sm:$0xff]  ;;  %vm14139_vm11 = vmmov %vm14134_vm9 }
 0xa5c   :  { %v11291_v60 = vmul.f32 %v14135_v55, %v3170_v11  ;;  %v11294_v53 = vmul.f32 %v14137_v15, %v3217_v50  ;;  %v14138_v59 = vld [vmem:[#allocation128_spill] sm:$0xff]  ;;  %vm14143_vm10 = vmmov %vm14141_vm13  ;;  %v2721_v11 = vadd.f32 %v11111_v4, %v2668_v1  ;;  %v11312_v42 = vpop.permute.xlu0 %3744  ;;  %v14146_v4 = vld [vmem:[#allocation134_spill] sm:$0xff]  ;;  %vm14147_vm9 = vcmp.lt.s32.totalorder %v6969_v14, 62 }
 0xa5d   :  { %v3329_v62 = vsel %vm14139_vm11, %v14132_v56, %v14138_v59  ;;  %v14140_v52 = vld [vmem:[#allocation8_spill] sm:$0xff]  ;;  %v2616_v50 = vadd.f32 %v11076_v39, %v2563_v58  ;;  %v11315_v56 = vmul.f32 %v14137_v15, %v3223_v13  ;;  %v14144_v59 = vld [vmem:[#allocation78_spill] sm:$0xff]  ;;  %v3429_v39 = vsel %vm14147_vm9, %v14146_v4, %v10743_v2  ;;  %vm14148_vm11 = vmmov %vm14147_vm9  ;;  %4315 = vrot.lane.b32.xlu0 %v9317_v12, %s13702_s11 }
 0xa5e   :  { %14136 = vst [vmem:[#allocation42_spill] sm:$0xff] %v11291_v60  ;;  %v3376_v46 = vsel %vm14141_vm13, %v14140_v52, %v10639_v51  ;;  %v14142_v27 = vld [vmem:[#allocation132_spill] sm:$0xff]  ;;  %v11318_v55 = vmul.f32 %v14144_v59, %v3270_v36  ;;  %v11321_v52 = vmul.f32 %v14144_v59, %v3276_v32  ;;  %v14145_v60 = vld [vmem:[#allocation70_spill] sm:$0xff]  ;;  %v3435_v58 = vsel %vm14148_vm11, %v10743_v2, %v10601_v18  ;;  %v2571_v36 = vpop.permute.xlu1 %2570 }
 0xa5f   :  { %v3382_v29 = vsel %vm14143_vm10, %v10639_v51, %v14142_v27  ;;  %v11324_v51 = vmul.f32 %v14145_v60, %v3323_v38  ;;  %v2774_v1 = vadd.f32 %v11133_v17, %v2721_v11  ;;  %v2669_v13 = vadd.f32 %v11100_v63, %v2616_v50  ;;  %v14149_v38 = vld [vmem:[#allocation84_spill] sm:$0xff]  ;;  %4107 = vrot.lane.b32.xlu1 %v13776_v19, %s14003_s0  ;;  %v14153_v11 = vld [vmem:[#allocation85_spill] sm:$0xff] }
 0xa60   :  { %v11339_v32 = vmul.f32 %v14145_v60, %v3329_v62  ;;  %v11342_v27 = vmul.f32 %v14149_v38, %v3376_v46  ;;  %v11345_v4 = vmul.f32 %v14149_v38, %v3382_v29  ;;  %vm14150_vm13 = vcmp.lt.s32.totalorder %v6969_v14, 61  ;;  %v11363_v29 = vpop.permute.xlu0 %3846 }
 0xa61   :  { %v3482_v2 = vsel %vm14150_vm13, %v10677_v6, %v10839_v49  ;;  %vm14151_vm10 = vmmov %vm14150_vm13  ;;  %vm14152_vm9 = vcmp.lt.s32.totalorder %v6969_v14, 60  ;;  %v2827_v62 = vadd.f32 %v11143_v41, %v2774_v1  ;;  %v2722_v46 = vadd.f32 %v11130_v0, %v2669_v13  ;;  %4274 = vrot.lane.b32.xlu0 %v9295_v57, %s14075_s20  ;;  %v14156_v13 = vld [vmem:[#allocation86_spill] sm:$0xff] }
 0xa62   :  { %v3488_v63 = vsel %vm14151_vm10, %v10839_v49, %v10705_v10  ;;  %v3535_v17 = vsel %vm14152_vm9, %v10774_v3, %v10905_v30  ;;  %v11366_v50 = vmul.f32 %v14153_v11, %v3429_v39  ;;  %v11369_v6 = vmul.f32 %v14153_v11, %v3435_v58  ;;  %vm14154_vm11 = vmmov %vm14152_vm9 }
 0xa63   :  { %v3541_v49 = vsel %vm14154_vm11, %v10905_v30, %v10808_v23  ;;  %vm14155_vm13 = vcmp.lt.s32.totalorder %v6969_v14, 59  ;;  %v2371_v0 = vsel %vm114_vm0, %v10988_v37, %v14028_v5  ;;  %v2373_v39 = vsel %vm114_vm0, %v11056_v8, %v10988_v37  ;;  %v2624_v30 = vpop.permute.xlu1 %2623  ;;  %v14157_v5 = vld [vmem:[#allocation88_spill] sm:$0xff]  ;;  %4160 = vrot.lane.b32.xlu1 %v13776_v19, %s14022_s28 }
 0xa64   :  { %v3588_v41 = vsel %vm14155_vm13, %v10866_v45, %v10957_v61  ;;  %v2880_v58 = vadd.f32 %v11159_v24, %v2827_v62  ;;  %v2775_v1 = vadd.f32 %v11136_v7, %v2722_v46  ;;  %v11392_v45 = vmul.f32 %v14156_v13, %v3482_v2  ;;  %vm14158_vm0 = vmmov %vm14155_vm13  ;;  %v14159_v7 = vld [vmem:[#allocation169_spill] sm:$0xff]  ;;  %v14160_v62 = vld [vmem:[#allocation80_spill] sm:$0xff] }
 0xa65   :  { %v11395_v23 = vmul.f32 %v14156_v13, %v3488_v63  ;;  %v11398_v3 = vmul.f32 %v14157_v5, %v3535_v17  ;;  %v3594_v37 = vsel %vm14158_vm0, %v10957_v61, %v10887_v54  ;;  %v2424_v8 = vsel %vm142_vm1, %v14159_v7, %v11125_v47  ;;  %v11416_v17 = vpop.permute.xlu0 %3838  ;;  %4376 = vrot.lane.b32.xlu0 %v9267_v22, %s14163_s16  ;;  %v14173_v54 = vld [vmem:[#allocation185_spill] sm:$0xff] }
 0xa66   :  { %v2933_v24 = vadd.f32 %v11185_v44, %v2880_v58  ;;  %v2426_v2 = vsel %vm142_vm1, %v11180_v35, %v14159_v7  ;;  %v2828_v63 = vadd.f32 %v11156_v31, %v2775_v1  ;;  %v11419_v61 = vmul.f32 %v14157_v5, %v3541_v49  ;;  %v14161_v31 = vld [vmem:[#allocation173_spill] sm:$0xff]  ;;  %v14162_v7 = vld [vmem:[#allocation175_spill] sm:$0xff] }
 0xa67   :  { %v11422_v46 = vmul.f32 %v14160_v62, %v3588_v41  ;;  %v2394_v47 = vmul.f32 %v14032_v48, %v2371_v0  ;;  %v2393_v44 = vmul.f32 %v14032_v48, %v2373_v39  ;;  %v2477_v1 = vsel %vm170_vm2, %v11228_v9, %v14161_v31  ;;  %v2677_v41 = vpop.permute.xlu1 %2676  ;;  %v14165_v0 = vld [vmem:[#allocation23_spill] sm:$0xff]  ;;  %4213 = vrot.lane.b32.xlu1 %v13776_v19, %s14030_s2 }
 0xa68   :  { %v2986_v58 = vadd.f32 %v11212_v40, %v2933_v24  ;;  %v2881_v35 = vadd.f32 %v11162_v25, %v2828_v63  ;;  %v2479_v49 = vsel %vm170_vm2, %v14162_v7, %v11228_v9  ;;  %v11439_v48 = vmul.f32 %v14160_v62, %v3594_v37  ;;  %v14164_v40 = vld [vmem:[#allocation160_spill] sm:$0xff]  ;;  %v14167_v31 = vld [vmem:[#allocation179_spill] sm:$0xff]  ;;  %v14168_v7 = vld [vmem:[#allocation181_spill] sm:$0xff] }
 0xa69   :  { %vm14166_vm1 = vcmp.lt.s32.totalorder %v6969_v14, 58  ;;  %v2447_v39 = vmul.f32 %v14082_v43, %v2424_v8  ;;  %v2446_v24 = vmul.f32 %v14082_v43, %v2426_v2  ;;  %v11455_v37 = vsel %vm198_vm3, %v11283_v21, %v14167_v31  ;;  %v11465_v43 = vpop.permute.xlu0 %3797  ;;  %4368 = vrot.lane.b32.xlu0 %v9317_v12, %s14163_s16 }
 0xa6a   :  { %v11445_v25 = vsel %vm14166_vm1, %v14165_v0, %v14164_v40  ;;  %v3039_v63 = vadd.f32 %v11218_v28, %v2986_v58  ;;  %v2934_v9 = vadd.f32 %v11209_v26, %v2881_v35  ;;  %v11461_v0 = vsel %vm198_vm3, %v14168_v7, %v11283_v21  ;;  %v14170_v28 = vld [vmem:[#allocation158_spill] sm:$0xff]  ;;  %v14171_v26 = vld [vmem:[#allocation164_spill] sm:$0xff]  ;;  %v14172_v58 = vld [vmem:[#allocation49_spill] sm:$0xff] }
 0xa6b   :  { %14169 = vst [vmem:[#allocation116_spill] sm:$0xff] %v11461_v0  ;;  %v2402_v8 = vadd.f32 %v2394_v47, %v14170_v28  ;;  %v2401_v2 = vadd.f32 %v2393_v44, %v14171_v26  ;;  %v2499_v35 = vmul.f32 %v14172_v58, %v2479_v49  ;;  %v2500_v31 = vmul.f32 %v14172_v58, %v2477_v1  ;;  %v14174_v7 = vld [vmem:[#allocation187_spill] sm:$0xff]  ;;  %v2730_v47 = vpop.permute.xlu1 %2729  ;;  %v14180_v26 = vld [vmem:[#allocation193_spill] sm:$0xff]  ;;  %vm14197_vm2 = vmmov %vm14166_vm1 }
 0xa6c   :  { %v3092_v62 = vadd.f32 %v11236_v20, %v3039_v63  ;;  %v2987_v5 = vadd.f32 %v11215_v33, %v2934_v9  ;;  %v11476_v21 = vsel %vm226_vm4, %v2571_v36, %v14173_v54  ;;  %v11481_v13 = vsel %vm226_vm4, %v14174_v7, %v2571_v36  ;;  %v14176_v20 = vld [vmem:[#allocation21_spill] sm:$0xff]  ;;  %v14177_v63 = vld [vmem:[#allocation11_spill] sm:$0xff]  ;;  %4266 = vrot.lane.b32.xlu1 %v13776_v19, %s14075_s20  ;;  %v14183_v7 = vld [vmem:[#allocation174_spill] sm:$0xff] }
 0xa6d   :  { %14175 = vst [vmem:[#allocation180_spill] sm:$0xff] %v11481_v13  ;;  %v2455_v44 = vadd.f32 %v2447_v39, %v2402_v8  ;;  %v2454_v1 = vadd.f32 %v2446_v24, %v2401_v2  ;;  %v2552_v49 = vmul.f32 %v14176_v20, %v11461_v0  ;;  %v2553_v33 = vmul.f32 %v14176_v20, %v11455_v37  ;;  %v14178_v28 = vld [vmem:[#allocation191_spill] sm:$0xff]  ;;  %v11503_v24 = vpop.permute.xlu0 %3899 }
 0xa6e   :  { %v3145_v54 = vadd.f32 %v11260_v34, %v3092_v62  ;;  %v3040_v9 = vadd.f32 %v14177_v63, %v2987_v5  ;;  %v11494_v36 = vsel %vm254_vm5, %v2624_v30, %v14178_v28  ;;  %v11499_v39 = vsel %vm254_vm5, %v14180_v26, %v2624_v30  ;;  %v14182_v34 = vld [vmem:[#allocation54_spill] sm:$0xff]  ;;  %v14184_v63 = vld [vmem:[#allocation197_spill] sm:$0xff]  ;;  %v14185_v28 = vld [vmem:[#allocation199_spill] sm:$0xff]  ;;  %4327 = vrot.lane.b32.xlu0 %v9295_v57, %s13702_s11 }
 0xa6f   :  { %14179 = vst [vmem:[#allocation184_spill] sm:$0xff] %v11494_v36  ;;  %14181 = vst [vmem:[#allocation182_spill] sm:$0xff] %v11499_v39  ;;  %v2507_v8 = vadd.f32 %v2499_v35, %v2454_v1  ;;  %v2508_v2 = vadd.f32 %v2500_v31, %v2455_v44  ;;  %v2605_v5 = vmul.f32 %v14182_v34, %v11481_v13  ;;  %v2783_v35 = vpop.permute.xlu1 %2782  ;;  %v14186_v1 = vld [vmem:[#allocation55_spill] sm:$0xff]  ;;  %vm14200_vm3 = vcmp.lt.s32.totalorder %v6969_v14, 57 }
 0xa70   :  { %v2606_v62 = vmul.f32 %v14182_v34, %v11476_v21  ;;  %v3198_v58 = vadd.f32 %v11288_v16, %v3145_v54  ;;  %v3093_v20 = vadd.f32 %v14183_v7, %v3040_v9  ;;  %v2689_v30 = vsel %vm282_vm6, %v2677_v41, %v14184_v63  ;;  %v14187_v9 = vld [vmem:[#allocation176_spill] sm:$0xff]  ;;  %v14188_v63 = vld [vmem:[#allocation203_spill] sm:$0xff]  ;;  %4319 = vrot.lane.b32.xlu1 %v13776_v19, %s13702_s11  ;;  %s14433_s11 = sld [smem:[#allocation259_spill]] }
 0xa71   :  { %v2691_v26 = vsel %vm282_vm6, %v14185_v28, %v2677_v41  ;;  %v2560_v31 = vadd.f32 %v2552_v49, %v2507_v8  ;;  %v2561_v44 = vadd.f32 %v2553_v33, %v2508_v2  ;;  %v2658_v34 = vmul.f32 %v14186_v1, %v11499_v39  ;;  %v14189_v28 = vld [vmem:[#allocation205_spill] sm:$0xff]  ;;  %v11533_v49 = vpop.permute.xlu0 %3891  ;;  %v14190_v2 = vld [vmem:[#allocation56_spill] sm:$0xff] }
 0xa72   :  { %v2659_v16 = vmul.f32 %v14186_v1, %v11494_v36  ;;  %v3251_v54 = vadd.f32 %v11294_v53, %v3198_v58  ;;  %v3146_v7 = vadd.f32 %v14187_v9, %v3093_v20  ;;  %v2742_v41 = vsel %vm310_vm7, %v2730_v47, %v14188_v63  ;;  %v14191_v20 = vld [vmem:[#allocation42_spill] sm:$0xff]  ;;  %v14192_v63 = vld [vmem:[#allocation209_spill] sm:$0xff]  ;;  %4429 = vrot.lane.b32.xlu0 %v9267_v22, %s14194_s18 }
 0xa73   :  { %v2744_v13 = vsel %vm310_vm7, %v14189_v28, %v2730_v47  ;;  %v2613_v33 = vadd.f32 %v2605_v5, %v2560_v31  ;;  %v2614_v8 = vadd.f32 %v2606_v62, %v2561_v44  ;;  %v2711_v1 = vmul.f32 %v14190_v2, %v2691_v26  ;;  %v14193_v47 = vld [vmem:[#allocation211_spill] sm:$0xff]  ;;  %v2836_v0 = vpop.permute.xlu1 %2835  ;;  %v14195_v26 = vld [vmem:[#allocation58_spill] sm:$0xff]  ;;  %v14196_v31 = vld [vmem:[#allocation36_spill] sm:$0xff] }
 0xa74   :  { %v2712_v53 = vmul.f32 %v14190_v2, %v2689_v30  ;;  %v3304_v58 = vadd.f32 %v11318_v55, %v3251_v54  ;;  %v3199_v9 = vadd.f32 %v14191_v20, %v3146_v7  ;;  %v2795_v39 = vsel %vm338_vm8, %v2783_v35, %v14192_v63  ;;  %v14198_v7 = vld [vmem:[#allocation170_spill] sm:$0xff]  ;;  %v14199_v2 = vld [vmem:[#allocation152_spill] sm:$0xff]  ;;  %4372 = vrot.lane.b32.xlu1 %v13776_v19, %s14163_s16 }
 0xa75   :  { %v2797_v28 = vsel %vm338_vm8, %v14193_v47, %v2783_v35  ;;  %v2666_v5 = vadd.f32 %v2658_v34, %v2613_v33  ;;  %v2667_v62 = vadd.f32 %v2659_v16, %v2614_v8  ;;  %v2764_v30 = vmul.f32 %v14195_v26, %v2744_v13  ;;  %v11561_v13 = vpop.permute.xlu0 %3850  ;;  %vm14212_vm8 = vmmov %vm14200_vm3 }
 0xa76   :  { %v2765_v55 = vmul.f32 %v14195_v26, %v2742_v41  ;;  %v3647_v44 = vsel %vm14197_vm2, %v14164_v40, %v14196_v31  ;;  %v3357_v54 = vadd.f32 %v11324_v51, %v3304_v58  ;;  %v3694_v35 = vsel %vm14200_vm3, %v14199_v2, %v14198_v7  ;;  %v14201_v41 = vld [vmem:[#allocation50_spill] sm:$0xff]  ;;  %v14202_v58 = vld [vmem:[#allocation215_spill] sm:$0xff]  ;;  %4421 = vrot.lane.b32.xlu0 %v9317_v12, %s14194_s18 }
 0xa77   :  { %v3252_v20 = vadd.f32 %v11315_v56, %v3199_v9  ;;  %v2719_v34 = vadd.f32 %v2711_v1, %v2666_v5  ;;  %v2720_v16 = vadd.f32 %v2712_v53, %v2667_v62  ;;  %v2817_v33 = vmul.f32 %v14201_v41, %v2797_v28  ;;  %v14204_v56 = vld [vmem:[#allocation217_spill] sm:$0xff]  ;;  %v2889_v47 = vpop.permute.xlu1 %2888  ;;  %v14206_v1 = vld [vmem:[#allocation94_spill] sm:$0xff]  ;;  %v14209_v26 = vld [vmem:[#allocation223_spill] sm:$0xff] }
 0xa78   :  { %v2818_v40 = vmul.f32 %v14201_v41, %v2795_v39  ;;  %v3410_v51 = vadd.f32 %v11342_v27, %v3357_v54  ;;  %vm14203_vm4 = vcmp.lt.s32.totalorder %v6969_v14, 103  ;;  %v3667_v53 = vmul.f32 %v14206_v1, %v11445_v25  ;;  %v14207_v62 = vld [vmem:[#allocation221_spill] sm:$0xff]  ;;  %4425 = vrot.lane.b32.xlu1 %v13776_v19, %s14194_s18 }
 0xa79   :  { %v3305_v8 = vadd.f32 %v11321_v52, %v3252_v20  ;;  %v2848_v63 = vsel %vm14203_vm4, %v2836_v0, %v14202_v58  ;;  %vm14205_vm5 = vmmov %vm14203_vm4  ;;  %v11578_v39 = vmul.f32 %v14206_v1, %v3647_v44  ;;  %v2772_v27 = vadd.f32 %v2764_v30, %v2719_v34  ;;  %v11590_v25 = vpop.permute.xlu0 %3952  ;;  %v14211_v44 = vld [vmem:[#allocation2_spill] sm:$0xff]  ;;  %v14213_v30 = vld [vmem:[#allocation95_spill] sm:$0xff] }
 0xa7a   :  { %v2850_v9 = vsel %vm14205_vm5, %v14204_v56, %v2836_v0  ;;  %v2773_v52 = vadd.f32 %v2765_v55, %v2720_v16  ;;  %v3463_v28 = vadd.f32 %v11366_v50, %v3410_v51  ;;  %vm14208_vm6 = vcmp.lt.s32.totalorder %v6969_v14, 102  ;;  %v14214_v55 = vld [vmem:[#allocation64_spill] sm:$0xff]  ;;  %4380 = vrot.lane.b32.xlu0 %v9295_v57, %s14163_s16  ;;  %v14215_v56 = vld [vmem:[#allocation65_spill] sm:$0xff]  ;;  %s14434_s16 = sld [smem:[#allocation260_spill]] }
 0xa7b   :  { %v3358_v5 = vadd.f32 %v11339_v32, %v3305_v8  ;;  %v2901_v0 = vsel %vm14208_vm6, %v2889_v47, %v14207_v62  ;;  %vm14210_vm7 = vmmov %vm14208_vm6  ;;  %v3700_v50 = vsel %vm14212_vm8, %v14198_v7, %v14211_v44  ;;  %v3720_v32 = vmul.f32 %v14213_v30, %v3694_v35  ;;  %v2942_v58 = vpop.permute.xlu1 %2941  ;;  %v14216_v62 = vld [vmem:[#allocation227_spill] sm:$0xff] }
 0xa7c   :  { %v2903_v54 = vsel %vm14210_vm7, %v14209_v26, %v2889_v47  ;;  %v2870_v20 = vmul.f32 %v14214_v55, %v2850_v9  ;;  %v2871_v34 = vmul.f32 %v14214_v55, %v2848_v63  ;;  %v3516_v16 = vadd.f32 %v11392_v45, %v3463_v28  ;;  %v14218_v9 = vld [vmem:[#allocation229_spill] sm:$0xff]  ;;  %v14220_v63 = vld [vmem:[#allocation166_spill] sm:$0xff]  ;;  %4478 = vrot.lane.b32.xlu1 %v13776_v19, %s14222_s19 }
 0xa7d   :  { %v3411_v41 = vadd.f32 %v11345_v4, %v3358_v5  ;;  %v2825_v51 = vadd.f32 %v2817_v33, %v2772_v27  ;;  %v2826_v8 = vadd.f32 %v2818_v40, %v2773_v52  ;;  %v2923_v47 = vmul.f32 %v14215_v56, %v2903_v54  ;;  %v11620_v52 = vpop.permute.xlu0 %3944 }
 0xa7e   :  { %v2924_v7 = vmul.f32 %v14215_v56, %v2901_v0  ;;  %vm14217_vm10 = vcmp.lt.s32.totalorder %v6969_v14, 101  ;;  %v3569_v4 = vadd.f32 %v11398_v3, %v3516_v16  ;;  %v3721_v33 = vmul.f32 %v14213_v30, %v3700_v50  ;;  %v14223_v0 = vld [vmem:[#allocation66_spill] sm:$0xff]  ;;  %v14224_v50 = vld [vmem:[#allocation172_spill] sm:$0xff]  ;;  %4482 = vrot.lane.b32.xlu0 %v9267_v22, %s14222_s19 }
 0xa7f   :  { %v2954_v35 = vsel %vm14217_vm10, %v2942_v58, %v14216_v62  ;;  %vm14219_vm9 = vmmov %vm14217_vm10  ;;  %v3464_v40 = vadd.f32 %v11369_v6, %v3411_v41  ;;  %vm14221_vm11 = vcmp.lt.s32.totalorder %v6969_v14, 56  ;;  %v2878_v28 = vadd.f32 %v2870_v20, %v2825_v51  ;;  %v14226_v16 = vld [vmem:[#allocation30_spill] sm:$0xff]  ;;  %v2995_v20 = vpop.permute.xlu1 %2994  ;;  %v14232_v62 = vld [vmem:[#allocation68_spill] sm:$0xff] }
 0xa80   :  { %v2956_v45 = vsel %vm14219_vm9, %v14218_v9, %v2942_v58  ;;  %v3747_v27 = vsel %vm14221_vm11, %v14220_v63, %v11312_v42  ;;  %v2879_v5 = vadd.f32 %v2871_v34, %v2826_v8  ;;  %v2977_v3 = vmul.f32 %v14223_v0, %v2954_v35  ;;  %vm14225_vm13 = vmmov %vm14221_vm11  ;;  %v14228_v8 = vld [vmem:[#allocation233_spill] sm:$0xff]  ;;  %4486 = vrot.lane.b32.xlu1 %v9295_v57, %s14222_s19 }
 0xa81   :  { %v2976_v26 = vmul.f32 %v14223_v0, %v2956_v45  ;;  %v3622_v54 = vadd.f32 %v11422_v46, %v3569_v4  ;;  %v3517_v6 = vadd.f32 %v11395_v23, %v3464_v40  ;;  %v3753_v55 = vsel %vm14225_vm13, %v11312_v42, %v14224_v50  ;;  %v14230_v46 = vld [vmem:[#allocation235_spill] sm:$0xff]  ;;  %v14234_v4 = vld [vmem:[#allocation178_spill] sm:$0xff]  ;;  %v14236_v0 = vld [vmem:[#allocation96_spill] sm:$0xff] }
 0xa82   :  { %vm14227_vm0 = vcmp.lt.s32.totalorder %v6969_v14, 40  ;;  %v2931_v34 = vadd.f32 %v2923_v47, %v2878_v28  ;;  %v2932_v51 = vadd.f32 %v2924_v7, %v2879_v5  ;;  %vm14229_vm1 = vcmp.lt.s32.totalorder %v6969_v14, 100  ;;  %v3904_v47 = vpop.permute.xlu0 %3903  ;;  %v14233_v7 = vld [vmem:[#allocation83_spill] sm:$0xff]  ;;  %4474 = vrot.lane.b32.xlu0 %v9317_v12, %s14222_s19 }
 0xa83   :  { %v3800_v41 = vsel %vm14227_vm0, %v14226_v16, %v11465_v43  ;;  %v3007_v23 = vsel %vm14229_vm1, %v2995_v20, %v14228_v8  ;;  %vm14231_vm2 = vmmov %vm14229_vm1  ;;  %v3675_v42 = vadd.f32 %v3667_v53, %v3622_v54  ;;  %v3570_v56 = vadd.f32 %v11419_v61, %v3517_v6 }
 0xa84   :  { %v3009_v58 = vsel %vm14231_vm2, %v14230_v46, %v2995_v20  ;;  %v3030_v9 = vmul.f32 %v14232_v62, %v3007_v23  ;;  %v3773_v45 = vmul.f32 %v14233_v7, %v3747_v27  ;;  %vm14235_vm3 = vmmov %vm14227_vm0  ;;  %v2984_v28 = vadd.f32 %v2976_v26, %v2931_v34  ;;  %v3048_v20 = vpop.permute.xlu1 %3047  ;;  %v14238_v23 = vld [vmem:[#allocation239_spill] sm:$0xff]  ;;  %4622 = vrot.lane.b32.xlu1 %v9267_v22, %s14243_s10 }
 0xa85   :  { %v3029_v35 = vmul.f32 %v14232_v62, %v3009_v58  ;;  %v3806_v40 = vsel %vm14235_vm3, %v11465_v43, %v14234_v4  ;;  %v2985_v5 = vadd.f32 %v2977_v3, %v2932_v51  ;;  %v3728_v53 = vadd.f32 %v3720_v32, %v3675_v42  ;;  %v14240_v32 = vld [vmem:[#allocation241_spill] sm:$0xff] }
 0xa86   :  { %v3623_v61 = vadd.f32 %v11439_v48, %v3570_v56  ;;  %v3826_v54 = vmul.f32 %v14236_v0, %v3800_v41  ;;  %vm14237_vm4 = vcmp.lt.s32.totalorder %v6969_v14, 39  ;;  %vm14239_vm5 = vcmp.lt.s32.totalorder %v6969_v14, 84  ;;  %v14242_v41 = vld [vmem:[#allocation60_spill] sm:$0xff]  ;;  %v11671_v46 = vpop.permute.xlu0 %4005  ;;  %4433 = vrot.lane.b32.xlu0 %v9295_v57, %s14194_s18 }
 0xa87   :  { %v3853_v6 = vsel %vm14237_vm4, %v11363_v29, %v11561_v13  ;;  %v3037_v27 = vadd.f32 %v3029_v35, %v2984_v28  ;;  %v3038_v8 = vadd.f32 %v3030_v9, %v2985_v5  ;;  %v3060_v43 = vsel %vm14239_vm5, %v3048_v20, %v14238_v23  ;;  %vm14241_vm6 = vmmov %vm14239_vm5 }
 0xa88   :  { %v3062_v48 = vsel %vm14241_vm6, %v14240_v32, %v3048_v20  ;;  %v3676_v26 = vadd.f32 %v11578_v39, %v3623_v61  ;;  %v3781_v3 = vadd.f32 %v3773_v45, %v3728_v53  ;;  %v3083_v51 = vmul.f32 %v14242_v41, %v3060_v43  ;;  %v3101_v28 = vpop.permute.xlu1 %3100  ;;  %vm14244_vm7 = vmmov %vm14237_vm4  ;;  %v14245_v45 = vld [vmem:[#allocation97_spill] sm:$0xff]  ;;  %v14246_v53 = vld [vmem:[#allocation244_spill] sm:$0xff]  ;;  %4618 = vrot.lane.b32.xlu1 %v13776_v19, %s14243_s10 }
 0xa89   :  { %v3082_v34 = vmul.f32 %v14242_v41, %v3062_v48  ;;  %v3774_v58 = vmul.f32 %v14233_v7, %v3753_v55  ;;  %v3827_v42 = vmul.f32 %v14236_v0, %v3806_v40  ;;  %v3859_v39 = vsel %vm14244_vm7, %v11561_v13, %v11416_v17  ;;  %v14248_v40 = vld [vmem:[#allocation246_spill] sm:$0xff] }
 0xa8a   :  { %v3729_v56 = vadd.f32 %v3721_v33, %v3676_v26  ;;  %v3834_v62 = vadd.f32 %v3826_v54, %v3781_v3  ;;  %v3091_v9 = vadd.f32 %v3083_v51, %v3038_v8  ;;  %v3879_v5 = vmul.f32 %v14245_v45, %v3853_v6  ;;  %v14251_v20 = vld [vmem:[#allocation74_spill] sm:$0xff]  ;;  %v11695_v13 = vpop.permute.xlu0 %3997  ;;  %4626 = vrot.lane.b32.xlu0 %v9295_v57, %s14243_s10  ;;  %v14254_v51 = vld [vmem:[#allocation27_spill] sm:$0xff] }
 0xa8b   :  { %v3090_v35 = vadd.f32 %v3082_v34, %v3037_v27  ;;  %vm14247_vm8 = vcmp.lt.s32.totalorder %v6969_v14, 83  ;;  %vm14250_vm9 = vcmp.lt.s32.totalorder %v6969_v14, 38  ;;  %v3880_v32 = vmul.f32 %v14245_v45, %v3859_v39  ;;  %v14253_v41 = vld [vmem:[#allocation98_spill] sm:$0xff] }
 0xa8c   :  { %v3113_v55 = vsel %vm14247_vm8, %v3101_v28, %v14246_v53  ;;  %vm14249_vm10 = vmmov %vm14247_vm8  ;;  %v3782_v61 = vadd.f32 %v3774_v58, %v3729_v56  ;;  %v3906_v54 = vsel %vm14250_vm9, %v11503_v24, %v3904_v47  ;;  %v3887_v6 = vadd.f32 %v3879_v5, %v3834_v62  ;;  %v3154_v3 = vpop.permute.xlu1 %3153  ;;  %v14256_v56 = vld [vmem:[#allocation28_spill] sm:$0xff]  ;;  %4679 = vrot.lane.b32.xlu1 %v9295_v57, %s13736_s1 }
 0xa8d   :  { %v3115_v33 = vsel %vm14249_vm10, %v14248_v40, %v3101_v28  ;;  %v3136_v8 = vmul.f32 %v14251_v20, %v3113_v55  ;;  %vm14252_vm11 = vmmov %vm14250_vm9  ;;  %v3932_v34 = vmul.f32 %v14253_v41, %v3906_v54  ;;  %vm14255_vm13 = vcmp.lt.s32.totalorder %v6969_v14, 82  ;;  %v14258_v28 = vld [vmem:[#allocation75_spill] sm:$0xff] }
 0xa8e   :  { %v3135_v27 = vmul.f32 %v14251_v20, %v3115_v33  ;;  %v3912_v23 = vsel %vm14252_vm11, %v3904_v47, %v11533_v49  ;;  %v3835_v43 = vadd.f32 %v3827_v42, %v3782_v61  ;;  %v3166_v58 = vsel %vm14255_vm13, %v3154_v3, %v14254_v51  ;;  %vm14257_vm0 = vmmov %vm14255_vm13  ;;  %v3957_v39 = vpop.permute.xlu0 %3956  ;;  %v14261_v54 = vld [vmem:[#allocation99_spill] sm:$0xff]  ;;  %4675 = vrot.lane.b32.xlu0 %v9267_v22, %s13736_s1 }
 0xa8f   :  { %v3144_v26 = vadd.f32 %v3136_v8, %v3091_v9  ;;  %v3168_v62 = vsel %vm14257_vm0, %v14256_v56, %v3154_v3  ;;  %v3933_v42 = vmul.f32 %v14253_v41, %v3912_v23  ;;  %v3189_v9 = vmul.f32 %v14258_v28, %v3166_v58 }
 0xa90   :  { %v3143_v48 = vadd.f32 %v3135_v27, %v3090_v35  ;;  %v3888_v47 = vadd.f32 %v3880_v32, %v3835_v43  ;;  %v3188_v35 = vmul.f32 %v14258_v28, %v3168_v62  ;;  %v3940_v5 = vadd.f32 %v3932_v34, %v3887_v6  ;;  %v3207_v27 = vpop.permute.xlu1 %3206  ;;  %v14262_v6 = vld [vmem:[#allocation32_spill] sm:$0xff]  ;;  %v14264_v43 = vld [vmem:[#allocation122_spill] sm:$0xff]  ;;  %4671 = vrot.lane.b32.xlu1 %v13776_v19, %s13736_s1 }
 0xa91   :  { %vm14259_vm1 = vcmp.lt.s32.totalorder %v6969_v14, 37  ;;  %v3197_v61 = vadd.f32 %v3189_v9, %v3144_v26  ;;  %vm14263_vm3 = vcmp.lt.s32.totalorder %v6969_v14, 81  ;;  %vm14267_vm5 = vcmp.lt.s32.totalorder %v6969_v14, 80  ;;  %v14268_v28 = vld [vmem:[#allocation12_spill] sm:$0xff] }
 0xa92   :  { %v3959_v53 = vsel %vm14259_vm1, %v11590_v25, %v3957_v39  ;;  %vm14260_vm2 = vmmov %vm14259_vm1  ;;  %v3941_v40 = vadd.f32 %v3933_v42, %v3888_v47  ;;  %v3196_v33 = vadd.f32 %v3188_v35, %v3143_v48  ;;  %v3219_v23 = vsel %vm14263_vm3, %v3207_v27, %v14262_v6  ;;  %v11735_v34 = vpop.permute.xlu0 %4058  ;;  %4614 = vrot.lane.b32.xlu0 %v9317_v12, %s14243_s10  ;;  %v14266_v47 = vld [vmem:[#allocation34_spill] sm:$0xff] }
 0xa93   :  { %v3965_v55 = vsel %vm14260_vm2, %v3957_v39, %v11620_v52  ;;  %v3985_v20 = vmul.f32 %v14261_v54, %v3959_v53  ;;  %vm14265_vm4 = vmmov %vm14263_vm3  ;;  %v3242_v26 = vmul.f32 %v14137_v15, %v3219_v23  ;;  %vm14272_vm7 = vcmp.lt.s32.totalorder %v6969_v14, 79 }
 0xa94   :  { %v3986_v8 = vmul.f32 %v14261_v54, %v3965_v55  ;;  %v3221_v32 = vsel %vm14265_vm4, %v14264_v43, %v3207_v27  ;;  %v3260_v62 = vpop.permute.xlu1 %3259  ;;  %vm14269_vm6 = vmmov %vm14267_vm5  ;;  %4728 = vrot.lane.b32.xlu1 %v9267_v22, %s14270_s24  ;;  %vm14275_vm10 = vcmp.lt.s32.totalorder %v6969_v14, 36  ;;  %vm14280_vm11 = vcmp.lt.s32.totalorder %v6969_v14, 78 }
 0xa95   :  { %v3993_v3 = vadd.f32 %v3985_v20, %v3940_v5  ;;  %v3241_v48 = vmul.f32 %v14137_v15, %v3221_v32  ;;  %v3250_v56 = vadd.f32 %v3242_v26, %v3197_v61  ;;  %v3272_v42 = vsel %vm14267_vm5, %v3260_v62, %v14266_v47  ;;  %v14273_v61 = vld [vmem:[#allocation128_spill] sm:$0xff]  ;;  %vm14274_vm8 = vmmov %vm14272_vm7 }
 0xa96   :  { %v3994_v51 = vadd.f32 %v3986_v8, %v3941_v40  ;;  %v3274_v15 = vsel %vm14269_vm6, %v14268_v28, %v3260_v62  ;;  %v3295_v9 = vmul.f32 %v14144_v59, %v3272_v42  ;;  %v11749_v39 = vpop.permute.xlu0 %4050  ;;  %4732 = vrot.lane.b32.xlu0 %v9295_v57, %s14270_s24  ;;  %v14271_v40 = vld [vmem:[#allocation130_spill] sm:$0xff]  ;;  %vm14276_vm9 = vmmov %vm14275_vm10  ;;  %v14281_v47 = vld [vmem:[#allocation132_spill] sm:$0xff]  ;;  %vm14284_vm0 = vcmp.lt.s32.totalorder %v6969_v14, 35 }
 0xa97   :  { %v3249_v58 = vadd.f32 %v3241_v48, %v3196_v33  ;;  %v3294_v35 = vmul.f32 %v14144_v59, %v3274_v15  ;;  %v14277_v48 = vld [vmem:[#allocation90_spill] sm:$0xff]  ;;  %vm14282_vm13 = vmmov %vm14280_vm11  ;;  %vm14288_vm2 = vcmp.lt.s32.totalorder %v6969_v14, 62  ;;  %vm14291_vm4 = vcmp.lt.s32.totalorder %v6969_v14, 61 }
 0xa98   :  { %v3303_v53 = vadd.f32 %v3295_v9, %v3250_v56  ;;  %v3313_v55 = vpop.permute.xlu1 %3312  ;;  %4724 = vrot.lane.b32.xlu1 %v13776_v19, %s14270_s24  ;;  %vm14285_vm1 = vmmov %vm14284_vm0  ;;  %vm14296_vm6 = vcmp.lt.s32.totalorder %v6969_v14, 60 }
 0xa99   :  { %v3302_v5 = vadd.f32 %v3294_v35, %v3249_v58  ;;  %v3325_v33 = vsel %vm14272_vm7, %v3313_v55, %v14271_v40  ;;  %v3327_v20 = vsel %vm14274_vm8, %v14273_v61, %v3313_v55  ;;  %v14286_v61 = vld [vmem:[#allocation102_spill] sm:$0xff]  ;;  %vm14289_vm3 = vmmov %vm14288_vm2  ;;  %vm14300_vm8 = vcmp.lt.s32.totalorder %v6969_v14, 59 }
 0xa9a   :  { %v3347_v59 = vmul.f32 %v14145_v60, %v3327_v20  ;;  %v3348_v27 = vmul.f32 %v14145_v60, %v3325_v33  ;;  %v4010_v8 = vpop.permute.xlu0 %4009  ;;  %4781 = vrot.lane.b32.xlu0 %v9267_v22, %s14278_s27  ;;  %v14279_v60 = vld [vmem:[#allocation8_spill] sm:$0xff]  ;;  %vm14292_vm5 = vmmov %vm14291_vm4 }
 0xa9b   :  { %v4012_v6 = vsel %vm14275_vm10, %v11671_v46, %v4010_v8  ;;  %v4018_v23 = vsel %vm14276_vm9, %v4010_v8, %v11695_v13  ;;  %vm14298_vm7 = vmmov %vm14296_vm6  ;;  %vm14306_vm9 = vcmp.lt.s32.totalorder %v6969_v14, 58 }
 0xa9c   :  { %v3355_v43 = vadd.f32 %v3347_v59, %v3302_v5  ;;  %v3356_v32 = vadd.f32 %v3348_v27, %v3303_v53  ;;  %v4038_v26 = vmul.f32 %v14277_v48, %v4012_v6  ;;  %v4039_v58 = vmul.f32 %v14277_v48, %v4018_v23  ;;  %v3366_v56 = vpop.permute.xlu1 %3365  ;;  %4667 = vrot.lane.b32.xlu1 %v9317_v12, %s13736_s1  ;;  %vm14302_vm10 = vmmov %vm14300_vm8  ;;  %s14429_s1 = sld [smem:[#allocation255_spill]] }
 0xa9d   :  { %v3378_v62 = vsel %vm14280_vm11, %v3366_v56, %v14279_v60  ;;  %v3380_v42 = vsel %vm14282_vm13, %v14281_v47, %v3366_v56  ;;  %vm14307_vm11 = vmmov %vm14306_vm9  ;;  %vm14308_vm13 = vcmp.lt.s32.totalorder %v6969_v14, 57 }
 0xa9e   :  { %v4046_v28 = vadd.f32 %v4038_v26, %v3993_v3  ;;  %v4047_v15 = vadd.f32 %v4039_v58, %v3994_v51  ;;  %v3400_v35 = vmul.f32 %v14149_v38, %v3380_v42  ;;  %v3401_v9 = vmul.f32 %v14149_v38, %v3378_v62  ;;  %v11783_v5 = vpop.permute.xlu0 %4111  ;;  %4777 = vrot.lane.b32.xlu0 %v13776_v19, %s14278_s27  ;;  %v14283_v38 = vld [vmem:[#allocation3_spill] sm:$0xff] }
 0xaa0   :  { %v3408_v22 = vadd.f32 %v3400_v35, %v3355_v43  ;;  %v3409_v53 = vadd.f32 %v3401_v9, %v3356_v32  ;;  %v3419_v55 = vpop.permute.xlu1 %3418  ;;  %4785 = vrot.lane.b32.xlu1 %v9295_v57, %s14278_s27  ;;  %v14287_v32 = vld [vmem:[#allocation134_spill] sm:$0xff]  ;;  %v14293_v35 = vld [vmem:[#allocation104_spill] sm:$0xff] }
 0xaa1   :  { %v3431_v26 = vsel %vm14288_vm2, %v3419_v55, %v14287_v32  ;;  %v3433_v58 = vsel %vm14289_vm3, %v10601_v18, %v3419_v55  ;;  %vm14312_vm3 = vcmp.lt.s32.totalorder %v6969_v14, 18 }
 0xaa2   :  { %v11789_v3 = vpop.permute.xlu0 %4103  ;;  %4720 = vrot.lane.b32.xlu0 %v9317_v12, %s14270_s24  ;;  %v3453_v42 = vmul.f32 %v14153_v11, %v3433_v58 }
 0xaa4   :  { %v3472_v51 = vpop.permute.xlu1 %3471  ;;  %4718 = vrot.lane.b32.xlu1 %v14283_v38, %s14270_s24  ;;  %v3461_v58 = vadd.f32 %v3453_v42, %v3408_v22 }
 0xaa5   :  { %v3486_v62 = vsel %vm14292_vm5, %v10705_v10, %v3472_v51  ;;  %vm14314_vm5 = vcmp.lt.s32.totalorder %v6969_v14, 40 }
 0xaa6   :  { %v4063_v40 = vpop.permute.xlu0 %4062  ;;  %4773 = vrot.lane.b32.xlu0 %v9317_v12, %s14278_s27  ;;  %v14290_v12 = vld [vmem:[#allocation35_spill] sm:$0xff] }
 0xaa7   :  { %v4065_v33 = vsel %vm14284_vm0, %v11735_v34, %v4063_v40  ;;  %v4071_v19 = vsel %vm14285_vm1, %v4063_v40, %v11749_v39  ;;  %v3484_v60 = vsel %vm14291_vm4, %v3472_v51, %v14290_v12  ;;  %v14294_v40 = vld [vmem:[#allocation86_spill] sm:$0xff]  ;;  %vm14309_vm0 = vmmov %vm14308_vm13  ;;  %vm14310_vm1 = vcmp.lt.s32.totalorder %v6969_v14, 56 }
 0xaa8   :  { %v4091_v57 = vmul.f32 %v14286_v61, %v4065_v33  ;;  %v4092_v20 = vmul.f32 %v14286_v61, %v4071_v19  ;;  %v3525_v59 = vpop.permute.xlu1 %3524  ;;  %4771 = vrot.lane.b32.xlu1 %v14283_v38, %s14278_s27  ;;  %v3506_v10 = vmul.f32 %v14294_v40, %v3486_v62  ;;  %v3507_v51 = vmul.f32 %v14294_v40, %v3484_v60  ;;  %v14295_v33 = vld [vmem:[#allocation14_spill] sm:$0xff]  ;;  %vm14311_vm2 = vmmov %vm14310_vm1  ;;  %s14439_s27 = sld [smem:[#allocation261_spill]] }
 0xaa9   :  { %v14297_v19 = vld [vmem:[#allocation138_spill] sm:$0xff]  ;;  %vm14313_vm4 = vmmov %vm14312_vm3 }
 0xaaa   :  { %v4099_v27 = vadd.f32 %v4091_v57, %v4046_v28  ;;  %v4100_v8 = vadd.f32 %v4092_v20, %v4047_v15  ;;  %v11807_v6 = vpop.permute.xlu0 %4164  ;;  %v3454_v28 = vmul.f32 %v14153_v11, %v3431_v26  ;;  %v3537_v11 = vsel %vm14296_vm6, %v3525_v59, %v14295_v33  ;;  %vm14316_vm6 = vmmov %vm14314_vm5 }
 0xaab   :  { %v3539_v57 = vsel %vm14298_vm7, %v14297_v19, %v3525_v59  ;;  %v3514_v59 = vadd.f32 %v3506_v10, %v3461_v58  ;;  %vm14317_vm7 = vcmp.lt.s32.totalorder %v6969_v14, 39 }
 0xaac   :  { %v3578_v23 = vpop.permute.xlu1 %3577  ;;  %v3462_v12 = vadd.f32 %v3454_v28, %v3409_v53  ;;  %v14305_v53 = vld [vmem:[#allocation23_spill] sm:$0xff] }
 0xaae   :  { %v11809_v43 = vpop.permute.xlu0 %4156 }
 0xab0   :  { %v3631_v56 = vpop.permute.xlu1 %3630 }
 0xab1   :  { %v3643_v42 = vsel %vm14306_vm9, %v3631_v56, %v14305_v53  ;;  %v3645_v28 = vsel %vm14307_vm11, %v14196_v31, %v3631_v56  ;;  %vm14321_vm11 = vcmp.lt.s32.totalorder %v6969_v14, 37 }
 0xab2   :  { %v4116_v47 = vpop.permute.xlu0 %4115 }
 0xab3   :  { %v4118_v15 = vsel %vm1038_vm12, %v11783_v5, %v4116_v47  ;;  %v4124_v18 = vsel %vm1038_vm12, %v4116_v47, %v11789_v3  ;;  %v14299_v47 = vld [vmem:[#allocation142_spill] sm:$0xff] }
 0xab4   :  { %v4144_v9 = vmul.f32 %v14293_v35, %v4118_v15  ;;  %v4145_v55 = vmul.f32 %v14293_v35, %v4124_v18  ;;  %v3684_v38 = vpop.permute.xlu1 %3683  ;;  %v3590_v62 = vsel %vm14300_vm8, %v3578_v23, %v14299_v47  ;;  %v14301_v15 = vld [vmem:[#allocation123_spill] sm:$0xff]  ;;  %v14303_v18 = vld [vmem:[#allocation88_spill] sm:$0xff]  ;;  %vm14318_vm8 = vmmov %vm14317_vm7 }
 0xab5   :  { %v3592_v60 = vsel %vm14302_vm10, %v14301_v15, %v3578_v23  ;;  %v3559_v40 = vmul.f32 %v14303_v18, %v3539_v57  ;;  %v3560_v33 = vmul.f32 %v14303_v18, %v3537_v11  ;;  %v3698_v10 = vsel %vm14308_vm13, %v14211_v44, %v3684_v38  ;;  %v14315_v15 = vld [vmem:[#allocation101_spill] sm:$0xff]  ;;  %vm14322_vm13 = vmmov %vm14321_vm11 }
 0xab6   :  { %v4152_v20 = vadd.f32 %v4144_v9, %v4099_v27  ;;  %v4153_v32 = vadd.f32 %v4145_v55, %v4100_v8  ;;  %v11841_v26 = vpop.permute.xlu0 %4217  ;;  %v3515_v27 = vadd.f32 %v3507_v51, %v3462_v12  ;;  %v14304_v8 = vld [vmem:[#allocation80_spill] sm:$0xff]  ;;  %v3665_v11 = vmul.f32 %v14206_v1, %v3645_v28 }
 0xab7   :  { %v3612_v9 = vmul.f32 %v14304_v8, %v3592_v60  ;;  %v3613_v22 = vmul.f32 %v14304_v8, %v3590_v62  ;;  %v3567_v55 = vadd.f32 %v3559_v40, %v3514_v59  ;;  %v3666_v57 = vmul.f32 %v14206_v1, %v3643_v42 }
 0xab8   :  { %v3737_v36 = vpop.permute.xlu1 %3736  ;;  %v3568_v19 = vadd.f32 %v3560_v33, %v3515_v27  ;;  %v3696_v58 = vsel %vm14309_vm0, %v3684_v38, %v14199_v2  ;;  %v3718_v62 = vmul.f32 %v14213_v30, %v3698_v10  ;;  %vm14319_vm10 = vcmp.lt.s32.totalorder %v6969_v14, 38 }
 0xab9   :  { %v3620_v12 = vadd.f32 %v3612_v9, %v3567_v55  ;;  %v3751_v31 = vsel %vm14310_vm1, %v14224_v50, %v3737_v36  ;;  %v3749_v44 = vsel %vm14311_vm2, %v3737_v36, %v14220_v63  ;;  %v3719_v38 = vmul.f32 %v14213_v30, %v3696_v58  ;;  %vm14320_vm9 = vmmov %vm14319_vm10 }
 0xaba   :  { %v11859_v23 = vpop.permute.xlu0 %4209  ;;  %v3621_v47 = vadd.f32 %v3613_v22, %v3568_v19  ;;  %v3771_v33 = vmul.f32 %v14233_v7, %v3751_v31  ;;  %v3772_v27 = vmul.f32 %v14233_v7, %v3749_v44  ;;  %vm14324_vm0 = vcmp.lt.s32.totalorder %v6969_v14, 36 }
 0xabb   :  { %v3673_v36 = vadd.f32 %v3665_v11, %v3620_v12  ;;  %vm14325_vm1 = vmmov %vm14324_vm0  ;;  %vm14326_vm2 = vcmp.lt.s32.totalorder %v6969_v14, 35 }
 0xabc   :  { %v3790_v51 = vpop.permute.xlu1 %3789  ;;  %v3674_v63 = vadd.f32 %v3666_v57, %v3621_v47 }
 0xabd   :  { %v3804_v50 = vsel %vm14314_vm5, %v14234_v4, %v3790_v51  ;;  %v3802_v59 = vsel %vm14316_vm6, %v3790_v51, %v14226_v16  ;;  %v3726_v22 = vadd.f32 %v3718_v62, %v3673_v36  ;;  %vm14330_vm5 = vcmp.lt.s32.totalorder %v6969_v14, 15 }
 0xabe   :  { %v4169_v56 = vpop.permute.xlu0 %4168  ;;  %v3824_v53 = vmul.f32 %v14236_v0, %v3804_v50  ;;  %v3727_v42 = vadd.f32 %v3719_v38, %v3674_v63  ;;  %v3825_v28 = vmul.f32 %v14236_v0, %v3802_v59  ;;  %vm14332_vm6 = vmmov %vm14330_vm5 }
 0xabf   :  { %v4171_v1 = vsel %vm14312_vm3, %v11807_v6, %v4169_v56  ;;  %v4177_v2 = vsel %vm14313_vm4, %v4169_v56, %v11809_v43  ;;  %v3779_v7 = vadd.f32 %v3771_v33, %v3726_v22  ;;  %vm14327_vm3 = vmmov %vm14326_vm2 }
 0xac0   :  { %v4197_v60 = vmul.f32 %v14315_v15, %v4171_v1  ;;  %v4198_v18 = vmul.f32 %v14315_v15, %v4177_v2  ;;  %v3843_v40 = vpop.permute.xlu1 %3842 }
 0xac1   :  { %v3857_v4 = vsel %vm14317_vm7, %v11416_v17, %v3843_v40  ;;  %v3855_v16 = vsel %vm14318_vm8, %v3843_v40, %v11363_v29  ;;  %v3832_v0 = vadd.f32 %v3824_v53, %v3779_v7  ;;  %vm14334_vm7 = vcmp.lt.s32.totalorder %v6969_v14, 13 }
 0xac2   :  { %v4205_v30 = vadd.f32 %v4197_v60, %v4152_v20  ;;  %v4206_v8 = vadd.f32 %v4198_v18, %v4153_v32  ;;  %v11896_v9 = vpop.permute.xlu0 %4270  ;;  %v3877_v20 = vmul.f32 %v14245_v45, %v3857_v4  ;;  %v3780_v32 = vadd.f32 %v3772_v27, %v3727_v42 }
 0xac3   :  { %v3878_v51 = vmul.f32 %v14245_v45, %v3855_v16 }
 0xac4   :  { %v3896_v55 = vpop.permute.xlu1 %3895  ;;  %v3833_v11 = vadd.f32 %v3825_v28, %v3780_v32  ;;  %v3885_v58 = vadd.f32 %v3877_v20, %v3832_v0  ;;  %v14328_v32 = vld [vmem:[#allocation93_spill] sm:$0xff] }
 0xac5   :  { %v3910_v17 = vsel %vm14319_vm10, %v11533_v49, %v3896_v55  ;;  %v3908_v19 = vsel %vm14320_vm9, %v3896_v55, %v11503_v24  ;;  %vm14337_vm10 = vmmov %vm14330_vm5 }
 0xac6   :  { %v11910_v10 = vpop.permute.xlu0 %4262  ;;  %v3930_v29 = vmul.f32 %v14253_v41, %v3910_v17  ;;  %v3931_v12 = vmul.f32 %v14253_v41, %v3908_v19  ;;  %v3886_v56 = vadd.f32 %v3878_v51, %v3833_v11  ;;  %vm14339_vm9 = vmmov %vm14334_vm7 }
 0xac8   :  { %v3949_v57 = vpop.permute.xlu1 %3948  ;;  %v3938_v45 = vadd.f32 %v3930_v29, %v3885_v58  ;;  %v3939_v38 = vadd.f32 %v3931_v12, %v3886_v56 }
 0xac9   :  { %v3961_v49 = vsel %vm14321_vm11, %v3949_v57, %v11590_v25  ;;  %v3963_v24 = vsel %vm14322_vm13, %v11620_v52, %v3949_v57  ;;  %v14323_v25 = vld [vmem:[#allocation105_spill] sm:$0xff]  ;;  %vm14342_vm13 = vcmp.lt.s32.totalorder %v6969_v14, 12 }
 0xaca   :  { %v3983_v47 = vmul.f32 %v14261_v54, %v3963_v24  ;;  %v4222_v31 = vpop.permute.xlu0 %4221  ;;  %v3984_v44 = vmul.f32 %v14261_v54, %v3961_v49 }
 0xacb   :  { %v4224_v62 = vsel %vm1094_vm14, %v11841_v26, %v4222_v31  ;;  %v4230_v41 = vsel %vm1094_vm14, %v4222_v31, %v11859_v23 }
 0xacc   :  { %v4250_v1 = vmul.f32 %v14323_v25, %v4224_v62  ;;  %v4251_v2 = vmul.f32 %v14323_v25, %v4230_v41  ;;  %v4002_v52 = vpop.permute.xlu1 %4001  ;;  %v3991_v50 = vadd.f32 %v3983_v47, %v3938_v45  ;;  %v3992_v59 = vadd.f32 %v3984_v44, %v3939_v38 }
 0xacd   :  { %v4014_v60 = vsel %vm14324_vm0, %v4002_v52, %v11671_v46  ;;  %v4016_v18 = vsel %vm14325_vm1, %v11695_v13, %v4002_v52  ;;  %vm14349_vm1 = vmmov %vm14342_vm13 }
 0xace   :  { %v4258_v40 = vadd.f32 %v4250_v1, %v4205_v30  ;;  %v11937_v36 = vadd.f32 %v4251_v2, %v4206_v8  ;;  %v4036_v54 = vmul.f32 %v14277_v48, %v4016_v18  ;;  %v4037_v63 = vmul.f32 %v14277_v48, %v4014_v60  ;;  %v4324_v33 = vpop.permute.xlu0 %4323 }
 0xad0   :  { %v4044_v27 = vadd.f32 %v4036_v54, %v3991_v50  ;;  %v4055_v4 = vpop.permute.xlu1 %4054  ;;  %v4045_v13 = vadd.f32 %v4037_v63, %v3992_v59  ;;  %v14333_v50 = vld [vmem:[#allocation106_spill] sm:$0xff]  ;;  %v14335_v63 = vld [vmem:[#allocation107_spill] sm:$0xff] }
 0xad1   :  { %v4067_v22 = vsel %vm14326_vm2, %v4055_v4, %v11735_v34  ;;  %v4069_v46 = vsel %vm14327_vm3, %v11749_v39, %v4055_v4  ;;  %vm14352_vm2 = vmmov %vm14349_vm1 }
 0xad2   :  { %v4089_v30 = vmul.f32 %v14286_v61, %v4069_v46  ;;  %v4090_v8 = vmul.f32 %v14286_v61, %v4067_v22  ;;  %v4316_v53 = vpop.permute.xlu0 %4315  ;;  %vm14353_vm3 = vmmov %vm14349_vm1 }
 0xad4   :  { %v4097_v42 = vadd.f32 %v4089_v30, %v4044_v27  ;;  %v4098_v48 = vadd.f32 %v4090_v8, %v4045_v13  ;;  %v4108_v28 = vpop.permute.xlu1 %4107  ;;  %v14338_v8 = vld [vmem:[#allocation108_spill] sm:$0xff] }
 0xad5   :  { %v4120_v16 = vsel %vm1038_vm12, %v4108_v28, %v11783_v5  ;;  %v4122_v34 = vsel %vm1038_vm12, %v11789_v3, %v4108_v28  ;;  %vm14329_vm12 = vmmov %vm14313_vm4 }
 0xad6   :  { %v4142_v55 = vmul.f32 %v14293_v35, %v4122_v34  ;;  %v4143_v39 = vmul.f32 %v14293_v35, %v4120_v16  ;;  %v4275_v7 = vpop.permute.xlu0 %4274 }
 0xad7   :  { %v4277_v61 = vsel %vm1122_vm15, %v11896_v9, %v4275_v7  ;;  %v4283_v4 = vsel %vm1122_vm15, %v4275_v7, %v11910_v10 }
 0xad8   :  { %v4150_v20 = vadd.f32 %v4142_v55, %v4097_v42  ;;  %v4151_v17 = vadd.f32 %v4143_v39, %v4098_v48  ;;  %v4303_v19 = vmul.f32 %v14328_v32, %v4277_v61  ;;  %v4161_v0 = vpop.permute.xlu1 %4160  ;;  %v4304_v34 = vmul.f32 %v14328_v32, %v4283_v4 }
 0xad9   :  { %v4173_v5 = vsel %vm14313_vm4, %v4161_v0, %v11807_v6  ;;  %v4175_v3 = vsel %vm14329_vm12, %v11809_v43, %v4161_v0  ;;  %vm14354_vm4 = vmmov %vm14334_vm7 }
 0xada   :  { %v11967_v51 = vadd.f32 %v4303_v19, %v4258_v40  ;;  %v4195_v35 = vmul.f32 %v14315_v15, %v4175_v3  ;;  %v4196_v29 = vmul.f32 %v14315_v15, %v4173_v5  ;;  %v4377_v11 = vpop.permute.xlu0 %4376  ;;  %vm14355_vm12 = vmmov %vm14354_vm4 }
 0xadc   :  { %v4203_v57 = vadd.f32 %v4195_v35, %v4150_v20  ;;  %v4204_v58 = vadd.f32 %v4196_v29, %v4151_v17  ;;  %v4214_v12 = vpop.permute.xlu1 %4213  ;;  %v14345_v29 = vld [vmem:[#allocation38_spill] sm:$0xff] }
 0xadd   :  { %v4226_v49 = vsel %vm1094_vm14, %v4214_v12, %v11841_v26  ;;  %v4228_v6 = vsel %vm1094_vm14, %v11859_v23, %v4214_v12  ;;  %vm14331_vm14 = vcmp.lt.s32.totalorder %v6969_v14, 14 }
 0xade   :  { %v4248_v43 = vmul.f32 %v14323_v25, %v4228_v6  ;;  %v4249_v24 = vmul.f32 %v14323_v25, %v4226_v49  ;;  %v4369_v47 = vpop.permute.xlu0 %4368  ;;  %vm14336_vm8 = vmmov %vm14331_vm14 }
 0xadf   :  { %vm14341_vm11 = vmmov %vm14336_vm8 }
 0xae0   :  { %v4256_v31 = vadd.f32 %v4248_v43, %v4203_v57  ;;  %v4257_v56 = vadd.f32 %v4249_v24, %v4204_v58  ;;  %v4267_v15 = vpop.permute.xlu1 %4266  ;;  %vm14343_vm0 = vmmov %vm14336_vm8  ;;  %v14346_v57 = vld [vmem:[#allocation100_spill] sm:$0xff]  ;;  %v14347_v43 = vld [vmem:[#allocation162_spill] sm:$0xff] }
 0xae1   :  { %v4279_v26 = vsel %vm1122_vm15, %v4267_v15, %v11896_v9  ;;  %v4281_v25 = vsel %vm1122_vm15, %v11910_v10, %v4267_v15  ;;  %vm14340_vm15 = vmmov %vm14330_vm5  ;;  %v4543_v58 = vmul.f32 %v14346_v57, %v14345_v29  ;;  %v14348_v24 = vld [vmem:[#allocation112_spill] sm:$0xff] }
 0xae2   :  { %v4328_v45 = vpop.permute.xlu0 %4327  ;;  %v4302_v1 = vmul.f32 %v14328_v32, %v4279_v26  ;;  %v4301_v18 = vmul.f32 %v14328_v32, %v4281_v25  ;;  %v14350_v25 = vld [vmem:[#allocation7_spill] sm:$0xff] }
 0xae3   :  { %v4330_v13 = vsel %vm14337_vm10, %v4324_v33, %v4328_v45  ;;  %v4336_v10 = vsel %vm14340_vm15, %v4328_v45, %v4316_v53  ;;  %vm14377_vm10 = vcmp.lt.s32.totalorder %v6969_v14, 119 }
 0xae4   :  { %v4320_v62 = vpop.permute.xlu1 %4319  ;;  %v4310_v54 = vadd.f32 %v4302_v1, %v4257_v56  ;;  %v4309_v28 = vadd.f32 %v4301_v18, %v4256_v31  ;;  %v4356_v61 = vmul.f32 %v14333_v50, %v4330_v13  ;;  %v4357_v35 = vmul.f32 %v14333_v50, %v4336_v10  ;;  %v14351_v1 = vld [vmem:[#allocation111_spill] sm:$0xff]  ;;  %v14356_v13 = vld [vmem:[#allocation184_spill] sm:$0xff]  ;;  %vm14385_vm15 = vmmov %vm14377_vm10 }
 0xae5   :  { %v4332_v23 = vsel %vm14330_vm5, %v4320_v62, %v4324_v33  ;;  %v4334_v38 = vsel %vm14332_vm6, %v4316_v53, %v4320_v62  ;;  %v14344_v53 = vld [vmem:[#allocation109_spill] sm:$0xff]  ;;  %v4572_v31 = vmul.f32 %v14348_v24, %v14347_v43  ;;  %v4312_v56 = vadd.f32 %v4304_v34, %v11937_v36  ;;  %v14357_v34 = vld [vmem:[#allocation4_spill] sm:$0xff] }
 0xae6   :  { %v11979_v41 = vpop.permute.xlu0 %4429  ;;  %v4355_v60 = vmul.f32 %v14333_v50, %v4332_v23  ;;  %v4354_v22 = vmul.f32 %v14333_v50, %v4334_v38  ;;  %v4364_v45 = vadd.f32 %v4356_v61, %v11967_v51  ;;  %v4542_v38 = vmul.f32 %v14346_v57, %v11455_v37 }
 0xae7   :  { %v4571_v36 = vmul.f32 %v14348_v24, %v11476_v21  ;;  %v4365_v50 = vadd.f32 %v4357_v35, %v4312_v56  ;;  %v4544_v10 = vmul.f32 %v14346_v57, %v14357_v34  ;;  %vm14362_vm5 = vcmp.lt.s32.totalorder %v6969_v14, 121  ;;  %v14371_v56 = vld [vmem:[#allocation148_spill] sm:$0xff] }
 0xae8   :  { %v4373_v44 = vpop.permute.xlu1 %4372  ;;  %v4363_v30 = vadd.f32 %v4355_v60, %v4310_v54  ;;  %v4362_v33 = vadd.f32 %v4354_v22, %v4309_v28  ;;  %vm14367_vm6 = vmmov %vm14362_vm5 }
 0xae9   :  { %v4385_v52 = vsel %vm14331_vm14, %v4373_v44, %v4377_v11  ;;  %v4387_v46 = vsel %vm14336_vm8, %v4369_v47, %v4373_v44  ;;  %vm14364_vm14 = vmmov %vm14362_vm5  ;;  %vm14372_vm8 = vcmp.lt.s32.totalorder %v6969_v14, 120 }
 0xaea   :  { %v4422_v2 = vpop.permute.xlu0 %4421  ;;  %v4408_v59 = vmul.f32 %v14335_v63, %v4385_v52  ;;  %v4407_v55 = vmul.f32 %v14335_v63, %v4387_v46  ;;  %v4601_v52 = vmul.f32 %v14351_v1, %v14350_v25 }
 0xaec   :  { %v4426_v9 = vpop.permute.xlu1 %4425  ;;  %v4416_v39 = vadd.f32 %v4408_v59, %v4363_v30  ;;  %v4415_v12 = vadd.f32 %v4407_v55, %v4362_v33  ;;  %v4600_v30 = vmul.f32 %v14351_v1, %v14356_v13  ;;  %v14358_v55 = vld [vmem:[#allocation116_spill] sm:$0xff]  ;;  %v14383_v13 = vld [vmem:[#allocation9_spill] sm:$0xff] }
 0xaed   :  { %v4438_v40 = vsel %vm14334_vm7, %v4426_v9, %v11979_v41  ;;  %v4440_v16 = vsel %vm14339_vm9, %v4422_v2, %v4426_v9  ;;  %vm14368_vm7 = vmmov %vm14362_vm5 }
 0xaee   :  { %v4381_v27 = vpop.permute.xlu0 %4380  ;;  %v4461_v42 = vmul.f32 %v14338_v8, %v4438_v40  ;;  %v4460_v19 = vmul.f32 %v14338_v8, %v4440_v16  ;;  %vm14380_vm9 = vmmov %vm14372_vm8 }
 0xaef   :  { %v4383_v20 = vsel %vm14341_vm11, %v4377_v11, %v4381_v27  ;;  %v4389_v32 = vsel %vm14343_vm0, %v4381_v27, %v4369_v47  ;;  %vm14390_vm11 = vcmp.lt.s32.totalorder %v6969_v14, 118  ;;  %vm14392_vm0 = vmmov %vm14362_vm5 }
 0xaf0   :  { %v4479_v48 = vpop.permute.xlu1 %4478  ;;  %v4469_v0 = vadd.f32 %v4461_v42, %v4416_v39  ;;  %v4409_v11 = vmul.f32 %v14335_v63, %v4383_v20  ;;  %v4410_v47 = vmul.f32 %v14335_v63, %v4389_v32  ;;  %v4468_v62 = vadd.f32 %v4460_v19, %v4415_v12  ;;  %v14359_v20 = vld [vmem:[#allocation39_spill] sm:$0xff]  ;;  %v14360_v19 = vld [vmem:[#allocation140_spill] sm:$0xff]  ;;  %v14366_v12 = vld [vmem:[#allocation153_spill] sm:$0xff] }
 0xaf2   :  { %v4483_v7 = vpop.permute.xlu0 %4482  ;;  %v4417_v60 = vadd.f32 %v4409_v11, %v4364_v45  ;;  %v4418_v54 = vadd.f32 %v4410_v47, %v4365_v50  ;;  %v14373_v47 = vld [vmem:[#allocation73_spill] sm:$0xff]  ;;  %v14374_v45 = vld [vmem:[#allocation182_spill] sm:$0xff] }
 0xaf3   :  { %v4491_v17 = vsel %vm14342_vm13, %v4479_v48, %v4483_v7  ;;  %vm14391_vm13 = vmmov %vm14362_vm5 }
 0xaf4   :  { %v4514_v5 = vmul.f32 %v14344_v53, %v4491_v17  ;;  %v4487_v3 = vpop.permute.xlu1 %4486  ;;  %v4573_v17 = vmul.f32 %v14348_v24, %v14359_v20 }
 0xaf5   :  { %v4489_v51 = vsel %vm14352_vm2, %v4483_v7, %v4487_v3 }
 0xaf6   :  { %v4522_v49 = vadd.f32 %v4514_v5, %v4469_v0  ;;  %v4475_v6 = vpop.permute.xlu0 %4474  ;;  %v4515_v42 = vmul.f32 %v14344_v53, %v4489_v51  ;;  %v14361_v0 = vld [vmem:[#allocation151_spill] sm:$0xff] }
 0xaf7   :  { %v4493_v15 = vsel %vm14349_vm1, %v4475_v6, %v4479_v48  ;;  %v4495_v63 = vsel %vm14353_vm3, %v4487_v3, %v4475_v6  ;;  %v4628_v32 = vsel %vm14362_vm5, %v14361_v0, %v14360_v19  ;;  %v14365_v3 = vld [vmem:[#allocation180_spill] sm:$0xff]  ;;  %v4630_v11 = vsel %vm14367_vm6, %v14366_v12, %v14361_v0  ;;  %v14378_v51 = vld [vmem:[#allocation87_spill] sm:$0xff]  ;;  %vm14393_vm1 = vmmov %vm14372_vm8 }
 0xaf8   :  { %v4551_v26 = vadd.f32 %v4543_v58, %v4522_v49  ;;  %v4513_v44 = vmul.f32 %v14344_v53, %v4493_v15  ;;  %v12036_v23 = vpop.permute.xlu1 %4622  ;;  %v4516_v48 = vmul.f32 %v14344_v53, %v4495_v63  ;;  %v14363_v53 = vld [vmem:[#allocation159_spill] sm:$0xff]  ;;  %v4574_v35 = vmul.f32 %v14348_v24, %v14365_v3  ;;  %v14369_v6 = vld [vmem:[#allocation168_spill] sm:$0xff]  ;;  %v14379_v63 = vld [vmem:[#allocation157_spill] sm:$0xff] }
 0xaf9   :  { %v4634_v5 = vsel %vm14364_vm14, %v14360_v19, %v14363_v53  ;;  %v4632_v49 = vsel %vm14368_vm7, %v14363_v53, %v14366_v12  ;;  %v4602_v43 = vmul.f32 %v14351_v1, %v14369_v6  ;;  %v4650_v15 = vmul.f32 %v14373_v47, %v4628_v32  ;;  %vm14395_vm2 = vmmov %vm14393_vm1 }
 0xafa   :  { %v4521_v9 = vadd.f32 %v4513_v44, %v4468_v62  ;;  %v4434_v18 = vpop.permute.xlu0 %4433  ;;  %v4580_v40 = vadd.f32 %v4572_v31, %v4551_v26  ;;  %v14370_v31 = vld [vmem:[#allocation155_spill] sm:$0xff]  ;;  %v4603_v62 = vmul.f32 %v14351_v1, %v14374_v45  ;;  %v4652_v1 = vmul.f32 %v14373_v47, %v4632_v49  ;;  %vm14396_vm3 = vmmov %vm14393_vm1  ;;  %v14399_v49 = vld [vmem:[#allocation92_spill] sm:$0xff] }
 0xafb   :  { %v4436_v59 = vsel %vm14354_vm4, %v11979_v41, %v4434_v18  ;;  %v4442_v37 = vsel %vm14355_vm12, %v4434_v18, %v4422_v2  ;;  %v4681_v24 = vsel %vm14372_vm8, %v14371_v56, %v14370_v31  ;;  %vm14398_vm4 = vmmov %vm14390_vm11 }
 0xafc   :  { %v4550_v21 = vadd.f32 %v4542_v38, %v4521_v9  ;;  %v4462_v27 = vmul.f32 %v14338_v8, %v4436_v59  ;;  %v4463_v4 = vmul.f32 %v14338_v8, %v4442_v37  ;;  %v12055_v22 = vpop.permute.xlu1 %4618  ;;  %v12057_v46 = vadd.f32 %v4601_v52, %v4580_v40  ;;  %v14375_v38 = vld [vmem:[#allocation150_spill] sm:$0xff]  ;;  %v14381_v37 = vld [vmem:[#allocation17_spill] sm:$0xff]  ;;  %vm14400_vm12 = vmmov %vm14393_vm1 }
 0xafd   :  { %v4545_v8 = vmul.f32 %v14346_v57, %v14358_v55  ;;  %v4651_v52 = vmul.f32 %v14373_v47, %v4634_v5  ;;  %v4703_v9 = vmul.f32 %v14378_v51, %v4681_v24  ;;  %v4683_v59 = vsel %vm14380_vm9, %v14379_v63, %v14371_v56  ;;  %v14387_v55 = vld [vmem:[#allocation15_spill] sm:$0xff]  ;;  %vm14401_vm5 = vmmov %vm14377_vm10  ;;  %v14402_v24 = vld [vmem:[#allocation81_spill] sm:$0xff] }
 0xafe   :  { %v4470_v41 = vadd.f32 %v4462_v27, %v4417_v60  ;;  %v4471_v28 = vadd.f32 %v4463_v4, %v4418_v54  ;;  %v4579_v16 = vadd.f32 %v4571_v36, %v4550_v21  ;;  %v4627_v2 = vpop.permute.xlu0 %4626  ;;  %v14376_v36 = vld [vmem:[#allocation161_spill] sm:$0xff]  ;;  %v4649_v60 = vmul.f32 %v14373_v47, %v4630_v11  ;;  %v14382_v27 = vld [vmem:[#allocation146_spill] sm:$0xff]  ;;  %vm14404_vm14 = vmmov %vm14392_vm0 }
 0xaff   :  { %v4734_v50 = vsel %vm14377_vm10, %v14376_v36, %v14375_v38  ;;  %v4658_v21 = vadd.f32 %v4650_v15, %v14381_v37  ;;  %v4702_v34 = vmul.f32 %v14378_v51, %v4683_v59  ;;  %v4631_v0 = vsel %vm14391_vm13, %v12055_v22, %v12036_v23  ;;  %v14397_v11 = vld [vmem:[#allocation165_spill] sm:$0xff]  ;;  %vm14405_vm6 = vmmov %vm14401_vm5 }
 0xb00   :  { %v4523_v39 = vadd.f32 %v4515_v42, %v4470_v41  ;;  %v4524_v7 = vadd.f32 %v4516_v48, %v4471_v28  ;;  %v4608_v61 = vadd.f32 %v4600_v30, %v4579_v16  ;;  %v12067_v33 = vpop.permute.xlu1 %4679  ;;  %v4657_v4 = vadd.f32 %v4649_v60, %v14382_v27  ;;  %v14384_v42 = vld [vmem:[#allocation154_spill] sm:$0xff]  ;;  %v14386_v28 = vld [vmem:[#allocation144_spill] sm:$0xff]  ;;  %vm14406_vm7 = vmmov %vm14392_vm0 }
 0xb01   :  { %v4756_v30 = vmul.f32 %v14383_v13, %v4734_v50  ;;  %v4736_v48 = vsel %vm14385_vm15, %v14384_v42, %v14376_v36  ;;  %v4659_v16 = vadd.f32 %v4651_v52, %v14386_v28  ;;  %v4629_v32 = vsel %vm14392_vm0, %v12036_v23, %v4627_v2  ;;  %vm14408_vm8 = vmmov %vm14393_vm1 }
 0xb02   :  { %v4552_v29 = vadd.f32 %v4544_v10, %v4523_v39  ;;  %v4553_v57 = vadd.f32 %v4545_v8, %v4524_v7  ;;  %v4676_v58 = vpop.permute.xlu0 %4675  ;;  %v4711_v10 = vadd.f32 %v4703_v9, %v4658_v21  ;;  %v4660_v8 = vadd.f32 %v4652_v1, %v14387_v55  ;;  %v14388_v39 = vld [vmem:[#allocation163_spill] sm:$0xff]  ;;  %v14389_v7 = vld [vmem:[#allocation156_spill] sm:$0xff]  ;;  %v14407_v1 = vld [vmem:[#allocation6_spill] sm:$0xff] }
 0xb03   :  { %v4787_v20 = vsel %vm14390_vm11, %v14389_v7, %v14388_v39  ;;  %v4755_v19 = vmul.f32 %v14383_v13, %v4736_v48  ;;  %v4710_v5 = vadd.f32 %v4702_v34, %v4657_v4  ;;  %v4789_v23 = vsel %vm14398_vm4, %v14397_v11, %v14389_v7  ;;  %vm14409_vm10 = vmmov %vm14393_vm1  ;;  %v14411_v55 = vld [vmem:[#allocation89_spill] sm:$0xff] }
 0xb04   :  { %v4672_v26 = vpop.permute.xlu1 %4671  ;;  %v4581_v44 = vadd.f32 %v4573_v17, %v4552_v29  ;;  %v4582_v25 = vadd.f32 %v4574_v35, %v4553_v57  ;;  %v4764_v3 = vadd.f32 %v4756_v30, %v4711_v10  ;;  %v14394_v35 = vld [vmem:[#allocation37_spill] sm:$0xff]  ;;  %v4809_v6 = vmul.f32 %v14399_v49, %v4787_v20  ;;  %vm14410_vm9 = vmmov %vm14398_vm4 }
 0xb05   :  { %v4684_v53 = vsel %vm14393_vm1, %v4672_v26, %v4676_v58  ;;  %v4685_v29 = vsel %vm14395_vm2, %v14394_v35, %v14379_v63  ;;  %v4687_v57 = vsel %vm14396_vm3, %v14370_v31, %v14394_v35  ;;  %v4653_v47 = vmul.f32 %v14402_v24, %v4631_v0  ;;  %v14403_v31 = vld [vmem:[#allocation110_spill] sm:$0xff]  ;;  %vm14412_vm15 = vmmov %vm14398_vm4 }
 0xb06   :  { %v4610_v18 = vadd.f32 %v4602_v43, %v4581_v44  ;;  %v12105_v40 = vadd.f32 %v4603_v62, %v4582_v25  ;;  %v4615_v54 = vpop.permute.xlu0 %4614  ;;  %v4682_v43 = vsel %vm14400_vm12, %v4676_v58, %v12067_v33  ;;  %v4654_v15 = vmul.f32 %v14402_v24, %v4629_v32  ;;  %vm14414_vm11 = vmmov %vm14401_vm5 }
 0xb07   :  { %v4706_v45 = vmul.f32 %v14403_v31, %v4684_v53  ;;  %v4635_v62 = vsel %vm14404_vm14, %v4627_v2, %v4615_v54  ;;  %v4763_v25 = vadd.f32 %v4755_v19, %v4710_v5  ;;  %v4704_v52 = vmul.f32 %v14378_v51, %v4687_v57  ;;  %vm14415_vm13 = vmmov %vm14401_vm5 }
 0xb08   :  { %v4729_v41 = vpop.permute.xlu1 %4728  ;;  %v4705_v36 = vmul.f32 %v14378_v51, %v4685_v29  ;;  %v4661_v50 = vadd.f32 %v4653_v47, %v4608_v61  ;;  %v4707_v60 = vmul.f32 %v14403_v31, %v4682_v43  ;;  %v4633_v9 = vsel %vm14406_vm7, %v4615_v54, %v12055_v22  ;;  %vm14417_vm0 = vmmov %vm14401_vm5 }
 0xb09   :  { %v4808_v2 = vmul.f32 %v14399_v49, %v4789_v23  ;;  %v4817_v37 = vadd.f32 %v4809_v6, %v4764_v3  ;;  %v4655_v21 = vmul.f32 %v14402_v24, %v4635_v62  ;;  %v4662_v61 = vadd.f32 %v4654_v15, %v12057_v46  ;;  %v14413_v3 = vld [vmem:[#allocation91_spill] sm:$0xff]  ;;  %v14416_v23 = vld [vmem:[#allocation5_spill] sm:$0xff]  ;;  %vm14418_vm1 = vmmov %vm14417_vm0 }
 0xb0a   :  { %v4733_v17 = vpop.permute.xlu0 %4732  ;;  %v4714_v27 = vadd.f32 %v4706_v45, %v4661_v50  ;;  %v4712_v30 = vadd.f32 %v4704_v52, %v4659_v16  ;;  %v4656_v48 = vmul.f32 %v14402_v24, %v4633_v9  ;;  %v4713_v34 = vadd.f32 %v4705_v36, %v4660_v8  ;;  %vm14420_vm2 = vmmov %vm14398_vm4 }
 0xb0b   :  { %v4735_v58 = vsel %vm14405_vm6, %v4729_v41, %v4733_v17  ;;  %v4715_v10 = vadd.f32 %v4707_v60, %v4662_v61  ;;  %v4816_v20 = vadd.f32 %v4808_v2, %v4763_v25  ;;  %v4663_v19 = vadd.f32 %v4655_v21, %v4610_v18  ;;  %v14419_v25 = vld [vmem:[#allocation18_spill] sm:$0xff]  ;;  %vm14421_vm3 = vmmov %vm14420_vm2 }
 0xb0c   :  { %v4725_v12 = vpop.permute.xlu1 %4724  ;;  %v4760_v4 = vmul.f32 %v14407_v1, %v4735_v58  ;;  %v12187_v35 = vadd.f32 %v14413_v3, %v4817_v37  ;;  %v4664_v8 = vadd.f32 %v4656_v48, %v12105_v40  ;;  %vm14423_vm4 = vmmov %vm14420_vm2  ;;  %vm14435_vm14 = vcmask 523264  }
 0xb0d   :  { %v4737_v56 = vsel %vm14401_vm5, %v4725_v12, %v4729_v41  ;;  %v12200_v15 = vadd.f32 %v14413_v3, %v4816_v20  ;;  %vm14424_vm12 = vmmov %vm14420_vm2  ;;  %vm4850_vm5 = vcmask 130048  }
 0xb0e   :  { %v4782_v44 = vpop.permute.xlu0 %4781  ;;  %v4759_v63 = vmul.f32 %v14407_v1, %v4737_v56  ;;  %v4768_v16 = vadd.f32 %v4760_v4, %v4715_v10  ;;  %v4843_v52 = vmul.f32 %v12187_v35, %v14419_v25  ;;  %vm14436_vm6 = vmmov %vm14435_vm14 }
 0xb0f   :  { %vm14437_vm7 = vmmov %vm14436_vm6 }
 0xb10   :  { %v4668_v59 = vpop.permute.xlu1 %4667 }
 0xb11   :  { %v4688_v51 = vsel %vm14408_vm8, %v12067_v33, %v4668_v59  ;;  %v4686_v22 = vsel %vm14409_vm10, %v4668_v59, %v4672_v26  ;;  %v4767_v33 = vadd.f32 %v4759_v63, %v4714_v27  ;;  %v14422_v63 = vld [vmem:[#allocation19_spill] sm:$0xff]  ;;  %vm14438_vm8 = vmmov %vm14436_vm6 }
 0xb12   :  { %v4778_v54 = vpop.permute.xlu0 %4777  ;;  %v4708_v41 = vmul.f32 %v14403_v31, %v4688_v51  ;;  %v4709_v0 = vmul.f32 %v14403_v31, %v4686_v22  ;;  %v4842_v22 = vmul.f32 %v12200_v15, %v14422_v63 }
 0xb13   :  { %v4790_v28 = vsel %vm14410_vm9, %v4778_v54, %v4782_v44 }
 0xb14   :  { %v4812_v46 = vmul.f32 %v14411_v55, %v4790_v28  ;;  %v4786_v7 = vpop.permute.xlu1 %4785  ;;  %v4716_v29 = vadd.f32 %v4708_v41, %v4663_v19  ;;  %v4717_v40 = vadd.f32 %v4709_v0, %v4664_v8  ;;  %v14426_v41 = vld [vmem:[#allocation10_spill] sm:$0xff] }
 0xb15   :  { %v4788_v26 = vsel %vm14412_vm15, %v4782_v44, %v4786_v7 }
 0xb16   :  { %v4820_v32 = vadd.f32 %v4812_v46, %v4767_v33  ;;  %v4813_v53 = vmul.f32 %v14411_v55, %v4788_v26  ;;  %v4721_v5 = vpop.permute.xlu0 %4720  ;;  %v14428_v33 = vmov 0.0  }
 0xb17   :  { %v4739_v57 = vsel %vm14414_vm11, %v4721_v5, %v4725_v12  ;;  %v4741_v18 = vsel %vm14415_vm13, %v4733_v17, %v4721_v5 }
 0xb18   :  { %v12195_v6 = vadd.f32 %v14416_v23, %v4820_v32  ;;  %v4821_v43 = vadd.f32 %v4813_v53, %v4768_v16  ;;  %v4761_v56 = vmul.f32 %v14407_v1, %v4741_v18  ;;  %v4762_v24 = vmul.f32 %v14407_v1, %v4739_v57  ;;  %v4719_v47 = vpop.permute.xlu1 %4718 }
 0xb19   :  { %v4738_v12 = vsel %vm14417_vm0, %v4719_v47, %v14384_v42  ;;  %v4740_v17 = vsel %vm14418_vm1, %v14375_v38, %v4719_v47 }
 0xb1a   :  { %v12209_v31 = vadd.f32 %v14416_v23, %v4821_v43  ;;  %v4769_v45 = vadd.f32 %v4761_v56, %v4716_v29  ;;  %v4757_v62 = vmul.f32 %v14383_v13, %v4740_v17  ;;  %v4774_v44 = vpop.permute.xlu0 %4773  ;;  %v4770_v36 = vadd.f32 %v4762_v24, %v4717_v40 }
 0xb1b   :  { %v4758_v58 = vmul.f32 %v14383_v13, %v4738_v12  ;;  %v4792_v42 = vsel %vm14420_vm2, %v4774_v44, %v4778_v54  ;;  %v4794_v50 = vsel %vm14421_vm3, %v4786_v7, %v4774_v44  ;;  %v4846_v59 = vmul.f32 %v12195_v6, %v14422_v63  ;;  %v12238_v54 = vld [vmem:[%s14425_s8] sm:$0xff] }
 0xb1c   :  { %v4814_v38 = vmul.f32 %v14411_v55, %v4794_v50  ;;  %v4815_v60 = vmul.f32 %v14411_v55, %v4792_v42  ;;  %v4772_v9 = vpop.permute.xlu1 %4771  ;;  %v4847_v1 = vmul.f32 %v12209_v31, %v14419_v25  ;;  %v4765_v2 = vadd.f32 %v4757_v62, %v4712_v30  ;;  %v12262_v55 = vld [vmem:[%s14425_s8 + $0x8] sm:$0xff] }
 0xb1d   :  { %v4766_v37 = vadd.f32 %v4758_v58, %v4713_v34  ;;  %v4791_v13 = vsel %vm14423_vm4, %v4772_v9, %v14397_v11  ;;  %v4793_v21 = vsel %vm14424_vm12, %v14388_v39, %v4772_v9  ;;  %v14427_v34 = vld [vmem:[#allocation22_spill] sm:$0xff] }
 0xb1e   :  { %v4822_v51 = vadd.f32 %v4814_v38, %v4769_v45  ;;  %v4823_v61 = vadd.f32 %v4815_v60, %v4770_v36  ;;  %v4810_v27 = vmul.f32 %v14399_v49, %v4793_v21  ;;  %v4811_v4 = vmul.f32 %v14399_v49, %v4791_v13  ;;  %4885 = vmatprep.subr.mxu0 %v4847_v1 }
 0xb1f   :  { %4886 = vmatpush1.msra.mxu0 %v4846_v59 }
 0xb20   :  { %v12241_v14 = vadd.f32 %v14416_v23, %v4822_v51  ;;  %v12244_v39 = vadd.f32 %v14416_v23, %v4823_v61  ;;  %v4818_v11 = vadd.f32 %v4810_v27, %v4765_v2  ;;  %v4819_v30 = vadd.f32 %v4811_v4, %v4766_v37  ;;  %4887 = vmatprep.subr.mxu0 %v4843_v52 }
 0xb21   :  { %4888 = vmatpush1.msra.mxu0 %v4842_v22 }
 0xb22   :  { %v12247_v49 = vadd.f32 %v14413_v3, %v4818_v11  ;;  %v12250_v48 = vadd.f32 %v14413_v3, %v4819_v30  ;;  %5927 = vmatmul.mubr.msk.f32.vlgmr.msra.gmra.mxu0 %vm4850_vm5, %v12238_v54  ;;  %v4849_v28 = vmul.f32 %v12244_v39, %v14426_v41  ;;  %v4848_v10 = vmul.f32 %v12241_v14, %v14427_v34 }
 0xb23   :  { %4927 = vmatprep.mubr.f32.mxu0 %v14428_v33 }
 0xb24   :  { %4962 = vmatprep.subr.mxu1 %v4849_v28  ;;  %v4845_v46 = vmul.f32 %v12250_v48, %v14426_v41  ;;  %v4844_v7 = vmul.f32 %v12247_v49, %v14427_v34 }
 0xb25   :  { %4963 = vmatpush1.msra.mxu1 %v4848_v10 }
 0xb26   :  { %5928 = vmatmul.mubr.msk.f32.gmra.mxu0 %vm4850_vm5, %v12262_v55  ;;  %4964 = vmatprep.subr.mxu1 %v4845_v46 }
 0xb27   :  { %4965 = vmatpush1.msra.mxu1 %v4844_v7  ;;  %5109 = vmatprep.mubr.f32.mxu0 %v14428_v33 }
 0xb28   :  { %5929 = vmatmul.mubr.msk.f32.vlgmr.msra.gmra.mxu1 %vm4850_vm5, %v12238_v54 }
 0xb29   :  { %5004 = vmatprep.mubr.f32.mxu1 %v14428_v33 }
 0xb2c   :  { %5930 = vmatmul.mubr.msk.f32.gmra.mxu1 %vm4850_vm5, %v12262_v55 }
 0xb2d   :  { %5186 = vmatprep.mubr.f32.mxu1 %v14428_v33 }
 0xbe2   :  { %v4923_v20 = vpop.f32.mrf.mxu0 }
 0xbe4   :  { %v4925_v19 = vpop.f32.mrf.mxu0 }
 0xbe5   :  { %v5011_v26 = vadd.f32 %v4925_v19, %v4923_v20 }
 0xbe6   :  { %v4929_v0 = vpop.f32.mrf.mxu0 }
 0xbe8   :  { %v4931_v16 = vpop.f32.mrf.mxu0  ;;  %v5000_v32 = vpop.f32.mrf.mxu1 }
 0xbe9   :  { %v5012_v53 = vadd.f32 %v5011_v26, %v5000_v32  ;;  %v5016_v3 = vadd.f32 %v4931_v16, %v4929_v0  ;;  %v2309_v26 = vld [vmem:[%s14429_s1 + $0x8] sm:$0xff] }
 0xbea   :  { %v5002_v5 = vpop.f32.mrf.mxu1 }
 0xbeb   :  { %v5013_v8 = vadd.f32 %v5012_v53, %v5002_v5  ;;  %v2311_v53 = vld [vmem:[%s14430_s23 + $0x8] sm:$0xff]  ;;  %v2308_v5 = vld [vmem:[%s14429_s1] sm:$0xff] }
 0xbec   :  { %v5006_v29 = vpop.f32.mrf.mxu1 }
 0xbed   :  { %v5017_v57 = vadd.f32 %v5016_v3, %v5006_v29  ;;  %5014 = vadd.xlane.f32.xlu1 %v5013_v8 }
 0xbee   :  { %v5008_v18 = vpop.f32.mrf.mxu1 }
 0xbef   :  { %v5018_v23 = vadd.f32 %v5017_v57, %v5008_v18  ;;  %v2310_v18 = vld [vmem:[%s14430_s23] sm:$0xff] }
 0xbf1   :  { %5019 = vadd.xlane.f32.xlu0 %v5018_v23 }
 0xc76   :  { %v12277_v43 = vpop.xlane.xlu1 %5014 }
 0xc77   :  { %v5022_v56 = vsub.f32 %v12187_v35, %v12277_v43  ;;  %v5024_v24 = vsub.f32 %v12250_v48, %v12277_v43  ;;  %v5021_v47 = vsub.f32 %v12200_v15, %v12277_v43  ;;  %v5023_v40 = vsub.f32 %v12247_v49, %v12277_v43 }
 0xc79   :  { %v5030_v52 = vmul.f32 %v5022_v56, %v5022_v56  ;;  %v5032_v36 = vmul.f32 %v5024_v24, %v5024_v24  ;;  %v5029_v60 = vmul.f32 %v5021_v47, %v5021_v47  ;;  %v5031_v9 = vmul.f32 %v5023_v40, %v5023_v40  ;;  %v2327_v56 = vld [vmem:[%s14431_s17 + $0x38] sm:$0xff]  ;;  %v2325_v47 = vld [vmem:[%s14431_s17 + $0x28] sm:$0xff]  ;;  %v2326_v40 = vld [vmem:[%s14431_s17 + $0x30] sm:$0xff] }
 0xc7a   :  { %v12287_v12 = vpop.xlane.xlu0 %5019 }
 0xc7b   :  { %v5025_v17 = vsub.f32 %v12195_v6, %v12287_v12  ;;  %v5027_v45 = vsub.f32 %v12241_v14, %v12287_v12  ;;  %v5026_v62 = vsub.f32 %v12209_v31, %v12287_v12  ;;  %v5028_v44 = vsub.f32 %v12244_v39, %v12287_v12 }
 0xc7c   :  { %v5038_v13 = vmul.f32 %v5030_v52, %v14419_v25  ;;  %v5040_v21 = vmul.f32 %v5032_v36, %v14426_v41  ;;  %v5037_v51 = vmul.f32 %v5029_v60, %v14422_v63  ;;  %v5039_v61 = vmul.f32 %v5031_v9, %v14427_v34  ;;  %v2331_v52 = vld [vmem:[%s14432_s29 + $0x8] sm:$0xff] }
 0xc7d   :  { %v5033_v58 = vmul.f32 %v5025_v17, %v5025_v17  ;;  %v5035_v42 = vmul.f32 %v5027_v45, %v5027_v45  ;;  %v5034_v50 = vmul.f32 %v5026_v62, %v5026_v62  ;;  %v5036_v38 = vmul.f32 %v5028_v44, %v5028_v44  ;;  %v2321_v17 = vld [vmem:[%s14431_s17 + $0x8] sm:$0xff]  ;;  %v2322_v45 = vld [vmem:[%s14431_s17 + $0x10] sm:$0xff]  ;;  %v2330_v62 = vld [vmem:[%s14432_s29] sm:$0xff] }
 0xc7e   :  { %v2320_v44 = vld [vmem:[%s14431_s17] sm:$0xff] }
 0xc7f   :  { %v5042_v1 = vmul.f32 %v5034_v50, %v14419_v25  ;;  %v5044_v59 = vmul.f32 %v5036_v38, %v14426_v41  ;;  %v5041_v2 = vmul.f32 %v5033_v58, %v14422_v63  ;;  %v5043_v37 = vmul.f32 %v5035_v42, %v14427_v34 }
 0xc81   :  { %5073 = vmatprep.subr.mxu0 %v5042_v1  ;;  %5150 = vmatprep.subr.mxu1 %v5044_v59 }
 0xc82   :  { %5074 = vmatpush1.msra.mxu0 %v5041_v2  ;;  %5151 = vmatpush1.msra.mxu1 %v5043_v37 }
 0xc83   :  { %5075 = vmatprep.subr.mxu0 %v5038_v13  ;;  %5152 = vmatprep.subr.mxu1 %v5040_v21 }
 0xc84   :  { %5076 = vmatpush1.msra.mxu0 %v5037_v51  ;;  %5153 = vmatpush1.msra.mxu1 %v5039_v61 }
 0xc85   :  { %5931 = vmatmul.mubr.msk.f32.vlgmr.msra.gmra.mxu0 %vm4850_vm5, %v12238_v54  ;;  %5933 = vmatmul.mubr.msk.f32.vlgmr.msra.gmra.mxu1 %vm4850_vm5, %v12238_v54 }
 0xc86   :  { %5115 = vmatprep.mubr.f32.mxu0 %v14428_v33  ;;  %5192 = vmatprep.mubr.f32.mxu1 %v14428_v33 }
 0xc89   :  { %5932 = vmatmul.mubr.msk.f32.gmra.mxu0 %vm4850_vm5, %v12262_v55  ;;  %5934 = vmatmul.mubr.msk.f32.gmra.mxu1 %vm4850_vm5, %v12262_v55 }
 0xc8a   :  { %5383 = vmatprep.mubr.f32.mxu0 %v14428_v33  ;;  %5496 = vmatprep.mubr.f32.mxu1 %v14428_v33 }
 0xd45   :  { %v5111_v25 = vpop.f32.mrf.mxu0  ;;  %v5188_v63 = vpop.f32.mrf.mxu1 }
 0xd47   :  { %v5113_v27 = vpop.f32.mrf.mxu0  ;;  %v5190_v4 = vpop.f32.mrf.mxu1 }
 0xd48   :  { %v5199_v30 = vadd.f32 %v5113_v27, %v5111_v25  ;;  %v2317_v27 = vld [vmem:[%s14433_s11 + $0x28] sm:$0xff] }
 0xd49   :  { %v5117_v22 = vpop.f32.mrf.mxu0  ;;  %v5194_v11 = vpop.f32.mrf.mxu1 }
 0xd4a   :  { %v5200_v10 = vadd.f32 %v5199_v30, %v5188_v63  ;;  %v2312_v63 = vld [vmem:[%s14433_s11] sm:$0xff] }
 0xd4b   :  { %v5119_v54 = vpop.f32.mrf.mxu0  ;;  %v5196_v34 = vpop.f32.mrf.mxu1 }
 0xd4c   :  { %v5204_v41 = vadd.f32 %v5119_v54, %v5117_v22  ;;  %v5201_v7 = vadd.f32 %v5200_v10, %v5190_v4  ;;  %v2318_v4 = vld [vmem:[%s14433_s11 + $0x30] sm:$0xff]  ;;  %v2319_v22 = vld [vmem:[%s14433_s11 + $0x38] sm:$0xff] }
 0xd4e   :  { %v5205_v28 = vadd.f32 %v5204_v41, %v5194_v11 }
 0xd50   :  { %v5206_v46 = vadd.f32 %v5205_v28, %v5196_v34 }
 0xd52   :  { %5207 = vadd.xlane.f32.xlu0 %v5206_v46 }
 0xd56   :  { %5202 = vadd.xlane.f32.xlu0 %v5201_v7 }
 0xddb   :  { %v5208_v55 = vpop.xlane.xlu0 %5207 }
 0xddc   :  { %v5210_v20 = vadd.f32 1e-05, %v5208_v55 }
 0xdde   :  { %6007 = vrsqrt.f32 %v5210_v20 }
 0xddf   :  { %v5203_v19 = vpop.xlane.xlu0 %5202 }
 0xde0   :  { %v5209_v0 = vadd.f32 1e-05, %v5203_v19 }
 0xde2   :  { %6009 = vrsqrt.f32 %v5209_v0 }
 0xdeb   :  { %v6008_v16 = vpop.eup %6007 }
 0xdec   :  { %v5214_v32 = vmul.f32 %v6008_v16, %v2309_v26 }
 0xdee   :  { %5226 = vperm.xlu1 %6004, %v5214_v32   ;;  %v5216_v3 = vmul.f32 %v5214_v32, %v12287_v12  ;;  %v2324_v12 = vld [vmem:[%s14431_s17 + $0x20] sm:$0xff] }
 0xdef   :  { %v6010_v8 = vpop.eup %6009 }
 0xdf0   :  { %v5218_v29 = vsub.f32 %v2311_v53, %v5216_v3  ;;  %v5213_v57 = vmul.f32 %v6010_v8, %v2308_v5 }
 0xdf2   :  { %5244 = vperm.xlu1 %6004, %v5218_v29   ;;  %5221 = vperm.xlu0 %6003, %v5213_v57   ;;  %v5215_v23 = vmul.f32 %v5213_v57, %v12277_v43  ;;  %v2323_v43 = vld [vmem:[%s14431_s17 + $0x18] sm:$0xff] }
 0xdf4   :  { %v5217_v24 = vsub.f32 %v2310_v18, %v5215_v23 }
 0xdf6   :  { %5292 = vperm.xlu0 %6003, %v2327_v56   ;;  %5239 = vperm.xlu1 %6004, %v5217_v24  }
 0xdfa   :  { %5282 = vperm.xlu0 %6003, %v2325_v47   ;;  %5287 = vperm.xlu1 %6004, %v2326_v40  }
 0xdfe   :  { %5272 = vperm.xlu0 %6003, %v2323_v43   ;;  %5277 = vperm.xlu1 %6004, %v2324_v12  }
 0xe02   :  { %5262 = vperm.xlu0 %6003, %v2321_v17   ;;  %5267 = vperm.xlu1 %6004, %v2322_v45  }
 0xe06   :  { %5579 = vperm.xlu0 %6003, %v2330_v62   ;;  %5257 = vperm.xlu1 %6004, %v2320_v44  }
 0xe0a   :  { %5584 = vperm.xlu1 %6004, %v2331_v52  }
 0xe69   :  { %v5227_v36 = vpop.permute.xlu1 %5226 }
 0xe6a   :  { %v5233_v58 = vmul.f32 %v5227_v36, %v12195_v6  ;;  %v5235_v42 = vmul.f32 %v5227_v36, %v12241_v14  ;;  %v5234_v50 = vmul.f32 %v5227_v36, %v12209_v31  ;;  %v5236_v38 = vmul.f32 %v5227_v36, %v12244_v39 }
 0xe6d   :  { %v5245_v60 = vpop.permute.xlu1 %5244  ;;  %v5222_v9 = vpop.permute.xlu0 %5221 }
 0xe6e   :  { %v5251_v1 = vadd.f32 %v5245_v60, %v5233_v58  ;;  %v5253_v59 = vadd.f32 %v5245_v60, %v5235_v42  ;;  %v5252_v2 = vadd.f32 %v5245_v60, %v5234_v50  ;;  %v5254_v37 = vadd.f32 %v5245_v60, %v5236_v38 }
 0xe6f   :  { %v5229_v13 = vmul.f32 %v5222_v9, %v12200_v15  ;;  %v5230_v21 = vmul.f32 %v5222_v9, %v12187_v35  ;;  %v5231_v51 = vmul.f32 %v5222_v9, %v12247_v49  ;;  %v5232_v6 = vmul.f32 %v5222_v9, %v12250_v48  ;;  %v2313_v35 = vld [vmem:[%s14433_s11 + $0x8] sm:$0xff]  ;;  %v2314_v15 = vld [vmem:[%s14433_s11 + $0x10] sm:$0xff]  ;;  %v2315_v49 = vld [vmem:[%s14433_s11 + $0x18] sm:$0xff] }
 0xe70   :  { %5347 = vmatprep.subr.mxu0 %v5252_v2  ;;  %5460 = vmatprep.subr.mxu1 %v5254_v37  ;;  %v2316_v48 = vld [vmem:[%s14433_s11 + $0x20] sm:$0xff] }
 0xe71   :  { %v5240_v14 = vpop.permute.xlu1 %5239  ;;  %5348 = vmatpush1.msra.mxu0 %v5251_v1  ;;  %5461 = vmatpush1.msra.mxu1 %v5253_v59  ;;  %v5293_v18 = vpop.permute.xlu0 %5292 }
 0xe72   :  { %v5247_v31 = vadd.f32 %v5240_v14, %v5229_v13  ;;  %v5249_v39 = vadd.f32 %v5240_v14, %v5231_v51  ;;  %v5248_v61 = vadd.f32 %v5240_v14, %v5230_v21  ;;  %v5250_v25 = vadd.f32 %v5240_v14, %v5232_v6 }
 0xe74   :  { %5349 = vmatprep.subr.mxu0 %v5248_v61  ;;  %5462 = vmatprep.subr.mxu1 %v5250_v25 }
 0xe75   :  { %5350 = vmatpush1.msra.mxu0 %v5247_v31  ;;  %5463 = vmatpush1.msra.mxu1 %v5249_v39  ;;  %v5288_v24 = vpop.permute.xlu1 %5287  ;;  %v5283_v17 = vpop.permute.xlu0 %5282 }
 0xe76   :  { %5935 = vmatmul.mubr.msk.f32.vlgmr.msra.gmra.mxu0 %vm4850_vm5, %v2312_v63  ;;  %5943 = vmatmul.mubr.msk.f32.vlgmr.msra.gmra.mxu1 %vm4850_vm5, %v2312_v63 }
 0xe77   :  { %5389 = vmatprep.mubr.f32.mxu0 %v14428_v33  ;;  %5502 = vmatprep.mubr.f32.mxu1 %v14428_v33 }
 0xe79   :  { %v5278_v44 = vpop.permute.xlu1 %5277  ;;  %v5273_v13 = vpop.permute.xlu0 %5272 }
 0xe7a   :  { %5936 = vmatmul.mubr.msk.f32.gmra.mxu0 %vm4850_vm5, %v2313_v35  ;;  %5944 = vmatmul.mubr.msk.f32.gmra.mxu1 %vm4850_vm5, %v2313_v35 }
 0xe7b   :  { %5395 = vmatprep.mubr.f32.mxu0 %v14428_v33  ;;  %5508 = vmatprep.mubr.f32.mxu1 %v14428_v33 }
 0xe7d   :  { %v5268_v63 = vpop.permute.xlu1 %5267 }
 0xe7e   :  { %5937 = vmatmul.mubr.msk.f32.gmra.mxu0 %vm4850_vm5, %v2314_v15  ;;  %5945 = vmatmul.mubr.msk.f32.gmra.mxu1 %vm4850_vm5, %v2314_v15 }
 0xe7f   :  { %5401 = vmatprep.mubr.f32.mxu0 %v14428_v33  ;;  %5514 = vmatprep.mubr.f32.mxu1 %v14428_v33 }
 0xe82   :  { %5938 = vmatmul.mubr.msk.f32.gmra.mxu0 %vm4850_vm5, %v2315_v49  ;;  %5946 = vmatmul.mubr.msk.f32.gmra.mxu1 %vm4850_vm5, %v2315_v49 }
 0xe83   :  { %5407 = vmatprep.mubr.f32.mxu0 %v14428_v33  ;;  %5520 = vmatprep.mubr.f32.mxu1 %v14428_v33 }
 0xe86   :  { %5939 = vmatmul.mubr.msk.f32.gmra.mxu0 %vm4850_vm5, %v2316_v48  ;;  %5947 = vmatmul.mubr.msk.f32.gmra.mxu1 %vm4850_vm5, %v2316_v48 }
 0xe87   :  { %5413 = vmatprep.mubr.f32.mxu0 %v14428_v33  ;;  %5526 = vmatprep.mubr.f32.mxu1 %v14428_v33 }
 0xe8a   :  { %5940 = vmatmul.mubr.msk.f32.gmra.mxu0 %vm4850_vm5, %v2317_v27  ;;  %5948 = vmatmul.mubr.msk.f32.gmra.mxu1 %vm4850_vm5, %v2317_v27 }
 0xe8b   :  { %5419 = vmatprep.mubr.f32.mxu0 %v14428_v33  ;;  %5532 = vmatprep.mubr.f32.mxu1 %v14428_v33 }
 0xe8e   :  { %5941 = vmatmul.mubr.msk.f32.gmra.mxu0 %vm4850_vm5, %v2318_v4  ;;  %5949 = vmatmul.mubr.msk.f32.gmra.mxu1 %vm4850_vm5, %v2318_v4 }
 0xe8f   :  { %5425 = vmatprep.mubr.f32.mxu0 %v14428_v33  ;;  %5538 = vmatprep.mubr.f32.mxu1 %v14428_v33 }
 0xe92   :  { %5942 = vmatmul.mubr.msk.f32.gmra.mxu0 %vm4850_vm5, %v2319_v22  ;;  %5950 = vmatmul.mubr.msk.f32.gmra.mxu1 %vm4850_vm5, %v2319_v22 }
 0xe93   :  { %5657 = vmatprep.mubr.f32.mxu0 %v14428_v33  ;;  %5734 = vmatprep.mubr.f32.mxu1 %v14428_v33 }
 0xf36   :  { %v12425_v54 = vpop.f32.mrf.mxu0  ;;  %v12427_v11 = vpop.f32.mrf.mxu1 }
 0xf38   :  { %v12429_v30 = vpop.f32.mrf.mxu0  ;;  %v12431_v41 = vpop.f32.mrf.mxu1 }
 0xf3a   :  { %v12433_v28 = vpop.f32.mrf.mxu0  ;;  %v12435_v34 = vpop.f32.mrf.mxu1 }
 0xf3c   :  { %v12437_v10 = vpop.f32.mrf.mxu0  ;;  %v12439_v46 = vpop.f32.mrf.mxu1 }
 0xf3e   :  { %v12441_v7 = vpop.f32.mrf.mxu0  ;;  %v12443_v55 = vpop.f32.mrf.mxu1 }
 0xf40   :  { %v12445_v20 = vpop.f32.mrf.mxu0  ;;  %v12447_v19 = vpop.f32.mrf.mxu1 }
 0xf42   :  { %v5403_v0 = vpop.f32.mrf.mxu0  ;;  %v12449_v26 = vpop.f32.mrf.mxu1 }
 0xf44   :  { %v5405_v16 = vpop.f32.mrf.mxu0  ;;  %v5518_v32 = vpop.f32.mrf.mxu1 }
 0xf45   :  { %v5406_v27 = vadd.f32 %v5405_v16, %v5273_v13  ;;  %v5263_v16 = vpop.permute.xlu0 %5262 }
 0xf46   :  { %v5409_v53 = vpop.f32.mrf.mxu0  ;;  %v5522_v5 = vpop.f32.mrf.mxu1 }
 0xf47   :  { %v5410_v35 = vadd.f32 %v5409_v53, %v5278_v44  ;;  %v5523_v4 = vadd.f32 %v5522_v5, %v5278_v44  ;;  %v5517_v53 = vadd.f32 %v12449_v26, %v5273_v13  ;;  %v5398_v5 = vadd.f32 %v12441_v7, %v5268_v63  ;;  %v5258_v26 = vpop.permute.xlu1 %5257 }
 0xf48   :  { %v5411_v3 = vpop.f32.mrf.mxu0  ;;  %v5524_v8 = vpop.f32.mrf.mxu1 }
 0xf49   :  { %v5412_v31 = vadd.f32 %v5411_v3, %v5278_v44  ;;  %v5525_v15 = vadd.f32 %v5524_v8, %v5278_v44  ;;  %v5505_v44 = vadd.f32 %v12435_v34, %v5263_v16 }
 0xf4a   :  { %v5415_v29 = vpop.f32.mrf.mxu0  ;;  %v5528_v57 = vpop.f32.mrf.mxu1 }
 0xf4b   :  { %v5416_v21 = vadd.f32 %v5415_v29, %v5283_v17  ;;  %v5529_v39 = vadd.f32 %v5528_v57, %v5283_v17  ;;  %v5404_v29 = vadd.f32 %v5403_v0, %v5273_v13  ;;  %v5562_v8 = vmax.f32 %v5412_v31, 0.0  ;;  %v5585_v31 = vpop.permute.xlu1 %5584 }
 0xf4c   :  { %v5417_v23 = vpop.f32.mrf.mxu0  ;;  %v5530_v56 = vpop.f32.mrf.mxu1  ;;  %v5564_v0 = vmax.f32 %v5525_v15, 0.0 }
 0xf4d   :  { %v5418_v59 = vadd.f32 %v5417_v23, %v5283_v17  ;;  %v5531_v51 = vadd.f32 %v5530_v56, %v5283_v17  ;;  %v5519_v23 = vadd.f32 %v5518_v32, %v5273_v13  ;;  %v5565_v3 = vmax.f32 %v5416_v21, 0.0 }
 0xf4e   :  { %v5421_v47 = vpop.f32.mrf.mxu0  ;;  %v5534_v40 = vpop.f32.mrf.mxu1  ;;  %v5400_v56 = vadd.f32 %v12445_v20, %v5268_v63  ;;  %v5394_v32 = vadd.f32 %v12437_v10, %v5263_v16  ;;  %v5558_v20 = vmax.f32 %v5406_v27, 0.0  ;;  %v5392_v17 = vadd.f32 %v12433_v28, %v5263_v16 }
 0xf4f   :  { %v5422_v60 = vadd.f32 %v5421_v47, %v5288_v24  ;;  %v5535_v2 = vadd.f32 %v5534_v40, %v5288_v24  ;;  %v5566_v22 = vmax.f32 %v5418_v59, 0.0  ;;  %v5568_v57 = vmax.f32 %v5531_v51, 0.0  ;;  %v5580_v59 = vpop.permute.xlu0 %5579 }
 0xf50   :  { %v5423_v43 = vpop.f32.mrf.mxu0  ;;  %v5536_v12 = vpop.f32.mrf.mxu1  ;;  %v5513_v47 = vadd.f32 %v12447_v19, %v5268_v63  ;;  %v5561_v40 = vmax.f32 %v5410_v35, 0.0  ;;  %v5557_v7 = vmax.f32 %v5404_v29, 0.0  ;;  %v5388_v19 = vadd.f32 %v12429_v30, %v5258_v26 }
 0xf51   :  { %v5424_v58 = vadd.f32 %v5423_v43, %v5288_v24  ;;  %v5537_v9 = vadd.f32 %v5536_v12, %v5288_v24  ;;  %v5569_v49 = vmax.f32 %v5422_v60, 0.0  ;;  %v5567_v24 = vmax.f32 %v5529_v39, 0.0 }
 0xf52   :  { %v5427_v45 = vpop.f32.mrf.mxu0  ;;  %v5540_v62 = vpop.f32.mrf.mxu1  ;;  %v5511_v43 = vadd.f32 %v12443_v55, %v5268_v63  ;;  %v5563_v12 = vmax.f32 %v5523_v4, 0.0  ;;  %v5554_v10 = vmax.f32 %v5400_v56, 0.0  ;;  %v5386_v55 = vadd.f32 %v12425_v54, %v5258_v26 }
 0xf53   :  { %v5428_v52 = vadd.f32 %v5427_v45, %v5293_v18  ;;  %v5541_v42 = vadd.f32 %v5540_v62, %v5293_v18  ;;  %v5570_v61 = vmax.f32 %v5424_v58, 0.0  ;;  %v5572_v48 = vmax.f32 %v5537_v9, 0.0 }
 0xf54   :  { %v5429_v36 = vpop.f32.mrf.mxu0  ;;  %v5542_v38 = vpop.f32.mrf.mxu1  ;;  %v5507_v45 = vadd.f32 %v12439_v46, %v5263_v16  ;;  %v5560_v62 = vmax.f32 %v5519_v23, 0.0  ;;  %v5553_v58 = vmax.f32 %v5398_v5, 0.0  ;;  %v5556_v28 = vmax.f32 %v5513_v47, 0.0 }
 0xf55   :  { %v5430_v50 = vadd.f32 %v5429_v36, %v5293_v18  ;;  %v5543_v1 = vadd.f32 %v5542_v38, %v5293_v18  ;;  %v5573_v6 = vmax.f32 %v5428_v52, 0.0  ;;  %v5575_v25 = vmax.f32 %v5541_v42, 0.0 }
 0xf56   :  { %v5571_v18 = vmax.f32 %v5535_v2, 0.0  ;;  %v5559_v52 = vmax.f32 %v5517_v53, 0.0  ;;  %v5501_v36 = vadd.f32 %v12431_v41, %v5258_v26  ;;  %v5499_v46 = vadd.f32 %v12427_v11, %v5258_v26  ;;  %v2328_v11 = vld [vmem:[%s14434_s16] sm:$0xff] }
 0xf57   :  { %v5574_v37 = vmax.f32 %v5430_v50, 0.0  ;;  %v5576_v14 = vmax.f32 %v5543_v1, 0.0  ;;  %v5550_v42 = vmax.f32 %v5394_v32, 0.0  ;;  %v5555_v50 = vmax.f32 %v5511_v43, 0.0  ;;  %v2329_v1 = vld [vmem:[%s14434_s16 + $0x8] sm:$0xff] }
 0xf58   :  { %v5549_v30 = vmax.f32 %v5392_v17, 0.0  ;;  %v5552_v34 = vmax.f32 %v5507_v45, 0.0  ;;  %v5546_v38 = vmax.f32 %v5388_v19, 0.0  ;;  %v5551_v60 = vmax.f32 %v5505_v44, 0.0 }
 0xf59   :  { %5609 = vmatprep.subr.mxu0 %v5574_v37  ;;  %5686 = vmatprep.subr.mxu1 %v5576_v14  ;;  %v5545_v54 = vmax.f32 %v5386_v55, 0.0  ;;  %v5548_v41 = vmax.f32 %v5501_v36, 0.0  ;;  %v5547_v9 = vmax.f32 %v5499_v46, 0.0 }
 0xf5a   :  { %5610 = vmatpush1.msra.mxu0 %v5573_v6  ;;  %5687 = vmatpush1.msra.mxu1 %v5575_v25 }
 0xf5b   :  { %5611 = vmatprep.subr.mxu0 %v5570_v61  ;;  %5688 = vmatprep.subr.mxu1 %v5572_v48 }
 0xf5c   :  { %5612 = vmatpush1.msra.mxu0 %v5569_v49  ;;  %5689 = vmatpush1.msra.mxu1 %v5571_v18 }
 0xf5d   :  { %5613 = vmatprep.subr.mxu0 %v5566_v22  ;;  %5690 = vmatprep.subr.mxu1 %v5568_v57 }
 0xf5e   :  { %5614 = vmatpush1.msra.mxu0 %v5565_v3  ;;  %5691 = vmatpush1.msra.mxu1 %v5567_v24 }
 0xf5f   :  { %5615 = vmatprep.subr.mxu0 %v5562_v8  ;;  %5692 = vmatprep.subr.mxu1 %v5564_v0 }
 0xf60   :  { %5616 = vmatpush1.msra.mxu0 %v5561_v40  ;;  %5693 = vmatpush1.msra.mxu1 %v5563_v12 }
 0xf61   :  { %5617 = vmatprep.subr.mxu0 %v5558_v20  ;;  %5694 = vmatprep.subr.mxu1 %v5560_v62 }
 0xf62   :  { %5618 = vmatpush1.msra.mxu0 %v5557_v7  ;;  %5695 = vmatpush1.msra.mxu1 %v5559_v52 }
 0xf63   :  { %5619 = vmatprep.subr.mxu0 %v5554_v10  ;;  %5696 = vmatprep.subr.mxu1 %v5556_v28 }
 0xf64   :  { %5620 = vmatpush1.msra.mxu0 %v5553_v58  ;;  %5697 = vmatpush1.msra.mxu1 %v5555_v50 }
 0xf65   :  { %5621 = vmatprep.subr.mxu0 %v5550_v42  ;;  %5698 = vmatprep.subr.mxu1 %v5552_v34 }
 0xf66   :  { %5622 = vmatpush1.msra.mxu0 %v5549_v30  ;;  %5699 = vmatpush1.msra.mxu1 %v5551_v60 }
 0xf67   :  { %5623 = vmatprep.subr.mxu0 %v5546_v38  ;;  %5700 = vmatprep.subr.mxu1 %v5548_v41 }
 0xf68   :  { %5624 = vmatpush1.msra.mxu0 %v5545_v54  ;;  %5701 = vmatpush1.msra.mxu1 %v5547_v9 }
 0xf69   :  { %5951 = vmatmul.mubr.msk.f32.vlgmr.msra.gmra.mxu0 %vm14435_vm14, %v2328_v11  ;;  %5953 = vmatmul.mubr.msk.f32.vlgmr.msra.gmra.mxu1 %vm14436_vm6, %v2328_v11 }
 0xf6a   :  { %5663 = vmatprep.mubr.f32.mxu0 %v14428_v33  ;;  %5740 = vmatprep.mubr.f32.mxu1 %v14428_v33 }
 0xf6d   :  { %5952 = vmatmul.mubr.msk.f32.gmra.mxu0 %vm14437_vm7, %v2329_v1  ;;  %5954 = vmatmul.mubr.msk.f32.gmra.mxu1 %vm14438_vm8, %v2329_v1 }
0x1029   :  { %v5659_v2 = vpop.f32.mrf.mxu0  ;;  %v5736_v13 = vpop.f32.mrf.mxu1 }
0x102a   :  { %v5660_v37 = vadd.f32 %v5659_v2, %v5580_v59  ;;  %v5737_v21 = vadd.f32 %v5736_v13, %v5580_v59 }
0x102b   :  { %v5661_v51 = vpop.f32.mrf.mxu0  ;;  %v5738_v14 = vpop.f32.mrf.mxu1 }
0x102c   :  { %5747 = vst [vmem:[%s14439_s27] sm:$0xff] %v5660_v37  ;;  %v5662_v6 = vadd.f32 %v5661_v51, %v5580_v59  ;;  %5749 = vst [vmem:[%s14439_s27 + $0x10] sm:$0xff] %v5737_v21  ;;  %v5739_v33 = vadd.f32 %v5738_v14, %v5580_v59 }
0x102d   :  { %v5665_v39 = vpop.f32.mrf.mxu0  ;;  %v5742_v25 = vpop.f32.mrf.mxu1 }
0x102e   :  { %5748 = vst [vmem:[%s14439_s27 + $0x8] sm:$0xff] %v5662_v6  ;;  %v5666_v61 = vadd.f32 %v5665_v39, %v5585_v31  ;;  %5750 = vst [vmem:[%s14439_s27 + $0x18] sm:$0xff] %v5739_v33  ;;  %v5743_v63 = vadd.f32 %v5742_v25, %v5585_v31 }
0x102f   :  { %v5667_v35 = vpop.f32.mrf.mxu0  ;;  %v5744_v49 = vpop.f32.mrf.mxu1 }
0x1030   :  { %5751 = vst [vmem:[%s14439_s27 + $0x20] sm:$0xff] %v5666_v61  ;;  %v5668_v15 = vadd.f32 %v5667_v35, %v5585_v31  ;;  %5753 = vst [vmem:[%s14439_s27 + $0x30] sm:$0xff] %v5743_v63  ;;  %v5745_v48 = vadd.f32 %v5744_v49, %v5585_v31 }
0x1032   :  { %5752 = vst [vmem:[%s14439_s27 + $0x28] sm:$0xff] %v5668_v15  ;;  %5754 = vst [vmem:[%s14439_s27 + $0x38] sm:$0xff] %v5745_v48 }

</bundles_post_ra>
